<compile_context>
chip_gen: v7x
topology: tpu7x:2x2x1
jax: 0.10.0
libtpu: 0.0.40
codegen_flags: <defaults>
</compile_context>

<pallas_src>
import functools

import numpy as np
import jax
import jax.numpy as jnp
from jax.experimental import pallas as pl
from jax.experimental.pallas import tpu as pltpu

MXU_DTYPE = jnp.bfloat16          # MXU operand dtype (accumulation is always f32)
VMEM_LIMIT = 32 * 1024 * 1024     # explicit scoped-VMEM limit, safe on v5e/v6e/v7x

# (stride, taps-per-axis) for the 3 DqnEncoder conv layers (k=8/s=4, k=4/s=2, k=3/s=1)
_CONV_CFG = ((4, 2), (2, 2), (1, 3))


# ----------------------------------------------------------------------------
# Conv kernel: one image per grid step.  Input has already been space-to-depth'd
# so the conv is stride-1 with kp x kp taps; patches are formed in-kernel with
# contiguous static slices and accumulated as kp^2 batched MXU matmuls.
# ----------------------------------------------------------------------------
def _conv_relu_kernel(x_ref, w_ref, b_ref, o_ref, *, kp, ho, wo, cout):
    cin = x_ref.shape[-1]
    acc = jnp.zeros((ho, wo, cout), jnp.float32)
    for ty in range(kp):
        for tx in range(kp):
            t = ty * kp + tx
            patch = x_ref[ty:ty + ho, tx:tx + wo, :].astype(MXU_DTYPE)   # [ho, wo, cin]
            w_t = jnp.broadcast_to(w_ref[t], (ho, cin, cout))            # bf16
            acc = acc + jnp.einsum('hwc,hco->hwo', patch, w_t,
                                   preferred_element_type=jnp.float32)
    y = jnp.maximum(acc + b_ref[...], 0.0)                               # f32 epilogue
    o_ref[...] = y.astype(o_ref.dtype)


def conv2d_relu_s2d(x, w_taps, b, *, kp):
    """Stride-1 conv (+bias+ReLU) over a space-to-depth'd NHWC input.

    x:      [B, Hin, Win, Cin]  f32 activations
    w_taps: [kp*kp, Cin, Cout]  bf16, tap-major, s2d channel order
    b:      [1, 1, Cout]        f32
    """
    B, Hin, Win, Cin = x.shape
    Cout = w_taps.shape[-1]
    Ho, Wo = Hin - kp + 1, Win - kp + 1
    return pl.pallas_call(
        functools.partial(_conv_relu_kernel, kp=kp, ho=Ho, wo=Wo, cout=Cout),
        grid=(B,),
        in_specs=[
            # None == pl.Squeezed(): kernel sees a 3-D per-image ref.
            pl.BlockSpec((None, Hin, Win, Cin), lambda bi: (bi, 0, 0, 0)),
            pl.BlockSpec((kp * kp, Cin, Cout), lambda bi: (0, 0, 0)),   # resident
            pl.BlockSpec((1, 1, Cout), lambda bi: (0, 0, 0)),            # resident
        ],
        out_specs=pl.BlockSpec((None, Ho, Wo, Cout), lambda bi: (bi, 0, 0, 0)),
        out_shape=jax.ShapeDtypeStruct((B, Ho, Wo, Cout), jnp.float32),
        compiler_params=pltpu.CompilerParams(
            dimension_semantics=("parallel",), vmem_limit_bytes=VMEM_LIMIT),
    )(x, w_taps, b)


# ----------------------------------------------------------------------------
# Fused trunk: Linear -> ReLU -> Linear in a single pallas_call (hidden stays in VMEM)
# ----------------------------------------------------------------------------
def _trunk_kernel(x_ref, w1_ref, b1_ref, w2_ref, b2_ref, o_ref):
    x = x_ref[...].astype(MXU_DTYPE)
    h = jnp.dot(x, w1_ref[...], preferred_element_type=jnp.float32) + b1_ref[...]
    h = jnp.maximum(h, 0.0)                                   # f32 epilogue
    q = jnp.dot(h.astype(MXU_DTYPE), w2_ref[...],
                preferred_element_type=jnp.float32) + b2_ref[...]
    o_ref[...] = q.astype(o_ref.dtype)


def trunk(x, w1, b1, w2, b2, *, max_tm=256):
    B, F = x.shape
    feat, A = w1.shape[1], w2.shape[1]
    tm = B if B <= max_tm else (max_tm if B % max_tm == 0 else B)
    return pl.pallas_call(
        _trunk_kernel,
        grid=(B // tm,),
        in_specs=[
            pl.BlockSpec((tm, F), lambda i: (i, 0)),
            pl.BlockSpec((F, feat), lambda i: (0, 0)),
            pl.BlockSpec((1, feat), lambda i: (0, 0)),
            pl.BlockSpec((feat, A), lambda i: (0, 0)),
            pl.BlockSpec((1, A), lambda i: (0, 0)),
        ],
        out_specs=pl.BlockSpec((tm, A), lambda i: (i, 0)),
        out_shape=jax.ShapeDtypeStruct((B, A), jnp.float32),
        compiler_params=pltpu.CompilerParams(
            dimension_semantics=("parallel",), vmem_limit_bytes=VMEM_LIMIT),
    )(x, w1, b1, w2, b2)


# ----------------------------------------------------------------------------
# Wrapper glue (pure XLA data movement) and weight-layout converters
# ----------------------------------------------------------------------------
def _space_to_depth(x, s):
    """NHWC [B,H,W,C] -> [B,H//s,W//s,s*s*C] with (ry, rx, c) channel order."""
    if s == 1:
        return x
    B, H, W, C = x.shape
    x = x.reshape(B, H // s, s, W // s, s, C)
    x = x.transpose(0, 1, 3, 2, 4, 5)
    return x.reshape(B, H // s, W // s, s * s * C)


def _conv_w_to_taps(w_oihw, stride):
    """torch Conv2d weight [Cout, Cin, k, k] -> [taps, stride^2*Cin, Cout] matching
    the space-to-depth'd stride-1 formulation (tap-major, (ry, rx, c) channel order)."""
    Cout, Cin, k, _ = w_oihw.shape
    s = stride
    kp = k // s
    w = w_oihw.transpose(2, 3, 1, 0)              # [kh, kw, Cin, Cout]
    w = w.reshape(kp, s, kp, s, Cin, Cout)        # kh=(ty,ry), kw=(tx,rx)
    w = w.transpose(0, 2, 1, 3, 4, 5)             # [ty, tx, ry, rx, Cin, Cout]
    return w.reshape(kp * kp, s * s * Cin, Cout)


def dqn_cnn_forward(obs, params):
    """obs: [B, 4, 84, 84] NCHW pixels in [0, 255] -> q_values [B, action_shape]."""
    x = obs.astype(jnp.float32).transpose(0, 2, 3, 1)     # NHWC, once at entry
    # obs/255 is folded into the conv1 weights (see pallas_params_from_reference).
    for (stride, kp), w, b in zip(_CONV_CFG, params["conv_w"], params["conv_b"]):
        x = _space_to_depth(x, stride)
        x = conv2d_relu_s2d(x, w, b, kp=kp)
    h = x.reshape(x.shape[0], -1)                         # NHWC flatten (fc1 matches)
    return trunk(h, params["fc1_w"], params["fc1_b"], params["fc2_w"], params["fc2_b"])


# ----------------------------------------------------------------------------
# Deterministic synthetic parameters (torch-style layouts) + Pallas conversion
# ----------------------------------------------------------------------------
def init_reference_params(key, feature_dim, action_shape):
    conv_defs = ((4, 32, 8), (32, 64, 4), (64, 64, 3))    # (Cin, Cout, k)
    keys = jax.random.split(key, 10)

    def dense(k, shape, fan_in):
        return jax.random.normal(k, shape, jnp.float32) / jnp.sqrt(fan_in)

    conv_w = [dense(keys[i], (co, ci, k, k), ci * k * k) for i, (ci, co, k) in enumerate(conv_defs)]
    conv_b = [0.1 * jax.random.normal(keys[3 + i], (co,), jnp.float32)
              for i, (_, co, _) in enumerate(conv_defs)]
    flat = 64 * 7 * 7                                      # 3136 for (4, 84, 84)
    return dict(
        conv_w=conv_w, conv_b=conv_b,
        fc1_w=dense(keys[6], (flat, feature_dim), flat),               # NCHW-flatten order
        fc1_b=0.1 * jax.random.normal(keys[7], (feature_dim,), jnp.float32),
        fc2_w=dense(keys[8], (feature_dim, action_shape), feature_dim),
        fc2_b=0.1 * jax.random.normal(keys[9], (action_shape,), jnp.float32))


def pallas_params_from_reference(ref):
    """One-time weight permutations: s2d tap layout, /255 fold, NHWC-flatten fc1, bf16."""
    conv_w, conv_b = [], []
    for i, (w, b, (stride, _)) in enumerate(zip(ref["conv_w"], ref["conv_b"], _CONV_CFG)):
        if i == 0:
            w = w / 255.0                                  # fold obs/255 into conv1
        conv_w.append(_conv_w_to_taps(w, stride).astype(MXU_DTYPE))
        conv_b.append(b.reshape(1, 1, -1))
    feat = ref["fc1_w"].shape[1]
    fc1_w = (ref["fc1_w"].reshape(64, 7, 7, feat)          # NCHW-flatten -> NHWC-flatten
             .transpose(1, 2, 0, 3).reshape(64 * 7 * 7, feat)).astype(MXU_DTYPE)
    return dict(conv_w=conv_w, conv_b=conv_b,
                fc1_w=fc1_w, fc1_b=ref["fc1_b"].reshape(1, -1),
                fc2_w=ref["fc2_w"].astype(MXU_DTYPE), fc2_b=ref["fc2_b"].reshape(1, -1))


def reference_forward(obs, ref):
    """Pure-XLA reference with torch semantics (NCHW conv stack, NCHW flatten)."""
    x = obs.astype(jnp.float32) / 255.0
    for w, b, (stride, _) in zip(ref["conv_w"], ref["conv_b"], _CONV_CFG):
        x = jax.lax.conv_general_dilated(x, w, (stride, stride), "VALID",
                                         dimension_numbers=("NCHW", "OIHW", "NCHW"))
        x = jnp.maximum(x + b.reshape(1, -1, 1, 1), 0.0)
    h = x.reshape(x.shape[0], -1)
    h = jnp.maximum(h @ ref["fc1_w"] + ref["fc1_b"], 0.0)
    return h @ ref["fc2_w"] + ref["fc2_b"]


# ----------------------------------------------------------------------------
if __name__ == "__main__":
    B = 4
    obs_shape = (4, 84, 84)        # DQNCnn asserts obs_shape == (4, 84, 84)
    feature_dim = 128
    action_shape = 6

    key = jax.random.PRNGKey(0)
    k_obs, k_par = jax.random.split(key)
    obs = jax.random.uniform(k_obs, (B,) + obs_shape, jnp.float32,
                             minval=0.0, maxval=255.0)
    ref_params = init_reference_params(k_par, feature_dim, action_shape)
    params = pallas_params_from_reference(ref_params)

    fwd = jax.jit(dqn_cnn_forward)
    q = jax.block_until_ready(fwd(obs, params))
    assert q.shape == (B, action_shape), q.shape
    assert bool(jnp.all(jnp.isfinite(q))), "non-finite Q values"

    # Numerical check against a pure-XLA f32 reference (bf16 MXU operands -> loose tol).
    q_ref = jax.block_until_ready(reference_forward(obs, ref_params))
    np.testing.assert_allclose(np.asarray(q), np.asarray(q_ref), rtol=5e-2, atol=5e-2)

    print("KERNEL_OK")
</pallas_src>

<mosaic_0001>
module attributes {stable_mosaic.version = 11 : i64} {
  func.func @_conv_relu_kernel(%arg0: i32, %arg1: memref<1x21x21x64xf32, #tpu.memory_space<vmem>>, %arg2: memref<4x64x32xbf16, #tpu.memory_space<vmem>>, %arg3: memref<1x1x32xf32, #tpu.memory_space<vmem>>, %arg4: memref<1x20x20x32xf32, #tpu.memory_space<vmem>>) attributes {dimension_semantics = [#tpu.dimension_semantics<parallel>], iteration_bounds = array<i64: 4>, scalar_prefetch = 0 : i64, scratch_operands = 0 : i64, tpu.core_type = #tpu.core_type<tc>, window_params = [{transform_indices = @transform_0, window_bounds = array<i64: 1, 21, 21, 64>}, {pipeline_mode = #tpu.pipeline_mode<synchronous>, transform_indices = @transform_1, window_bounds = array<i64: 4, 64, 32>}, {pipeline_mode = #tpu.pipeline_mode<synchronous>, transform_indices = @transform_2, window_bounds = array<i64: 1, 1, 32>}, {transform_indices = @transform_3, window_bounds = array<i64: 1, 20, 20, 32>}]} {
    %cst = arith.constant 0.000000e+00 : f32
    %0 = vector.broadcast %cst : f32 to vector<20x20x32xf32>
    %c0 = arith.constant 0 : index
    %c0_0 = arith.constant 0 : index
    %c0_1 = arith.constant 0 : index
    %c0_2 = arith.constant 0 : index
    %1 = vector.load %arg1[%c0, %c0_0, %c0_1, %c0_2] : memref<1x21x21x64xf32, #tpu.memory_space<vmem>>, vector<1x20x20x64xf32>
    %2 = vector.shape_cast %1 : vector<1x20x20x64xf32> to vector<20x20x64xf32>
    %3 = arith.truncf %2 : vector<20x20x64xf32> to vector<20x20x64xbf16>
    %c0_3 = arith.constant 0 : index
    %c0_4 = arith.constant 0 : index
    %c0_5 = arith.constant 0 : index
    %4 = vector.load %arg2[%c0_3, %c0_4, %c0_5] : memref<4x64x32xbf16, #tpu.memory_space<vmem>>, vector<1x64x32xbf16>
    %5 = vector.shape_cast %4 : vector<1x64x32xbf16> to vector<64x32xbf16>
    %6 = vector.shape_cast %5 : vector<64x32xbf16> to vector<1x64x32xbf16>
    %7 = vector.broadcast %6 : vector<1x64x32xbf16> to vector<20x64x32xbf16>
    "tpu.trace_start"() <{level = 10 : i32, message = "hwc,hco->hwo"}> : () -> ()
    %cst_6 = arith.constant dense<0.000000e+00> : vector<20x20x32xf32>
    %8 = tpu.matmul %3, %7, %cst_6 {dimension_numbers = #tpu.dot_dimension_numbers<[2], [1], [1], [2], [0, 0, 0, 1, 1, 2], [0], [0]>} : vector<20x20x64xbf16>, vector<20x64x32xbf16>, vector<20x20x32xf32> -> vector<20x20x32xf32>
    "tpu.trace_stop"() : () -> ()
    %9 = arith.addf %0, %8 : vector<20x20x32xf32>
    %c0_7 = arith.constant 0 : index
    %c0_8 = arith.constant 0 : index
    %c1 = arith.constant 1 : index
    %c0_9 = arith.constant 0 : index
    %10 = vector.load %arg1[%c0_7, %c0_8, %c1, %c0_9] : memref<1x21x21x64xf32, #tpu.memory_space<vmem>>, vector<1x20x20x64xf32>
    %11 = vector.shape_cast %10 : vector<1x20x20x64xf32> to vector<20x20x64xf32>
    %12 = arith.truncf %11 : vector<20x20x64xf32> to vector<20x20x64xbf16>
    %c1_10 = arith.constant 1 : index
    %c0_11 = arith.constant 0 : index
    %c0_12 = arith.constant 0 : index
    %13 = vector.load %arg2[%c1_10, %c0_11, %c0_12] : memref<4x64x32xbf16, #tpu.memory_space<vmem>>, vector<1x64x32xbf16>
    %14 = vector.shape_cast %13 : vector<1x64x32xbf16> to vector<64x32xbf16>
    %15 = vector.shape_cast %14 : vector<64x32xbf16> to vector<1x64x32xbf16>
    %16 = vector.broadcast %15 : vector<1x64x32xbf16> to vector<20x64x32xbf16>
    "tpu.trace_start"() <{level = 10 : i32, message = "hwc,hco->hwo"}> : () -> ()
    %cst_13 = arith.constant dense<0.000000e+00> : vector<20x20x32xf32>
    %17 = tpu.matmul %12, %16, %cst_13 {dimension_numbers = #tpu.dot_dimension_numbers<[2], [1], [1], [2], [0, 0, 0, 1, 1, 2], [0], [0]>} : vector<20x20x64xbf16>, vector<20x64x32xbf16>, vector<20x20x32xf32> -> vector<20x20x32xf32>
    "tpu.trace_stop"() : () -> ()
    %18 = arith.addf %9, %17 : vector<20x20x32xf32>
    %c0_14 = arith.constant 0 : index
    %c1_15 = arith.constant 1 : index
    %c0_16 = arith.constant 0 : index
    %c0_17 = arith.constant 0 : index
    %19 = vector.load %arg1[%c0_14, %c1_15, %c0_16, %c0_17] : memref<1x21x21x64xf32, #tpu.memory_space<vmem>>, vector<1x20x20x64xf32>
    %20 = vector.shape_cast %19 : vector<1x20x20x64xf32> to vector<20x20x64xf32>
    %21 = arith.truncf %20 : vector<20x20x64xf32> to vector<20x20x64xbf16>
    %c2 = arith.constant 2 : index
    %c0_18 = arith.constant 0 : index
    %c0_19 = arith.constant 0 : index
    %22 = vector.load %arg2[%c2, %c0_18, %c0_19] : memref<4x64x32xbf16, #tpu.memory_space<vmem>>, vector<1x64x32xbf16>
    %23 = vector.shape_cast %22 : vector<1x64x32xbf16> to vector<64x32xbf16>
    %24 = vector.shape_cast %23 : vector<64x32xbf16> to vector<1x64x32xbf16>
    %25 = vector.broadcast %24 : vector<1x64x32xbf16> to vector<20x64x32xbf16>
    "tpu.trace_start"() <{level = 10 : i32, message = "hwc,hco->hwo"}> : () -> ()
    %cst_20 = arith.constant dense<0.000000e+00> : vector<20x20x32xf32>
    %26 = tpu.matmul %21, %25, %cst_20 {dimension_numbers = #tpu.dot_dimension_numbers<[2], [1], [1], [2], [0, 0, 0, 1, 1, 2], [0], [0]>} : vector<20x20x64xbf16>, vector<20x64x32xbf16>, vector<20x20x32xf32> -> vector<20x20x32xf32>
    "tpu.trace_stop"() : () -> ()
    %27 = arith.addf %18, %26 : vector<20x20x32xf32>
    %c0_21 = arith.constant 0 : index
    %c1_22 = arith.constant 1 : index
    %c1_23 = arith.constant 1 : index
    %c0_24 = arith.constant 0 : index
    %28 = vector.load %arg1[%c0_21, %c1_22, %c1_23, %c0_24] : memref<1x21x21x64xf32, #tpu.memory_space<vmem>>, vector<1x20x20x64xf32>
    %29 = vector.shape_cast %28 : vector<1x20x20x64xf32> to vector<20x20x64xf32>
    %30 = arith.truncf %29 : vector<20x20x64xf32> to vector<20x20x64xbf16>
    %c3 = arith.constant 3 : index
    %c0_25 = arith.constant 0 : index
    %c0_26 = arith.constant 0 : index
    %31 = vector.load %arg2[%c3, %c0_25, %c0_26] : memref<4x64x32xbf16, #tpu.memory_space<vmem>>, vector<1x64x32xbf16>
    %32 = vector.shape_cast %31 : vector<1x64x32xbf16> to vector<64x32xbf16>
    %33 = vector.shape_cast %32 : vector<64x32xbf16> to vector<1x64x32xbf16>
    %34 = vector.broadcast %33 : vector<1x64x32xbf16> to vector<20x64x32xbf16>
    "tpu.trace_start"() <{level = 10 : i32, message = "hwc,hco->hwo"}> : () -> ()
    %cst_27 = arith.constant dense<0.000000e+00> : vector<20x20x32xf32>
    %35 = tpu.matmul %30, %34, %cst_27 {dimension_numbers = #tpu.dot_dimension_numbers<[2], [1], [1], [2], [0, 0, 0, 1, 1, 2], [0], [0]>} : vector<20x20x64xbf16>, vector<20x64x32xbf16>, vector<20x20x32xf32> -> vector<20x20x32xf32>
    "tpu.trace_stop"() : () -> ()
    %36 = arith.addf %27, %35 : vector<20x20x32xf32>
    %c0_28 = arith.constant 0 : index
    %c0_29 = arith.constant 0 : index
    %c0_30 = arith.constant 0 : index
    %37 = vector.load %arg3[%c0_28, %c0_29, %c0_30] : memref<1x1x32xf32, #tpu.memory_space<vmem>>, vector<1x1x32xf32>
    %38 = vector.broadcast %37 : vector<1x1x32xf32> to vector<20x20x32xf32>
    %39 = arith.addf %36, %38 : vector<20x20x32xf32>
    %cst_31 = arith.constant 0.000000e+00 : f32
    %40 = vector.broadcast %cst_31 : f32 to vector<20x20x32xf32>
    %41 = arith.maximumf %39, %40 : vector<20x20x32xf32>
    %c0_32 = arith.constant 0 : index
    %c0_33 = arith.constant 0 : index
    %c0_34 = arith.constant 0 : index
    %c0_35 = arith.constant 0 : index
    %42 = vector.load %arg4[%c0_32, %c0_33, %c0_34, %c0_35] : memref<1x20x20x32xf32, #tpu.memory_space<vmem>>, vector<1x20x20x32xf32>
    %43 = vector.shape_cast %42 : vector<1x20x20x32xf32> to vector<20x20x32xf32>
    %44 = vector.shape_cast %41 : vector<20x20x32xf32> to vector<1x20x20x32xf32>
    tpu.vector_store %arg4[%c0_32, %c0_33, %c0_34, %c0_35], %44 {strides = array<i32>} : memref<1x20x20x32xf32, #tpu.memory_space<vmem>>, vector<1x20x20x32xf32>,
    return
  }
  func.func @transform_0(%arg0: i32) -> (i32, i32, i32, i32) {
    %c0_i32 = arith.constant 0 : i32
    %c0_i32_0 = arith.constant 0 : i32
    %c0_i32_1 = arith.constant 0 : i32
    %c0_i32_2 = arith.constant 0 : i32
    return %arg0, %c0_i32, %c0_i32_0, %c0_i32_1 : i32, i32, i32, i32
  }
  func.func @transform_1(%arg0: i32) -> (i32, i32, i32) {
    %c0_i32 = arith.constant 0 : i32
    %c0_i32_0 = arith.constant 0 : i32
    %c0_i32_1 = arith.constant 0 : i32
    %c0_i32_2 = arith.constant 0 : i32
    return %c0_i32, %c0_i32_0, %c0_i32_1 : i32, i32, i32
  }
  func.func @transform_2(%arg0: i32) -> (i32, i32, i32) {
    %c0_i32 = arith.constant 0 : i32
    %c0_i32_0 = arith.constant 0 : i32
    %c0_i32_1 = arith.constant 0 : i32
    %c0_i32_2 = arith.constant 0 : i32
    return %c0_i32, %c0_i32_0, %c0_i32_1 : i32, i32, i32
  }
  func.func @transform_3(%arg0: i32) -> (i32, i32, i32, i32) {
    %c0_i32 = arith.constant 0 : i32
    %c0_i32_0 = arith.constant 0 : i32
    %c0_i32_1 = arith.constant 0 : i32
    %c0_i32_2 = arith.constant 0 : i32
    return %arg0, %c0_i32, %c0_i32_0, %c0_i32_1 : i32, i32, i32, i32
  }
}

module attributes {stable_mosaic.version = 11 : i64} {
  func.func @_conv_relu_kernel(%arg0: i32, %arg1: memref<1x10x10x128xf32, #tpu.memory_space<vmem>>, %arg2: memref<4x128x64xbf16, #tpu.memory_space<vmem>>, %arg3: memref<1x1x64xf32, #tpu.memory_space<vmem>>, %arg4: memref<1x9x9x64xf32, #tpu.memory_space<vmem>>) attributes {dimension_semantics = [#tpu.dimension_semantics<parallel>], iteration_bounds = array<i64: 4>, scalar_prefetch = 0 : i64, scratch_operands = 0 : i64, tpu.core_type = #tpu.core_type<tc>, window_params = [{transform_indices = @transform_0, window_bounds = array<i64: 1, 10, 10, 128>}, {pipeline_mode = #tpu.pipeline_mode<synchronous>, transform_indices = @transform_1, window_bounds = array<i64: 4, 128, 64>}, {pipeline_mode = #tpu.pipeline_mode<synchronous>, transform_indices = @transform_2, window_bounds = array<i64: 1, 1, 64>}, {transform_indices = @transform_3, window_bounds = array<i64: 1, 9, 9, 64>}]} {
    %cst = arith.constant 0.000000e+00 : f32
    %0 = vector.broadcast %cst : f32 to vector<9x9x64xf32>
    %c0 = arith.constant 0 : index
    %c0_0 = arith.constant 0 : index
    %c0_1 = arith.constant 0 : index
    %c0_2 = arith.constant 0 : index
    %1 = vector.load %arg1[%c0, %c0_0, %c0_1, %c0_2] : memref<1x10x10x128xf32, #tpu.memory_space<vmem>>, vector<1x9x9x128xf32>
    %2 = vector.shape_cast %1 : vector<1x9x9x128xf32> to vector<9x9x128xf32>
    %3 = arith.truncf %2 : vector<9x9x128xf32> to vector<9x9x128xbf16>
    %c0_3 = arith.constant 0 : index
    %c0_4 = arith.constant 0 : index
    %c0_5 = arith.constant 0 : index
    %4 = vector.load %arg2[%c0_3, %c0_4, %c0_5] : memref<4x128x64xbf16, #tpu.memory_space<vmem>>, vector<1x128x64xbf16>
    %5 = vector.shape_cast %4 : vector<1x128x64xbf16> to vector<128x64xbf16>
    %6 = vector.shape_cast %5 : vector<128x64xbf16> to vector<1x128x64xbf16>
    %7 = vector.broadcast %6 : vector<1x128x64xbf16> to vector<9x128x64xbf16>
    "tpu.trace_start"() <{level = 10 : i32, message = "hwc,hco->hwo"}> : () -> ()
    %cst_6 = arith.constant dense<0.000000e+00> : vector<9x9x64xf32>
    %8 = tpu.matmul %3, %7, %cst_6 {dimension_numbers = #tpu.dot_dimension_numbers<[2], [1], [1], [2], [0, 0, 0, 1, 1, 2], [0], [0]>} : vector<9x9x128xbf16>, vector<9x128x64xbf16>, vector<9x9x64xf32> -> vector<9x9x64xf32>
    "tpu.trace_stop"() : () -> ()
    %9 = arith.addf %0, %8 : vector<9x9x64xf32>
    %c0_7 = arith.constant 0 : index
    %c0_8 = arith.constant 0 : index
    %c1 = arith.constant 1 : index
    %c0_9 = arith.constant 0 : index
    %10 = vector.load %arg1[%c0_7, %c0_8, %c1, %c0_9] : memref<1x10x10x128xf32, #tpu.memory_space<vmem>>, vector<1x9x9x128xf32>
    %11 = vector.shape_cast %10 : vector<1x9x9x128xf32> to vector<9x9x128xf32>
    %12 = arith.truncf %11 : vector<9x9x128xf32> to vector<9x9x128xbf16>
    %c1_10 = arith.constant 1 : index
    %c0_11 = arith.constant 0 : index
    %c0_12 = arith.constant 0 : index
    %13 = vector.load %arg2[%c1_10, %c0_11, %c0_12] : memref<4x128x64xbf16, #tpu.memory_space<vmem>>, vector<1x128x64xbf16>
    %14 = vector.shape_cast %13 : vector<1x128x64xbf16> to vector<128x64xbf16>
    %15 = vector.shape_cast %14 : vector<128x64xbf16> to vector<1x128x64xbf16>
    %16 = vector.broadcast %15 : vector<1x128x64xbf16> to vector<9x128x64xbf16>
    "tpu.trace_start"() <{level = 10 : i32, message = "hwc,hco->hwo"}> : () -> ()
    %cst_13 = arith.constant dense<0.000000e+00> : vector<9x9x64xf32>
    %17 = tpu.matmul %12, %16, %cst_13 {dimension_numbers = #tpu.dot_dimension_numbers<[2], [1], [1], [2], [0, 0, 0, 1, 1, 2], [0], [0]>} : vector<9x9x128xbf16>, vector<9x128x64xbf16>, vector<9x9x64xf32> -> vector<9x9x64xf32>
    "tpu.trace_stop"() : () -> ()
    %18 = arith.addf %9, %17 : vector<9x9x64xf32>
    %c0_14 = arith.constant 0 : index
    %c1_15 = arith.constant 1 : index
    %c0_16 = arith.constant 0 : index
    %c0_17 = arith.constant 0 : index
    %19 = vector.load %arg1[%c0_14, %c1_15, %c0_16, %c0_17] : memref<1x10x10x128xf32, #tpu.memory_space<vmem>>, vector<1x9x9x128xf32>
    %20 = vector.shape_cast %19 : vector<1x9x9x128xf32> to vector<9x9x128xf32>
    %21 = arith.truncf %20 : vector<9x9x128xf32> to vector<9x9x128xbf16>
    %c2 = arith.constant 2 : index
    %c0_18 = arith.constant 0 : index
    %c0_19 = arith.constant 0 : index
    %22 = vector.load %arg2[%c2, %c0_18, %c0_19] : memref<4x128x64xbf16, #tpu.memory_space<vmem>>, vector<1x128x64xbf16>
    %23 = vector.shape_cast %22 : vector<1x128x64xbf16> to vector<128x64xbf16>
    %24 = vector.shape_cast %23 : vector<128x64xbf16> to vector<1x128x64xbf16>
    %25 = vector.broadcast %24 : vector<1x128x64xbf16> to vector<9x128x64xbf16>
    "tpu.trace_start"() <{level = 10 : i32, message = "hwc,hco->hwo"}> : () -> ()
    %cst_20 = arith.constant dense<0.000000e+00> : vector<9x9x64xf32>
    %26 = tpu.matmul %21, %25, %cst_20 {dimension_numbers = #tpu.dot_dimension_numbers<[2], [1], [1], [2], [0, 0, 0, 1, 1, 2], [0], [0]>} : vector<9x9x128xbf16>, vector<9x128x64xbf16>, vector<9x9x64xf32> -> vector<9x9x64xf32>
    "tpu.trace_stop"() : () -> ()
    %27 = arith.addf %18, %26 : vector<9x9x64xf32>
    %c0_21 = arith.constant 0 : index
    %c1_22 = arith.constant 1 : index
    %c1_23 = arith.constant 1 : index
    %c0_24 = arith.constant 0 : index
    %28 = vector.load %arg1[%c0_21, %c1_22, %c1_23, %c0_24] : memref<1x10x10x128xf32, #tpu.memory_space<vmem>>, vector<1x9x9x128xf32>
    %29 = vector.shape_cast %28 : vector<1x9x9x128xf32> to vector<9x9x128xf32>
    %30 = arith.truncf %29 : vector<9x9x128xf32> to vector<9x9x128xbf16>
    %c3 = arith.constant 3 : index
    %c0_25 = arith.constant 0 : index
    %c0_26 = arith.constant 0 : index
    %31 = vector.load %arg2[%c3, %c0_25, %c0_26] : memref<4x128x64xbf16, #tpu.memory_space<vmem>>, vector<1x128x64xbf16>
    %32 = vector.shape_cast %31 : vector<1x128x64xbf16> to vector<128x64xbf16>
    %33 = vector.shape_cast %32 : vector<128x64xbf16> to vector<1x128x64xbf16>
    %34 = vector.broadcast %33 : vector<1x128x64xbf16> to vector<9x128x64xbf16>
    "tpu.trace_start"() <{level = 10 : i32, message = "hwc,hco->hwo"}> : () -> ()
    %cst_27 = arith.constant dense<0.000000e+00> : vector<9x9x64xf32>
    %35 = tpu.matmul %30, %34, %cst_27 {dimension_numbers = #tpu.dot_dimension_numbers<[2], [1], [1], [2], [0, 0, 0, 1, 1, 2], [0], [0]>} : vector<9x9x128xbf16>, vector<9x128x64xbf16>, vector<9x9x64xf32> -> vector<9x9x64xf32>
    "tpu.trace_stop"() : () -> ()
    %36 = arith.addf %27, %35 : vector<9x9x64xf32>
    %c0_28 = arith.constant 0 : index
    %c0_29 = arith.constant 0 : index
    %c0_30 = arith.constant 0 : index
    %37 = vector.load %arg3[%c0_28, %c0_29, %c0_30] : memref<1x1x64xf32, #tpu.memory_space<vmem>>, vector<1x1x64xf32>
    %38 = vector.broadcast %37 : vector<1x1x64xf32> to vector<9x9x64xf32>
    %39 = arith.addf %36, %38 : vector<9x9x64xf32>
    %cst_31 = arith.constant 0.000000e+00 : f32
    %40 = vector.broadcast %cst_31 : f32 to vector<9x9x64xf32>
    %41 = arith.maximumf %39, %40 : vector<9x9x64xf32>
    %c0_32 = arith.constant 0 : index
    %c0_33 = arith.constant 0 : index
    %c0_34 = arith.constant 0 : index
    %c0_35 = arith.constant 0 : index
    %42 = vector.load %arg4[%c0_32, %c0_33, %c0_34, %c0_35] : memref<1x9x9x64xf32, #tpu.memory_space<vmem>>, vector<1x9x9x64xf32>
    %43 = vector.shape_cast %42 : vector<1x9x9x64xf32> to vector<9x9x64xf32>
    %44 = vector.shape_cast %41 : vector<9x9x64xf32> to vector<1x9x9x64xf32>
    tpu.vector_store %arg4[%c0_32, %c0_33, %c0_34, %c0_35], %44 {strides = array<i32>} : memref<1x9x9x64xf32, #tpu.memory_space<vmem>>, vector<1x9x9x64xf32>,
    return
  }
  func.func @transform_0(%arg0: i32) -> (i32, i32, i32, i32) {
    %c0_i32 = arith.constant 0 : i32
    %c0_i32_0 = arith.constant 0 : i32
    %c0_i32_1 = arith.constant 0 : i32
    %c0_i32_2 = arith.constant 0 : i32
    return %arg0, %c0_i32, %c0_i32_0, %c0_i32_1 : i32, i32, i32, i32
  }
  func.func @transform_1(%arg0: i32) -> (i32, i32, i32) {
    %c0_i32 = arith.constant 0 : i32
    %c0_i32_0 = arith.constant 0 : i32
    %c0_i32_1 = arith.constant 0 : i32
    %c0_i32_2 = arith.constant 0 : i32
    return %c0_i32, %c0_i32_0, %c0_i32_1 : i32, i32, i32
  }
  func.func @transform_2(%arg0: i32) -> (i32, i32, i32) {
    %c0_i32 = arith.constant 0 : i32
    %c0_i32_0 = arith.constant 0 : i32
    %c0_i32_1 = arith.constant 0 : i32
    %c0_i32_2 = arith.constant 0 : i32
    return %c0_i32, %c0_i32_0, %c0_i32_1 : i32, i32, i32
  }
  func.func @transform_3(%arg0: i32) -> (i32, i32, i32, i32) {
    %c0_i32 = arith.constant 0 : i32
    %c0_i32_0 = arith.constant 0 : i32
    %c0_i32_1 = arith.constant 0 : i32
    %c0_i32_2 = arith.constant 0 : i32
    return %arg0, %c0_i32, %c0_i32_0, %c0_i32_1 : i32, i32, i32, i32
  }
}

module attributes {stable_mosaic.version = 11 : i64} {
  func.func @_conv_relu_kernel(%arg0: i32, %arg1: memref<1x9x9x64xf32, #tpu.memory_space<vmem>>, %arg2: memref<9x64x64xbf16, #tpu.memory_space<vmem>>, %arg3: memref<1x1x64xf32, #tpu.memory_space<vmem>>, %arg4: memref<1x7x7x64xf32, #tpu.memory_space<vmem>>) attributes {dimension_semantics = [#tpu.dimension_semantics<parallel>], iteration_bounds = array<i64: 4>, scalar_prefetch = 0 : i64, scratch_operands = 0 : i64, tpu.core_type = #tpu.core_type<tc>, window_params = [{transform_indices = @transform_0, window_bounds = array<i64: 1, 9, 9, 64>}, {pipeline_mode = #tpu.pipeline_mode<synchronous>, transform_indices = @transform_1, window_bounds = array<i64: 9, 64, 64>}, {pipeline_mode = #tpu.pipeline_mode<synchronous>, transform_indices = @transform_2, window_bounds = array<i64: 1, 1, 64>}, {transform_indices = @transform_3, window_bounds = array<i64: 1, 7, 7, 64>}]} {
    %cst = arith.constant 0.000000e+00 : f32
    %0 = vector.broadcast %cst : f32 to vector<7x7x64xf32>
    %c0 = arith.constant 0 : index
    %c0_0 = arith.constant 0 : index
    %c0_1 = arith.constant 0 : index
    %c0_2 = arith.constant 0 : index
    %1 = vector.load %arg1[%c0, %c0_0, %c0_1, %c0_2] : memref<1x9x9x64xf32, #tpu.memory_space<vmem>>, vector<1x7x7x64xf32>
    %2 = vector.shape_cast %1 : vector<1x7x7x64xf32> to vector<7x7x64xf32>
    %3 = arith.truncf %2 : vector<7x7x64xf32> to vector<7x7x64xbf16>
    %c0_3 = arith.constant 0 : index
    %c0_4 = arith.constant 0 : index
    %c0_5 = arith.constant 0 : index
    %4 = vector.load %arg2[%c0_3, %c0_4, %c0_5] : memref<9x64x64xbf16, #tpu.memory_space<vmem>>, vector<1x64x64xbf16>
    %5 = vector.shape_cast %4 : vector<1x64x64xbf16> to vector<64x64xbf16>
    %6 = vector.shape_cast %5 : vector<64x64xbf16> to vector<1x64x64xbf16>
    %7 = vector.broadcast %6 : vector<1x64x64xbf16> to vector<7x64x64xbf16>
    "tpu.trace_start"() <{level = 10 : i32, message = "hwc,hco->hwo"}> : () -> ()
    %cst_6 = arith.constant dense<0.000000e+00> : vector<7x7x64xf32>
    %8 = tpu.matmul %3, %7, %cst_6 {dimension_numbers = #tpu.dot_dimension_numbers<[2], [1], [1], [2], [0, 0, 0, 1, 1, 2], [0], [0]>} : vector<7x7x64xbf16>, vector<7x64x64xbf16>, vector<7x7x64xf32> -> vector<7x7x64xf32>
    "tpu.trace_stop"() : () -> ()
    %9 = arith.addf %0, %8 : vector<7x7x64xf32>
    %c0_7 = arith.constant 0 : index
    %c0_8 = arith.constant 0 : index
    %c1 = arith.constant 1 : index
    %c0_9 = arith.constant 0 : index
    %10 = vector.load %arg1[%c0_7, %c0_8, %c1, %c0_9] : memref<1x9x9x64xf32, #tpu.memory_space<vmem>>, vector<1x7x7x64xf32>
    %11 = vector.shape_cast %10 : vector<1x7x7x64xf32> to vector<7x7x64xf32>
    %12 = arith.truncf %11 : vector<7x7x64xf32> to vector<7x7x64xbf16>
    %c1_10 = arith.constant 1 : index
    %c0_11 = arith.constant 0 : index
    %c0_12 = arith.constant 0 : index
    %13 = vector.load %arg2[%c1_10, %c0_11, %c0_12] : memref<9x64x64xbf16, #tpu.memory_space<vmem>>, vector<1x64x64xbf16>
    %14 = vector.shape_cast %13 : vector<1x64x64xbf16> to vector<64x64xbf16>
    %15 = vector.shape_cast %14 : vector<64x64xbf16> to vector<1x64x64xbf16>
    %16 = vector.broadcast %15 : vector<1x64x64xbf16> to vector<7x64x64xbf16>
    "tpu.trace_start"() <{level = 10 : i32, message = "hwc,hco->hwo"}> : () -> ()
    %cst_13 = arith.constant dense<0.000000e+00> : vector<7x7x64xf32>
    %17 = tpu.matmul %12, %16, %cst_13 {dimension_numbers = #tpu.dot_dimension_numbers<[2], [1], [1], [2], [0, 0, 0, 1, 1, 2], [0], [0]>} : vector<7x7x64xbf16>, vector<7x64x64xbf16>, vector<7x7x64xf32> -> vector<7x7x64xf32>
    "tpu.trace_stop"() : () -> ()
    %18 = arith.addf %9, %17 : vector<7x7x64xf32>
    %c0_14 = arith.constant 0 : index
    %c0_15 = arith.constant 0 : index
    %c2 = arith.constant 2 : index
    %c0_16 = arith.constant 0 : index
    %19 = vector.load %arg1[%c0_14, %c0_15, %c2, %c0_16] : memref<1x9x9x64xf32, #tpu.memory_space<vmem>>, vector<1x7x7x64xf32>
    %20 = vector.shape_cast %19 : vector<1x7x7x64xf32> to vector<7x7x64xf32>
    %21 = arith.truncf %20 : vector<7x7x64xf32> to vector<7x7x64xbf16>
    %c2_17 = arith.constant 2 : index
    %c0_18 = arith.constant 0 : index
    %c0_19 = arith.constant 0 : index
    %22 = vector.load %arg2[%c2_17, %c0_18, %c0_19] : memref<9x64x64xbf16, #tpu.memory_space<vmem>>, vector<1x64x64xbf16>
    %23 = vector.shape_cast %22 : vector<1x64x64xbf16> to vector<64x64xbf16>
    %24 = vector.shape_cast %23 : vector<64x64xbf16> to vector<1x64x64xbf16>
    %25 = vector.broadcast %24 : vector<1x64x64xbf16> to vector<7x64x64xbf16>
    "tpu.trace_start"() <{level = 10 : i32, message = "hwc,hco->hwo"}> : () -> ()
    %cst_20 = arith.constant dense<0.000000e+00> : vector<7x7x64xf32>
    %26 = tpu.matmul %21, %25, %cst_20 {dimension_numbers = #tpu.dot_dimension_numbers<[2], [1], [1], [2], [0, 0, 0, 1, 1, 2], [0], [0]>} : vector<7x7x64xbf16>, vector<7x64x64xbf16>, vector<7x7x64xf32> -> vector<7x7x64xf32>
    "tpu.trace_stop"() : () -> ()
    %27 = arith.addf %18, %26 : vector<7x7x64xf32>
    %c0_21 = arith.constant 0 : index
    %c1_22 = arith.constant 1 : index
    %c0_23 = arith.constant 0 : index
    %c0_24 = arith.constant 0 : index
    %28 = vector.load %arg1[%c0_21, %c1_22, %c0_23, %c0_24] : memref<1x9x9x64xf32, #tpu.memory_space<vmem>>, vector<1x7x7x64xf32>
    %29 = vector.shape_cast %28 : vector<1x7x7x64xf32> to vector<7x7x64xf32>
    %30 = arith.truncf %29 : vector<7x7x64xf32> to vector<7x7x64xbf16>
    %c3 = arith.constant 3 : index
    %c0_25 = arith.constant 0 : index
    %c0_26 = arith.constant 0 : index
    %31 = vector.load %arg2[%c3, %c0_25, %c0_26] : memref<9x64x64xbf16, #tpu.memory_space<vmem>>, vector<1x64x64xbf16>
    %32 = vector.shape_cast %31 : vector<1x64x64xbf16> to vector<64x64xbf16>
    %33 = vector.shape_cast %32 : vector<64x64xbf16> to vector<1x64x64xbf16>
    %34 = vector.broadcast %33 : vector<1x64x64xbf16> to vector<7x64x64xbf16>
    "tpu.trace_start"() <{level = 10 : i32, message = "hwc,hco->hwo"}> : () -> ()
    %cst_27 = arith.constant dense<0.000000e+00> : vector<7x7x64xf32>
    %35 = tpu.matmul %30, %34, %cst_27 {dimension_numbers = #tpu.dot_dimension_numbers<[2], [1], [1], [2], [0, 0, 0, 1, 1, 2], [0], [0]>} : vector<7x7x64xbf16>, vector<7x64x64xbf16>, vector<7x7x64xf32> -> vector<7x7x64xf32>
    "tpu.trace_stop"() : () -> ()
    %36 = arith.addf %27, %35 : vector<7x7x64xf32>
    %c0_28 = arith.constant 0 : index
    %c1_29 = arith.constant 1 : index
    %c1_30 = arith.constant 1 : index
    %c0_31 = arith.constant 0 : index
    %37 = vector.load %arg1[%c0_28, %c1_29, %c1_30, %c0_31] : memref<1x9x9x64xf32, #tpu.memory_space<vmem>>, vector<1x7x7x64xf32>
    %38 = vector.shape_cast %37 : vector<1x7x7x64xf32> to vector<7x7x64xf32>
    %39 = arith.truncf %38 : vector<7x7x64xf32> to vector<7x7x64xbf16>
    %c4 = arith.constant 4 : index
    %c0_32 = arith.constant 0 : index
    %c0_33 = arith.constant 0 : index
    %40 = vector.load %arg2[%c4, %c0_32, %c0_33] : memref<9x64x64xbf16, #tpu.memory_space<vmem>>, vector<1x64x64xbf16>
    %41 = vector.shape_cast %40 : vector<1x64x64xbf16> to vector<64x64xbf16>
    %42 = vector.shape_cast %41 : vector<64x64xbf16> to vector<1x64x64xbf16>
    %43 = vector.broadcast %42 : vector<1x64x64xbf16> to vector<7x64x64xbf16>
    "tpu.trace_start"() <{level = 10 : i32, message = "hwc,hco->hwo"}> : () -> ()
    %cst_34 = arith.constant dense<0.000000e+00> : vector<7x7x64xf32>
    %44 = tpu.matmul %39, %43, %cst_34 {dimension_numbers = #tpu.dot_dimension_numbers<[2], [1], [1], [2], [0, 0, 0, 1, 1, 2], [0], [0]>} : vector<7x7x64xbf16>, vector<7x64x64xbf16>, vector<7x7x64xf32> -> vector<7x7x64xf32>
    "tpu.trace_stop"() : () -> ()
    %45 = arith.addf %36, %44 : vector<7x7x64xf32>
    %c0_35 = arith.constant 0 : index
    %c1_36 = arith.constant 1 : index
    %c2_37 = arith.constant 2 : index
    %c0_38 = arith.constant 0 : index
    %46 = vector.load %arg1[%c0_35, %c1_36, %c2_37, %c0_38] : memref<1x9x9x64xf32, #tpu.memory_space<vmem>>, vector<1x7x7x64xf32>
    %47 = vector.shape_cast %46 : vector<1x7x7x64xf32> to vector<7x7x64xf32>
    %48 = arith.truncf %47 : vector<7x7x64xf32> to vector<7x7x64xbf16>
    %c5 = arith.constant 5 : index
    %c0_39 = arith.constant 0 : index
    %c0_40 = arith.constant 0 : index
    %49 = vector.load %arg2[%c5, %c0_39, %c0_40] : memref<9x64x64xbf16, #tpu.memory_space<vmem>>, vector<1x64x64xbf16>
    %50 = vector.shape_cast %49 : vector<1x64x64xbf16> to vector<64x64xbf16>
    %51 = vector.shape_cast %50 : vector<64x64xbf16> to vector<1x64x64xbf16>
    %52 = vector.broadcast %51 : vector<1x64x64xbf16> to vector<7x64x64xbf16>
    "tpu.trace_start"() <{level = 10 : i32, message = "hwc,hco->hwo"}> : () -> ()
    %cst_41 = arith.constant dense<0.000000e+00> : vector<7x7x64xf32>
    %53 = tpu.matmul %48, %52, %cst_41 {dimension_numbers = #tpu.dot_dimension_numbers<[2], [1], [1], [2], [0, 0, 0, 1, 1, 2], [0], [0]>} : vector<7x7x64xbf16>, vector<7x64x64xbf16>, vector<7x7x64xf32> -> vector<7x7x64xf32>
    "tpu.trace_stop"() : () -> ()
    %54 = arith.addf %45, %53 : vector<7x7x64xf32>
    %c0_42 = arith.constant 0 : index
    %c2_43 = arith.constant 2 : index
    %c0_44 = arith.constant 0 : index
    %c0_45 = arith.constant 0 : index
    %55 = vector.load %arg1[%c0_42, %c2_43, %c0_44, %c0_45] : memref<1x9x9x64xf32, #tpu.memory_space<vmem>>, vector<1x7x7x64xf32>
    %56 = vector.shape_cast %55 : vector<1x7x7x64xf32> to vector<7x7x64xf32>
    %57 = arith.truncf %56 : vector<7x7x64xf32> to vector<7x7x64xbf16>
    %c6 = arith.constant 6 : index
    %c0_46 = arith.constant 0 : index
    %c0_47 = arith.constant 0 : index
    %58 = vector.load %arg2[%c6, %c0_46, %c0_47] : memref<9x64x64xbf16, #tpu.memory_space<vmem>>, vector<1x64x64xbf16>
    %59 = vector.shape_cast %58 : vector<1x64x64xbf16> to vector<64x64xbf16>
    %60 = vector.shape_cast %59 : vector<64x64xbf16> to vector<1x64x64xbf16>
    %61 = vector.broadcast %60 : vector<1x64x64xbf16> to vector<7x64x64xbf16>
    "tpu.trace_start"() <{level = 10 : i32, message = "hwc,hco->hwo"}> : () -> ()
    %cst_48 = arith.constant dense<0.000000e+00> : vector<7x7x64xf32>
    %62 = tpu.matmul %57, %61, %cst_48 {dimension_numbers = #tpu.dot_dimension_numbers<[2], [1], [1], [2], [0, 0, 0, 1, 1, 2], [0], [0]>} : vector<7x7x64xbf16>, vector<7x64x64xbf16>, vector<7x7x64xf32> -> vector<7x7x64xf32>
    "tpu.trace_stop"() : () -> ()
    %63 = arith.addf %54, %62 : vector<7x7x64xf32>
    %c0_49 = arith.constant 0 : index
    %c2_50 = arith.constant 2 : index
    %c1_51 = arith.constant 1 : index
    %c0_52 = arith.constant 0 : index
    %64 = vector.load %arg1[%c0_49, %c2_50, %c1_51, %c0_52] : memref<1x9x9x64xf32, #tpu.memory_space<vmem>>, vector<1x7x7x64xf32>
    %65 = vector.shape_cast %64 : vector<1x7x7x64xf32> to vector<7x7x64xf32>
    %66 = arith.truncf %65 : vector<7x7x64xf32> to vector<7x7x64xbf16>
    %c7 = arith.constant 7 : index
    %c0_53 = arith.constant 0 : index
    %c0_54 = arith.constant 0 : index
    %67 = vector.load %arg2[%c7, %c0_53, %c0_54] : memref<9x64x64xbf16, #tpu.memory_space<vmem>>, vector<1x64x64xbf16>
    %68 = vector.shape_cast %67 : vector<1x64x64xbf16> to vector<64x64xbf16>
    %69 = vector.shape_cast %68 : vector<64x64xbf16> to vector<1x64x64xbf16>
    %70 = vector.broadcast %69 : vector<1x64x64xbf16> to vector<7x64x64xbf16>
    "tpu.trace_start"() <{level = 10 : i32, message = "hwc,hco->hwo"}> : () -> ()
    %cst_55 = arith.constant dense<0.000000e+00> : vector<7x7x64xf32>
    %71 = tpu.matmul %66, %70, %cst_55 {dimension_numbers = #tpu.dot_dimension_numbers<[2], [1], [1], [2], [0, 0, 0, 1, 1, 2], [0], [0]>} : vector<7x7x64xbf16>, vector<7x64x64xbf16>, vector<7x7x64xf32> -> vector<7x7x64xf32>
    "tpu.trace_stop"() : () -> ()
    %72 = arith.addf %63, %71 : vector<7x7x64xf32>
    %c0_56 = arith.constant 0 : index
    %c2_57 = arith.constant 2 : index
    %c2_58 = arith.constant 2 : index
    %c0_59 = arith.constant 0 : index
    %73 = vector.load %arg1[%c0_56, %c2_57, %c2_58, %c0_59] : memref<1x9x9x64xf32, #tpu.memory_space<vmem>>, vector<1x7x7x64xf32>
    %74 = vector.shape_cast %73 : vector<1x7x7x64xf32> to vector<7x7x64xf32>
    %75 = arith.truncf %74 : vector<7x7x64xf32> to vector<7x7x64xbf16>
    %c8 = arith.constant 8 : index
    %c0_60 = arith.constant 0 : index
    %c0_61 = arith.constant 0 : index
    %76 = vector.load %arg2[%c8, %c0_60, %c0_61] : memref<9x64x64xbf16, #tpu.memory_space<vmem>>, vector<1x64x64xbf16>
    %77 = vector.shape_cast %76 : vector<1x64x64xbf16> to vector<64x64xbf16>
    %78 = vector.shape_cast %77 : vector<64x64xbf16> to vector<1x64x64xbf16>
    %79 = vector.broadcast %78 : vector<1x64x64xbf16> to vector<7x64x64xbf16>
    "tpu.trace_start"() <{level = 10 : i32, message = "hwc,hco->hwo"}> : () -> ()
    %cst_62 = arith.constant dense<0.000000e+00> : vector<7x7x64xf32>
    %80 = tpu.matmul %75, %79, %cst_62 {dimension_numbers = #tpu.dot_dimension_numbers<[2], [1], [1], [2], [0, 0, 0, 1, 1, 2], [0], [0]>} : vector<7x7x64xbf16>, vector<7x64x64xbf16>, vector<7x7x64xf32> -> vector<7x7x64xf32>
    "tpu.trace_stop"() : () -> ()
    %81 = arith.addf %72, %80 : vector<7x7x64xf32>
    %c0_63 = arith.constant 0 : index
    %c0_64 = arith.constant 0 : index
    %c0_65 = arith.constant 0 : index
    %82 = vector.load %arg3[%c0_63, %c0_64, %c0_65] : memref<1x1x64xf32, #tpu.memory_space<vmem>>, vector<1x1x64xf32>
    %83 = vector.broadcast %82 : vector<1x1x64xf32> to vector<7x7x64xf32>
    %84 = arith.addf %81, %83 : vector<7x7x64xf32>
    %cst_66 = arith.constant 0.000000e+00 : f32
    %85 = vector.broadcast %cst_66 : f32 to vector<7x7x64xf32>
    %86 = arith.maximumf %84, %85 : vector<7x7x64xf32>
    %c0_67 = arith.constant 0 : index
    %c0_68 = arith.constant 0 : index
    %c0_69 = arith.constant 0 : index
    %c0_70 = arith.constant 0 : index
    %87 = vector.load %arg4[%c0_67, %c0_68, %c0_69, %c0_70] : memref<1x7x7x64xf32, #tpu.memory_space<vmem>>, vector<1x7x7x64xf32>
    %88 = vector.shape_cast %87 : vector<1x7x7x64xf32> to vector<7x7x64xf32>
    %89 = vector.shape_cast %86 : vector<7x7x64xf32> to vector<1x7x7x64xf32>
    tpu.vector_store %arg4[%c0_67, %c0_68, %c0_69, %c0_70], %89 {strides = array<i32>} : memref<1x7x7x64xf32, #tpu.memory_space<vmem>>, vector<1x7x7x64xf32>,
    return
  }
  func.func @transform_0(%arg0: i32) -> (i32, i32, i32, i32) {
    %c0_i32 = arith.constant 0 : i32
    %c0_i32_0 = arith.constant 0 : i32
    %c0_i32_1 = arith.constant 0 : i32
    %c0_i32_2 = arith.constant 0 : i32
    return %arg0, %c0_i32, %c0_i32_0, %c0_i32_1 : i32, i32, i32, i32
  }
  func.func @transform_1(%arg0: i32) -> (i32, i32, i32) {
    %c0_i32 = arith.constant 0 : i32
    %c0_i32_0 = arith.constant 0 : i32
    %c0_i32_1 = arith.constant 0 : i32
    %c0_i32_2 = arith.constant 0 : i32
    return %c0_i32, %c0_i32_0, %c0_i32_1 : i32, i32, i32
  }
  func.func @transform_2(%arg0: i32) -> (i32, i32, i32) {
    %c0_i32 = arith.constant 0 : i32
    %c0_i32_0 = arith.constant 0 : i32
    %c0_i32_1 = arith.constant 0 : i32
    %c0_i32_2 = arith.constant 0 : i32
    return %c0_i32, %c0_i32_0, %c0_i32_1 : i32, i32, i32
  }
  func.func @transform_3(%arg0: i32) -> (i32, i32, i32, i32) {
    %c0_i32 = arith.constant 0 : i32
    %c0_i32_0 = arith.constant 0 : i32
    %c0_i32_1 = arith.constant 0 : i32
    %c0_i32_2 = arith.constant 0 : i32
    return %arg0, %c0_i32, %c0_i32_0, %c0_i32_1 : i32, i32, i32, i32
  }
}

module attributes {stable_mosaic.version = 11 : i64} {
  func.func @_trunk_kernel(%arg0: i32, %arg1: memref<4x3136xf32, #tpu.memory_space<vmem>>, %arg2: memref<3136x128xbf16, #tpu.memory_space<vmem>>, %arg3: memref<1x128xf32, #tpu.memory_space<vmem>>, %arg4: memref<128x6xbf16, #tpu.memory_space<vmem>>, %arg5: memref<1x6xf32, #tpu.memory_space<vmem>>, %arg6: memref<4x6xf32, #tpu.memory_space<vmem>>) attributes {dimension_semantics = [#tpu.dimension_semantics<parallel>], iteration_bounds = array<i64: 1>, scalar_prefetch = 0 : i64, scratch_operands = 0 : i64, tpu.core_type = #tpu.core_type<tc>, window_params = [{transform_indices = @transform_0, window_bounds = array<i64: 4, 3136>}, {pipeline_mode = #tpu.pipeline_mode<synchronous>, transform_indices = @transform_1, window_bounds = array<i64: 3136, 128>}, {pipeline_mode = #tpu.pipeline_mode<synchronous>, transform_indices = @transform_2, window_bounds = array<i64: 1, 128>}, {pipeline_mode = #tpu.pipeline_mode<synchronous>, transform_indices = @transform_3, window_bounds = array<i64: 128, 6>}, {pipeline_mode = #tpu.pipeline_mode<synchronous>, transform_indices = @transform_4, window_bounds = array<i64: 1, 6>}, {transform_indices = @transform_5, window_bounds = array<i64: 4, 6>}]} {
    %c0 = arith.constant 0 : index
    %c0_0 = arith.constant 0 : index
    %0 = vector.load %arg1[%c0, %c0_0] : memref<4x3136xf32, #tpu.memory_space<vmem>>, vector<4x3136xf32>
    %1 = arith.truncf %0 : vector<4x3136xf32> to vector<4x3136xbf16>
    %c0_1 = arith.constant 0 : index
    %c0_2 = arith.constant 0 : index
    %2 = vector.load %arg2[%c0_1, %c0_2] : memref<3136x128xbf16, #tpu.memory_space<vmem>>, vector<3136x128xbf16>
    %cst = arith.constant dense<0.000000e+00> : vector<4x128xf32>
    %3 = tpu.matmul %1, %2, %cst {dimension_numbers = #tpu.dot_dimension_numbers<[1], [0], [0], [1], [0, 0, 1, 1], [], []>} : vector<4x3136xbf16>, vector<3136x128xbf16>, vector<4x128xf32> -> vector<4x128xf32>
    %c0_3 = arith.constant 0 : index
    %c0_4 = arith.constant 0 : index
    %4 = vector.load %arg3[%c0_3, %c0_4] : memref<1x128xf32, #tpu.memory_space<vmem>>, vector<1x128xf32>
    %5 = vector.broadcast %4 : vector<1x128xf32> to vector<4x128xf32>
    %6 = arith.addf %3, %5 : vector<4x128xf32>
    %cst_5 = arith.constant 0.000000e+00 : f32
    %7 = vector.broadcast %cst_5 : f32 to vector<4x128xf32>
    %8 = arith.maximumf %6, %7 : vector<4x128xf32>
    %9 = arith.truncf %8 : vector<4x128xf32> to vector<4x128xbf16>
    %c0_6 = arith.constant 0 : index
    %c0_7 = arith.constant 0 : index
    %10 = vector.load %arg4[%c0_6, %c0_7] : memref<128x6xbf16, #tpu.memory_space<vmem>>, vector<128x6xbf16>
    %cst_8 = arith.constant dense<0.000000e+00> : vector<4x6xf32>
    %11 = tpu.matmul %9, %10, %cst_8 {dimension_numbers = #tpu.dot_dimension_numbers<[1], [0], [0], [1], [0, 0, 1, 1], [], []>} : vector<4x128xbf16>, vector<128x6xbf16>, vector<4x6xf32> -> vector<4x6xf32>
    %c0_9 = arith.constant 0 : index
    %c0_10 = arith.constant 0 : index
    %12 = vector.load %arg5[%c0_9, %c0_10] : memref<1x6xf32, #tpu.memory_space<vmem>>, vector<1x6xf32>
    %13 = vector.broadcast %12 : vector<1x6xf32> to vector<4x6xf32>
    %14 = arith.addf %11, %13 : vector<4x6xf32>
    %c0_11 = arith.constant 0 : index
    %c0_12 = arith.constant 0 : index
    %15 = vector.load %arg6[%c0_11, %c0_12] : memref<4x6xf32, #tpu.memory_space<vmem>>, vector<4x6xf32>
    tpu.vector_store %arg6[%c0_11, %c0_12], %14 {strides = array<i32>} : memref<4x6xf32, #tpu.memory_space<vmem>>, vector<4x6xf32>,
    return
  }
  func.func @transform_0(%arg0: i32) -> (i32, i32) {
    %c0_i32 = arith.constant 0 : i32
    %c0_i32_0 = arith.constant 0 : i32
    return %arg0, %c0_i32 : i32, i32
  }
  func.func @transform_1(%arg0: i32) -> (i32, i32) {
    %c0_i32 = arith.constant 0 : i32
    %c0_i32_0 = arith.constant 0 : i32
    %c0_i32_1 = arith.constant 0 : i32
    return %c0_i32, %c0_i32_0 : i32, i32
  }
  func.func @transform_2(%arg0: i32) -> (i32, i32) {
    %c0_i32 = arith.constant 0 : i32
    %c0_i32_0 = arith.constant 0 : i32
    %c0_i32_1 = arith.constant 0 : i32
    return %c0_i32, %c0_i32_0 : i32, i32
  }
  func.func @transform_3(%arg0: i32) -> (i32, i32) {
    %c0_i32 = arith.constant 0 : i32
    %c0_i32_0 = arith.constant 0 : i32
    %c0_i32_1 = arith.constant 0 : i32
    return %c0_i32, %c0_i32_0 : i32, i32
  }
  func.func @transform_4(%arg0: i32) -> (i32, i32) {
    %c0_i32 = arith.constant 0 : i32
    %c0_i32_0 = arith.constant 0 : i32
    %c0_i32_1 = arith.constant 0 : i32
    return %c0_i32, %c0_i32_0 : i32, i32
  }
  func.func @transform_5(%arg0: i32) -> (i32, i32) {
    %c0_i32 = arith.constant 0 : i32
    %c0_i32_0 = arith.constant 0 : i32
    return %arg0, %c0_i32 : i32, i32
  }
}

</mosaic_0001>

<bundles_post_ra>
// kernel: dqn_cnn_forward.4
= control target key start
LH: loop header
LB: loop body
LE: loop exit
PB: predicated region body
PF: predicated region fallthrough
CT: control target
= control target key end

     0   :  { %s7213_s12 = smov 0   ;;  %s9121_s0 = inlined_call_operand.vmem [shape: f32[4,21,21,64], index: 0, kind: input, shape index: {}]   ;;  %s9122_s1 = inlined_call_operand.vmem [shape: bf16[4,64,32], index: 1, kind: input, shape index: {}]   ;;  %s9123_s2 = inlined_call_operand.vmem [shape: f32[1,1,32], index: 2, kind: input, shape index: {}]   ;;  %s9124_s3 = inlined_call_operand.vmem [shape: f32[4,20,20,32], index: 3, kind: output, shape index: {}]  }
   0x1 LB: > { %s5389_s13 = sadd.s32 4294967295, %s7191_s12   ;;  %p5393_p0 = scmp.ge.s32.totalorder %s7191_s12, 1  ;;  %s7191_s12 = sphi %s7213_s12, %s13_s12  }
   0x2   : > { %p137_p1 = scmp.lt.s32.totalorder %s7191_s12, 5 }
   0x4   : > { %p138_p2 = pnand %p5393_p0, %p137_p1 }
   0x6   : > { %141 = sbr.rel (%p138_p2) target bundleno = 876 (0x36c), region = 32 }
   0xd   : > { %v7224_v0 = vld [vmem:[%s9122_s1 + $0x20] sm:$0xff]   ;;  %p161_p3 = scmp.lt.s32.totalorder %s5389_s13, 3  ;;  %v7229_v1 = vld [vmem:[%s9122_s1 + $0x28] sm:$0xff]   ;;  %v7242_v2 = vld [vmem:[%s9122_s1 + $0x30] sm:$0xff]   ;;  %vm413_vm0 = vcmask 523264   ;;  %vm5275_vm1 = vcmask 257024  }
   0xe   : > { %6199 = vmatprep.subr.bf16.mxu0 %v7224_v0  ;;  %6211 = vmatprep.subr.bf16.mxu1 %v7224_v0  ;;  %v7260_v6 = vld [vmem:[%s9122_s1 + $0x38] sm:$0xff]   ;;  %vm5272_vm2 = vcmask 261120  }
   0xf   : > { %s9210_s13 = smov (!%p161_p3, %s5389_s13), 3  ;;  %6200 = vmatpush3.bf16.msra.mxu0 %v7224_v0  ;;  %6212 = vmatpush3.bf16.msra.mxu1 %v7224_v0 }
  0x10   : > { %6201 = vmatprep.subr.bf16.mxu0 %v7229_v1  ;;  %6213 = vmatprep.subr.bf16.mxu1 %v7229_v1  ;;  %s7159_s20 = smul.u32 504, %s9210_s13 }
  0x12   : > { %s7248_s23 = scalar_lea.vmem %s9121_s0, %s7159_s20 }
  0x13   : > { %6202 = vmatpush3.bf16.msra.mxu0 %v7229_v1  ;;  %6214 = vmatpush3.bf16.msra.mxu1 %v7229_v1  ;;  %v280_v3 = vld [vmem:[%s7248_s23 + $0x1] sm:$0xff]  ;;  %v281_v4 = vld [vmem:[%s7248_s23 + $0x9] sm:$0xff]  ;;  %v283_v5 = vld [vmem:[%s7248_s23 + $0x19] sm:$0xff] }
  0x14   : > { %6203 = vmatprep.subr.bf16.mxu0 %v7242_v2  ;;  %6215 = vmatprep.subr.bf16.mxu1 %v7242_v2  ;;  %v340_v7 = vpack.c.bf16 %v281_v4, %v280_v3  ;;  %v284_v8 = vld [vmem:[%s7248_s23 + $0x21] sm:$0xff]  ;;  %v282_v10 = vld [vmem:[%s7248_s23 + $0x11] sm:$0xf]  ;;  %v285_v11 = vld [vmem:[%s7248_s23 + $0x29] sm:$0xf] }
  0x15   : > { %v342_v9 = vpack.c.bf16 %v284_v8, %v283_v5  ;;  %v286_v12 = vld [vmem:[%s7248_s23 + $0x31] sm:$0xff]  ;;  %v341_v13 = vpack.c.bf16 %v282_v10, %v282_v10  ;;  %v343_v14 = vpack.c.bf16 %v285_v11, %v285_v11  ;;  %v287_v15 = vld [vmem:[%s7248_s23 + $0x39] sm:$0xff]  ;;  %v289_v16 = vld [vmem:[%s7248_s23 + $0x49] sm:$0xff] }
  0x16   : > { %6207 = vmatprep.mubr.msk.bf16.mxu0 %vm413_vm0, %v340_v7  ;;  %v290_v17 = vld [vmem:[%s7248_s23 + $0x51] sm:$0xff]  ;;  %v344_v18 = vpack.c.bf16 %v287_v15, %v286_v12  ;;  %v288_v20 = vld [vmem:[%s7248_s23 + $0x41] sm:$0xf]  ;;  %v291_v21 = vld [vmem:[%s7248_s23 + $0x59] sm:$0xf] }
  0x17   : > { %6204 = vmatpush3.bf16.msra.mxu0 %v7242_v2  ;;  %6216 = vmatpush3.bf16.msra.mxu1 %v7242_v2  ;;  %v346_v19 = vpack.c.bf16 %v290_v17, %v289_v16  ;;  %v292_v22 = vld [vmem:[%s7248_s23 + $0x61] sm:$0xff]  ;;  %v345_v23 = vpack.c.bf16 %v288_v20, %v288_v20  ;;  %v347_v24 = vpack.c.bf16 %v291_v21, %v291_v21  ;;  %v293_v25 = vld [vmem:[%s7248_s23 + $0x69] sm:$0xff]  ;;  %v295_v26 = vld [vmem:[%s7248_s23 + $0x79] sm:$0xff] }
  0x18   : > { %6205 = vmatprep.subr.bf16.mxu0 %v7260_v6  ;;  %6217 = vmatprep.subr.bf16.mxu1 %v7260_v6  ;;  %v296_v27 = vld [vmem:[%s7248_s23 + $0x81] sm:$0xff]  ;;  %v348_v28 = vpack.c.bf16 %v293_v25, %v292_v22  ;;  %v294_v30 = vld [vmem:[%s7248_s23 + $0x71] sm:$0xf]  ;;  %v297_v31 = vld [vmem:[%s7248_s23 + $0x89] sm:$0xf] }
  0x19   : > { %6219 = vmatprep.mubr.msk.bf16.mxu1 %vm413_vm0, %v342_v9  ;;  %v350_v29 = vpack.c.bf16 %v296_v27, %v295_v26  ;;  %v298_v32 = vld [vmem:[%s7248_s23 + $0x91] sm:$0xff]  ;;  %v349_v33 = vpack.c.bf16 %v294_v30, %v294_v30  ;;  %v351_v34 = vpack.c.bf16 %v297_v31, %v297_v31  ;;  %v299_v35 = vld [vmem:[%s7248_s23 + $0x99] sm:$0xff]  ;;  %v301_v36 = vld [vmem:[%s7248_s23 + $0xa9] sm:$0xff] }
  0x1a   : > { %v302_v37 = vld [vmem:[%s7248_s23 + $0xb1] sm:$0xff]  ;;  %v352_v38 = vpack.c.bf16 %v299_v35, %v298_v32  ;;  %v300_v40 = vld [vmem:[%s7248_s23 + $0xa1] sm:$0xf]  ;;  %v303_v41 = vld [vmem:[%s7248_s23 + $0xb9] sm:$0xf] }
  0x1b   : > { %6206 = vmatpush3.bf16.msra.mxu0 %v7260_v6  ;;  %6218 = vmatpush3.bf16.msra.mxu1 %v7260_v6  ;;  %v354_v39 = vpack.c.bf16 %v302_v37, %v301_v36  ;;  %v304_v42 = vld [vmem:[%s7248_s23 + $0xc1] sm:$0xff]  ;;  %v353_v43 = vpack.c.bf16 %v300_v40, %v300_v40  ;;  %v355_v44 = vpack.c.bf16 %v303_v41, %v303_v41  ;;  %v305_v45 = vld [vmem:[%s7248_s23 + $0xc9] sm:$0xff]  ;;  %v307_v46 = vld [vmem:[%s7248_s23 + $0xd9] sm:$0xff] }
  0x1c   : > { %6223 = vmatprep.subr.bf16.mxu0 %v7224_v0  ;;  %6235 = vmatprep.subr.bf16.mxu1 %v7224_v0  ;;  %v308_v47 = vld [vmem:[%s7248_s23 + $0xe1] sm:$0xff]  ;;  %v356_v48 = vpack.c.bf16 %v305_v45, %v304_v42  ;;  %v306_v50 = vld [vmem:[%s7248_s23 + $0xd1] sm:$0xf]  ;;  %v309_v51 = vld [vmem:[%s7248_s23 + $0xe9] sm:$0xf] }
  0x1d   : > { %v358_v49 = vpack.c.bf16 %v308_v47, %v307_v46  ;;  %v310_v52 = vld [vmem:[%s7248_s23 + $0xf1] sm:$0xff]  ;;  %v357_v53 = vpack.c.bf16 %v306_v50, %v306_v50  ;;  %v359_v54 = vpack.c.bf16 %v309_v51, %v309_v51  ;;  %v311_v55 = vld [vmem:[%s7248_s23 + $0xf9] sm:$0xff]  ;;  %v313_v56 = vld [vmem:[%s7248_s23 + $0x109] sm:$0xff] }
  0x1e   : > { %6208 = vmatmul.mubr.msk.bf16.vlgmr.msra.gmra.mrb[0].mxu0 %vm413_vm0, %v341_v13  ;;  %6220 = vmatmul.mubr.msk.bf16.vlgmr.msra.gmra.mrb[0].mxu1 %vm413_vm0, %v343_v14  ;;  %v314_v57 = vld [vmem:[%s7248_s23 + $0x111] sm:$0xff]  ;;  %v360_v58 = vpack.c.bf16 %v311_v55, %v310_v52  ;;  %v312_v60 = vld [vmem:[%s7248_s23 + $0x101] sm:$0xf]  ;;  %v315_v61 = vld [vmem:[%s7248_s23 + $0x119] sm:$0xf] }
  0x1f   : > { %6224 = vmatpush3.bf16.msra.mxu0 %v7224_v0  ;;  %6236 = vmatpush3.bf16.msra.mxu1 %v7224_v0  ;;  %v362_v59 = vpack.c.bf16 %v314_v57, %v313_v56  ;;  %v316_v62 = vld [vmem:[%s7248_s23 + $0x121] sm:$0xff]  ;;  %v361_v63 = vpack.c.bf16 %v312_v60, %v312_v60  ;;  %v363_v3 = vpack.c.bf16 %v315_v61, %v315_v61  ;;  %v317_v4 = vld [vmem:[%s7248_s23 + $0x129] sm:$0xff]  ;;  %v319_v5 = vld [vmem:[%s7248_s23 + $0x139] sm:$0xff] }
  0x20   : > { %6225 = vmatprep.subr.bf16.mxu0 %v7229_v1  ;;  %6237 = vmatprep.subr.bf16.mxu1 %v7229_v1  ;;  %v320_v7 = vld [vmem:[%s7248_s23 + $0x141] sm:$0xff]  ;;  %v364_v8 = vpack.c.bf16 %v317_v4, %v316_v62  ;;  %v318_v10 = vld [vmem:[%s7248_s23 + $0x131] sm:$0xf]  ;;  %v321_v11 = vld [vmem:[%s7248_s23 + $0x149] sm:$0xf] }
  0x21   : > { %6231 = vmatprep.mubr.msk.bf16.mxu0 %vm413_vm0, %v344_v18  ;;  %6243 = vmatprep.mubr.msk.bf16.mxu1 %vm413_vm0, %v346_v19  ;;  %v366_v9 = vpack.c.bf16 %v320_v7, %v319_v5  ;;  %v322_v12 = vld [vmem:[%s7248_s23 + $0x151] sm:$0xff]  ;;  %v365_v13 = vpack.c.bf16 %v318_v10, %v318_v10  ;;  %v367_v14 = vpack.c.bf16 %v321_v11, %v321_v11  ;;  %v323_v15 = vld [vmem:[%s7248_s23 + $0x159] sm:$0xff]  ;;  %v325_v16 = vld [vmem:[%s7248_s23 + $0x169] sm:$0xff] }
  0x22   : > { %v326_v17 = vld [vmem:[%s7248_s23 + $0x171] sm:$0xff]  ;;  %v368_v18 = vpack.c.bf16 %v323_v15, %v322_v12  ;;  %v324_v20 = vld [vmem:[%s7248_s23 + $0x161] sm:$0xf]  ;;  %v327_v21 = vld [vmem:[%s7248_s23 + $0x179] sm:$0xf] }
  0x23   : > { %6226 = vmatpush3.bf16.msra.mxu0 %v7229_v1  ;;  %6238 = vmatpush3.bf16.msra.mxu1 %v7229_v1  ;;  %v370_v19 = vpack.c.bf16 %v326_v17, %v325_v16  ;;  %v328_v22 = vld [vmem:[%s7248_s23 + $0x181] sm:$0xff]  ;;  %v329_v25 = vld [vmem:[%s7248_s23 + $0x189] sm:$0xff]  ;;  %v331_v26 = vld [vmem:[%s7248_s23 + $0x199] sm:$0xff] }
  0x24   : > { %6227 = vmatprep.subr.bf16.mxu0 %v7242_v2  ;;  %6239 = vmatprep.subr.bf16.mxu1 %v7242_v2  ;;  %v332_v27 = vld [vmem:[%s7248_s23 + $0x1a1] sm:$0xff]  ;;  %v330_v30 = vld [vmem:[%s7248_s23 + $0x191] sm:$0xf]  ;;  %v333_v31 = vld [vmem:[%s7248_s23 + $0x1a9] sm:$0xf] }
  0x25   : > { %v334_v32 = vld [vmem:[%s7248_s23 + $0x1b1] sm:$0xff]  ;;  %v335_v35 = vld [vmem:[%s7248_s23 + $0x1b9] sm:$0xff]  ;;  %v337_v36 = vld [vmem:[%s7248_s23 + $0x1c9] sm:$0xff] }
  0x26   : > { %v338_v37 = vld [vmem:[%s7248_s23 + $0x1d1] sm:$0xff]  ;;  %v339_v40 = vld [vmem:[%s7248_s23 + $0x1d9] sm:$0xf]  ;;  %v7508_v41 = vld [vmem:[%s9122_s1] sm:$0xff]  }
  0x27   : > { %6228 = vmatpush3.bf16.msra.mxu0 %v7242_v2  ;;  %6240 = vmatpush3.bf16.msra.mxu1 %v7242_v2  ;;  %v175_v45 = vld [vmem:[%s7248_s23 + $0x18] sm:$0xff]  ;;  %v176_v46 = vld [vmem:[%s7248_s23 + $0x20] sm:$0xff]  ;;  %v174_v50 = vld [vmem:[%s7248_s23 + $0x10] sm:$0xf] }
  0x28   : > { %6229 = vmatprep.subr.bf16.mxu0 %v7260_v6  ;;  %6241 = vmatprep.subr.bf16.mxu1 %v7260_v6  ;;  %v177_v51 = vld [vmem:[%s7248_s23 + $0x28] sm:$0xf]  ;;  %v178_v52 = vld [vmem:[%s7248_s23 + $0x30] sm:$0xff]  ;;  %v179_v55 = vld [vmem:[%s7248_s23 + $0x38] sm:$0xff] }
  0x29   : > { %v181_v56 = vld [vmem:[%s7248_s23 + $0x48] sm:$0xff]  ;;  %v182_v57 = vld [vmem:[%s7248_s23 + $0x50] sm:$0xff]  ;;  %v180_v60 = vld [vmem:[%s7248_s23 + $0x40] sm:$0xf] }
  0x2a   : > { %v183_v61 = vld [vmem:[%s7248_s23 + $0x58] sm:$0xf]  ;;  %v184_v62 = vld [vmem:[%s7248_s23 + $0x60] sm:$0xff]  ;;  %v185_v4 = vld [vmem:[%s7248_s23 + $0x68] sm:$0xff] }
  0x2b   : > { %6230 = vmatpush3.bf16.msra.mxu0 %v7260_v6  ;;  %6242 = vmatpush3.bf16.msra.mxu1 %v7260_v6  ;;  %v187_v5 = vld [vmem:[%s7248_s23 + $0x78] sm:$0xff]  ;;  %v188_v7 = vld [vmem:[%s7248_s23 + $0x80] sm:$0xff]  ;;  %v186_v10 = vld [vmem:[%s7248_s23 + $0x70] sm:$0xf] }
  0x2c   : > { %6247 = vmatprep.subr.bf16.mxu0 %v7224_v0  ;;  %6259 = vmatprep.subr.bf16.mxu1 %v7224_v0  ;;  %v189_v11 = vld [vmem:[%s7248_s23 + $0x88] sm:$0xf]  ;;  %v190_v12 = vld [vmem:[%s7248_s23 + $0x90] sm:$0xff]  ;;  %v191_v15 = vld [vmem:[%s7248_s23 + $0x98] sm:$0xff] }
  0x2d   : > { %v193_v16 = vld [vmem:[%s7248_s23 + $0xa8] sm:$0xff]  ;;  %v194_v17 = vld [vmem:[%s7248_s23 + $0xb0] sm:$0xff] }
  0x2e   : > { %6232 = vmatmul.mubr.msk.bf16.vlgmr.msra.gmra.mrb[4].mxu0 %vm413_vm0, %v345_v23  ;;  %6244 = vmatmul.mubr.msk.bf16.vlgmr.msra.gmra.mrb[4].mxu1 %vm413_vm0, %v347_v24  ;;  %v369_v23 = vpack.c.bf16 %v324_v20, %v324_v20  ;;  %v371_v24 = vpack.c.bf16 %v327_v21, %v327_v21  ;;  %v192_v20 = vld [vmem:[%s7248_s23 + $0xa0] sm:$0xf]  ;;  %v195_v21 = vld [vmem:[%s7248_s23 + $0xb8] sm:$0xf] }
  0x2f   : > { %6248 = vmatpush3.bf16.msra.mxu0 %v7224_v0  ;;  %6260 = vmatpush3.bf16.msra.mxu1 %v7224_v0 }
  0x30   : > { %6249 = vmatprep.subr.bf16.mxu0 %v7229_v1  ;;  %6261 = vmatprep.subr.bf16.mxu1 %v7229_v1 }
  0x31   : > { %6255 = vmatprep.mubr.msk.bf16.mxu0 %vm413_vm0, %v348_v28  ;;  %6267 = vmatprep.mubr.msk.bf16.mxu1 %vm413_vm0, %v350_v29  ;;  %v372_v28 = vpack.c.bf16 %v329_v25, %v328_v22  ;;  %v374_v29 = vpack.c.bf16 %v332_v27, %v331_v26  ;;  %v196_v22 = vld [vmem:[%s7248_s23 + $0xc0] sm:$0xff]  ;;  %v197_v25 = vld [vmem:[%s7248_s23 + $0xc8] sm:$0xff]  ;;  %v199_v26 = vld [vmem:[%s7248_s23 + $0xd8] sm:$0xff] }
  0x32   : > { %v200_v27 = vld [vmem:[%s7248_s23 + $0xe0] sm:$0xff] }
  0x33   : > { %6250 = vmatpush3.bf16.msra.mxu0 %v7229_v1  ;;  %6262 = vmatpush3.bf16.msra.mxu1 %v7229_v1 }
  0x34   : > { %6251 = vmatprep.subr.bf16.mxu0 %v7242_v2  ;;  %6263 = vmatprep.subr.bf16.mxu1 %v7242_v2 }
  0x37   : > { %6252 = vmatpush3.bf16.msra.mxu0 %v7242_v2  ;;  %6264 = vmatpush3.bf16.msra.mxu1 %v7242_v2 }
  0x38   : > { %6253 = vmatprep.subr.bf16.mxu0 %v7260_v6  ;;  %6265 = vmatprep.subr.bf16.mxu1 %v7260_v6 }
  0x3b   : > { %6254 = vmatpush3.bf16.msra.mxu0 %v7260_v6  ;;  %6266 = vmatpush3.bf16.msra.mxu1 %v7260_v6 }
  0x3c   : > { %6271 = vmatprep.subr.bf16.mxu0 %v7224_v0  ;;  %6283 = vmatprep.subr.bf16.mxu1 %v7224_v0 }
  0x3e   : > { %6256 = vmatmul.mubr.msk.bf16.vlgmr.msra.gmra.mrb[8].mxu0 %vm413_vm0, %v349_v33  ;;  %6268 = vmatmul.mubr.msk.bf16.vlgmr.msra.gmra.mrb[8].mxu1 %vm413_vm0, %v351_v34  ;;  %v373_v33 = vpack.c.bf16 %v330_v30, %v330_v30  ;;  %v375_v34 = vpack.c.bf16 %v333_v31, %v333_v31 }
  0x3f   : > { %6272 = vmatpush3.bf16.msra.mxu0 %v7224_v0  ;;  %6284 = vmatpush3.bf16.msra.mxu1 %v7224_v0 }
  0x40   : > { %6273 = vmatprep.subr.bf16.mxu0 %v7229_v1  ;;  %6285 = vmatprep.subr.bf16.mxu1 %v7229_v1 }
  0x41   : > { %6279 = vmatprep.mubr.msk.bf16.mxu0 %vm413_vm0, %v352_v38  ;;  %6291 = vmatprep.mubr.msk.bf16.mxu1 %vm413_vm0, %v354_v39  ;;  %v376_v38 = vpack.c.bf16 %v335_v35, %v334_v32  ;;  %v378_v39 = vpack.c.bf16 %v338_v37, %v337_v36 }
  0x43   : > { %6274 = vmatpush3.bf16.msra.mxu0 %v7229_v1  ;;  %6286 = vmatpush3.bf16.msra.mxu1 %v7229_v1 }
  0x44   : > { %6275 = vmatprep.subr.bf16.mxu0 %v7242_v2  ;;  %6287 = vmatprep.subr.bf16.mxu1 %v7242_v2 }
  0x47   : > { %6276 = vmatpush3.bf16.msra.mxu0 %v7242_v2  ;;  %6288 = vmatpush3.bf16.msra.mxu1 %v7242_v2 }
  0x48   : > { %6277 = vmatprep.subr.bf16.mxu0 %v7260_v6  ;;  %6289 = vmatprep.subr.bf16.mxu1 %v7260_v6 }
  0x4b   : > { %6278 = vmatpush3.bf16.msra.mxu0 %v7260_v6  ;;  %6290 = vmatpush3.bf16.msra.mxu1 %v7260_v6 }
  0x4c   : > { %6295 = vmatprep.subr.bf16.mxu0 %v7224_v0  ;;  %6307 = vmatprep.subr.bf16.mxu1 %v7224_v0 }
  0x4e   : > { %6280 = vmatmul.mubr.msk.bf16.vlgmr.msra.gmra.mrb[12].mxu0 %vm413_vm0, %v353_v43  ;;  %6292 = vmatmul.mubr.msk.bf16.vlgmr.msra.gmra.mrb[12].mxu1 %vm413_vm0, %v355_v44  ;;  %v379_v43 = vpack.c.bf16 %v339_v40, %v339_v40  ;;  %v173_v44 = vld [vmem:[%s7248_s23 + $0x8] sm:$0xff] }
  0x4f   : > { %6296 = vmatpush3.bf16.msra.mxu0 %v7224_v0  ;;  %6308 = vmatpush3.bf16.msra.mxu1 %v7224_v0 }
  0x50   : > { %6297 = vmatprep.subr.bf16.mxu0 %v7229_v1  ;;  %6309 = vmatprep.subr.bf16.mxu1 %v7229_v1 }
  0x51   : > { %6303 = vmatprep.mubr.msk.bf16.mxu0 %vm413_vm0, %v356_v48  ;;  %6315 = vmatprep.mubr.msk.bf16.mxu1 %vm413_vm0, %v358_v49  ;;  %v7523_v48 = vpack.c.bf16 %v176_v46, %v175_v45  ;;  %v7546_v49 = vld [vmem:[%s9122_s1 + $0x18] sm:$0xff]  }
  0x53   : > { %6298 = vmatpush3.bf16.msra.mxu0 %v7229_v1  ;;  %6310 = vmatpush3.bf16.msra.mxu1 %v7229_v1 }
  0x54   : > { %6299 = vmatprep.subr.bf16.mxu0 %v7242_v2  ;;  %6311 = vmatprep.subr.bf16.mxu1 %v7242_v2 }
  0x57   : > { %6300 = vmatpush3.bf16.msra.mxu0 %v7242_v2  ;;  %6312 = vmatpush3.bf16.msra.mxu1 %v7242_v2 }
  0x58   : > { %6301 = vmatprep.subr.bf16.mxu0 %v7260_v6  ;;  %6313 = vmatprep.subr.bf16.mxu1 %v7260_v6 }
  0x5b   : > { %6302 = vmatpush3.bf16.msra.mxu0 %v7260_v6  ;;  %6314 = vmatpush3.bf16.msra.mxu1 %v7260_v6 }
  0x5c   : > { %6319 = vmatprep.subr.bf16.mxu0 %v7224_v0  ;;  %6331 = vmatprep.subr.bf16.mxu1 %v7224_v0 }
  0x5e   : > { %6304 = vmatmul.mubr.msk.bf16.vlgmr.msra.gmra.mrb[16].mxu0 %vm413_vm0, %v357_v53  ;;  %6316 = vmatmul.mubr.msk.bf16.vlgmr.msra.gmra.mrb[16].mxu1 %vm413_vm0, %v359_v54  ;;  %v233_v53 = vpack.c.bf16 %v174_v50, %v174_v50  ;;  %v235_v54 = vpack.c.bf16 %v177_v51, %v177_v51 }
  0x5f   : > { %6320 = vmatpush3.bf16.msra.mxu0 %v7224_v0  ;;  %6332 = vmatpush3.bf16.msra.mxu1 %v7224_v0 }
  0x60   : > { %6321 = vmatprep.subr.bf16.mxu0 %v7229_v1  ;;  %6333 = vmatprep.subr.bf16.mxu1 %v7229_v1 }
  0x61   : > { %6327 = vmatprep.mubr.msk.bf16.mxu0 %vm413_vm0, %v360_v58  ;;  %6339 = vmatprep.mubr.msk.bf16.mxu1 %vm413_vm0, %v362_v59  ;;  %v7562_v58 = vpack.c.bf16 %v179_v55, %v178_v52  ;;  %v7564_v59 = vpack.c.bf16 %v182_v57, %v181_v56  ;;  %v204_v57 = vld [vmem:[%s7248_s23 + $0x100] sm:$0xf] }
  0x63   : > { %6322 = vmatpush3.bf16.msra.mxu0 %v7229_v1  ;;  %6334 = vmatpush3.bf16.msra.mxu1 %v7229_v1 }
  0x64   : > { %6323 = vmatprep.subr.bf16.mxu0 %v7242_v2  ;;  %6335 = vmatprep.subr.bf16.mxu1 %v7242_v2 }
  0x67   : > { %6324 = vmatpush3.bf16.msra.mxu0 %v7242_v2  ;;  %6336 = vmatpush3.bf16.msra.mxu1 %v7242_v2 }
  0x68   : > { %6325 = vmatprep.subr.bf16.mxu0 %v7260_v6  ;;  %6337 = vmatprep.subr.bf16.mxu1 %v7260_v6 }
  0x6b   : > { %6326 = vmatpush3.bf16.msra.mxu0 %v7260_v6  ;;  %6338 = vmatpush3.bf16.msra.mxu1 %v7260_v6 }
  0x6c   : > { %6343 = vmatprep.subr.bf16.mxu0 %v7224_v0  ;;  %6355 = vmatprep.subr.bf16.mxu1 %v7224_v0 }
  0x6e   : > { %6328 = vmatmul.mubr.msk.bf16.vlgmr.msra.gmra.mrb[20].mxu0 %vm413_vm0, %v361_v63  ;;  %6340 = vmatmul.mubr.msk.bf16.vlgmr.msra.gmra.mrb[20].mxu1 %vm413_vm0, %v363_v3  ;;  %v237_v63 = vpack.c.bf16 %v180_v60, %v180_v60  ;;  %v239_v3 = vpack.c.bf16 %v183_v61, %v183_v61  ;;  %v207_v60 = vld [vmem:[%s7248_s23 + $0x118] sm:$0xf]  ;;  %v208_v61 = vld [vmem:[%s7248_s23 + $0x120] sm:$0xff] }
  0x6f   : > { %6344 = vmatpush3.bf16.msra.mxu0 %v7224_v0  ;;  %6356 = vmatpush3.bf16.msra.mxu1 %v7224_v0 }
  0x70   : > { %6345 = vmatprep.subr.bf16.mxu0 %v7229_v1  ;;  %6357 = vmatprep.subr.bf16.mxu1 %v7229_v1 }
  0x71   : > { %6351 = vmatprep.mubr.msk.bf16.mxu0 %vm413_vm0, %v364_v8  ;;  %6363 = vmatprep.mubr.msk.bf16.mxu1 %vm413_vm0, %v366_v9  ;;  %v7594_v8 = vpack.c.bf16 %v185_v4, %v184_v62  ;;  %v7596_v9 = vpack.c.bf16 %v188_v7, %v187_v5  ;;  %v253_v62 = vpack.c.bf16 %v204_v57, %v204_v57  ;;  %v211_v4 = vld [vmem:[%s7248_s23 + $0x138] sm:$0xff]  ;;  %v212_v5 = vld [vmem:[%s7248_s23 + $0x140] sm:$0xff] }
  0x72   : > { %v219_v57 = vld [vmem:[%s7248_s23 + $0x178] sm:$0xf] }
  0x73   : > { %6346 = vmatpush3.bf16.msra.mxu0 %v7229_v1  ;;  %6358 = vmatpush3.bf16.msra.mxu1 %v7229_v1 }
  0x74   : > { %6347 = vmatprep.subr.bf16.mxu0 %v7242_v2  ;;  %6359 = vmatprep.subr.bf16.mxu1 %v7242_v2 }
  0x77   : > { %6348 = vmatpush3.bf16.msra.mxu0 %v7242_v2  ;;  %6360 = vmatpush3.bf16.msra.mxu1 %v7242_v2 }
  0x78   : > { %6349 = vmatprep.subr.bf16.mxu0 %v7260_v6  ;;  %6361 = vmatprep.subr.bf16.mxu1 %v7260_v6 }
  0x7b   : > { %6350 = vmatpush3.bf16.msra.mxu0 %v7260_v6  ;;  %6362 = vmatpush3.bf16.msra.mxu1 %v7260_v6 }
  0x7c   : > { %6367 = vmatprep.subr.bf16.mxu0 %v7224_v0  ;;  %6379 = vmatprep.subr.bf16.mxu1 %v7224_v0 }
  0x7e   : > { %6352 = vmatmul.mubr.msk.bf16.vlgmr.msra.gmra.mrb[24].mxu0 %vm413_vm0, %v365_v13  ;;  %6364 = vmatmul.mubr.msk.bf16.vlgmr.msra.gmra.mrb[24].mxu1 %vm413_vm0, %v367_v14  ;;  %v241_v13 = vpack.c.bf16 %v186_v10, %v186_v10  ;;  %v243_v14 = vpack.c.bf16 %v189_v11, %v189_v11  ;;  %v7748_v10 = vpack.c.bf16 %v212_v5, %v211_v4  ;;  %v224_v4 = vld [vmem:[%s7248_s23 + $0x1a0] sm:$0xff] }
  0x7f   : > { %6368 = vmatpush3.bf16.msra.mxu0 %v7224_v0  ;;  %6380 = vmatpush3.bf16.msra.mxu1 %v7224_v0 }
  0x80   : > { %6369 = vmatprep.subr.bf16.mxu0 %v7229_v1  ;;  %6381 = vmatprep.subr.bf16.mxu1 %v7229_v1 }
  0x81   : > { %6375 = vmatprep.mubr.msk.bf16.mxu0 %vm413_vm0, %v368_v18  ;;  %6387 = vmatprep.mubr.msk.bf16.mxu1 %vm413_vm0, %v370_v19  ;;  %v7626_v18 = vpack.c.bf16 %v191_v15, %v190_v12  ;;  %v7628_v19 = vpack.c.bf16 %v194_v17, %v193_v16 }
  0x83   : > { %6370 = vmatpush3.bf16.msra.mxu0 %v7229_v1  ;;  %6382 = vmatpush3.bf16.msra.mxu1 %v7229_v1 }
  0x84   : > { %6371 = vmatprep.subr.bf16.mxu0 %v7242_v2  ;;  %6383 = vmatprep.subr.bf16.mxu1 %v7242_v2 }
  0x87   : > { %6372 = vmatpush3.bf16.msra.mxu0 %v7242_v2  ;;  %6384 = vmatpush3.bf16.msra.mxu1 %v7242_v2 }
  0x88   : > { %6373 = vmatprep.subr.bf16.mxu0 %v7260_v6  ;;  %6385 = vmatprep.subr.bf16.mxu1 %v7260_v6 }
  0x8b   : > { %6374 = vmatpush3.bf16.msra.mxu0 %v7260_v6  ;;  %6386 = vmatpush3.bf16.msra.mxu1 %v7260_v6 }
  0x8c   : > { %6391 = vmatprep.subr.bf16.mxu0 %v7224_v0  ;;  %6403 = vmatprep.subr.bf16.mxu1 %v7224_v0 }
  0x8e   : > { %6376 = vmatmul.mubr.msk.bf16.vlgmr.msra.gmra.mrb[28].mxu0 %vm413_vm0, %v369_v23  ;;  %6388 = vmatmul.mubr.msk.bf16.vlgmr.msra.gmra.mrb[28].mxu1 %vm413_vm0, %v371_v24  ;;  %v245_v23 = vpack.c.bf16 %v192_v20, %v192_v20  ;;  %v247_v24 = vpack.c.bf16 %v195_v21, %v195_v21  ;;  %v210_v21 = vld [vmem:[%s7248_s23 + $0x130] sm:$0xf] }
  0x8f   : > { %6392 = vmatpush3.bf16.msra.mxu0 %v7224_v0  ;;  %6404 = vmatpush3.bf16.msra.mxu1 %v7224_v0 }
  0x90   : > { %6393 = vmatprep.subr.bf16.mxu0 %v7229_v1  ;;  %6405 = vmatprep.subr.bf16.mxu1 %v7229_v1 }
  0x91   : > { %6399 = vmatprep.mubr.msk.bf16.mxu0 %vm413_vm0, %v372_v28  ;;  %6411 = vmatprep.mubr.msk.bf16.mxu1 %vm413_vm0, %v374_v29  ;;  %v7658_v28 = vpack.c.bf16 %v197_v25, %v196_v22  ;;  %v7660_v29 = vpack.c.bf16 %v200_v27, %v199_v26  ;;  %v213_v22 = vld [vmem:[%s7248_s23 + $0x148] sm:$0xf]  ;;  %v215_v26 = vld [vmem:[%s7248_s23 + $0x158] sm:$0xff] }
  0x92   : > { %v259_v25 = vpack.c.bf16 %v213_v22, %v213_v22  ;;  %v217_v27 = vld [vmem:[%s7248_s23 + $0x168] sm:$0xff] }
  0x93   : > { %6394 = vmatpush3.bf16.msra.mxu0 %v7229_v1  ;;  %6406 = vmatpush3.bf16.msra.mxu1 %v7229_v1 }
  0x94   : > { %6395 = vmatprep.subr.bf16.mxu0 %v7242_v2  ;;  %6407 = vmatprep.subr.bf16.mxu1 %v7242_v2 }
  0x97   : > { %6396 = vmatpush3.bf16.msra.mxu0 %v7242_v2  ;;  %6408 = vmatpush3.bf16.msra.mxu1 %v7242_v2 }
  0x98   : > { %6397 = vmatprep.subr.bf16.mxu0 %v7260_v6  ;;  %6409 = vmatprep.subr.bf16.mxu1 %v7260_v6 }
  0x9b   : > { %6398 = vmatpush3.bf16.msra.mxu0 %v7260_v6  ;;  %6410 = vmatpush3.bf16.msra.mxu1 %v7260_v6 }
  0x9c   : > { %6415 = vmatprep.subr.bf16.mxu0 %v7224_v0  ;;  %6427 = vmatprep.subr.bf16.mxu1 %v7224_v0 }
  0x9e   : > { %6400 = vmatmul.mubr.msk.bf16.vlgmr.msra.gmra.mrb[32].mxu0 %vm413_vm0, %v373_v33  ;;  %6412 = vmatmul.mubr.msk.bf16.vlgmr.msra.gmra.mrb[32].mxu1 %vm413_vm0, %v375_v34 }
  0x9f   : > { %6416 = vmatpush3.bf16.msra.mxu0 %v7224_v0  ;;  %6428 = vmatpush3.bf16.msra.mxu1 %v7224_v0  ;;  %v336_v0 = vld [vmem:[%s7248_s23 + $0x1c1] sm:$0xf] }
  0xa0   : > { %6417 = vmatprep.subr.bf16.mxu0 %v7229_v1  ;;  %6429 = vmatprep.subr.bf16.mxu1 %v7229_v1  ;;  %v377_v42 = vpack.c.bf16 %v336_v0, %v336_v0  ;;  %v202_v0 = vld [vmem:[%s7248_s23 + $0xf0] sm:$0xff] }
  0xa1   : > { %6423 = vmatprep.mubr.msk.bf16.mxu0 %vm413_vm0, %v376_v38  ;;  %6435 = vmatprep.mubr.msk.bf16.mxu1 %vm413_vm0, %v378_v39  ;;  %v198_v38 = vld [vmem:[%s7248_s23 + $0xd0] sm:$0xf]  ;;  %v201_v39 = vld [vmem:[%s7248_s23 + $0xe8] sm:$0xf] }
  0xa2   : > { %v249_v40 = vpack.c.bf16 %v198_v38, %v198_v38 }
  0xa3   : > { %6418 = vmatpush3.bf16.msra.mxu0 %v7229_v1  ;;  %6430 = vmatpush3.bf16.msra.mxu1 %v7229_v1  ;;  %v172_v1 = vld [vmem:[%s7248_s23] sm:$0xff] }
  0xa4   : > { %6419 = vmatprep.subr.bf16.mxu0 %v7242_v2  ;;  %6431 = vmatprep.subr.bf16.mxu1 %v7242_v2  ;;  %v232_v47 = vpack.c.bf16 %v173_v44, %v172_v1  ;;  %v251_v1 = vpack.c.bf16 %v201_v39, %v201_v39  ;;  %v206_v44 = vld [vmem:[%s7248_s23 + $0x110] sm:$0xff] }
  0xa7   : > { %6420 = vmatpush3.bf16.msra.mxu0 %v7242_v2  ;;  %6432 = vmatpush3.bf16.msra.mxu1 %v7242_v2  ;;  %v7521_v2 = vld [vmem:[%s9122_s1 + $0x8] sm:$0xff]  }
  0xa8   : > { %6421 = vmatprep.subr.bf16.mxu0 %v7260_v6  ;;  %6433 = vmatprep.subr.bf16.mxu1 %v7260_v6 }
  0xab   : > { %6422 = vmatpush3.bf16.msra.mxu0 %v7260_v6  ;;  %6434 = vmatpush3.bf16.msra.mxu1 %v7260_v6  ;;  %v7534_v6 = vld [vmem:[%s9122_s1 + $0x10] sm:$0xff]  }
  0xac   : > { %6439 = vmatprep.subr.bf16.mxu0 %v7508_v41  ;;  %6451 = vmatprep.subr.bf16.mxu1 %v7508_v41 }
  0xae   : > { %6424 = vmatmul.mubr.msk.bf16.vlgmr.msra.gmra.mrb[36].mxu0 %vm413_vm0, %v377_v42  ;;  %6436 = vmatmul.mubr.msk.bf16.vlgmr.msra.gmra.mrb[36].mxu1 %vm413_vm0, %v379_v43  ;;  %v203_v42 = vld [vmem:[%s7248_s23 + $0xf8] sm:$0xff]  ;;  %v205_v43 = vld [vmem:[%s7248_s23 + $0x108] sm:$0xff] }
  0xaf   : > { %6440 = vmatpush3.bf16.msra.mxu0 %v7508_v41  ;;  %6452 = vmatpush3.bf16.msra.mxu1 %v7508_v41  ;;  %v7702_v45 = vpack.c.bf16 %v203_v42, %v202_v0  ;;  %v7704_v46 = vpack.c.bf16 %v206_v44, %v205_v43 }
  0xb0   : > { %6441 = vmatprep.subr.bf16.mxu0 %v7521_v2  ;;  %6453 = vmatprep.subr.bf16.mxu1 %v7521_v2 }
  0xb1   : > { %6447 = vmatprep.mubr.msk.bf16.mxu0 %vm413_vm0, %v232_v47  ;;  %6459 = vmatprep.mubr.msk.bf16.mxu1 %vm413_vm0, %v7523_v48 }
  0xb3   : > { %6442 = vmatpush3.bf16.msra.mxu0 %v7521_v2  ;;  %6454 = vmatpush3.bf16.msra.mxu1 %v7521_v2 }
  0xb4   : > { %6443 = vmatprep.subr.bf16.mxu0 %v7534_v6  ;;  %6455 = vmatprep.subr.bf16.mxu1 %v7534_v6 }
  0xb7   : > { %6444 = vmatpush3.bf16.msra.mxu0 %v7534_v6  ;;  %6456 = vmatpush3.bf16.msra.mxu1 %v7534_v6 }
  0xb8   : > { %6445 = vmatprep.subr.bf16.mxu0 %v7546_v49  ;;  %6457 = vmatprep.subr.bf16.mxu1 %v7546_v49 }
  0xbb   : > { %6446 = vmatpush3.bf16.msra.mxu0 %v7546_v49  ;;  %6458 = vmatpush3.bf16.msra.mxu1 %v7546_v49 }
  0xbc   : > { %6463 = vmatprep.subr.bf16.mxu0 %v7508_v41  ;;  %6475 = vmatprep.subr.bf16.mxu1 %v7508_v41 }
  0xbe   : > { %6448 = vmatmul.mubr.msk.bf16.vlgmr.msra.gmra.mrb[40].mxu0 %vm413_vm0, %v233_v53  ;;  %6460 = vmatmul.mubr.msk.bf16.vlgmr.msra.gmra.mrb[40].mxu1 %vm413_vm0, %v235_v54 }
  0xbf   : > { %6464 = vmatpush3.bf16.msra.mxu0 %v7508_v41  ;;  %6476 = vmatpush3.bf16.msra.mxu1 %v7508_v41 }
  0xc0   : > { %6465 = vmatprep.subr.bf16.mxu0 %v7521_v2  ;;  %6477 = vmatprep.subr.bf16.mxu1 %v7521_v2 }
  0xc1   : > { %6471 = vmatprep.mubr.msk.bf16.mxu0 %vm413_vm0, %v7562_v58  ;;  %6483 = vmatprep.mubr.msk.bf16.mxu1 %vm413_vm0, %v7564_v59 }
  0xc3   : > { %6466 = vmatpush3.bf16.msra.mxu0 %v7521_v2  ;;  %6478 = vmatpush3.bf16.msra.mxu1 %v7521_v2 }
  0xc4   : > { %6467 = vmatprep.subr.bf16.mxu0 %v7534_v6  ;;  %6479 = vmatprep.subr.bf16.mxu1 %v7534_v6 }
  0xc7   : > { %6468 = vmatpush3.bf16.msra.mxu0 %v7534_v6  ;;  %6480 = vmatpush3.bf16.msra.mxu1 %v7534_v6 }
  0xc8   : > { %6469 = vmatprep.subr.bf16.mxu0 %v7546_v49  ;;  %6481 = vmatprep.subr.bf16.mxu1 %v7546_v49 }
  0xcb   : > { %6470 = vmatpush3.bf16.msra.mxu0 %v7546_v49  ;;  %6482 = vmatpush3.bf16.msra.mxu1 %v7546_v49 }
  0xcc   : > { %6487 = vmatprep.subr.bf16.mxu0 %v7508_v41  ;;  %6499 = vmatprep.subr.bf16.mxu1 %v7508_v41 }
  0xce   : > { %6472 = vmatmul.mubr.msk.bf16.vlgmr.msra.gmra.mrb[44].mxu0 %vm413_vm0, %v237_v63  ;;  %6484 = vmatmul.mubr.msk.bf16.vlgmr.msra.gmra.mrb[44].mxu1 %vm413_vm0, %v239_v3  ;;  %v255_v63 = vpack.c.bf16 %v207_v60, %v207_v60  ;;  %v209_v3 = vld [vmem:[%s7248_s23 + $0x128] sm:$0xff]  ;;  %v220_v60 = vld [vmem:[%s7248_s23 + $0x180] sm:$0xff] }
  0xcf   : > { %6488 = vmatpush3.bf16.msra.mxu0 %v7508_v41  ;;  %6500 = vmatpush3.bf16.msra.mxu1 %v7508_v41  ;;  %v7746_v7 = vpack.c.bf16 %v209_v3, %v208_v61  ;;  %v223_v3 = vld [vmem:[%s7248_s23 + $0x198] sm:$0xff] }
  0xd0   : > { %6489 = vmatprep.subr.bf16.mxu0 %v7521_v2  ;;  %6501 = vmatprep.subr.bf16.mxu1 %v7521_v2 }
  0xd1   : > { %6495 = vmatprep.mubr.msk.bf16.mxu0 %vm413_vm0, %v7594_v8  ;;  %6507 = vmatprep.mubr.msk.bf16.mxu1 %vm413_vm0, %v7596_v9 }
  0xd3   : > { %6490 = vmatpush3.bf16.msra.mxu0 %v7521_v2  ;;  %6502 = vmatpush3.bf16.msra.mxu1 %v7521_v2 }
  0xd4   : > { %6491 = vmatprep.subr.bf16.mxu0 %v7534_v6  ;;  %6503 = vmatprep.subr.bf16.mxu1 %v7534_v6 }
  0xd7   : > { %6492 = vmatpush3.bf16.msra.mxu0 %v7534_v6  ;;  %6504 = vmatpush3.bf16.msra.mxu1 %v7534_v6 }
  0xd8   : > { %6493 = vmatprep.subr.bf16.mxu0 %v7546_v49  ;;  %6505 = vmatprep.subr.bf16.mxu1 %v7546_v49 }
  0xdb   : > { %6494 = vmatpush3.bf16.msra.mxu0 %v7546_v49  ;;  %6506 = vmatpush3.bf16.msra.mxu1 %v7546_v49 }
  0xdc   : > { %6511 = vmatprep.subr.bf16.mxu0 %v7508_v41  ;;  %6523 = vmatprep.subr.bf16.mxu1 %v7508_v41 }
  0xde   : > { %6496 = vmatmul.mubr.msk.bf16.vlgmr.msra.gmra.mrb[48].mxu0 %vm413_vm0, %v241_v13  ;;  %6508 = vmatmul.mubr.msk.bf16.vlgmr.msra.gmra.mrb[48].mxu1 %vm413_vm0, %v243_v14 }
  0xdf   : > { %6512 = vmatpush3.bf16.msra.mxu0 %v7508_v41  ;;  %6524 = vmatpush3.bf16.msra.mxu1 %v7508_v41 }
  0xe0   : > { %6513 = vmatprep.subr.bf16.mxu0 %v7521_v2  ;;  %6525 = vmatprep.subr.bf16.mxu1 %v7521_v2 }
  0xe1   : > { %6519 = vmatprep.mubr.msk.bf16.mxu0 %vm413_vm0, %v7626_v18  ;;  %6531 = vmatprep.mubr.msk.bf16.mxu1 %vm413_vm0, %v7628_v19 }
  0xe3   : > { %6514 = vmatpush3.bf16.msra.mxu0 %v7521_v2  ;;  %6526 = vmatpush3.bf16.msra.mxu1 %v7521_v2 }
  0xe4   : > { %6515 = vmatprep.subr.bf16.mxu0 %v7534_v6  ;;  %6527 = vmatprep.subr.bf16.mxu1 %v7534_v6 }
  0xe7   : > { %6516 = vmatpush3.bf16.msra.mxu0 %v7534_v6  ;;  %6528 = vmatpush3.bf16.msra.mxu1 %v7534_v6 }
  0xe8   : > { %6517 = vmatprep.subr.bf16.mxu0 %v7546_v49  ;;  %6529 = vmatprep.subr.bf16.mxu1 %v7546_v49 }
  0xeb   : > { %6518 = vmatpush3.bf16.msra.mxu0 %v7546_v49  ;;  %6530 = vmatpush3.bf16.msra.mxu1 %v7546_v49 }
  0xec   : > { %6535 = vmatprep.subr.bf16.mxu0 %v7508_v41  ;;  %6547 = vmatprep.subr.bf16.mxu1 %v7508_v41 }
  0xee   : > { %6520 = vmatmul.mubr.msk.bf16.vlgmr.msra.gmra.mrb[52].mxu0 %vm413_vm0, %v245_v23  ;;  %6532 = vmatmul.mubr.msk.bf16.vlgmr.msra.gmra.mrb[52].mxu1 %vm413_vm0, %v247_v24  ;;  %v214_v23 = vld [vmem:[%s7248_s23 + $0x150] sm:$0xff]  ;;  %v257_v24 = vpack.c.bf16 %v210_v21, %v210_v21 }
  0xef   : > { %6536 = vmatpush3.bf16.msra.mxu0 %v7508_v41  ;;  %6548 = vmatpush3.bf16.msra.mxu1 %v7508_v41 }
  0xf0   : > { %6537 = vmatprep.subr.bf16.mxu0 %v7521_v2  ;;  %6549 = vmatprep.subr.bf16.mxu1 %v7521_v2 }
  0xf1   : > { %v7668_v30 = vpop.f32.mrb[0].mxu0  ;;  %v7670_v31 = vpop.f32.mrb[0].mxu1  ;;  %6543 = vmatprep.mubr.msk.bf16.mxu0 %vm413_vm0, %v7658_v28  ;;  %6555 = vmatprep.mubr.msk.bf16.mxu1 %vm413_vm0, %v7660_v29 }
  0xf2   : > { %v7676_v32 = vpop.f32.mrb[1].mxu0  ;;  %v7678_v33 = vpop.f32.mrb[1].mxu1 }
  0xf3   : > { %v6210_v34 = vpop.f32.mrb[2].mxu0  ;;  %v6222_v35 = vpop.f32.mrb[2].mxu1  ;;  %6538 = vmatpush3.bf16.msra.mxu0 %v7521_v2  ;;  %6550 = vmatpush3.bf16.msra.mxu1 %v7521_v2 }
  0xf4   : > { %v7682_v36 = vpop.f32.mrb[3].mxu0  ;;  %v7684_v37 = vpop.f32.mrb[3].mxu1  ;;  %6539 = vmatprep.subr.bf16.mxu0 %v7534_v6  ;;  %6551 = vmatprep.subr.bf16.mxu1 %v7534_v6  ;;  %v218_v34 = vld [vmem:[%s7248_s23 + $0x170] sm:$0xff]  ;;  %v7790_v35 = vpack.c.bf16 %v215_v26, %v214_v23 }
  0xf5   : > { %v7792_v38 = vpack.c.bf16 %v218_v34, %v217_v27  ;;  %v222_v34 = vld [vmem:[%s7248_s23 + $0x190] sm:$0xf] }
  0xf7   : > { %6540 = vmatpush3.bf16.msra.mxu0 %v7534_v6  ;;  %6552 = vmatpush3.bf16.msra.mxu1 %v7534_v6 }
  0xf8   : > { %6541 = vmatprep.subr.bf16.mxu0 %v7546_v49  ;;  %6553 = vmatprep.subr.bf16.mxu1 %v7546_v49 }
  0xfb   : > { %6542 = vmatpush3.bf16.msra.mxu0 %v7546_v49  ;;  %6554 = vmatpush3.bf16.msra.mxu1 %v7546_v49 }
  0xfc   : > { %6559 = vmatprep.subr.bf16.mxu0 %v7508_v41  ;;  %6571 = vmatprep.subr.bf16.mxu1 %v7508_v41 }
  0xfe   : > { %6544 = vmatmul.mubr.msk.bf16.vlgmr.msra.gmra.mrb[56].mxu0 %vm413_vm0, %v249_v40  ;;  %6556 = vmatmul.mubr.msk.bf16.vlgmr.msra.gmra.mrb[56].mxu1 %vm413_vm0, %v251_v1 }
  0xff   : > { %6560 = vmatpush3.bf16.msra.mxu0 %v7508_v41  ;;  %6572 = vmatpush3.bf16.msra.mxu1 %v7508_v41 }
 0x100   : > { %6561 = vmatprep.subr.bf16.mxu0 %v7521_v2  ;;  %6573 = vmatprep.subr.bf16.mxu1 %v7521_v2 }
 0x101   : > { %v7712_v47 = vpop.f32.mrb[4].mxu0  ;;  %v7714_v50 = vpop.f32.mrb[4].mxu1  ;;  %6567 = vmatprep.mubr.msk.bf16.mxu0 %vm413_vm0, %v7702_v45  ;;  %6579 = vmatprep.mubr.msk.bf16.mxu1 %vm413_vm0, %v7704_v46 }
 0x102   : > { %v7720_v51 = vpop.f32.mrb[5].mxu0  ;;  %v7722_v52 = vpop.f32.mrb[5].mxu1 }
 0x103   : > { %v6234_v53 = vpop.f32.mrb[6].mxu0  ;;  %v6246_v54 = vpop.f32.mrb[6].mxu1  ;;  %6562 = vmatpush3.bf16.msra.mxu0 %v7521_v2  ;;  %6574 = vmatpush3.bf16.msra.mxu1 %v7521_v2 }
 0x104   : > { %v7726_v55 = vpop.f32.mrb[7].mxu0  ;;  %v7728_v56 = vpop.f32.mrb[7].mxu1  ;;  %6563 = vmatprep.subr.bf16.mxu0 %v7534_v6  ;;  %6575 = vmatprep.subr.bf16.mxu1 %v7534_v6  ;;  %v216_v54 = vld [vmem:[%s7248_s23 + $0x160] sm:$0xf] }
 0x105   : > { %v261_v61 = vpack.c.bf16 %v216_v54, %v216_v54  ;;  %v265_v54 = vpack.c.bf16 %v222_v34, %v222_v34 }
 0x107   : > { %6564 = vmatpush3.bf16.msra.mxu0 %v7534_v6  ;;  %6576 = vmatpush3.bf16.msra.mxu1 %v7534_v6 }
 0x108   : > { %6565 = vmatprep.subr.bf16.mxu0 %v7546_v49  ;;  %6577 = vmatprep.subr.bf16.mxu1 %v7546_v49 }
 0x10b   : > { %6566 = vmatpush3.bf16.msra.mxu0 %v7546_v49  ;;  %6578 = vmatpush3.bf16.msra.mxu1 %v7546_v49 }
 0x10c   : > { %6583 = vmatprep.subr.bf16.mxu0 %v7508_v41  ;;  %6595 = vmatprep.subr.bf16.mxu1 %v7508_v41 }
 0x10e   : > { %6568 = vmatmul.mubr.msk.bf16.vlgmr.msra.gmra.mrb[60].mxu0 %vm413_vm0, %v253_v62  ;;  %6580 = vmatmul.mubr.msk.bf16.vlgmr.msra.gmra.mrb[60].mxu1 %vm413_vm0, %v255_v63  ;;  %v263_v62 = vpack.c.bf16 %v219_v57, %v219_v57  ;;  %v221_v63 = vld [vmem:[%s7248_s23 + $0x188] sm:$0xff] }
 0x10f   : > { %6584 = vmatpush3.bf16.msra.mxu0 %v7508_v41  ;;  %6596 = vmatpush3.bf16.msra.mxu1 %v7508_v41  ;;  %v7834_v5 = vpack.c.bf16 %v221_v63, %v220_v60  ;;  %v227_v60 = vld [vmem:[%s7248_s23 + $0x1b8] sm:$0xff] }
 0x110   : > { %6585 = vmatprep.subr.bf16.mxu0 %v7521_v2  ;;  %6597 = vmatprep.subr.bf16.mxu1 %v7521_v2 }
 0x111   : > { %v7756_v11 = vpop.f32.mrb[8].mxu0  ;;  %v7758_v12 = vpop.f32.mrb[8].mxu1  ;;  %6591 = vmatprep.mubr.msk.bf16.mxu0 %vm413_vm0, %v7746_v7  ;;  %6603 = vmatprep.mubr.msk.bf16.mxu1 %vm413_vm0, %v7748_v10 }
 0x112   : > { %v7764_v13 = vpop.f32.mrb[9].mxu0  ;;  %v7766_v14 = vpop.f32.mrb[9].mxu1 }
 0x113   : > { %v6258_v15 = vpop.f32.mrb[10].mxu0  ;;  %v6270_v16 = vpop.f32.mrb[10].mxu1  ;;  %6586 = vmatpush3.bf16.msra.mxu0 %v7521_v2  ;;  %6598 = vmatpush3.bf16.msra.mxu1 %v7521_v2 }
 0x114   : > { %v7770_v17 = vpop.f32.mrb[11].mxu0  ;;  %v7772_v20 = vpop.f32.mrb[11].mxu1  ;;  %6587 = vmatprep.subr.bf16.mxu0 %v7534_v6  ;;  %6599 = vmatprep.subr.bf16.mxu1 %v7534_v6  ;;  %v7836_v15 = vpack.c.bf16 %v224_v4, %v223_v3 }
 0x117   : > { %6588 = vmatpush3.bf16.msra.mxu0 %v7534_v6  ;;  %6600 = vmatpush3.bf16.msra.mxu1 %v7534_v6 }
 0x118   : > { %6589 = vmatprep.subr.bf16.mxu0 %v7546_v49  ;;  %6601 = vmatprep.subr.bf16.mxu1 %v7546_v49 }
 0x11b   : > { %6590 = vmatpush3.bf16.msra.mxu0 %v7546_v49  ;;  %6602 = vmatpush3.bf16.msra.mxu1 %v7546_v49 }
 0x11c   : > { %6607 = vmatprep.subr.bf16.mxu0 %v7508_v41  ;;  %6619 = vmatprep.subr.bf16.mxu1 %v7508_v41 }
 0x11e   : > { %6592 = vmatmul.mubr.msk.bf16.vlgmr.msra.gmra.mrb[64].mxu0 %vm413_vm0, %v257_v24  ;;  %6604 = vmatmul.mubr.msk.bf16.vlgmr.msra.gmra.mrb[64].mxu1 %vm413_vm0, %v259_v25 }
 0x11f   : > { %6608 = vmatpush3.bf16.msra.mxu0 %v7508_v41  ;;  %6620 = vmatpush3.bf16.msra.mxu1 %v7508_v41 }
 0x120   : > { %6609 = vmatprep.subr.bf16.mxu0 %v7521_v2  ;;  %6621 = vmatprep.subr.bf16.mxu1 %v7521_v2 }
 0x121   : > { %v7800_v39 = vpop.f32.mrb[12].mxu0  ;;  %v7802_v0 = vpop.f32.mrb[12].mxu1  ;;  %6615 = vmatprep.mubr.msk.bf16.mxu0 %vm413_vm0, %v7790_v35  ;;  %6627 = vmatprep.mubr.msk.bf16.mxu1 %vm413_vm0, %v7792_v38 }
 0x122   : > { %v7808_v40 = vpop.f32.mrb[13].mxu0  ;;  %v7810_v1 = vpop.f32.mrb[13].mxu1 }
 0x123   : > { %v6282_v42 = vpop.f32.mrb[14].mxu0  ;;  %v6294_v43 = vpop.f32.mrb[14].mxu1  ;;  %6610 = vmatpush3.bf16.msra.mxu0 %v7521_v2  ;;  %6622 = vmatpush3.bf16.msra.mxu1 %v7521_v2 }
 0x124   : > { %v7814_v44 = vpop.f32.mrb[15].mxu0  ;;  %v7816_v53 = vpop.f32.mrb[15].mxu1  ;;  %6611 = vmatprep.subr.bf16.mxu0 %v7534_v6  ;;  %6623 = vmatprep.subr.bf16.mxu1 %v7534_v6  ;;  %v225_v42 = vld [vmem:[%s7248_s23 + $0x1a8] sm:$0xf]  ;;  %v226_v43 = vld [vmem:[%s7248_s23 + $0x1b0] sm:$0xff] }
 0x125   : > { %v267_v57 = vpack.c.bf16 %v225_v42, %v225_v42  ;;  %v7878_v63 = vpack.c.bf16 %v227_v60, %v226_v43  ;;  %v231_v60 = vld [vmem:[%s7248_s23 + $0x1d8] sm:$0xf] }
 0x127   : > { %6612 = vmatpush3.bf16.msra.mxu0 %v7534_v6  ;;  %6624 = vmatpush3.bf16.msra.mxu1 %v7534_v6 }
 0x128   : > { %6613 = vmatprep.subr.bf16.mxu0 %v7546_v49  ;;  %6625 = vmatprep.subr.bf16.mxu1 %v7546_v49 }
 0x12b   : > { %6614 = vmatpush3.bf16.msra.mxu0 %v7546_v49  ;;  %6626 = vmatpush3.bf16.msra.mxu1 %v7546_v49 }
 0x12c   : > { %6631 = vmatprep.subr.bf16.mxu0 %v7508_v41  ;;  %6643 = vmatprep.subr.bf16.mxu1 %v7508_v41 }
 0x12e   : > { %6616 = vmatmul.mubr.msk.bf16.vlgmr.msra.gmra.mrb[68].mxu0 %vm413_vm0, %v261_v61  ;;  %6628 = vmatmul.mubr.msk.bf16.vlgmr.msra.gmra.mrb[68].mxu1 %vm413_vm0, %v263_v62  ;;  %v229_v61 = vld [vmem:[%s7248_s23 + $0x1c8] sm:$0xff]  ;;  %v230_v62 = vld [vmem:[%s7248_s23 + $0x1d0] sm:$0xff] }
 0x12f   : > { %6632 = vmatpush3.bf16.msra.mxu0 %v7508_v41  ;;  %6644 = vmatpush3.bf16.msra.mxu1 %v7508_v41  ;;  %v7880_v3 = vpack.c.bf16 %v230_v62, %v229_v61  ;;  %v271_v62 = vpack.c.bf16 %v231_v60, %v231_v60 }
 0x130   : > { %6633 = vmatprep.subr.bf16.mxu0 %v7521_v2  ;;  %6645 = vmatprep.subr.bf16.mxu1 %v7521_v2 }
 0x131   : > { %v7844_v16 = vpop.f32.mrb[16].mxu0  ;;  %v7846_v21 = vpop.f32.mrb[16].mxu1  ;;  %6639 = vmatprep.mubr.msk.bf16.mxu0 %vm413_vm0, %v7834_v5  ;;  %6651 = vmatprep.mubr.msk.bf16.mxu1 %vm413_vm0, %v7836_v15 }
 0x132   : > { %v7852_v22 = vpop.f32.mrb[17].mxu0  ;;  %v7854_v23 = vpop.f32.mrb[17].mxu1 }
 0x133   : > { %v6306_v24 = vpop.f32.mrb[18].mxu0  ;;  %v6318_v25 = vpop.f32.mrb[18].mxu1  ;;  %6634 = vmatpush3.bf16.msra.mxu0 %v7521_v2  ;;  %6646 = vmatpush3.bf16.msra.mxu1 %v7521_v2 }
 0x134   : > { %v7858_v26 = vpop.f32.mrb[19].mxu0  ;;  %v7860_v27 = vpop.f32.mrb[19].mxu1  ;;  %6635 = vmatprep.subr.bf16.mxu0 %v7534_v6  ;;  %6647 = vmatprep.subr.bf16.mxu1 %v7534_v6 }
 0x137   : > { %6636 = vmatpush3.bf16.msra.mxu0 %v7534_v6  ;;  %6648 = vmatpush3.bf16.msra.mxu1 %v7534_v6 }
 0x138   : > { %6637 = vmatprep.subr.bf16.mxu0 %v7546_v49  ;;  %6649 = vmatprep.subr.bf16.mxu1 %v7546_v49 }
 0x13b   : > { %6638 = vmatpush3.bf16.msra.mxu0 %v7546_v49  ;;  %6650 = vmatpush3.bf16.msra.mxu1 %v7546_v49 }
 0x13c   : > { %6655 = vmatprep.subr.bf16.mxu0 %v7508_v41  ;;  %6667 = vmatprep.subr.bf16.mxu1 %v7508_v41 }
 0x13e   : > { %6640 = vmatmul.mubr.msk.bf16.vlgmr.msra.gmra.mrb[72].mxu0 %vm413_vm0, %v265_v54  ;;  %6652 = vmatmul.mubr.msk.bf16.vlgmr.msra.gmra.mrb[72].mxu1 %vm413_vm0, %v267_v57  ;;  %v228_v57 = vld [vmem:[%s7248_s23 + $0x1c0] sm:$0xf] }
 0x13f   : > { %6656 = vmatpush3.bf16.msra.mxu0 %v7508_v41  ;;  %6668 = vmatpush3.bf16.msra.mxu1 %v7508_v41  ;;  %v269_v61 = vpack.c.bf16 %v228_v57, %v228_v57 }
 0x140   : > { %6657 = vmatprep.subr.bf16.mxu0 %v7521_v2  ;;  %6669 = vmatprep.subr.bf16.mxu1 %v7521_v2 }
 0x141   : > { %v7888_v4 = vpop.f32.mrb[20].mxu0  ;;  %v7890_v24 = vpop.f32.mrb[20].mxu1  ;;  %6663 = vmatprep.mubr.msk.bf16.mxu0 %vm413_vm0, %v7878_v63  ;;  %6675 = vmatprep.mubr.msk.bf16.mxu1 %vm413_vm0, %v7880_v3 }
 0x142   : > { %v7896_v25 = vpop.f32.mrb[21].mxu0  ;;  %v7898_v34 = vpop.f32.mrb[21].mxu1 }
 0x143   : > { %v6330_v41 = vpop.f32.mrb[22].mxu0  ;;  %v6342_v42 = vpop.f32.mrb[22].mxu1  ;;  %6658 = vmatpush3.bf16.msra.mxu0 %v7521_v2  ;;  %6670 = vmatpush3.bf16.msra.mxu1 %v7521_v2  ;;  %v7917_v2 = vld [vmem:[%s9122_s1 + $0x40] sm:$0xff]  }
 0x144   : > { %v7902_v43 = vpop.f32.mrb[23].mxu0  ;;  %v7904_v54 = vpop.f32.mrb[23].mxu1  ;;  %6659 = vmatprep.subr.bf16.mxu0 %v7534_v6  ;;  %6671 = vmatprep.subr.bf16.mxu1 %v7534_v6 }
 0x147   : > { %6660 = vmatpush3.bf16.msra.mxu0 %v7534_v6  ;;  %6672 = vmatpush3.bf16.msra.mxu1 %v7534_v6  ;;  %v7926_v6 = vld [vmem:[%s9122_s1 + $0x48] sm:$0xff]  }
 0x148   : > { %6661 = vmatprep.subr.bf16.mxu0 %v7546_v49  ;;  %6673 = vmatprep.subr.bf16.mxu1 %v7546_v49 }
 0x14b   : > { %6662 = vmatpush3.bf16.msra.mxu0 %v7546_v49  ;;  %6674 = vmatpush3.bf16.msra.mxu1 %v7546_v49  ;;  %v7937_v49 = vld [vmem:[%s9122_s1 + $0x50] sm:$0xff]  }
 0x14c   : > { %6679 = vmatprep.subr.bf16.mxu0 %v7917_v2  ;;  %6691 = vmatprep.subr.bf16.mxu1 %v7917_v2 }
 0x14e   : > { %6664 = vmatmul.mubr.msk.bf16.vlgmr.msra.gmra.mrb[76].mxu0 %vm413_vm0, %v269_v61  ;;  %6676 = vmatmul.mubr.msk.bf16.vlgmr.msra.gmra.mrb[76].mxu1 %vm413_vm0, %v271_v62 }
 0x14f   : > { %6680 = vmatpush3.bf16.msra.mxu0 %v7917_v2  ;;  %6692 = vmatpush3.bf16.msra.mxu1 %v7917_v2 }
 0x150   : > { %6681 = vmatprep.subr.bf16.mxu0 %v7926_v6  ;;  %6693 = vmatprep.subr.bf16.mxu1 %v7926_v6 }
 0x151   : > { %v7939_v41 = vpop.f32.mrb[24].mxu0  ;;  %v7941_v42 = vpop.f32.mrb[24].mxu1  ;;  %6687 = vmatprep.mubr.msk.bf16.mxu0 %vm413_vm0, %v7523_v48  ;;  %6699 = vmatprep.mubr.msk.bf16.mxu1 %vm413_vm0, %v7562_v58  ;;  %v7962_v48 = vld [vmem:[%s9122_s1 + $0x58] sm:$0xff]   ;;  %v5494_v58 = vld [vmem:[%s7248_s23 + $0x28] sm:$0xf] }
 0x152   : > { %9125 = vst [vmem:[#allocation2_spill] sm:$0xff] %v7939_v41  ;;  %9126 = vst [vmem:[#allocation3_spill] sm:$0xff] %v7941_v42  ;;  %v7947_v57 = vpop.f32.mrb[25].mxu0  ;;  %v7949_v60 = vpop.f32.mrb[25].mxu1 }
 0x153   : > { %9127 = vst [vmem:[#allocation4_spill] sm:$0xff] %v7949_v60  ;;  %v6354_v61 = vpop.f32.mrb[26].mxu0  ;;  %v6366_v62 = vpop.f32.mrb[26].mxu1  ;;  %6682 = vmatpush3.bf16.msra.mxu0 %v7926_v6  ;;  %6694 = vmatpush3.bf16.msra.mxu1 %v7926_v6 }
 0x154   : > { %v7953_v41 = vpop.f32.mrb[27].mxu0  ;;  %v7955_v42 = vpop.f32.mrb[27].mxu1  ;;  %6683 = vmatprep.subr.bf16.mxu0 %v7937_v49  ;;  %6695 = vmatprep.subr.bf16.mxu1 %v7937_v49  ;;  %v5497_v61 = vld [vmem:[%s7248_s23 + $0x40] sm:$0xf]  ;;  %v2660_v62 = vpack.c.bf16 %v5494_v58, %v5494_v58 }
 0x155   : > { %9128 = vst [vmem:[#allocation5_spill] sm:$0xff] %v7953_v41  ;;  %9129 = vst [vmem:[#allocation6_spill] sm:$0xff] %v7955_v42  ;;  %v2662_v42 = vpack.c.bf16 %v5497_v61, %v5497_v61 }
 0x157   : > { %6684 = vmatpush3.bf16.msra.mxu0 %v7937_v49  ;;  %6696 = vmatpush3.bf16.msra.mxu1 %v7937_v49 }
 0x158   : > { %6685 = vmatprep.subr.bf16.mxu0 %v7962_v48  ;;  %6697 = vmatprep.subr.bf16.mxu1 %v7962_v48 }
 0x15b   : > { %6686 = vmatpush3.bf16.msra.mxu0 %v7962_v48  ;;  %6698 = vmatpush3.bf16.msra.mxu1 %v7962_v48 }
 0x15c   : > { %6703 = vmatprep.subr.bf16.mxu0 %v7917_v2  ;;  %6715 = vmatprep.subr.bf16.mxu1 %v7917_v2 }
 0x15e   : > { %6688 = vmatmul.mubr.msk.bf16.vlgmr.msra.gmra.mrb[80].mxu0 %vm413_vm0, %v2660_v62  ;;  %6700 = vmatmul.mubr.msk.bf16.vlgmr.msra.gmra.mrb[80].mxu1 %vm413_vm0, %v2662_v42 }
 0x15f   : > { %6704 = vmatpush3.bf16.msra.mxu0 %v7917_v2  ;;  %6716 = vmatpush3.bf16.msra.mxu1 %v7917_v2 }
 0x160   : > { %6705 = vmatprep.subr.bf16.mxu0 %v7926_v6  ;;  %6717 = vmatprep.subr.bf16.mxu1 %v7926_v6 }
 0x161   : > { %v7980_v58 = vpop.f32.mrb[28].mxu0  ;;  %v7982_v61 = vpop.f32.mrb[28].mxu1  ;;  %6711 = vmatprep.mubr.msk.bf16.mxu0 %vm413_vm0, %v7564_v59  ;;  %6723 = vmatprep.mubr.msk.bf16.mxu1 %vm413_vm0, %v7594_v8  ;;  %v5500_v59 = vld [vmem:[%s7248_s23 + $0x58] sm:$0xf]  ;;  %v5503_v8 = vld [vmem:[%s7248_s23 + $0x70] sm:$0xf] }
 0x162   : > { %9130 = vst [vmem:[#allocation7_spill] sm:$0xff] %v7980_v58  ;;  %9131 = vst [vmem:[#allocation8_spill] sm:$0xff] %v7982_v61  ;;  %v7988_v42 = vpop.f32.mrb[29].mxu0  ;;  %v7990_v62 = vpop.f32.mrb[29].mxu1 }
 0x163   : > { %v6378_v41 = vpop.f32.mrb[30].mxu0  ;;  %v6390_v60 = vpop.f32.mrb[30].mxu1  ;;  %6706 = vmatpush3.bf16.msra.mxu0 %v7926_v6  ;;  %6718 = vmatpush3.bf16.msra.mxu1 %v7926_v6 }
 0x164   : > { %v7994_v58 = vpop.f32.mrb[31].mxu0  ;;  %v7996_v61 = vpop.f32.mrb[31].mxu1  ;;  %6707 = vmatprep.subr.bf16.mxu0 %v7937_v49  ;;  %6719 = vmatprep.subr.bf16.mxu1 %v7937_v49  ;;  %v2664_v41 = vpack.c.bf16 %v5500_v59, %v5500_v59  ;;  %v2666_v60 = vpack.c.bf16 %v5503_v8, %v5503_v8 }
 0x165   : > { %9132 = vst [vmem:[#allocation9_spill] sm:$0xff] %v7994_v58  ;;  %9133 = vst [vmem:[#allocation10_spill] sm:$0xff] %v7996_v61 }
 0x167   : > { %6708 = vmatpush3.bf16.msra.mxu0 %v7937_v49  ;;  %6720 = vmatpush3.bf16.msra.mxu1 %v7937_v49 }
 0x168   : > { %6709 = vmatprep.subr.bf16.mxu0 %v7962_v48  ;;  %6721 = vmatprep.subr.bf16.mxu1 %v7962_v48 }
 0x16b   : > { %6710 = vmatpush3.bf16.msra.mxu0 %v7962_v48  ;;  %6722 = vmatpush3.bf16.msra.mxu1 %v7962_v48 }
 0x16c   : > { %6727 = vmatprep.subr.bf16.mxu0 %v7917_v2  ;;  %6739 = vmatprep.subr.bf16.mxu1 %v7917_v2 }
 0x16e   : > { %6712 = vmatmul.mubr.msk.bf16.vlgmr.msra.gmra.mrb[84].mxu0 %vm413_vm0, %v2664_v41  ;;  %6724 = vmatmul.mubr.msk.bf16.vlgmr.msra.gmra.mrb[84].mxu1 %vm413_vm0, %v2666_v60 }
 0x16f   : > { %6728 = vmatpush3.bf16.msra.mxu0 %v7917_v2  ;;  %6740 = vmatpush3.bf16.msra.mxu1 %v7917_v2 }
 0x170   : > { %6729 = vmatprep.subr.bf16.mxu0 %v7926_v6  ;;  %6741 = vmatprep.subr.bf16.mxu1 %v7926_v6 }
 0x171   : > { %v8016_v59 = vpop.f32.mrb[32].mxu0  ;;  %v8018_v8 = vpop.f32.mrb[32].mxu1  ;;  %6735 = vmatprep.mubr.msk.bf16.mxu0 %vm413_vm0, %v7596_v9  ;;  %6747 = vmatprep.mubr.msk.bf16.mxu1 %vm413_vm0, %v7626_v18  ;;  %v5506_v9 = vld [vmem:[%s7248_s23 + $0x88] sm:$0xf]  ;;  %v5509_v18 = vld [vmem:[%s7248_s23 + $0xa0] sm:$0xf] }
 0x172   : > { %9134 = vst [vmem:[#allocation11_spill] sm:$0xff] %v8016_v59  ;;  %9135 = vst [vmem:[#allocation12_spill] sm:$0xff] %v8018_v8  ;;  %v8024_v41 = vpop.f32.mrb[33].mxu0  ;;  %v8026_v60 = vpop.f32.mrb[33].mxu1 }
 0x173   : > { %9136 = vst [vmem:[#allocation13_spill] sm:$0xff] %v8026_v60  ;;  %v6402_v61 = vpop.f32.mrb[34].mxu0  ;;  %v6414_v58 = vpop.f32.mrb[34].mxu1  ;;  %6730 = vmatpush3.bf16.msra.mxu0 %v7926_v6  ;;  %6742 = vmatpush3.bf16.msra.mxu1 %v7926_v6 }
 0x174   : > { %v8030_v59 = vpop.f32.mrb[35].mxu0  ;;  %v8032_v8 = vpop.f32.mrb[35].mxu1  ;;  %6731 = vmatprep.subr.bf16.mxu0 %v7937_v49  ;;  %6743 = vmatprep.subr.bf16.mxu1 %v7937_v49  ;;  %v2668_v58 = vpack.c.bf16 %v5506_v9, %v5506_v9  ;;  %v2670_v61 = vpack.c.bf16 %v5509_v18, %v5509_v18 }
 0x175   : > { %9137 = vst [vmem:[#allocation14_spill] sm:$0xff] %v8030_v59  ;;  %9138 = vst [vmem:[#allocation15_spill] sm:$0xff] %v8032_v8 }
 0x177   : > { %6732 = vmatpush3.bf16.msra.mxu0 %v7937_v49  ;;  %6744 = vmatpush3.bf16.msra.mxu1 %v7937_v49 }
 0x178   : > { %6733 = vmatprep.subr.bf16.mxu0 %v7962_v48  ;;  %6745 = vmatprep.subr.bf16.mxu1 %v7962_v48 }
 0x17b   : > { %6734 = vmatpush3.bf16.msra.mxu0 %v7962_v48  ;;  %6746 = vmatpush3.bf16.msra.mxu1 %v7962_v48 }
 0x17c   : > { %6751 = vmatprep.subr.bf16.mxu0 %v7917_v2  ;;  %6763 = vmatprep.subr.bf16.mxu1 %v7917_v2 }
 0x17e   : > { %6736 = vmatmul.mubr.msk.bf16.vlgmr.msra.gmra.mrb[88].mxu0 %vm413_vm0, %v2668_v58  ;;  %6748 = vmatmul.mubr.msk.bf16.vlgmr.msra.gmra.mrb[88].mxu1 %vm413_vm0, %v2670_v61 }
 0x17f   : > { %6752 = vmatpush3.bf16.msra.mxu0 %v7917_v2  ;;  %6764 = vmatpush3.bf16.msra.mxu1 %v7917_v2 }
 0x180   : > { %6753 = vmatprep.subr.bf16.mxu0 %v7926_v6  ;;  %6765 = vmatprep.subr.bf16.mxu1 %v7926_v6 }
 0x181   : > { %v8052_v9 = vpop.f32.mrb[36].mxu0  ;;  %v8054_v18 = vpop.f32.mrb[36].mxu1  ;;  %6759 = vmatprep.mubr.msk.bf16.mxu0 %vm413_vm0, %v7628_v19  ;;  %6771 = vmatprep.mubr.msk.bf16.mxu1 %vm413_vm0, %v7658_v28  ;;  %v5512_v19 = vld [vmem:[%s7248_s23 + $0xb8] sm:$0xf]  ;;  %v5515_v28 = vld [vmem:[%s7248_s23 + $0xd0] sm:$0xf] }
 0x182   : > { %9139 = vst [vmem:[#allocation16_spill] sm:$0xff] %v8052_v9  ;;  %9140 = vst [vmem:[#allocation17_spill] sm:$0xff] %v8054_v18  ;;  %v8060_v58 = vpop.f32.mrb[37].mxu0  ;;  %v8062_v61 = vpop.f32.mrb[37].mxu1 }
 0x183   : > { %9141 = vst [vmem:[#allocation18_spill] sm:$0xff] %v8060_v58  ;;  %9142 = vst [vmem:[#allocation19_spill] sm:$0xff] %v8062_v61  ;;  %v6426_v8 = vpop.f32.mrb[38].mxu0  ;;  %v6438_v59 = vpop.f32.mrb[38].mxu1  ;;  %6754 = vmatpush3.bf16.msra.mxu0 %v7926_v6  ;;  %6766 = vmatpush3.bf16.msra.mxu1 %v7926_v6 }
 0x184   : > { %v8066_v9 = vpop.f32.mrb[39].mxu0  ;;  %v8068_v18 = vpop.f32.mrb[39].mxu1  ;;  %6755 = vmatprep.subr.bf16.mxu0 %v7937_v49  ;;  %6767 = vmatprep.subr.bf16.mxu1 %v7937_v49  ;;  %v2672_v59 = vpack.c.bf16 %v5512_v19, %v5512_v19  ;;  %v2674_v8 = vpack.c.bf16 %v5515_v28, %v5515_v28 }
 0x185   : > { %9143 = vst [vmem:[#allocation20_spill] sm:$0xff] %v8066_v9  ;;  %9144 = vst [vmem:[#allocation21_spill] sm:$0xff] %v8068_v18 }
 0x187   : > { %6756 = vmatpush3.bf16.msra.mxu0 %v7937_v49  ;;  %6768 = vmatpush3.bf16.msra.mxu1 %v7937_v49 }
 0x188   : > { %6757 = vmatprep.subr.bf16.mxu0 %v7962_v48  ;;  %6769 = vmatprep.subr.bf16.mxu1 %v7962_v48 }
 0x18b   : > { %6758 = vmatpush3.bf16.msra.mxu0 %v7962_v48  ;;  %6770 = vmatpush3.bf16.msra.mxu1 %v7962_v48 }
 0x18c   : > { %6775 = vmatprep.subr.bf16.mxu0 %v7917_v2  ;;  %6787 = vmatprep.subr.bf16.mxu1 %v7917_v2 }
 0x18e   : > { %6760 = vmatmul.mubr.msk.bf16.vlgmr.msra.gmra.mrb[92].mxu0 %vm413_vm0, %v2672_v59  ;;  %6772 = vmatmul.mubr.msk.bf16.vlgmr.msra.gmra.mrb[92].mxu1 %vm413_vm0, %v2674_v8 }
 0x18f   : > { %6776 = vmatpush3.bf16.msra.mxu0 %v7917_v2  ;;  %6788 = vmatpush3.bf16.msra.mxu1 %v7917_v2 }
 0x190   : > { %6777 = vmatprep.subr.bf16.mxu0 %v7926_v6  ;;  %6789 = vmatprep.subr.bf16.mxu1 %v7926_v6 }
 0x191   : > { %v6449_v19 = vpop.f32.mrb[40].mxu0  ;;  %v6461_v28 = vpop.f32.mrb[40].mxu1  ;;  %6783 = vmatprep.mubr.msk.bf16.mxu0 %vm413_vm0, %v7660_v29  ;;  %6795 = vmatprep.mubr.msk.bf16.mxu1 %vm413_vm0, %v7702_v45 }
 0x192   : > { %v8093_v59 = vadd.f32 %v6449_v19, %v7668_v30  ;;  %v8096_v8 = vadd.f32 %v6461_v28, %v7670_v31  ;;  %v1558_v18 = vpop.f32.mrb[41].mxu0  ;;  %v1612_v9 = vpop.f32.mrb[41].mxu1 }
 0x193   : > { %v8099_v61 = vadd.f32 %v1558_v18, %v7676_v32  ;;  %v8102_v58 = vadd.f32 %v1612_v9, %v7678_v33  ;;  %v6450_v29 = vpop.f32.mrb[42].mxu0  ;;  %v6462_v60 = vpop.f32.mrb[42].mxu1  ;;  %6778 = vmatpush3.bf16.msra.mxu0 %v7926_v6  ;;  %6790 = vmatpush3.bf16.msra.mxu1 %v7926_v6  ;;  %v5518_v33 = vld [vmem:[%s7248_s23 + $0xe8] sm:$0xf] }
 0x194   : > { %v1561_v30 = vpop.f32.mrb[43].mxu0  ;;  %v1615_v45 = vpop.f32.mrb[43].mxu1  ;;  %6779 = vmatprep.subr.bf16.mxu0 %v7937_v49  ;;  %6791 = vmatprep.subr.bf16.mxu1 %v7937_v49  ;;  %v5521_v60 = vld [vmem:[%s7248_s23 + $0x100] sm:$0xf]  ;;  %v2676_v9 = vpack.c.bf16 %v5518_v33, %v5518_v33 }
 0x195   : > { %v8109_v31 = vadd.f32 %v1561_v30, %v7682_v36  ;;  %v8112_v32 = vadd.f32 %v1615_v45, %v7684_v37  ;;  %v2678_v18 = vpack.c.bf16 %v5521_v60, %v5521_v60 }
 0x197   : > { %6780 = vmatpush3.bf16.msra.mxu0 %v7937_v49  ;;  %6792 = vmatpush3.bf16.msra.mxu1 %v7937_v49 }
 0x198   : > { %6781 = vmatprep.subr.bf16.mxu0 %v7962_v48  ;;  %6793 = vmatprep.subr.bf16.mxu1 %v7962_v48 }
 0x19b   : > { %6782 = vmatpush3.bf16.msra.mxu0 %v7962_v48  ;;  %6794 = vmatpush3.bf16.msra.mxu1 %v7962_v48 }
 0x19c   : > { %6799 = vmatprep.subr.bf16.mxu0 %v7917_v2  ;;  %6811 = vmatprep.subr.bf16.mxu1 %v7917_v2 }
 0x19e   : > { %6784 = vmatmul.mubr.msk.bf16.vlgmr.msra.gmra.mrb[96].mxu0 %vm413_vm0, %v2676_v9  ;;  %6796 = vmatmul.mubr.msk.bf16.vlgmr.msra.gmra.mrb[96].mxu1 %vm413_vm0, %v2678_v18  ;;  %v5527_v9 = vld [vmem:[%s7248_s23 + $0x130] sm:$0xf] }
 0x19f   : > { %6800 = vmatpush3.bf16.msra.mxu0 %v7917_v2  ;;  %6812 = vmatpush3.bf16.msra.mxu1 %v7917_v2 }
 0x1a0   : > { %6801 = vmatprep.subr.bf16.mxu0 %v7926_v6  ;;  %6813 = vmatprep.subr.bf16.mxu1 %v7926_v6 }
 0x1a1   : > { %v6473_v36 = vpop.f32.mrb[44].mxu0  ;;  %v6485_v37 = vpop.f32.mrb[44].mxu1  ;;  %6807 = vmatprep.mubr.msk.bf16.mxu0 %vm413_vm0, %v7704_v46  ;;  %6819 = vmatprep.mubr.msk.bf16.mxu1 %vm413_vm0, %v7746_v7 }
 0x1a2   : > { %v8135_v19 = vadd.f32 %v6473_v36, %v7712_v47  ;;  %v8138_v28 = vadd.f32 %v6485_v37, %v7714_v50  ;;  %v1666_v29 = vpop.f32.mrb[45].mxu0  ;;  %v1720_v30 = vpop.f32.mrb[45].mxu1  ;;  %v2682_v36 = vpack.c.bf16 %v5527_v9, %v5527_v9 }
 0x1a3   : > { %v8141_v45 = vadd.f32 %v1666_v29, %v7720_v51  ;;  %v8144_v33 = vadd.f32 %v1720_v30, %v7722_v52  ;;  %v6474_v46 = vpop.f32.mrb[46].mxu0  ;;  %v6486_v60 = vpop.f32.mrb[46].mxu1  ;;  %6802 = vmatpush3.bf16.msra.mxu0 %v7926_v6  ;;  %6814 = vmatpush3.bf16.msra.mxu1 %v7926_v6  ;;  %v5524_v52 = vld [vmem:[%s7248_s23 + $0x118] sm:$0xf] }
 0x1a4   : > { %v1669_v47 = vpop.f32.mrb[47].mxu0  ;;  %v1723_v7 = vpop.f32.mrb[47].mxu1  ;;  %6803 = vmatprep.subr.bf16.mxu0 %v7937_v49  ;;  %6815 = vmatprep.subr.bf16.mxu1 %v7937_v49  ;;  %v2680_v18 = vpack.c.bf16 %v5524_v52, %v5524_v52  ;;  %v5533_v52 = vld [vmem:[%s7248_s23 + $0x160] sm:$0xf] }
 0x1a5   : > { %v8151_v50 = vadd.f32 %v1669_v47, %v7726_v55  ;;  %v8154_v51 = vadd.f32 %v1723_v7, %v7728_v56 }
 0x1a7   : > { %6804 = vmatpush3.bf16.msra.mxu0 %v7937_v49  ;;  %6816 = vmatpush3.bf16.msra.mxu1 %v7937_v49 }
 0x1a8   : > { %6805 = vmatprep.subr.bf16.mxu0 %v7962_v48  ;;  %6817 = vmatprep.subr.bf16.mxu1 %v7962_v48 }
 0x1ab   : > { %6806 = vmatpush3.bf16.msra.mxu0 %v7962_v48  ;;  %6818 = vmatpush3.bf16.msra.mxu1 %v7962_v48 }
 0x1ac   : > { %6823 = vmatprep.subr.bf16.mxu0 %v7917_v2  ;;  %6835 = vmatprep.subr.bf16.mxu1 %v7917_v2 }
 0x1ae   : > { %6808 = vmatmul.mubr.msk.bf16.vlgmr.msra.gmra.mrb[100].mxu0 %vm413_vm0, %v2680_v18  ;;  %6820 = vmatmul.mubr.msk.bf16.vlgmr.msra.gmra.mrb[100].mxu1 %vm413_vm0, %v2682_v36  ;;  %v2686_v18 = vpack.c.bf16 %v5533_v52, %v5533_v52 }
 0x1af   : > { %6824 = vmatpush3.bf16.msra.mxu0 %v7917_v2  ;;  %6836 = vmatpush3.bf16.msra.mxu1 %v7917_v2 }
 0x1b0   : > { %6825 = vmatprep.subr.bf16.mxu0 %v7926_v6  ;;  %6837 = vmatprep.subr.bf16.mxu1 %v7926_v6 }
 0x1b1   : > { %v6497_v55 = vpop.f32.mrb[48].mxu0  ;;  %v6509_v56 = vpop.f32.mrb[48].mxu1  ;;  %6831 = vmatprep.mubr.msk.bf16.mxu0 %vm413_vm0, %v7748_v10  ;;  %6843 = vmatprep.mubr.msk.bf16.mxu1 %vm413_vm0, %v7790_v35 }
 0x1b2   : > { %v8177_v37 = vadd.f32 %v6497_v55, %v7756_v11  ;;  %v8180_v29 = vadd.f32 %v6509_v56, %v7758_v12  ;;  %v1774_v30 = vpop.f32.mrb[49].mxu0  ;;  %v1828_v46 = vpop.f32.mrb[49].mxu1 }
 0x1b3   : > { %v8183_v60 = vadd.f32 %v1774_v30, %v7764_v13  ;;  %v8186_v47 = vadd.f32 %v1828_v46, %v7766_v14  ;;  %v6498_v10 = vpop.f32.mrb[50].mxu0  ;;  %v6510_v7 = vpop.f32.mrb[50].mxu1  ;;  %6826 = vmatpush3.bf16.msra.mxu0 %v7926_v6  ;;  %6838 = vmatpush3.bf16.msra.mxu1 %v7926_v6  ;;  %v5530_v14 = vld [vmem:[%s7248_s23 + $0x148] sm:$0xf] }
 0x1b4   : > { %v1777_v11 = vpop.f32.mrb[51].mxu0  ;;  %v1831_v35 = vpop.f32.mrb[51].mxu1  ;;  %6827 = vmatprep.subr.bf16.mxu0 %v7937_v49  ;;  %6839 = vmatprep.subr.bf16.mxu1 %v7937_v49  ;;  %v2684_v9 = vpack.c.bf16 %v5530_v14, %v5530_v14 }
 0x1b5   : > { %v8193_v12 = vadd.f32 %v1777_v11, %v7770_v17  ;;  %v8196_v13 = vadd.f32 %v1831_v35, %v7772_v20  ;;  %v5539_v11 = vld [vmem:[%s7248_s23 + $0x190] sm:$0xf] }
 0x1b6   : > { %v2690_v14 = vpack.c.bf16 %v5539_v11, %v5539_v11 }
 0x1b7   : > { %6828 = vmatpush3.bf16.msra.mxu0 %v7937_v49  ;;  %6840 = vmatpush3.bf16.msra.mxu1 %v7937_v49 }
 0x1b8   : > { %6829 = vmatprep.subr.bf16.mxu0 %v7962_v48  ;;  %6841 = vmatprep.subr.bf16.mxu1 %v7962_v48 }
 0x1bb   : > { %6830 = vmatpush3.bf16.msra.mxu0 %v7962_v48  ;;  %6842 = vmatpush3.bf16.msra.mxu1 %v7962_v48 }
 0x1bc   : > { %6847 = vmatprep.subr.bf16.mxu0 %v7917_v2  ;;  %6859 = vmatprep.subr.bf16.mxu1 %v7917_v2 }
 0x1be   : > { %6832 = vmatmul.mubr.msk.bf16.vlgmr.msra.gmra.mrb[104].mxu0 %vm413_vm0, %v2684_v9  ;;  %6844 = vmatmul.mubr.msk.bf16.vlgmr.msra.gmra.mrb[104].mxu1 %vm413_vm0, %v2686_v18 }
 0x1bf   : > { %6848 = vmatpush3.bf16.msra.mxu0 %v7917_v2  ;;  %6860 = vmatpush3.bf16.msra.mxu1 %v7917_v2 }
 0x1c0   : > { %6849 = vmatprep.subr.bf16.mxu0 %v7926_v6  ;;  %6861 = vmatprep.subr.bf16.mxu1 %v7926_v6 }
 0x1c1   : > { %v6521_v17 = vpop.f32.mrb[52].mxu0  ;;  %v6533_v20 = vpop.f32.mrb[52].mxu1  ;;  %6855 = vmatprep.mubr.msk.bf16.mxu0 %vm413_vm0, %v7792_v38  ;;  %6867 = vmatprep.mubr.msk.bf16.mxu1 %vm413_vm0, %v7834_v5 }
 0x1c2   : > { %v8219_v36 = vadd.f32 %v6521_v17, %v7800_v39  ;;  %v8222_v55 = vadd.f32 %v6533_v20, %v7802_v0  ;;  %v1882_v56 = vpop.f32.mrb[53].mxu0  ;;  %v1936_v30 = vpop.f32.mrb[53].mxu1 }
 0x1c3   : > { %v8225_v46 = vadd.f32 %v1882_v56, %v7808_v40  ;;  %v8228_v10 = vadd.f32 %v1936_v30, %v7810_v1  ;;  %v6522_v38 = vpop.f32.mrb[54].mxu0  ;;  %v6534_v7 = vpop.f32.mrb[54].mxu1  ;;  %6850 = vmatpush3.bf16.msra.mxu0 %v7926_v6  ;;  %6862 = vmatpush3.bf16.msra.mxu1 %v7926_v6  ;;  %v5536_v1 = vld [vmem:[%s7248_s23 + $0x178] sm:$0xf] }
 0x1c4   : > { %v1885_v39 = vpop.f32.mrb[55].mxu0  ;;  %v1939_v5 = vpop.f32.mrb[55].mxu1  ;;  %6851 = vmatprep.subr.bf16.mxu0 %v7937_v49  ;;  %6863 = vmatprep.subr.bf16.mxu1 %v7937_v49  ;;  %v2688_v35 = vpack.c.bf16 %v5536_v1, %v5536_v1  ;;  %v5545_v38 = vld [vmem:[%s7248_s23 + $0x1c0] sm:$0xf]  ;;  %v5550_v1 = vld [vmem:[%s7248_s23 + $0x1e8] sm:$0xff] }
 0x1c5   : > { %v8235_v0 = vadd.f32 %v1885_v39, %v7814_v44  ;;  %v8238_v40 = vadd.f32 %v1939_v5, %v7816_v53  ;;  %v2694_v39 = vpack.c.bf16 %v5545_v38, %v5545_v38  ;;  %v5549_v5 = vld [vmem:[%s7248_s23 + $0x1e0] sm:$0xff] }
 0x1c6   : > { %v5608_v38 = vld [vmem:[%s7248_s23 + $0x39] sm:$0xff] }
 0x1c7   : > { %6852 = vmatpush3.bf16.msra.mxu0 %v7937_v49  ;;  %6864 = vmatpush3.bf16.msra.mxu1 %v7937_v49 }
 0x1c8   : > { %6853 = vmatprep.subr.bf16.mxu0 %v7962_v48  ;;  %6865 = vmatprep.subr.bf16.mxu1 %v7962_v48 }
 0x1cb   : > { %6854 = vmatpush3.bf16.msra.mxu0 %v7962_v48  ;;  %6866 = vmatpush3.bf16.msra.mxu1 %v7962_v48 }
 0x1cc   : > { %6871 = vmatprep.subr.bf16.mxu0 %v7917_v2  ;;  %6883 = vmatprep.subr.bf16.mxu1 %v7917_v2 }
 0x1ce   : > { %6856 = vmatmul.mubr.msk.bf16.vlgmr.msra.gmra.mrb[108].mxu0 %vm413_vm0, %v2688_v35  ;;  %6868 = vmatmul.mubr.msk.bf16.vlgmr.msra.gmra.mrb[108].mxu1 %vm413_vm0, %v2690_v14 }
 0x1cf   : > { %6872 = vmatpush3.bf16.msra.mxu0 %v7917_v2  ;;  %6884 = vmatpush3.bf16.msra.mxu1 %v7917_v2 }
 0x1d0   : > { %6873 = vmatprep.subr.bf16.mxu0 %v7926_v6  ;;  %6885 = vmatprep.subr.bf16.mxu1 %v7926_v6 }
 0x1d1   : > { %v6545_v44 = vpop.f32.mrb[56].mxu0  ;;  %v6557_v53 = vpop.f32.mrb[56].mxu1  ;;  %6879 = vmatprep.mubr.msk.bf16.mxu0 %vm413_vm0, %v7836_v15  ;;  %6891 = vmatprep.mubr.msk.bf16.mxu1 %vm413_vm0, %v7878_v63  ;;  %v5542_v63 = vld [vmem:[%s7248_s23 + $0x1a8] sm:$0xf] }
 0x1d2   : > { %v8261_v52 = vadd.f32 %v6545_v44, %v7844_v16  ;;  %v8264_v9 = vadd.f32 %v6557_v53, %v7846_v21  ;;  %v1990_v18 = vpop.f32.mrb[57].mxu0  ;;  %v2044_v17 = vpop.f32.mrb[57].mxu1  ;;  %v2692_v7 = vpack.c.bf16 %v5542_v63, %v5542_v63  ;;  %v5607_v63 = vld [vmem:[%s7248_s23 + $0x31] sm:$0xff] }
 0x1d3   : > { %v8267_v20 = vadd.f32 %v1990_v18, %v7852_v22  ;;  %v8270_v56 = vadd.f32 %v2044_v17, %v7854_v23  ;;  %v6546_v15 = vpop.f32.mrb[58].mxu0  ;;  %v6558_v30 = vpop.f32.mrb[58].mxu1  ;;  %6874 = vmatpush3.bf16.msra.mxu0 %v7926_v6  ;;  %6886 = vmatpush3.bf16.msra.mxu1 %v7926_v6 }
 0x1d4   : > { %v1993_v16 = vpop.f32.mrb[59].mxu0  ;;  %v2047_v21 = vpop.f32.mrb[59].mxu1  ;;  %6875 = vmatprep.subr.bf16.mxu0 %v7937_v49  ;;  %6887 = vmatprep.subr.bf16.mxu1 %v7937_v49  ;;  %v5551_v15 = vld [vmem:[%s7248_s23 + $0x1f0] sm:$0xf]  ;;  %v8334_v30 = vld [vmem:[%s9122_s1 + $0x60] sm:$0xff]  }
 0x1d5   : > { %v8277_v22 = vadd.f32 %v1993_v16, %v7858_v26  ;;  %v8280_v23 = vadd.f32 %v2047_v21, %v7860_v27  ;;  %v2697_v26 = vpack.c.bf16 %v5550_v1, %v5549_v5  ;;  %v2698_v21 = vpack.c.bf16 %v5551_v15, %v5551_v15 }
 0x1d7   : > { %6876 = vmatpush3.bf16.msra.mxu0 %v7937_v49  ;;  %6888 = vmatpush3.bf16.msra.mxu1 %v7937_v49 }
 0x1d8   : > { %6877 = vmatprep.subr.bf16.mxu0 %v7962_v48  ;;  %6889 = vmatprep.subr.bf16.mxu1 %v7962_v48 }
 0x1db   : > { %6878 = vmatpush3.bf16.msra.mxu0 %v7962_v48  ;;  %6890 = vmatpush3.bf16.msra.mxu1 %v7962_v48 }
 0x1dc   : > { %6895 = vmatprep.subr.bf16.mxu0 %v7917_v2  ;;  %6907 = vmatprep.subr.bf16.mxu1 %v7917_v2 }
 0x1de   : > { %6880 = vmatmul.mubr.msk.bf16.vlgmr.msra.gmra.mrb[112].mxu0 %vm413_vm0, %v2692_v7  ;;  %6892 = vmatmul.mubr.msk.bf16.vlgmr.msra.gmra.mrb[112].mxu1 %vm413_vm0, %v2694_v39  ;;  %v3934_v39 = vpack.c.bf16 %v5608_v38, %v5607_v63  ;;  %v9149_v63 = vld [vmem:[#allocation6_spill] sm:$0xff] }
 0x1df   : > { %6896 = vmatpush3.bf16.msra.mxu0 %v7917_v2  ;;  %6908 = vmatpush3.bf16.msra.mxu1 %v7917_v2 }
 0x1e0   : > { %6897 = vmatprep.subr.bf16.mxu0 %v7926_v6  ;;  %6909 = vmatprep.subr.bf16.mxu1 %v7926_v6 }
 0x1e1   : > { %v6569_v27 = vpop.f32.mrb[60].mxu0  ;;  %v6581_v11 = vpop.f32.mrb[60].mxu1  ;;  %6903 = vmatprep.mubr.msk.bf16.mxu0 %vm413_vm0, %v7880_v3  ;;  %6915 = vmatprep.mubr.msk.bf16.mxu1 %vm413_vm0, %v2697_v26  ;;  %v9145_v26 = vld [vmem:[#allocation2_spill] sm:$0xff] }
 0x1e2   : > { %v8304_v35 = vadd.f32 %v6569_v27, %v7888_v4  ;;  %v8307_v14 = vadd.f32 %v6581_v11, %v7890_v24  ;;  %v2098_v44 = vpop.f32.mrb[61].mxu0  ;;  %v2152_v2 = vpop.f32.mrb[61].mxu1  ;;  %v9146_v11 = vld [vmem:[#allocation3_spill] sm:$0xff] }
 0x1e3   : > { %v8310_v53 = vadd.f32 %v2098_v44, %v7896_v25  ;;  %v8313_v18 = vadd.f32 %v2152_v2, %v7898_v34  ;;  %v6570_v17 = vpop.f32.mrb[62].mxu0  ;;  %v6582_v3 = vpop.f32.mrb[62].mxu1  ;;  %6898 = vmatpush3.bf16.msra.mxu0 %v7926_v6  ;;  %6910 = vmatpush3.bf16.msra.mxu1 %v7926_v6  ;;  %v5548_v6 = vld [vmem:[%s7248_s23 + $0x1d8] sm:$0xf] }
 0x1e4   : > { %v2101_v4 = vpop.f32.mrb[63].mxu0  ;;  %v2155_v24 = vpop.f32.mrb[63].mxu1  ;;  %6899 = vmatprep.subr.bf16.mxu0 %v7937_v49  ;;  %6911 = vmatprep.subr.bf16.mxu1 %v7937_v49  ;;  %v2696_v16 = vpack.c.bf16 %v5548_v6, %v5548_v6 }
 0x1e5   : > { %v8320_v25 = vadd.f32 %v2101_v4, %v7902_v43  ;;  %v8323_v34 = vadd.f32 %v2155_v24, %v7904_v54  ;;  %v5604_v43 = vld [vmem:[%s7248_s23 + $0x19] sm:$0xff]  ;;  %v5605_v54 = vld [vmem:[%s7248_s23 + $0x21] sm:$0xff]  ;;  %v9147_v4 = vld [vmem:[#allocation4_spill] sm:$0xff] }
 0x1e6   : > { %v3932_v7 = vpack.c.bf16 %v5605_v54, %v5604_v43 }
 0x1e7   : > { %6900 = vmatpush3.bf16.msra.mxu0 %v7937_v49  ;;  %6912 = vmatpush3.bf16.msra.mxu1 %v7937_v49  ;;  %v8347_v49 = vld [vmem:[%s9122_s1 + $0x68] sm:$0xff]  }
 0x1e8   : > { %6901 = vmatprep.subr.bf16.mxu0 %v7962_v48  ;;  %6913 = vmatprep.subr.bf16.mxu1 %v7962_v48 }
 0x1eb   : > { %6902 = vmatpush3.bf16.msra.mxu0 %v7962_v48  ;;  %6914 = vmatpush3.bf16.msra.mxu1 %v7962_v48  ;;  %v8358_v48 = vld [vmem:[%s9122_s1 + $0x70] sm:$0xff]  }
 0x1ec   : > { %6919 = vmatprep.subr.bf16.mxu0 %v8334_v30  ;;  %6931 = vmatprep.subr.bf16.mxu1 %v8334_v30 }
 0x1ee   : > { %6904 = vmatmul.mubr.msk.bf16.vlgmr.msra.gmra.mrb[116].mxu0 %vm413_vm0, %v2696_v16  ;;  %6916 = vmatmul.mubr.msk.bf16.vlgmr.msra.gmra.mrb[116].mxu1 %vm413_vm0, %v2698_v21  ;;  %v9148_v21 = vld [vmem:[#allocation5_spill] sm:$0xff] }
 0x1ef   : > { %6920 = vmatpush3.bf16.msra.mxu0 %v8334_v30  ;;  %6932 = vmatpush3.bf16.msra.mxu1 %v8334_v30 }
 0x1f0   : > { %6921 = vmatprep.subr.bf16.mxu0 %v8347_v49  ;;  %6933 = vmatprep.subr.bf16.mxu1 %v8347_v49 }
 0x1f1   : > { %v6593_v5 = vpop.f32.mrb[64].mxu0  ;;  %v6605_v1 = vpop.f32.mrb[64].mxu1  ;;  %6927 = vmatprep.mubr.msk.bf16.mxu0 %vm413_vm0, %v3932_v7  ;;  %6939 = vmatprep.mubr.msk.bf16.mxu1 %vm413_vm0, %v3934_v39  ;;  %v5606_v7 = vld [vmem:[%s7248_s23 + $0x29] sm:$0xf]  ;;  %v5609_v39 = vld [vmem:[%s7248_s23 + $0x41] sm:$0xf] }
 0x1f2   : > { %v8363_v27 = vadd.f32 %v6593_v5, %v9145_v26  ;;  %v8366_v44 = vadd.f32 %v6605_v1, %v9146_v11  ;;  %v2206_v2 = vpop.f32.mrb[65].mxu0  ;;  %v2260_v17 = vpop.f32.mrb[65].mxu1  ;;  %v5610_v5 = vld [vmem:[%s7248_s23 + $0x49] sm:$0xff]  ;;  %v3933_v1 = vpack.c.bf16 %v5606_v7, %v5606_v7  ;;  %v3935_v26 = vpack.c.bf16 %v5609_v39, %v5609_v39  ;;  %v5611_v11 = vld [vmem:[%s7248_s23 + $0x51] sm:$0xff] }
 0x1f3   : > { %v8369_v3 = vadd.f32 %v2206_v2, %v7947_v57  ;;  %v8372_v24 = vadd.f32 %v2260_v17, %v9147_v4  ;;  %v6594_v6 = vpop.f32.mrb[66].mxu0  ;;  %v6606_v15 = vpop.f32.mrb[66].mxu1  ;;  %6922 = vmatpush3.bf16.msra.mxu0 %v8347_v49  ;;  %6934 = vmatpush3.bf16.msra.mxu1 %v8347_v49  ;;  %v8381_v57 = vld [vmem:[%s9122_s1 + $0x78] sm:$0xff]   ;;  %v5613_v2 = vld [vmem:[%s7248_s23 + $0x61] sm:$0xff]  ;;  %v5614_v17 = vld [vmem:[%s7248_s23 + $0x69] sm:$0xff]  ;;  %v3936_v4 = vpack.c.bf16 %v5611_v11, %v5610_v5 }
 0x1f4   : > { %v2209_v43 = vpop.f32.mrb[67].mxu0  ;;  %v2263_v16 = vpop.f32.mrb[67].mxu1  ;;  %6923 = vmatprep.subr.bf16.mxu0 %v8358_v48  ;;  %6935 = vmatprep.subr.bf16.mxu1 %v8358_v48  ;;  %v3938_v6 = vpack.c.bf16 %v5614_v17, %v5613_v2 }
 0x1f5   : > { %v8384_v54 = vadd.f32 %v2209_v43, %v9148_v21  ;;  %v8387_v38 = vadd.f32 %v2263_v16, %v9149_v63  ;;  %v9150_v16 = vld [vmem:[#allocation7_spill] sm:$0xff]  ;;  %v9151_v63 = vld [vmem:[#allocation8_spill] sm:$0xff] }
 0x1f7   : > { %6924 = vmatpush3.bf16.msra.mxu0 %v8358_v48  ;;  %6936 = vmatpush3.bf16.msra.mxu1 %v8358_v48 }
 0x1f8   : > { %6925 = vmatprep.subr.bf16.mxu0 %v8381_v57  ;;  %6937 = vmatprep.subr.bf16.mxu1 %v8381_v57 }
 0x1fb   : > { %6926 = vmatpush3.bf16.msra.mxu0 %v8381_v57  ;;  %6938 = vmatpush3.bf16.msra.mxu1 %v8381_v57 }
 0x1fc   : > { %6943 = vmatprep.subr.bf16.mxu0 %v8334_v30  ;;  %6955 = vmatprep.subr.bf16.mxu1 %v8334_v30 }
 0x1fe   : > { %6928 = vmatmul.mubr.msk.bf16.vlgmr.msra.gmra.mrb[120].mxu0 %vm413_vm0, %v3933_v1  ;;  %6940 = vmatmul.mubr.msk.bf16.vlgmr.msra.gmra.mrb[120].mxu1 %vm413_vm0, %v3935_v26 }
 0x1ff   : > { %6944 = vmatpush3.bf16.msra.mxu0 %v8334_v30  ;;  %6956 = vmatpush3.bf16.msra.mxu1 %v8334_v30 }
 0x200   : > { %6945 = vmatprep.subr.bf16.mxu0 %v8347_v49  ;;  %6957 = vmatprep.subr.bf16.mxu1 %v8347_v49 }
 0x201   : > { %v6617_v15 = vpop.f32.mrb[68].mxu0  ;;  %v6629_v43 = vpop.f32.mrb[68].mxu1  ;;  %6951 = vmatprep.mubr.msk.bf16.mxu0 %vm413_vm0, %v3936_v4  ;;  %6963 = vmatprep.mubr.msk.bf16.mxu1 %vm413_vm0, %v3938_v6 }
 0x202   : > { %v8412_v21 = vadd.f32 %v6617_v15, %v9150_v16  ;;  %v8415_v7 = vadd.f32 %v6629_v43, %v9151_v63  ;;  %v2314_v39 = vpop.f32.mrb[69].mxu0  ;;  %v2368_v5 = vpop.f32.mrb[69].mxu1  ;;  %v5612_v43 = vld [vmem:[%s7248_s23 + $0x59] sm:$0xf]  ;;  %v5615_v16 = vld [vmem:[%s7248_s23 + $0x71] sm:$0xf] }
 0x203   : > { %v8418_v1 = vadd.f32 %v2314_v39, %v7988_v42  ;;  %v8421_v26 = vadd.f32 %v2368_v5, %v7990_v62  ;;  %v6618_v11 = vpop.f32.mrb[70].mxu0  ;;  %v6630_v2 = vpop.f32.mrb[70].mxu1  ;;  %6946 = vmatpush3.bf16.msra.mxu0 %v8347_v49  ;;  %6958 = vmatpush3.bf16.msra.mxu1 %v8347_v49  ;;  %v9153_v42 = vld [vmem:[#allocation9_spill] sm:$0xff]  ;;  %v9155_v62 = vld [vmem:[#allocation10_spill] sm:$0xff]  ;;  %v3937_v39 = vpack.c.bf16 %v5612_v43, %v5612_v43 }
 0x204   : > { %v2317_v17 = vpop.f32.mrb[71].mxu0  ;;  %v2371_v4 = vpop.f32.mrb[71].mxu1  ;;  %6947 = vmatprep.subr.bf16.mxu0 %v8358_v48  ;;  %6959 = vmatprep.subr.bf16.mxu1 %v8358_v48  ;;  %v5616_v63 = vld [vmem:[%s7248_s23 + $0x79] sm:$0xff]  ;;  %v3939_v5 = vpack.c.bf16 %v5615_v16, %v5615_v16  ;;  %v5617_v11 = vld [vmem:[%s7248_s23 + $0x81] sm:$0xff]  ;;  %v5619_v2 = vld [vmem:[%s7248_s23 + $0x91] sm:$0xff] }
 0x205   : > { %9152 = vst [vmem:[#allocation2_spill] sm:$0xff] %v8421_v26  ;;  %v8428_v6 = vadd.f32 %v2317_v17, %v9153_v42  ;;  %v8431_v15 = vadd.f32 %v2371_v4, %v9155_v62  ;;  %v5620_v17 = vld [vmem:[%s7248_s23 + $0x99] sm:$0xff]  ;;  %v3940_v4 = vpack.c.bf16 %v5617_v11, %v5616_v63  ;;  %v9157_v16 = vld [vmem:[#allocation11_spill] sm:$0xff] }
 0x206   : > { %v3942_v42 = vpack.c.bf16 %v5620_v17, %v5619_v2 }
 0x207   : > { %9154 = vst [vmem:[#allocation3_spill] sm:$0xff] %v8428_v6  ;;  %9156 = vst [vmem:[#allocation4_spill] sm:$0xff] %v8431_v15  ;;  %6948 = vmatpush3.bf16.msra.mxu0 %v8358_v48  ;;  %6960 = vmatpush3.bf16.msra.mxu1 %v8358_v48  ;;  %v9162_v15 = vld [vmem:[#allocation13_spill] sm:$0xff] }
 0x208   : > { %6949 = vmatprep.subr.bf16.mxu0 %v8381_v57  ;;  %6961 = vmatprep.subr.bf16.mxu1 %v8381_v57 }
 0x20b   : > { %6950 = vmatpush3.bf16.msra.mxu0 %v8381_v57  ;;  %6962 = vmatpush3.bf16.msra.mxu1 %v8381_v57 }
 0x20c   : > { %6967 = vmatprep.subr.bf16.mxu0 %v8334_v30  ;;  %6979 = vmatprep.subr.bf16.mxu1 %v8334_v30 }
 0x20e   : > { %6952 = vmatmul.mubr.msk.bf16.vlgmr.msra.gmra.mrb[124].mxu0 %vm413_vm0, %v3937_v39  ;;  %6964 = vmatmul.mubr.msk.bf16.vlgmr.msra.gmra.mrb[124].mxu1 %vm413_vm0, %v3939_v5  ;;  %v9159_v39 = vld [vmem:[#allocation12_spill] sm:$0xff] }
 0x20f   : > { %6968 = vmatpush3.bf16.msra.mxu0 %v8334_v30  ;;  %6980 = vmatpush3.bf16.msra.mxu1 %v8334_v30 }
 0x210   : > { %6969 = vmatprep.subr.bf16.mxu0 %v8347_v49  ;;  %6981 = vmatprep.subr.bf16.mxu1 %v8347_v49 }
 0x211   : > { %v6641_v62 = vpop.f32.mrb[72].mxu0  ;;  %v6653_v43 = vpop.f32.mrb[72].mxu1  ;;  %6975 = vmatprep.mubr.msk.bf16.mxu0 %vm413_vm0, %v3940_v4  ;;  %6987 = vmatprep.mubr.msk.bf16.mxu1 %vm413_vm0, %v3942_v42 }
 0x212   : > { %v8456_v63 = vadd.f32 %v6641_v62, %v9157_v16  ;;  %v8459_v11 = vadd.f32 %v6653_v43, %v9159_v39  ;;  %v2422_v5 = vpop.f32.mrb[73].mxu0  ;;  %v2476_v2 = vpop.f32.mrb[73].mxu1  ;;  %v5618_v16 = vld [vmem:[%s7248_s23 + $0x89] sm:$0xf]  ;;  %v5621_v39 = vld [vmem:[%s7248_s23 + $0xa1] sm:$0xf] }
 0x213   : > { %v8462_v17 = vadd.f32 %v2422_v5, %v8024_v41  ;;  %v8465_v6 = vadd.f32 %v2476_v2, %v9162_v15  ;;  %v6642_v26 = vpop.f32.mrb[74].mxu0  ;;  %v6654_v4 = vpop.f32.mrb[74].mxu1  ;;  %6970 = vmatpush3.bf16.msra.mxu0 %v8347_v49  ;;  %6982 = vmatpush3.bf16.msra.mxu1 %v8347_v49  ;;  %v9164_v41 = vld [vmem:[#allocation14_spill] sm:$0xff]  ;;  %v9166_v15 = vld [vmem:[#allocation15_spill] sm:$0xff]  ;;  %v3941_v2 = vpack.c.bf16 %v5618_v16, %v5618_v16 }
 0x214   : > { %9158 = vst [vmem:[#allocation5_spill] sm:$0xff] %v8456_v63  ;;  %9160 = vst [vmem:[#allocation6_spill] sm:$0xff] %v8459_v11  ;;  %v2425_v42 = vpop.f32.mrb[75].mxu0  ;;  %v2479_v62 = vpop.f32.mrb[75].mxu1  ;;  %6971 = vmatprep.subr.bf16.mxu0 %v8358_v48  ;;  %6983 = vmatprep.subr.bf16.mxu1 %v8358_v48  ;;  %v5622_v5 = vld [vmem:[%s7248_s23 + $0xa9] sm:$0xff]  ;;  %v3943_v4 = vpack.c.bf16 %v5621_v39, %v5621_v39  ;;  %v9169_v39 = vld [vmem:[#allocation17_spill] sm:$0xff] }
 0x215   : > { %9161 = vst [vmem:[#allocation7_spill] sm:$0xff] %v8462_v17  ;;  %9163 = vst [vmem:[#allocation8_spill] sm:$0xff] %v8465_v6  ;;  %v8472_v43 = vadd.f32 %v2425_v42, %v9164_v41  ;;  %v8475_v26 = vadd.f32 %v2479_v62, %v9166_v15  ;;  %v5623_v6 = vld [vmem:[%s7248_s23 + $0xb1] sm:$0xff]  ;;  %v5625_v17 = vld [vmem:[%s7248_s23 + $0xc1] sm:$0xff] }
 0x216   : > { %v5626_v42 = vld [vmem:[%s7248_s23 + $0xc9] sm:$0xff]  ;;  %v3944_v62 = vpack.c.bf16 %v5623_v6, %v5622_v5 }
 0x217   : > { %9165 = vst [vmem:[#allocation9_spill] sm:$0xff] %v8472_v43  ;;  %9167 = vst [vmem:[#allocation10_spill] sm:$0xff] %v8475_v26  ;;  %6972 = vmatpush3.bf16.msra.mxu0 %v8358_v48  ;;  %6984 = vmatpush3.bf16.msra.mxu1 %v8358_v48  ;;  %v3946_v41 = vpack.c.bf16 %v5626_v42, %v5625_v17  ;;  %v9168_v6 = vld [vmem:[#allocation16_spill] sm:$0xff]  ;;  %v9170_v42 = vld [vmem:[#allocation18_spill] sm:$0xff] }
 0x218   : > { %6973 = vmatprep.subr.bf16.mxu0 %v8381_v57  ;;  %6985 = vmatprep.subr.bf16.mxu1 %v8381_v57  ;;  %v9172_v43 = vld [vmem:[#allocation19_spill] sm:$0xff] }
 0x21b   : > { %6974 = vmatpush3.bf16.msra.mxu0 %v8381_v57  ;;  %6986 = vmatpush3.bf16.msra.mxu1 %v8381_v57 }
 0x21c   : > { %6991 = vmatprep.subr.bf16.mxu0 %v8334_v30  ;;  %7003 = vmatprep.subr.bf16.mxu1 %v8334_v30 }
 0x21e   : > { %6976 = vmatmul.mubr.msk.bf16.vlgmr.msra.gmra.mrb[128].mxu0 %vm413_vm0, %v3941_v2  ;;  %6988 = vmatmul.mubr.msk.bf16.vlgmr.msra.gmra.mrb[128].mxu1 %vm413_vm0, %v3943_v4 }
 0x21f   : > { %6992 = vmatpush3.bf16.msra.mxu0 %v8334_v30  ;;  %7004 = vmatpush3.bf16.msra.mxu1 %v8334_v30 }
 0x220   : > { %6993 = vmatprep.subr.bf16.mxu0 %v8347_v49  ;;  %7005 = vmatprep.subr.bf16.mxu1 %v8347_v49 }
 0x221   : > { %v6665_v15 = vpop.f32.mrb[76].mxu0  ;;  %v6677_v16 = vpop.f32.mrb[76].mxu1  ;;  %6999 = vmatprep.mubr.msk.bf16.mxu0 %vm413_vm0, %v3944_v62  ;;  %7011 = vmatprep.mubr.msk.bf16.mxu1 %vm413_vm0, %v3946_v41 }
 0x222   : > { %v8500_v17 = vadd.f32 %v6665_v15, %v9168_v6  ;;  %v8503_v5 = vadd.f32 %v6677_v16, %v9169_v39  ;;  %v2530_v2 = vpop.f32.mrb[77].mxu0  ;;  %v2584_v4 = vpop.f32.mrb[77].mxu1  ;;  %v9174_v16 = vld [vmem:[#allocation20_spill] sm:$0xff]  ;;  %v5624_v39 = vld [vmem:[%s7248_s23 + $0xb9] sm:$0xf] }
 0x223   : > { %v8506_v26 = vadd.f32 %v2530_v2, %v9170_v42  ;;  %v8509_v11 = vadd.f32 %v2584_v4, %v9172_v43  ;;  %v6666_v63 = vpop.f32.mrb[78].mxu0  ;;  %v6678_v62 = vpop.f32.mrb[78].mxu1  ;;  %6994 = vmatpush3.bf16.msra.mxu0 %v8347_v49  ;;  %7006 = vmatpush3.bf16.msra.mxu1 %v8347_v49  ;;  %v9175_v43 = vld [vmem:[#allocation21_spill] sm:$0xff]  ;;  %v5627_v2 = vld [vmem:[%s7248_s23 + $0xd1] sm:$0xf]  ;;  %v3945_v42 = vpack.c.bf16 %v5624_v39, %v5624_v39 }
 0x224   : > { %v2533_v41 = vpop.f32.mrb[79].mxu0  ;;  %v2587_v15 = vpop.f32.mrb[79].mxu1  ;;  %6995 = vmatprep.subr.bf16.mxu0 %v8358_v48  ;;  %7007 = vmatprep.subr.bf16.mxu1 %v8358_v48  ;;  %v5628_v4 = vld [vmem:[%s7248_s23 + $0xd9] sm:$0xff]  ;;  %v3947_v62 = vpack.c.bf16 %v5627_v2, %v5627_v2 }
 0x225   : > { %9171 = vst [vmem:[#allocation11_spill] sm:$0xff] %v8506_v26  ;;  %9173 = vst [vmem:[#allocation12_spill] sm:$0xff] %v8509_v11  ;;  %v8516_v6 = vadd.f32 %v2533_v41, %v9174_v16  ;;  %v8519_v63 = vadd.f32 %v2587_v15, %v9175_v43  ;;  %v5629_v11 = vld [vmem:[%s7248_s23 + $0xe1] sm:$0xff]  ;;  %v5631_v26 = vld [vmem:[%s7248_s23 + $0xf1] sm:$0xff] }
 0x226   : > { %v5632_v41 = vld [vmem:[%s7248_s23 + $0xf9] sm:$0xff]  ;;  %v3948_v15 = vpack.c.bf16 %v5629_v11, %v5628_v4 }
 0x227   : > { %6996 = vmatpush3.bf16.msra.mxu0 %v8358_v48  ;;  %7008 = vmatpush3.bf16.msra.mxu1 %v8358_v48  ;;  %v3950_v16 = vpack.c.bf16 %v5632_v41, %v5631_v26 }
 0x228   : > { %6997 = vmatprep.subr.bf16.mxu0 %v8381_v57  ;;  %7009 = vmatprep.subr.bf16.mxu1 %v8381_v57 }
 0x22b   : > { %6998 = vmatpush3.bf16.msra.mxu0 %v8381_v57  ;;  %7010 = vmatpush3.bf16.msra.mxu1 %v8381_v57 }
 0x22c   : > { %7015 = vmatprep.subr.bf16.mxu0 %v8334_v30  ;;  %7027 = vmatprep.subr.bf16.mxu1 %v8334_v30 }
 0x22e   : > { %7000 = vmatmul.mubr.msk.bf16.vlgmr.msra.gmra.mrb[132].mxu0 %vm413_vm0, %v3945_v42  ;;  %7012 = vmatmul.mubr.msk.bf16.vlgmr.msra.gmra.mrb[132].mxu1 %vm413_vm0, %v3947_v62 }
 0x22f   : > { %7016 = vmatpush3.bf16.msra.mxu0 %v8334_v30  ;;  %7028 = vmatpush3.bf16.msra.mxu1 %v8334_v30 }
 0x230   : > { %7017 = vmatprep.subr.bf16.mxu0 %v8347_v49  ;;  %7029 = vmatprep.subr.bf16.mxu1 %v8347_v49 }
 0x231   : > { %v6689_v43 = vpop.f32.mrb[80].mxu0  ;;  %v6701_v39 = vpop.f32.mrb[80].mxu1  ;;  %7023 = vmatprep.mubr.msk.bf16.mxu0 %vm413_vm0, %v3948_v15  ;;  %7035 = vmatprep.mubr.msk.bf16.mxu1 %vm413_vm0, %v3950_v16  ;;  %v5630_v16 = vld [vmem:[%s7248_s23 + $0xe9] sm:$0xf] }
 0x232   : > { %v8544_v11 = vadd.f32 %v6689_v43, %v8093_v59  ;;  %v8547_v26 = vadd.f32 %v6701_v39, %v8096_v8  ;;  %v2772_v2 = vpop.f32.mrb[81].mxu0  ;;  %v2826_v4 = vpop.f32.mrb[81].mxu1  ;;  %v5633_v43 = vld [vmem:[%s7248_s23 + $0x101] sm:$0xf]  ;;  %v5634_v39 = vld [vmem:[%s7248_s23 + $0x109] sm:$0xff] }
 0x233   : > { %v8550_v42 = vadd.f32 %v2772_v2, %v8099_v61  ;;  %v8553_v62 = vadd.f32 %v2826_v4, %v8102_v58  ;;  %v6690_v41 = vpop.f32.mrb[82].mxu0  ;;  %v6702_v15 = vpop.f32.mrb[82].mxu1  ;;  %7018 = vmatpush3.bf16.msra.mxu0 %v8347_v49  ;;  %7030 = vmatpush3.bf16.msra.mxu1 %v8347_v49  ;;  %v3949_v2 = vpack.c.bf16 %v5630_v16, %v5630_v16 }
 0x234   : > { %v2775_v59 = vpop.f32.mrb[83].mxu0  ;;  %v2829_v8 = vpop.f32.mrb[83].mxu1  ;;  %7019 = vmatprep.subr.bf16.mxu0 %v8358_v48  ;;  %7031 = vmatprep.subr.bf16.mxu1 %v8358_v48  ;;  %v3951_v4 = vpack.c.bf16 %v5633_v43, %v5633_v43  ;;  %v5635_v41 = vld [vmem:[%s7248_s23 + $0x111] sm:$0xff]  ;;  %v5637_v15 = vld [vmem:[%s7248_s23 + $0x121] sm:$0xff] }
 0x235   : > { %v8560_v61 = vadd.f32 %v2775_v59, %v8109_v31  ;;  %v8563_v58 = vadd.f32 %v2829_v8, %v8112_v32  ;;  %v5638_v31 = vld [vmem:[%s7248_s23 + $0x129] sm:$0xff]  ;;  %v3952_v32 = vpack.c.bf16 %v5635_v41, %v5634_v39 }
 0x236   : > { %v3954_v59 = vpack.c.bf16 %v5638_v31, %v5637_v15 }
 0x237   : > { %7020 = vmatpush3.bf16.msra.mxu0 %v8358_v48  ;;  %7032 = vmatpush3.bf16.msra.mxu1 %v8358_v48 }
 0x238   : > { %7021 = vmatprep.subr.bf16.mxu0 %v8381_v57  ;;  %7033 = vmatprep.subr.bf16.mxu1 %v8381_v57 }
 0x23b   : > { %7022 = vmatpush3.bf16.msra.mxu0 %v8381_v57  ;;  %7034 = vmatpush3.bf16.msra.mxu1 %v8381_v57 }
 0x23c   : > { %7039 = vmatprep.subr.bf16.mxu0 %v8334_v30  ;;  %7051 = vmatprep.subr.bf16.mxu1 %v8334_v30 }
 0x23e   : > { %7024 = vmatmul.mubr.msk.bf16.vlgmr.msra.gmra.mrb[136].mxu0 %vm413_vm0, %v3949_v2  ;;  %7036 = vmatmul.mubr.msk.bf16.vlgmr.msra.gmra.mrb[136].mxu1 %vm413_vm0, %v3951_v4 }
 0x23f   : > { %7040 = vmatpush3.bf16.msra.mxu0 %v8334_v30  ;;  %7052 = vmatpush3.bf16.msra.mxu1 %v8334_v30 }
 0x240   : > { %7041 = vmatprep.subr.bf16.mxu0 %v8347_v49  ;;  %7053 = vmatprep.subr.bf16.mxu1 %v8347_v49 }
 0x241   : > { %v6713_v8 = vpop.f32.mrb[84].mxu0  ;;  %v6725_v16 = vpop.f32.mrb[84].mxu1  ;;  %7047 = vmatprep.mubr.msk.bf16.mxu0 %vm413_vm0, %v3952_v32  ;;  %7059 = vmatprep.mubr.msk.bf16.mxu1 %vm413_vm0, %v3954_v59  ;;  %v5636_v59 = vld [vmem:[%s7248_s23 + $0x119] sm:$0xf] }
 0x242   : > { %v8588_v43 = vadd.f32 %v6713_v8, %v8135_v19  ;;  %v8591_v39 = vadd.f32 %v6725_v16, %v8138_v28  ;;  %v2880_v2 = vpop.f32.mrb[85].mxu0  ;;  %v2934_v4 = vpop.f32.mrb[85].mxu1  ;;  %v5639_v8 = vld [vmem:[%s7248_s23 + $0x131] sm:$0xf]  ;;  %v5640_v16 = vld [vmem:[%s7248_s23 + $0x139] sm:$0xff] }
 0x243   : > { %v8594_v41 = vadd.f32 %v2880_v2, %v8141_v45  ;;  %v8597_v15 = vadd.f32 %v2934_v4, %v8144_v33  ;;  %v6714_v31 = vpop.f32.mrb[86].mxu0  ;;  %v6726_v32 = vpop.f32.mrb[86].mxu1  ;;  %7042 = vmatpush3.bf16.msra.mxu0 %v8347_v49  ;;  %7054 = vmatpush3.bf16.msra.mxu1 %v8347_v49  ;;  %v3953_v2 = vpack.c.bf16 %v5636_v59, %v5636_v59 }
 0x244   : > { %v2883_v19 = vpop.f32.mrb[87].mxu0  ;;  %v2937_v28 = vpop.f32.mrb[87].mxu1  ;;  %7043 = vmatprep.subr.bf16.mxu0 %v8358_v48  ;;  %7055 = vmatprep.subr.bf16.mxu1 %v8358_v48  ;;  %v3955_v4 = vpack.c.bf16 %v5639_v8, %v5639_v8  ;;  %v5641_v31 = vld [vmem:[%s7248_s23 + $0x141] sm:$0xff]  ;;  %v5643_v32 = vld [vmem:[%s7248_s23 + $0x151] sm:$0xff] }
 0x245   : > { %v8604_v45 = vadd.f32 %v2883_v19, %v8151_v50  ;;  %v8607_v33 = vadd.f32 %v2937_v28, %v8154_v51  ;;  %v5644_v50 = vld [vmem:[%s7248_s23 + $0x159] sm:$0xff]  ;;  %v3956_v51 = vpack.c.bf16 %v5641_v31, %v5640_v16 }
 0x246   : > { %v3958_v19 = vpack.c.bf16 %v5644_v50, %v5643_v32 }
 0x247   : > { %7044 = vmatpush3.bf16.msra.mxu0 %v8358_v48  ;;  %7056 = vmatpush3.bf16.msra.mxu1 %v8358_v48 }
 0x248   : > { %7045 = vmatprep.subr.bf16.mxu0 %v8381_v57  ;;  %7057 = vmatprep.subr.bf16.mxu1 %v8381_v57 }
 0x24b   : > { %7046 = vmatpush3.bf16.msra.mxu0 %v8381_v57  ;;  %7058 = vmatpush3.bf16.msra.mxu1 %v8381_v57 }
 0x24c   : > { %7063 = vmatprep.subr.bf16.mxu0 %v8334_v30  ;;  %7075 = vmatprep.subr.bf16.mxu1 %v8334_v30 }
 0x24e   : > { %7048 = vmatmul.mubr.msk.bf16.vlgmr.msra.gmra.mrb[140].mxu0 %vm413_vm0, %v3953_v2  ;;  %7060 = vmatmul.mubr.msk.bf16.vlgmr.msra.gmra.mrb[140].mxu1 %vm413_vm0, %v3955_v4 }
 0x24f   : > { %7064 = vmatpush3.bf16.msra.mxu0 %v8334_v30  ;;  %7076 = vmatpush3.bf16.msra.mxu1 %v8334_v30 }
 0x250   : > { %7065 = vmatprep.subr.bf16.mxu0 %v8347_v49  ;;  %7077 = vmatprep.subr.bf16.mxu1 %v8347_v49 }
 0x251   : > { %v6737_v28 = vpop.f32.mrb[88].mxu0  ;;  %v6749_v59 = vpop.f32.mrb[88].mxu1  ;;  %7071 = vmatprep.mubr.msk.bf16.mxu0 %vm413_vm0, %v3956_v51  ;;  %7083 = vmatprep.mubr.msk.bf16.mxu1 %vm413_vm0, %v3958_v19  ;;  %v5642_v19 = vld [vmem:[%s7248_s23 + $0x149] sm:$0xf] }
 0x252   : > { %v8632_v8 = vadd.f32 %v6737_v28, %v8177_v37  ;;  %v8635_v16 = vadd.f32 %v6749_v59, %v8180_v29  ;;  %v2988_v2 = vpop.f32.mrb[89].mxu0  ;;  %v3042_v4 = vpop.f32.mrb[89].mxu1  ;;  %v5645_v28 = vld [vmem:[%s7248_s23 + $0x161] sm:$0xf]  ;;  %v5646_v59 = vld [vmem:[%s7248_s23 + $0x169] sm:$0xff] }
 0x253   : > { %v8638_v31 = vadd.f32 %v2988_v2, %v8183_v60  ;;  %v8641_v32 = vadd.f32 %v3042_v4, %v8186_v47  ;;  %v6738_v50 = vpop.f32.mrb[90].mxu0  ;;  %v6750_v51 = vpop.f32.mrb[90].mxu1  ;;  %7066 = vmatpush3.bf16.msra.mxu0 %v8347_v49  ;;  %7078 = vmatpush3.bf16.msra.mxu1 %v8347_v49  ;;  %v3957_v2 = vpack.c.bf16 %v5642_v19, %v5642_v19 }
 0x254   : > { %v2991_v37 = vpop.f32.mrb[91].mxu0  ;;  %v3045_v29 = vpop.f32.mrb[91].mxu1  ;;  %7067 = vmatprep.subr.bf16.mxu0 %v8358_v48  ;;  %7079 = vmatprep.subr.bf16.mxu1 %v8358_v48  ;;  %v3959_v4 = vpack.c.bf16 %v5645_v28, %v5645_v28  ;;  %v5647_v50 = vld [vmem:[%s7248_s23 + $0x171] sm:$0xff]  ;;  %v5649_v51 = vld [vmem:[%s7248_s23 + $0x181] sm:$0xff] }
 0x255   : > { %v8648_v60 = vadd.f32 %v2991_v37, %v8193_v12  ;;  %v8651_v47 = vadd.f32 %v3045_v29, %v8196_v13  ;;  %v5650_v12 = vld [vmem:[%s7248_s23 + $0x189] sm:$0xff]  ;;  %v3960_v13 = vpack.c.bf16 %v5647_v50, %v5646_v59 }
 0x256   : > { %v3962_v37 = vpack.c.bf16 %v5650_v12, %v5649_v51 }
 0x257   : > { %7068 = vmatpush3.bf16.msra.mxu0 %v8358_v48  ;;  %7080 = vmatpush3.bf16.msra.mxu1 %v8358_v48 }
 0x258   : > { %7069 = vmatprep.subr.bf16.mxu0 %v8381_v57  ;;  %7081 = vmatprep.subr.bf16.mxu1 %v8381_v57 }
 0x25b   : > { %7070 = vmatpush3.bf16.msra.mxu0 %v8381_v57  ;;  %7082 = vmatpush3.bf16.msra.mxu1 %v8381_v57 }
 0x25c   : > { %7087 = vmatprep.subr.bf16.mxu0 %v8334_v30  ;;  %7099 = vmatprep.subr.bf16.mxu1 %v8334_v30 }
 0x25e   : > { %7072 = vmatmul.mubr.msk.bf16.vlgmr.msra.gmra.mrb[144].mxu0 %vm413_vm0, %v3957_v2  ;;  %7084 = vmatmul.mubr.msk.bf16.vlgmr.msra.gmra.mrb[144].mxu1 %vm413_vm0, %v3959_v4 }
 0x25f   : > { %7088 = vmatpush3.bf16.msra.mxu0 %v8334_v30  ;;  %7100 = vmatpush3.bf16.msra.mxu1 %v8334_v30 }
 0x260   : > { %7089 = vmatprep.subr.bf16.mxu0 %v8347_v49  ;;  %7101 = vmatprep.subr.bf16.mxu1 %v8347_v49 }
 0x261   : > { %v6761_v29 = vpop.f32.mrb[92].mxu0  ;;  %v6773_v19 = vpop.f32.mrb[92].mxu1  ;;  %7095 = vmatprep.mubr.msk.bf16.mxu0 %vm413_vm0, %v3960_v13  ;;  %7107 = vmatprep.mubr.msk.bf16.mxu1 %vm413_vm0, %v3962_v37  ;;  %v5648_v37 = vld [vmem:[%s7248_s23 + $0x179] sm:$0xf] }
 0x262   : > { %v8676_v28 = vadd.f32 %v6761_v29, %v8219_v36  ;;  %v8679_v59 = vadd.f32 %v6773_v19, %v8222_v55  ;;  %v3096_v2 = vpop.f32.mrb[93].mxu0  ;;  %v3150_v4 = vpop.f32.mrb[93].mxu1  ;;  %v5651_v29 = vld [vmem:[%s7248_s23 + $0x191] sm:$0xf]  ;;  %v5652_v19 = vld [vmem:[%s7248_s23 + $0x199] sm:$0xff] }
 0x263   : > { %v8682_v50 = vadd.f32 %v3096_v2, %v8225_v46  ;;  %v8685_v51 = vadd.f32 %v3150_v4, %v8228_v10  ;;  %v6762_v12 = vpop.f32.mrb[94].mxu0  ;;  %v6774_v13 = vpop.f32.mrb[94].mxu1  ;;  %7090 = vmatpush3.bf16.msra.mxu0 %v8347_v49  ;;  %7102 = vmatpush3.bf16.msra.mxu1 %v8347_v49  ;;  %v3961_v2 = vpack.c.bf16 %v5648_v37, %v5648_v37 }
 0x264   : > { %v3099_v36 = vpop.f32.mrb[95].mxu0  ;;  %v3153_v55 = vpop.f32.mrb[95].mxu1  ;;  %7091 = vmatprep.subr.bf16.mxu0 %v8358_v48  ;;  %7103 = vmatprep.subr.bf16.mxu1 %v8358_v48  ;;  %v3963_v4 = vpack.c.bf16 %v5651_v29, %v5651_v29  ;;  %v5653_v12 = vld [vmem:[%s7248_s23 + $0x1a1] sm:$0xff]  ;;  %v5655_v13 = vld [vmem:[%s7248_s23 + $0x1b1] sm:$0xff] }
 0x265   : > { %v8692_v46 = vadd.f32 %v3099_v36, %v8235_v0  ;;  %v8695_v10 = vadd.f32 %v3153_v55, %v8238_v40  ;;  %v5656_v0 = vld [vmem:[%s7248_s23 + $0x1b9] sm:$0xff]  ;;  %v3964_v40 = vpack.c.bf16 %v5653_v12, %v5652_v19 }
 0x266   : > { %v3966_v36 = vpack.c.bf16 %v5656_v0, %v5655_v13 }
 0x267   : > { %7092 = vmatpush3.bf16.msra.mxu0 %v8358_v48  ;;  %7104 = vmatpush3.bf16.msra.mxu1 %v8358_v48 }
 0x268   : > { %7093 = vmatprep.subr.bf16.mxu0 %v8381_v57  ;;  %7105 = vmatprep.subr.bf16.mxu1 %v8381_v57 }
 0x26b   : > { %7094 = vmatpush3.bf16.msra.mxu0 %v8381_v57  ;;  %7106 = vmatpush3.bf16.msra.mxu1 %v8381_v57 }
 0x26c   : > { %7111 = vmatprep.subr.bf16.mxu0 %v8334_v30  ;;  %7123 = vmatprep.subr.bf16.mxu1 %v8334_v30 }
 0x26e   : > { %7096 = vmatmul.mubr.msk.bf16.vlgmr.msra.gmra.mrb[148].mxu0 %vm413_vm0, %v3961_v2  ;;  %7108 = vmatmul.mubr.msk.bf16.vlgmr.msra.gmra.mrb[148].mxu1 %vm413_vm0, %v3963_v4 }
 0x26f   : > { %7112 = vmatpush3.bf16.msra.mxu0 %v8334_v30  ;;  %7124 = vmatpush3.bf16.msra.mxu1 %v8334_v30 }
 0x270   : > { %7113 = vmatprep.subr.bf16.mxu0 %v8347_v49  ;;  %7125 = vmatprep.subr.bf16.mxu1 %v8347_v49 }
 0x271   : > { %v6785_v55 = vpop.f32.mrb[96].mxu0  ;;  %v6797_v37 = vpop.f32.mrb[96].mxu1  ;;  %7119 = vmatprep.mubr.msk.bf16.mxu0 %vm413_vm0, %v3964_v40  ;;  %7131 = vmatprep.mubr.msk.bf16.mxu1 %vm413_vm0, %v3966_v36  ;;  %v5654_v36 = vld [vmem:[%s7248_s23 + $0x1a9] sm:$0xf] }
 0x272   : > { %v8720_v29 = vadd.f32 %v6785_v55, %v8261_v52  ;;  %v8723_v19 = vadd.f32 %v6797_v37, %v8264_v9  ;;  %v3204_v2 = vpop.f32.mrb[97].mxu0  ;;  %v3258_v4 = vpop.f32.mrb[97].mxu1  ;;  %v5657_v55 = vld [vmem:[%s7248_s23 + $0x1c1] sm:$0xf]  ;;  %v5658_v37 = vld [vmem:[%s7248_s23 + $0x1c9] sm:$0xff] }
 0x273   : > { %v8726_v12 = vadd.f32 %v3204_v2, %v8267_v20  ;;  %v8729_v13 = vadd.f32 %v3258_v4, %v8270_v56  ;;  %v6786_v0 = vpop.f32.mrb[98].mxu0  ;;  %v6798_v40 = vpop.f32.mrb[98].mxu1  ;;  %7114 = vmatpush3.bf16.msra.mxu0 %v8347_v49  ;;  %7126 = vmatpush3.bf16.msra.mxu1 %v8347_v49  ;;  %v3965_v2 = vpack.c.bf16 %v5654_v36, %v5654_v36 }
 0x274   : > { %v3207_v52 = vpop.f32.mrb[99].mxu0  ;;  %v3261_v9 = vpop.f32.mrb[99].mxu1  ;;  %7115 = vmatprep.subr.bf16.mxu0 %v8358_v48  ;;  %7127 = vmatprep.subr.bf16.mxu1 %v8358_v48  ;;  %v3967_v4 = vpack.c.bf16 %v5657_v55, %v5657_v55  ;;  %v5659_v0 = vld [vmem:[%s7248_s23 + $0x1d1] sm:$0xff]  ;;  %v5661_v40 = vld [vmem:[%s7248_s23 + $0x1e1] sm:$0xff] }
 0x275   : > { %v8736_v20 = vadd.f32 %v3207_v52, %v8277_v22  ;;  %v8739_v56 = vadd.f32 %v3261_v9, %v8280_v23  ;;  %v5662_v22 = vld [vmem:[%s7248_s23 + $0x1e9] sm:$0xff]  ;;  %v3968_v23 = vpack.c.bf16 %v5659_v0, %v5658_v37 }
 0x276   : > { %v3970_v52 = vpack.c.bf16 %v5662_v22, %v5661_v40 }
 0x277   : > { %7116 = vmatpush3.bf16.msra.mxu0 %v8358_v48  ;;  %7128 = vmatpush3.bf16.msra.mxu1 %v8358_v48 }
 0x278   : > { %7117 = vmatprep.subr.bf16.mxu0 %v8381_v57  ;;  %7129 = vmatprep.subr.bf16.mxu1 %v8381_v57 }
 0x27b   : > { %7118 = vmatpush3.bf16.msra.mxu0 %v8381_v57  ;;  %7130 = vmatpush3.bf16.msra.mxu1 %v8381_v57 }
 0x27c   : > { %7135 = vmatprep.subr.bf16.mxu0 %v8334_v30  ;;  %7147 = vmatprep.subr.bf16.mxu1 %v8334_v30 }
 0x27e   : > { %7120 = vmatmul.mubr.msk.bf16.vlgmr.msra.gmra.mrb[152].mxu0 %vm413_vm0, %v3965_v2  ;;  %7132 = vmatmul.mubr.msk.bf16.vlgmr.msra.gmra.mrb[152].mxu1 %vm413_vm0, %v3967_v4 }
 0x27f   : > { %7136 = vmatpush3.bf16.msra.mxu0 %v8334_v30  ;;  %7148 = vmatpush3.bf16.msra.mxu1 %v8334_v30 }
 0x280   : > { %7137 = vmatprep.subr.bf16.mxu0 %v8347_v49  ;;  %7149 = vmatprep.subr.bf16.mxu1 %v8347_v49 }
 0x281   : > { %v6809_v9 = vpop.f32.mrb[100].mxu0  ;;  %v6821_v36 = vpop.f32.mrb[100].mxu1  ;;  %7143 = vmatprep.mubr.msk.bf16.mxu0 %vm413_vm0, %v3968_v23  ;;  %7155 = vmatprep.mubr.msk.bf16.mxu1 %vm413_vm0, %v3970_v52  ;;  %v5663_v52 = vld [vmem:[%s7248_s23 + $0x1f1] sm:$0xf] }
 0x282   : > { %v8764_v55 = vadd.f32 %v6809_v9, %v8304_v35  ;;  %v8767_v37 = vadd.f32 %v6821_v36, %v8307_v14  ;;  %v3312_v2 = vpop.f32.mrb[101].mxu0  ;;  %v3366_v4 = vpop.f32.mrb[101].mxu1  ;;  %v3971_v9 = vpack.c.bf16 %v5663_v52, %v5663_v52 }
 0x283   : > { %v8770_v30 = vadd.f32 %v3312_v2, %v8310_v53  ;;  %v8773_v0 = vadd.f32 %v3366_v4, %v8313_v18  ;;  %v6810_v40 = vpop.f32.mrb[102].mxu0  ;;  %v6822_v22 = vpop.f32.mrb[102].mxu1  ;;  %7138 = vmatpush3.bf16.msra.mxu0 %v8347_v49  ;;  %7150 = vmatpush3.bf16.msra.mxu1 %v8347_v49  ;;  %v5660_v18 = vld [vmem:[%s7248_s23 + $0x1d9] sm:$0xf]  ;;  %s7160_s23 = smul.u32 480, %s9210_s13 }
 0x284   : > { %v3315_v35 = vpop.f32.mrb[103].mxu0  ;;  %v3369_v23 = vpop.f32.mrb[103].mxu1  ;;  %7139 = vmatprep.subr.bf16.mxu0 %v8358_v48  ;;  %7151 = vmatprep.subr.bf16.mxu1 %v8358_v48  ;;  %v3969_v49 = vpack.c.bf16 %v5660_v18, %v5660_v18 }
 0x285   : > { %v8780_v14 = vadd.f32 %v3315_v35, %v8320_v25  ;;  %v8783_v53 = vadd.f32 %v3369_v23, %v8323_v34  ;;  %s8882_s29 = scalar_lea.vmem %s9124_s3, %s7160_s23 }
 0x287   : > { %7140 = vmatpush3.bf16.msra.mxu0 %v8358_v48  ;;  %7152 = vmatpush3.bf16.msra.mxu1 %v8358_v48 }
 0x288   : > { %7141 = vmatprep.subr.bf16.mxu0 %v8381_v57  ;;  %7153 = vmatprep.subr.bf16.mxu1 %v8381_v57 }
 0x28b   : > { %7142 = vmatpush3.bf16.msra.mxu0 %v8381_v57  ;;  %7154 = vmatpush3.bf16.msra.mxu1 %v8381_v57 }
 0x28e   : > { %7144 = vmatmul.mubr.msk.bf16.vlgmr.msra.gmra.mrb[156].mxu0 %vm413_vm0, %v3969_v49  ;;  %7156 = vmatmul.mubr.msk.bf16.vlgmr.msra.gmra.mrb[156].mxu1 %vm413_vm0, %v3971_v9 }
 0x291   : > { %v6833_v25 = vpop.f32.mrb[104].mxu0  ;;  %v6845_v34 = vpop.f32.mrb[104].mxu1 }
 0x292   : > { %v8796_v48 = vadd.f32 %v6833_v25, %v8363_v27  ;;  %v8799_v36 = vadd.f32 %v6845_v34, %v8366_v44  ;;  %v3420_v2 = vpop.f32.mrb[105].mxu0  ;;  %v3474_v4 = vpop.f32.mrb[105].mxu1 }
 0x293   : > { %v8802_v40 = vadd.f32 %v3420_v2, %v8369_v3  ;;  %v8805_v22 = vadd.f32 %v3474_v4, %v8372_v24  ;;  %v6834_v57 = vpop.f32.mrb[106].mxu0  ;;  %v6846_v35 = vpop.f32.mrb[106].mxu1  ;;  %v9179_v2 = vld [vmem:[#allocation2_spill] sm:$0xff] }
 0x294   : > { %v3423_v23 = vpop.f32.mrb[107].mxu0  ;;  %v3477_v18 = vpop.f32.mrb[107].mxu1 }
 0x295   : > { %v8808_v52 = vadd.f32 %v3423_v23, %v8384_v54  ;;  %v8811_v27 = vadd.f32 %v3477_v18, %v8387_v38  ;;  %v9181_v23 = vld [vmem:[#allocation3_spill] sm:$0xff] }
 0x2a1   : > { %v6857_v44 = vpop.f32.mrb[108].mxu0  ;;  %v6869_v49 = vpop.f32.mrb[108].mxu1 }
 0x2a2   : > { %v8814_v9 = vadd.f32 %v6857_v44, %v8412_v21  ;;  %v8817_v3 = vadd.f32 %v6869_v49, %v8415_v7  ;;  %v3528_v24 = vpop.f32.mrb[109].mxu0  ;;  %v3582_v25 = vpop.f32.mrb[109].mxu1  ;;  %v9183_v21 = vld [vmem:[#allocation4_spill] sm:$0xff] }
 0x2a3   : > { %v8820_v34 = vadd.f32 %v3528_v24, %v8418_v1  ;;  %v8823_v4 = vadd.f32 %v3582_v25, %v9179_v2  ;;  %v6858_v54 = vpop.f32.mrb[110].mxu0  ;;  %v6870_v57 = vpop.f32.mrb[110].mxu1  ;;  %v9186_v1 = vld [vmem:[#allocation6_spill] sm:$0xff] }
 0x2a4   : > { %9176 = vst [vmem:[#allocation13_spill] sm:$0xff] %v8814_v9  ;;  %9177 = vst [vmem:[#allocation14_spill] sm:$0xff] %v8817_v3  ;;  %v3531_v38 = vpop.f32.mrb[111].mxu0  ;;  %v3585_v35 = vpop.f32.mrb[111].mxu1  ;;  %v9185_v3 = vld [vmem:[#allocation5_spill] sm:$0xff]  ;;  %v9188_v54 = vld [vmem:[#allocation7_spill] sm:$0xff] }
 0x2a5   : > { %9178 = vst [vmem:[#allocation15_spill] sm:$0xff] %v8820_v34  ;;  %9180 = vst [vmem:[#allocation16_spill] sm:$0xff] %v8823_v4  ;;  %v8826_v18 = vadd.f32 %v3531_v38, %v9181_v23  ;;  %v8829_v44 = vadd.f32 %v3585_v35, %v9183_v21  ;;  %v9189_v4 = vld [vmem:[#allocation8_spill] sm:$0xff] }
 0x2a7   : > { %9182 = vst [vmem:[#allocation17_spill] sm:$0xff] %v8826_v18  ;;  %9184 = vst [vmem:[#allocation18_spill] sm:$0xff] %v8829_v44  ;;  %v9190_v44 = vld [vmem:[#allocation9_spill] sm:$0xff] }
 0x2b1   : > { %v6881_v7 = vpop.f32.mrb[112].mxu0  ;;  %v6893_v49 = vpop.f32.mrb[112].mxu1 }
 0x2b2   : > { %v8832_v9 = vadd.f32 %v6881_v7, %v9185_v3  ;;  %v8835_v24 = vadd.f32 %v6893_v49, %v9186_v1  ;;  %v3636_v25 = vpop.f32.mrb[113].mxu0  ;;  %v3690_v2 = vpop.f32.mrb[113].mxu1  ;;  %v9192_v3 = vld [vmem:[#allocation10_spill] sm:$0xff] }
 0x2b3   : > { %v8838_v57 = vadd.f32 %v3636_v25, %v9188_v54  ;;  %v8841_v34 = vadd.f32 %v3690_v2, %v9189_v4  ;;  %v6882_v38 = vpop.f32.mrb[114].mxu0  ;;  %v6894_v23 = vpop.f32.mrb[114].mxu1  ;;  %v9194_v54 = vld [vmem:[#allocation11_spill] sm:$0xff] }
 0x2b4   : > { %9187 = vst [vmem:[#allocation19_spill] sm:$0xff] %v8835_v24  ;;  %v3639_v35 = vpop.f32.mrb[115].mxu0  ;;  %v3693_v21 = vpop.f32.mrb[115].mxu1  ;;  %v9195_v23 = vld [vmem:[#allocation12_spill] sm:$0xff] }
 0x2b5   : > { %v8844_v18 = vadd.f32 %v3639_v35, %v9190_v44  ;;  %v8847_v7 = vadd.f32 %v3693_v21, %v9192_v3 }
 0x2b7   : > { %9191 = vst [vmem:[#allocation20_spill] sm:$0xff] %v8844_v18  ;;  %9193 = vst [vmem:[#allocation21_spill] sm:$0xff] %v8847_v7 }
 0x2c1   : > { %v6905_v49 = vpop.f32.mrb[116].mxu0  ;;  %v6917_v1 = vpop.f32.mrb[116].mxu1 }
 0x2c2   : > { %v8850_v24 = vadd.f32 %v6905_v49, %v8500_v17  ;;  %v8853_v25 = vadd.f32 %v6917_v1, %v8503_v5  ;;  %v3744_v4 = vpop.f32.mrb[117].mxu0  ;;  %v3798_v2 = vpop.f32.mrb[117].mxu1  ;;  %v8871_v49 = vld [vmem:[%s9123_s2] ss:$0 sm:$0xff] }
 0x2c3   : > { %v8856_v38 = vadd.f32 %v3744_v4, %v9194_v54  ;;  %v8859_v44 = vadd.f32 %v3798_v2, %v9195_v23  ;;  %v6906_v35 = vpop.f32.mrb[118].mxu0  ;;  %v6918_v18 = vpop.f32.mrb[118].mxu1 }
 0x2c4   : > { %v3747_v21 = vpop.f32.mrb[119].mxu0  ;;  %v3801_v3 = vpop.f32.mrb[119].mxu1 }
 0x2c5   : > { %v8862_v7 = vadd.f32 %v3747_v21, %v8516_v6  ;;  %v8865_v17 = vadd.f32 %v3801_v3, %v8519_v63 }
 0x2c7   : > { %9196 = vst [vmem:[#allocation2_spill] sm:$0xff] %v8862_v7  ;;  %9197 = vst [vmem:[#allocation3_spill] sm:$0xff] %v8865_v17 }
 0x2d1   : > { %v6929_v5 = vpop.f32.mrb[120].mxu0  ;;  %v6941_v1 = vpop.f32.mrb[120].mxu1 }
 0x2d2   : > { %v5087_v4 = vadd.f32 %v6929_v5, %v8544_v11  ;;  %v5090_v18 = vadd.f32 %v6941_v1, %v8547_v26  ;;  %v4045_v2 = vpop.f32.mrb[121].mxu0  ;;  %v4099_v54 = vpop.f32.mrb[121].mxu1 }
 0x2d3   : > { %v5085_v6 = vadd.f32 %v4045_v2, %v8550_v42  ;;  %v5088_v23 = vadd.f32 %v4099_v54, %v8553_v62  ;;  %v6930_v63 = vpop.f32.mrb[122].mxu0  ;;  %v6942_v35 = vpop.f32.mrb[122].mxu1 }
 0x2d4   : > { %v5154_v21 = vadd.f32 %v8871_v49, %v5087_v4  ;;  %v5157_v3 = vadd.f32 %v8871_v49, %v5090_v18  ;;  %v4048_v17 = vpop.f32.mrb[123].mxu0  ;;  %v4102_v7 = vpop.f32.mrb[123].mxu1 }
 0x2d5   : > { %v5152_v11 = vadd.f32 %v8871_v49, %v5085_v6  ;;  %v5155_v26 = vadd.f32 %v8871_v49, %v5088_v23  ;;  %v5086_v42 = vadd.f32 %v4048_v17, %v8560_v61  ;;  %v5089_v62 = vadd.f32 %v4102_v7, %v8563_v58 }
 0x2d6   : > { %v5214_v5 = vmax.f32 %v5154_v21, 0.0  ;;  %v5217_v1 = vmax.f32 %v5157_v3, 0.0 }
 0x2d7   : > { %v5212_v4 = vmax.f32 %v5152_v11, 0.0  ;;  %v5215_v18 = vmax.f32 %v5155_v26, 0.0  ;;  %v5153_v2 = vadd.f32 %v8871_v49, %v5086_v42  ;;  %v5156_v54 = vadd.f32 %v8871_v49, %v5089_v62 }
 0x2d8   : > { %5276 = vst.msk [vmem:[%s8882_s29 + $0x10] sm:$0xf] %vm5275_vm1, %v5214_v5  ;;  %5279 = vst.msk [vmem:[%s8882_s29 + $0x28] sm:$0xf] %vm5275_vm1, %v5217_v1 }
 0x2d9   : > { %5273 = vst.msk [vmem:[%s8882_s29] sm:$0xff] %vm5272_vm2, %v5212_v4  ;;  %5277 = vst.msk [vmem:[%s8882_s29 + $0x18] sm:$0xff] %vm5272_vm2, %v5215_v18  ;;  %v5213_v61 = vmax.f32 %v5153_v2, 0.0  ;;  %v5216_v17 = vmax.f32 %v5156_v54, 0.0 }
 0x2db   : > { %5274 = vst.msk [vmem:[%s8882_s29 + $0x8] sm:$0xff] %vm5272_vm2, %v5213_v61  ;;  %5278 = vst.msk [vmem:[%s8882_s29 + $0x20] sm:$0xff] %vm5272_vm2, %v5216_v17 }
 0x2e1   : > { %v6953_v58 = vpop.f32.mrb[124].mxu0  ;;  %v6965_v7 = vpop.f32.mrb[124].mxu1 }
 0x2e2   : > { %v5093_v6 = vadd.f32 %v6953_v58, %v8588_v43  ;;  %v5096_v23 = vadd.f32 %v6965_v7, %v8591_v39  ;;  %v4153_v63 = vpop.f32.mrb[125].mxu0  ;;  %v4207_v35 = vpop.f32.mrb[125].mxu1 }
 0x2e3   : > { %v5091_v21 = vadd.f32 %v4153_v63, %v8594_v41  ;;  %v5094_v3 = vadd.f32 %v4207_v35, %v8597_v15  ;;  %v6954_v11 = vpop.f32.mrb[126].mxu0  ;;  %v6966_v26 = vpop.f32.mrb[126].mxu1 }
 0x2e4   : > { %v5160_v42 = vadd.f32 %v8871_v49, %v5093_v6  ;;  %v5163_v62 = vadd.f32 %v8871_v49, %v5096_v23  ;;  %v4156_v5 = vpop.f32.mrb[127].mxu0  ;;  %v4210_v43 = vpop.f32.mrb[127].mxu1 }
 0x2e5   : > { %v5158_v39 = vadd.f32 %v8871_v49, %v5091_v21  ;;  %v5161_v1 = vadd.f32 %v8871_v49, %v5094_v3  ;;  %v5092_v41 = vadd.f32 %v4156_v5, %v8604_v45  ;;  %v5095_v15 = vadd.f32 %v4210_v43, %v8607_v33 }
 0x2e6   : > { %v5220_v4 = vmax.f32 %v5160_v42, 0.0  ;;  %v5223_v18 = vmax.f32 %v5163_v62, 0.0 }
 0x2e7   : > { %v5218_v2 = vmax.f32 %v5158_v39, 0.0  ;;  %v5221_v54 = vmax.f32 %v5161_v1, 0.0  ;;  %v5159_v61 = vadd.f32 %v8871_v49, %v5092_v41  ;;  %v5162_v17 = vadd.f32 %v8871_v49, %v5095_v15 }
 0x2e8   : > { %5282 = vst.msk [vmem:[%s8882_s29 + $0x40] sm:$0xf] %vm5275_vm1, %v5220_v4  ;;  %5285 = vst.msk [vmem:[%s8882_s29 + $0x58] sm:$0xf] %vm5275_vm1, %v5223_v18 }
 0x2e9   : > { %5280 = vst.msk [vmem:[%s8882_s29 + $0x30] sm:$0xff] %vm5272_vm2, %v5218_v2  ;;  %5283 = vst.msk [vmem:[%s8882_s29 + $0x48] sm:$0xff] %vm5272_vm2, %v5221_v54  ;;  %v5219_v58 = vmax.f32 %v5159_v61, 0.0  ;;  %v5222_v45 = vmax.f32 %v5162_v17, 0.0 }
 0x2eb   : > { %5281 = vst.msk [vmem:[%s8882_s29 + $0x38] sm:$0xff] %vm5272_vm2, %v5219_v58  ;;  %5284 = vst.msk [vmem:[%s8882_s29 + $0x50] sm:$0xff] %vm5272_vm2, %v5222_v45 }
 0x2f1   : > { %v6977_v33 = vpop.f32.mrb[128].mxu0  ;;  %v6989_v7 = vpop.f32.mrb[128].mxu1 }
 0x2f2   : > { %v5099_v6 = vadd.f32 %v6977_v33, %v8632_v8  ;;  %v5102_v23 = vadd.f32 %v6989_v7, %v8635_v16  ;;  %v4261_v63 = vpop.f32.mrb[129].mxu0  ;;  %v4315_v35 = vpop.f32.mrb[129].mxu1 }
 0x2f3   : > { %v5097_v21 = vadd.f32 %v4261_v63, %v8638_v31  ;;  %v5100_v3 = vadd.f32 %v4315_v35, %v8641_v32  ;;  %v6978_v11 = vpop.f32.mrb[130].mxu0  ;;  %v6990_v26 = vpop.f32.mrb[130].mxu1 }
 0x2f4   : > { %v5166_v42 = vadd.f32 %v8871_v49, %v5099_v6  ;;  %v5169_v62 = vadd.f32 %v8871_v49, %v5102_v23  ;;  %v4264_v5 = vpop.f32.mrb[131].mxu0  ;;  %v4318_v8 = vpop.f32.mrb[131].mxu1 }
 0x2f5   : > { %v5164_v16 = vadd.f32 %v8871_v49, %v5097_v21  ;;  %v5167_v43 = vadd.f32 %v8871_v49, %v5100_v3  ;;  %v5098_v31 = vadd.f32 %v4264_v5, %v8648_v60  ;;  %v5101_v32 = vadd.f32 %v4318_v8, %v8651_v47 }
 0x2f6   : > { %v5226_v39 = vmax.f32 %v5166_v42, 0.0  ;;  %v5229_v1 = vmax.f32 %v5169_v62, 0.0 }
 0x2f7   : > { %v5224_v41 = vmax.f32 %v5164_v16, 0.0  ;;  %v5227_v15 = vmax.f32 %v5167_v43, 0.0  ;;  %v5165_v4 = vadd.f32 %v8871_v49, %v5098_v31  ;;  %v5168_v18 = vadd.f32 %v8871_v49, %v5101_v32 }
 0x2f8   : > { %5288 = vst.msk [vmem:[%s8882_s29 + $0x70] sm:$0xf] %vm5275_vm1, %v5226_v39  ;;  %5291 = vst.msk [vmem:[%s8882_s29 + $0x88] sm:$0xf] %vm5275_vm1, %v5229_v1 }
 0x2f9   : > { %5286 = vst.msk [vmem:[%s8882_s29 + $0x60] sm:$0xff] %vm5272_vm2, %v5224_v41  ;;  %5289 = vst.msk [vmem:[%s8882_s29 + $0x78] sm:$0xff] %vm5272_vm2, %v5227_v15  ;;  %v5225_v2 = vmax.f32 %v5165_v4, 0.0  ;;  %v5228_v60 = vmax.f32 %v5168_v18, 0.0 }
 0x2fb   : > { %5287 = vst.msk [vmem:[%s8882_s29 + $0x68] sm:$0xff] %vm5272_vm2, %v5225_v2  ;;  %5290 = vst.msk [vmem:[%s8882_s29 + $0x80] sm:$0xff] %vm5272_vm2, %v5228_v60 }
 0x301   : > { %v7001_v47 = vpop.f32.mrb[132].mxu0  ;;  %v7013_v54 = vpop.f32.mrb[132].mxu1 }
 0x302   : > { %v5105_v61 = vadd.f32 %v7001_v47, %v8676_v28  ;;  %v5108_v17 = vadd.f32 %v7013_v54, %v8679_v59  ;;  %v4369_v58 = vpop.f32.mrb[133].mxu0  ;;  %v4423_v45 = vpop.f32.mrb[133].mxu1 }
 0x303   : > { %v5103_v33 = vadd.f32 %v4369_v58, %v8682_v50  ;;  %v5106_v7 = vadd.f32 %v4423_v45, %v8685_v51  ;;  %v7002_v6 = vpop.f32.mrb[134].mxu0  ;;  %v7014_v23 = vpop.f32.mrb[134].mxu1 }
 0x304   : > { %v5172_v63 = vadd.f32 %v8871_v49, %v5105_v61  ;;  %v5175_v35 = vadd.f32 %v8871_v49, %v5108_v17  ;;  %v4372_v21 = vpop.f32.mrb[135].mxu0  ;;  %v4426_v28 = vpop.f32.mrb[135].mxu1 }
 0x305   : > { %v5170_v59 = vadd.f32 %v8871_v49, %v5103_v33  ;;  %v5173_v3 = vadd.f32 %v8871_v49, %v5106_v7  ;;  %v5104_v50 = vadd.f32 %v4372_v21, %v8692_v46  ;;  %v5107_v51 = vadd.f32 %v4426_v28, %v8695_v10 }
 0x306   : > { %v5232_v11 = vmax.f32 %v5172_v63, 0.0  ;;  %v5235_v26 = vmax.f32 %v5175_v35, 0.0 }
 0x307   : > { %v5230_v42 = vmax.f32 %v5170_v59, 0.0  ;;  %v5233_v62 = vmax.f32 %v5173_v3, 0.0  ;;  %v5171_v5 = vadd.f32 %v8871_v49, %v5104_v50  ;;  %v5174_v8 = vadd.f32 %v8871_v49, %v5107_v51 }
 0x308   : > { %5294 = vst.msk [vmem:[%s8882_s29 + $0xa0] sm:$0xf] %vm5275_vm1, %v5232_v11  ;;  %5297 = vst.msk [vmem:[%s8882_s29 + $0xb8] sm:$0xf] %vm5275_vm1, %v5235_v26 }
 0x309   : > { %5292 = vst.msk [vmem:[%s8882_s29 + $0x90] sm:$0xff] %vm5272_vm2, %v5230_v42  ;;  %5295 = vst.msk [vmem:[%s8882_s29 + $0xa8] sm:$0xff] %vm5272_vm2, %v5233_v62  ;;  %v5231_v16 = vmax.f32 %v5171_v5, 0.0  ;;  %v5234_v46 = vmax.f32 %v5174_v8, 0.0 }
 0x30b   : > { %5293 = vst.msk [vmem:[%s8882_s29 + $0x98] sm:$0xff] %vm5272_vm2, %v5231_v16  ;;  %5296 = vst.msk [vmem:[%s8882_s29 + $0xb0] sm:$0xff] %vm5272_vm2, %v5234_v46 }
 0x311   : > { %v7025_v10 = vpop.f32.mrb[136].mxu0  ;;  %v7037_v43 = vpop.f32.mrb[136].mxu1 }
 0x312   : > { %v5111_v31 = vadd.f32 %v7025_v10, %v8720_v29  ;;  %v5114_v32 = vadd.f32 %v7037_v43, %v8723_v19  ;;  %v4477_v39 = vpop.f32.mrb[137].mxu0  ;;  %v4531_v1 = vpop.f32.mrb[137].mxu1 }
 0x313   : > { %v5109_v41 = vadd.f32 %v4477_v39, %v8726_v12  ;;  %v5112_v15 = vadd.f32 %v4531_v1, %v8729_v13  ;;  %v7026_v4 = vpop.f32.mrb[138].mxu0  ;;  %v7038_v18 = vpop.f32.mrb[138].mxu1 }
 0x314   : > { %v5178_v2 = vadd.f32 %v8871_v49, %v5111_v31  ;;  %v5181_v60 = vadd.f32 %v8871_v49, %v5114_v32  ;;  %v4480_v47 = vpop.f32.mrb[139].mxu0  ;;  %v4534_v29 = vpop.f32.mrb[139].mxu1 }
 0x315   : > { %v5176_v19 = vadd.f32 %v8871_v49, %v5109_v41  ;;  %v5179_v54 = vadd.f32 %v8871_v49, %v5112_v15  ;;  %v5110_v12 = vadd.f32 %v4480_v47, %v8736_v20  ;;  %v5113_v13 = vadd.f32 %v4534_v29, %v8739_v56 }
 0x316   : > { %v5238_v61 = vmax.f32 %v5178_v2, 0.0  ;;  %v5241_v17 = vmax.f32 %v5181_v60, 0.0 }
 0x317   : > { %v5236_v58 = vmax.f32 %v5176_v19, 0.0  ;;  %v5239_v45 = vmax.f32 %v5179_v54, 0.0  ;;  %v5177_v33 = vadd.f32 %v8871_v49, %v5110_v12  ;;  %v5180_v7 = vadd.f32 %v8871_v49, %v5113_v13 }
 0x318   : > { %5300 = vst.msk [vmem:[%s8882_s29 + $0xd0] sm:$0xf] %vm5275_vm1, %v5238_v61  ;;  %5303 = vst.msk [vmem:[%s8882_s29 + $0xe8] sm:$0xf] %vm5275_vm1, %v5241_v17 }
 0x319   : > { %5298 = vst.msk [vmem:[%s8882_s29 + $0xc0] sm:$0xff] %vm5272_vm2, %v5236_v58  ;;  %5301 = vst.msk [vmem:[%s8882_s29 + $0xd8] sm:$0xff] %vm5272_vm2, %v5239_v45  ;;  %v5237_v6 = vmax.f32 %v5177_v33, 0.0  ;;  %v5240_v20 = vmax.f32 %v5180_v7, 0.0 }
 0x31b   : > { %5299 = vst.msk [vmem:[%s8882_s29 + $0xc8] sm:$0xff] %vm5272_vm2, %v5237_v6  ;;  %5302 = vst.msk [vmem:[%s8882_s29 + $0xe0] sm:$0xff] %vm5272_vm2, %v5240_v20  ;;  %v9198_v6 = vld [vmem:[#allocation13_spill] sm:$0xff] }
 0x321   : > { %v7049_v56 = vpop.f32.mrb[140].mxu0  ;;  %v7061_v23 = vpop.f32.mrb[140].mxu1 }
 0x322   : > { %v5117_v63 = vadd.f32 %v7049_v56, %v8764_v55  ;;  %v5120_v35 = vadd.f32 %v7061_v23, %v8767_v37  ;;  %v4585_v21 = vpop.f32.mrb[141].mxu0  ;;  %v4639_v28 = vpop.f32.mrb[141].mxu1  ;;  %v9199_v56 = vld [vmem:[#allocation14_spill] sm:$0xff] }
 0x323   : > { %v5115_v59 = vadd.f32 %v4585_v21, %v8770_v30  ;;  %v5118_v3 = vadd.f32 %v4639_v28, %v8773_v0  ;;  %v7050_v50 = vpop.f32.mrb[142].mxu0  ;;  %v7062_v51 = vpop.f32.mrb[142].mxu1  ;;  %v9200_v21 = vld [vmem:[#allocation15_spill] sm:$0xff] }
 0x324   : > { %v5184_v11 = vadd.f32 %v8871_v49, %v5117_v63  ;;  %v5187_v26 = vadd.f32 %v8871_v49, %v5120_v35  ;;  %v4588_v42 = vpop.f32.mrb[143].mxu0  ;;  %v4642_v55 = vpop.f32.mrb[143].mxu1 }
 0x325   : > { %v5182_v37 = vadd.f32 %v8871_v49, %v5115_v59  ;;  %v5185_v62 = vadd.f32 %v8871_v49, %v5118_v3  ;;  %v5116_v30 = vadd.f32 %v4588_v42, %v8780_v14  ;;  %v5119_v0 = vadd.f32 %v4642_v55, %v8783_v53  ;;  %v9201_v59 = vld [vmem:[#allocation16_spill] sm:$0xff] }
 0x326   : > { %v5244_v5 = vmax.f32 %v5184_v11, 0.0  ;;  %v5247_v8 = vmax.f32 %v5187_v26, 0.0 }
 0x327   : > { %v5242_v16 = vmax.f32 %v5182_v37, 0.0  ;;  %v5245_v46 = vmax.f32 %v5185_v62, 0.0  ;;  %v5183_v10 = vadd.f32 %v8871_v49, %v5116_v30  ;;  %v5186_v43 = vadd.f32 %v8871_v49, %v5119_v0  ;;  %v9202_v30 = vld [vmem:[#allocation17_spill] sm:$0xff] }
 0x328   : > { %5306 = vst.msk [vmem:[%s8882_s29 + $0x100] sm:$0xf] %vm5275_vm1, %v5244_v5  ;;  %5309 = vst.msk [vmem:[%s8882_s29 + $0x118] sm:$0xf] %vm5275_vm1, %v5247_v8  ;;  %v9203_v5 = vld [vmem:[#allocation18_spill] sm:$0xff] }
 0x329   : > { %5304 = vst.msk [vmem:[%s8882_s29 + $0xf0] sm:$0xff] %vm5272_vm2, %v5242_v16  ;;  %5307 = vst.msk [vmem:[%s8882_s29 + $0x108] sm:$0xff] %vm5272_vm2, %v5245_v46  ;;  %v5243_v31 = vmax.f32 %v5183_v10, 0.0  ;;  %v5246_v14 = vmax.f32 %v5186_v43, 0.0 }
 0x32b   : > { %5305 = vst.msk [vmem:[%s8882_s29 + $0xf8] sm:$0xff] %vm5272_vm2, %v5243_v31  ;;  %5308 = vst.msk [vmem:[%s8882_s29 + $0x110] sm:$0xff] %vm5272_vm2, %v5246_v14 }
 0x331   : > { %v7073_v53 = vpop.f32.mrb[144].mxu0  ;;  %v7085_v32 = vpop.f32.mrb[144].mxu1 }
 0x332   : > { %v5123_v39 = vadd.f32 %v7073_v53, %v8796_v48  ;;  %v5126_v1 = vadd.f32 %v7085_v32, %v8799_v36  ;;  %v4693_v41 = vpop.f32.mrb[145].mxu0  ;;  %v4747_v15 = vpop.f32.mrb[145].mxu1 }
 0x333   : > { %v5121_v4 = vadd.f32 %v4693_v41, %v8802_v40  ;;  %v5124_v18 = vadd.f32 %v4747_v15, %v8805_v22  ;;  %v7074_v2 = vpop.f32.mrb[146].mxu0  ;;  %v7086_v60 = vpop.f32.mrb[146].mxu1  ;;  %v9204_v15 = vld [vmem:[#allocation19_spill] sm:$0xff] }
 0x334   : > { %v5190_v47 = vadd.f32 %v8871_v49, %v5123_v39  ;;  %v5193_v29 = vadd.f32 %v8871_v49, %v5126_v1  ;;  %v4696_v19 = vpop.f32.mrb[147].mxu0  ;;  %v4750_v48 = vpop.f32.mrb[147].mxu1 }
 0x335   : > { %v5188_v36 = vadd.f32 %v8871_v49, %v5121_v4  ;;  %v5191_v54 = vadd.f32 %v8871_v49, %v5124_v18  ;;  %v5122_v40 = vadd.f32 %v4696_v19, %v8808_v52  ;;  %v5125_v22 = vadd.f32 %v4750_v48, %v8811_v27 }
 0x336   : > { %v5250_v12 = vmax.f32 %v5190_v47, 0.0  ;;  %v5253_v13 = vmax.f32 %v5193_v29, 0.0 }
 0x337   : > { %v5248_v61 = vmax.f32 %v5188_v36, 0.0  ;;  %v5251_v17 = vmax.f32 %v5191_v54, 0.0  ;;  %v5189_v58 = vadd.f32 %v8871_v49, %v5122_v40  ;;  %v5192_v45 = vadd.f32 %v8871_v49, %v5125_v22 }
 0x338   : > { %5312 = vst.msk [vmem:[%s8882_s29 + $0x130] sm:$0xf] %vm5275_vm1, %v5250_v12  ;;  %5315 = vst.msk [vmem:[%s8882_s29 + $0x148] sm:$0xf] %vm5275_vm1, %v5253_v13  ;;  %v9206_v12 = vld [vmem:[#allocation21_spill] sm:$0xff] }
 0x339   : > { %5310 = vst.msk [vmem:[%s8882_s29 + $0x120] sm:$0xff] %vm5272_vm2, %v5248_v61  ;;  %5313 = vst.msk [vmem:[%s8882_s29 + $0x138] sm:$0xff] %vm5272_vm2, %v5251_v17  ;;  %v5249_v33 = vmax.f32 %v5189_v58, 0.0  ;;  %v5252_v52 = vmax.f32 %v5192_v45, 0.0 }
 0x33b   : > { %5311 = vst.msk [vmem:[%s8882_s29 + $0x128] sm:$0xff] %vm5272_vm2, %v5249_v33  ;;  %5314 = vst.msk [vmem:[%s8882_s29 + $0x140] sm:$0xff] %vm5272_vm2, %v5252_v52 }
 0x341   : > { %v7097_v27 = vpop.f32.mrb[148].mxu0  ;;  %v7109_v7 = vpop.f32.mrb[148].mxu1 }
 0x342   : > { %v5129_v20 = vadd.f32 %v7097_v27, %v9198_v6  ;;  %v5132_v23 = vadd.f32 %v7109_v7, %v9199_v56  ;;  %v4801_v63 = vpop.f32.mrb[149].mxu0  ;;  %v4855_v35 = vpop.f32.mrb[149].mxu1 }
 0x343   : > { %v5127_v28 = vadd.f32 %v4801_v63, %v9200_v21  ;;  %v5130_v3 = vadd.f32 %v4855_v35, %v9201_v59  ;;  %v7098_v50 = vpop.f32.mrb[150].mxu0  ;;  %v7110_v51 = vpop.f32.mrb[150].mxu1 }
 0x344   : > { %v5196_v11 = vadd.f32 %v8871_v49, %v5129_v20  ;;  %v5199_v26 = vadd.f32 %v8871_v49, %v5132_v23  ;;  %v4804_v42 = vpop.f32.mrb[151].mxu0  ;;  %v4858_v55 = vpop.f32.mrb[151].mxu1 }
 0x345   : > { %v5194_v37 = vadd.f32 %v8871_v49, %v5127_v28  ;;  %v5197_v62 = vadd.f32 %v8871_v49, %v5130_v3  ;;  %v5128_v0 = vadd.f32 %v4804_v42, %v9202_v30  ;;  %v5131_v8 = vadd.f32 %v4858_v55, %v9203_v5  ;;  %v9208_v42 = vld [vmem:[#allocation3_spill] sm:$0xff] }
 0x346   : > { %v5256_v16 = vmax.f32 %v5196_v11, 0.0  ;;  %v5259_v46 = vmax.f32 %v5199_v26, 0.0 }
 0x347   : > { %v5254_v10 = vmax.f32 %v5194_v37, 0.0  ;;  %v5257_v43 = vmax.f32 %v5197_v62, 0.0  ;;  %v5195_v31 = vadd.f32 %v8871_v49, %v5128_v0  ;;  %v5198_v14 = vadd.f32 %v8871_v49, %v5131_v8 }
 0x348   : > { %5318 = vst.msk [vmem:[%s8882_s29 + $0x160] sm:$0xf] %vm5275_vm1, %v5256_v16  ;;  %5321 = vst.msk [vmem:[%s8882_s29 + $0x178] sm:$0xf] %vm5275_vm1, %v5259_v46 }
 0x349   : > { %5316 = vst.msk [vmem:[%s8882_s29 + $0x150] sm:$0xff] %vm5272_vm2, %v5254_v10  ;;  %5319 = vst.msk [vmem:[%s8882_s29 + $0x168] sm:$0xff] %vm5272_vm2, %v5257_v43  ;;  %v5255_v53 = vmax.f32 %v5195_v31, 0.0  ;;  %v5258_v32 = vmax.f32 %v5198_v14, 0.0 }
 0x34b   : > { %5317 = vst.msk [vmem:[%s8882_s29 + $0x158] sm:$0xff] %vm5272_vm2, %v5255_v53  ;;  %5320 = vst.msk [vmem:[%s8882_s29 + $0x170] sm:$0xff] %vm5272_vm2, %v5258_v32 }
 0x351   : > { %v7121_v39 = vpop.f32.mrb[152].mxu0  ;;  %v7133_v1 = vpop.f32.mrb[152].mxu1 }
 0x352   : > { %v5135_v41 = vadd.f32 %v7121_v39, %v8832_v9  ;;  %v5138_v4 = vadd.f32 %v7133_v1, %v9204_v15  ;;  %v4909_v18 = vpop.f32.mrb[153].mxu0  ;;  %v4963_v2 = vpop.f32.mrb[153].mxu1 }
 0x353   : > { %v5133_v60 = vadd.f32 %v4909_v18, %v8838_v57  ;;  %v5136_v47 = vadd.f32 %v4963_v2, %v8841_v34  ;;  %v7122_v29 = vpop.f32.mrb[154].mxu0  ;;  %v7134_v19 = vpop.f32.mrb[154].mxu1  ;;  %v9205_v57 = vld [vmem:[#allocation20_spill] sm:$0xff] }
 0x354   : > { %v5202_v48 = vadd.f32 %v8871_v49, %v5135_v41  ;;  %v5205_v36 = vadd.f32 %v8871_v49, %v5138_v4  ;;  %v4912_v54 = vpop.f32.mrb[155].mxu0  ;;  %v4966_v9 = vpop.f32.mrb[155].mxu1 }
 0x355   : > { %v5200_v40 = vadd.f32 %v8871_v49, %v5133_v60  ;;  %v5203_v22 = vadd.f32 %v8871_v49, %v5136_v47  ;;  %v5134_v34 = vadd.f32 %v4912_v54, %v9205_v57  ;;  %v5137_v13 = vadd.f32 %v4966_v9, %v9206_v12 }
 0x356   : > { %v5262_v61 = vmax.f32 %v5202_v48, 0.0  ;;  %v5265_v17 = vmax.f32 %v5205_v36, 0.0 }
 0x357   : > { %v5260_v58 = vmax.f32 %v5200_v40, 0.0  ;;  %v5263_v45 = vmax.f32 %v5203_v22, 0.0  ;;  %v5201_v33 = vadd.f32 %v8871_v49, %v5134_v34  ;;  %v5204_v52 = vadd.f32 %v8871_v49, %v5137_v13 }
 0x358   : > { %5324 = vst.msk [vmem:[%s8882_s29 + $0x190] sm:$0xf] %vm5275_vm1, %v5262_v61  ;;  %5327 = vst.msk [vmem:[%s8882_s29 + $0x1a8] sm:$0xf] %vm5275_vm1, %v5265_v17 }
 0x359   : > { %5322 = vst.msk [vmem:[%s8882_s29 + $0x180] sm:$0xff] %vm5272_vm2, %v5260_v58  ;;  %5325 = vst.msk [vmem:[%s8882_s29 + $0x198] sm:$0xff] %vm5272_vm2, %v5263_v45  ;;  %v5261_v27 = vmax.f32 %v5201_v33, 0.0  ;;  %v5264_v7 = vmax.f32 %v5204_v52, 0.0 }
 0x35b   : > { %5323 = vst.msk [vmem:[%s8882_s29 + $0x188] sm:$0xff] %vm5272_vm2, %v5261_v27  ;;  %5326 = vst.msk [vmem:[%s8882_s29 + $0x1a0] sm:$0xff] %vm5272_vm2, %v5264_v7 }
 0x361   : > { %v7145_v6 = vpop.f32.mrb[156].mxu0  ;;  %v7157_v20 = vpop.f32.mrb[156].mxu1 }
 0x362   : > { %v5141_v56 = vadd.f32 %v7145_v6, %v8850_v24  ;;  %v5144_v23 = vadd.f32 %v7157_v20, %v8853_v25  ;;  %v5017_v63 = vpop.f32.mrb[157].mxu0  ;;  %v5071_v35 = vpop.f32.mrb[157].mxu1 }
 0x363   : > { %v5139_v21 = vadd.f32 %v5017_v63, %v8856_v38  ;;  %v5142_v28 = vadd.f32 %v5071_v35, %v8859_v44  ;;  %v7146_v59 = vpop.f32.mrb[158].mxu0  ;;  %v7158_v3 = vpop.f32.mrb[158].mxu1  ;;  %v9207_v38 = vld [vmem:[#allocation2_spill] sm:$0xff] }
 0x364   : > { %v5208_v50 = vadd.f32 %v8871_v49, %v5141_v56  ;;  %v5211_v51 = vadd.f32 %v8871_v49, %v5144_v23  ;;  %v5020_v11 = vpop.f32.mrb[159].mxu0  ;;  %v5074_v24 = vpop.f32.mrb[159].mxu1 }
 0x365   : > { %v5206_v25 = vadd.f32 %v8871_v49, %v5139_v21  ;;  %v5209_v26 = vadd.f32 %v8871_v49, %v5142_v28  ;;  %v5140_v44 = vadd.f32 %v5020_v11, %v9207_v38  ;;  %v5143_v55 = vadd.f32 %v5074_v24, %v9208_v42 }
 0x366   : > { %v5268_v37 = vmax.f32 %v5208_v50, 0.0  ;;  %v5271_v62 = vmax.f32 %v5211_v51, 0.0 }
 0x367   : > { %v5266_v30 = vmax.f32 %v5206_v25, 0.0  ;;  %v5269_v0 = vmax.f32 %v5209_v26, 0.0  ;;  %v5207_v5 = vadd.f32 %v8871_v49, %v5140_v44  ;;  %v5210_v8 = vadd.f32 %v8871_v49, %v5143_v55 }
 0x368   : > { %5330 = vst.msk [vmem:[%s8882_s29 + $0x1c0] sm:$0xf] %vm5275_vm1, %v5268_v37  ;;  %5333 = vst.msk [vmem:[%s8882_s29 + $0x1d8] sm:$0xf] %vm5275_vm1, %v5271_v62 }
 0x369   : > { %5328 = vst.msk [vmem:[%s8882_s29 + $0x1b0] sm:$0xff] %vm5272_vm2, %v5266_v30  ;;  %5331 = vst.msk [vmem:[%s8882_s29 + $0x1c8] sm:$0xff] %vm5272_vm2, %v5269_v0  ;;  %v5267_v16 = vmax.f32 %v5207_v5, 0.0  ;;  %v5270_v46 = vmax.f32 %v5210_v8, 0.0 }
 0x36b   : > { %5329 = vst.msk [vmem:[%s8882_s29 + $0x1b8] sm:$0xff] %vm5272_vm2, %v5267_v16  ;;  %5332 = vst.msk [vmem:[%s8882_s29 + $0x1d0] sm:$0xff] %vm5272_vm2, %v5270_v46 }
 0x36c PF: > { %s13_s12 = sadd.s32 1, %s7191_s12  }
 0x36d   : > { %p10_p4 = scmp.ge.s32.totalorder %s13_s12, 6  }
 0x36f   :  { %12 = sbr.rel (!%p10_p4) target bundleno = 1 (0x1), region = 66 }

// kernel: dqn_cnn_forward.5
= control target key start
LH: loop header
LB: loop body
LE: loop exit
PB: predicated region body
PF: predicated region fallthrough
CT: control target
= control target key end

     0   :  { %s3414_s12 = smov 0   ;;  %s4564_s0 = inlined_call_operand.vmem [shape: f32[4,10,10,128], index: 0, kind: input, shape index: {}]   ;;  %s4565_s1 = inlined_call_operand.vmem [shape: bf16[4,128,64], index: 1, kind: input, shape index: {}]   ;;  %s4566_s2 = inlined_call_operand.vmem [shape: f32[1,1,64], index: 2, kind: input, shape index: {}]   ;;  %s4567_s3 = inlined_call_operand.vmem [shape: f32[4,9,9,64], index: 3, kind: output, shape index: {}]  }
   0x1 LB: > { %s2170_s13 = sadd.s32 4294967295, %s3390_s12   ;;  %p2174_p0 = scmp.ge.s32.totalorder %s3390_s12, 1  ;;  %s3390_s12 = sphi %s3414_s12, %s13_s12  }
   0x2   : > { %p137_p1 = scmp.lt.s32.totalorder %s3390_s12, 5 }
   0x4   : > { %p138_p2 = pnand %p2174_p0, %p137_p1 }
   0x5   : > { %v3425_v0 = vld [vmem:[%s4565_s1 + $0x40] sm:$0xff] (!%p138_p2)   ;;  %v3392_v1 = vmov (!%p138_p2), 0.0   ;;  %v3434_v2 = vld [vmem:[%s4565_s1 + $0x48] sm:$0xff] (!%p138_p2)   ;;  %vm3393_vm0 = vmmov (!%p138_p2), 0   ;;  %v3447_v3 = vld [vmem:[%s4565_s1 + $0x50] sm:$0xff] (!%p138_p2)   ;;  %p161_p3 = scmp.lt.s32.totalorder (!%p138_p2), %s2170_s13, 3 }
   0x6   : > { %141 = sbr.rel (%p138_p2) target bundleno = 803 (0x323), region = 32  ;;  %2620 = vmatprep.subr.bf16.mxu0 (!%p138_p2), %v3392_v1  ;;  %2640 = vmatprep.subr.bf16.mxu1 (!%p138_p2), %v3392_v1  ;;  %v3456_v4 = vld [vmem:[%s4565_s1 + $0x58] sm:$0xff] (!%p138_p2)   ;;  %v3467_v5 = vld [vmem:[%s4565_s1 + $0x60] sm:$0xff] (!%p138_p2)   ;;  %v3477_v6 = vld [vmem:[%s4565_s1 + $0x68] sm:$0xff] (!%p138_p2)   ;;  %vm2095_vm1 = vcmask (!%p138_p2), 523264   ;;  %vm2097_vm2 = vcmask (!%p138_p2), 516096  }
   0x7   : > { %2621 = vmatpush3.bf16.msra.mxu0 (!%p138_p2), %v3425_v0  ;;  %2641 = vmatpush3.bf16.msra.mxu1 (!%p138_p2), %v3425_v0  ;;  %v3484_v7 = vld [vmem:[%s4565_s1 + $0x70] sm:$0xff] (!%p138_p2)   ;;  %v3498_v8 = vld [vmem:[%s4565_s1 + $0x78] sm:$0xff] (!%p138_p2)   ;;  %v3633_v33 = vld [vmem:[%s4565_s1] sm:$0xff] (!%p138_p2)  }
   0x8   : > { %2622 = vmatprep.subr.bf16.mxu0 (!%p138_p2), %v3392_v1  ;;  %2642 = vmatprep.subr.bf16.mxu1 (!%p138_p2), %v3392_v1  ;;  %v3642_v34 = vld [vmem:[%s4565_s1 + $0x8] sm:$0xff] (!%p138_p2)   ;;  %v3655_v35 = vld [vmem:[%s4565_s1 + $0x10] sm:$0xff] (!%p138_p2)   ;;  %v3664_v36 = vld [vmem:[%s4565_s1 + $0x18] sm:$0xff] (!%p138_p2)  }
   0x9   : > { %2636 = vmatprep.mubr.msk.bf16.mxu0 (!%p138_p2), %vm3393_vm0, %v3392_v1  ;;  %2656 = vmatprep.mubr.msk.bf16.mxu1 (!%p138_p2), %vm3393_vm0, %v3392_v1  ;;  %v3673_v37 = vld [vmem:[%s4565_s1 + $0x20] sm:$0xff] (!%p138_p2)   ;;  %v3682_v38 = vld [vmem:[%s4565_s1 + $0x28] sm:$0xff] (!%p138_p2)   ;;  %v3691_v39 = vld [vmem:[%s4565_s1 + $0x30] sm:$0xff] (!%p138_p2)  }
   0xa   : > { %v3698_v40 = vld [vmem:[%s4565_s1 + $0x38] sm:$0xff] (!%p138_p2)  }
   0xb   : > { %2623 = vmatpush3.bf16.msra.mxu0 (!%p138_p2), %v3434_v2  ;;  %2643 = vmatpush3.bf16.msra.mxu1 (!%p138_p2), %v3434_v2 }
   0xc   : > { %2624 = vmatprep.subr.bf16.mxu0 (!%p138_p2), %v3392_v1  ;;  %2644 = vmatprep.subr.bf16.mxu1 (!%p138_p2), %v3392_v1 }
   0xd   : > { %s4569_s13 = smov (!%p161_p3, %s2170_s13), 3 }
   0xe   : > { %s3340_s24 = smul.u32 160, %s4569_s13 }
   0xf   : > { %2625 = vmatpush3.bf16.msra.mxu0 %v3447_v3  ;;  %2645 = vmatpush3.bf16.msra.mxu1 %v3447_v3 }
  0x10   : > { %2626 = vmatprep.subr.bf16.mxu0 %v3392_v1  ;;  %2646 = vmatprep.subr.bf16.mxu1 %v3392_v1  ;;  %s3489_s4 = scalar_lea.vmem %s4564_s0, %s3340_s24 }
  0x11   : > { %v215_v9 = vld [vmem:[%s3489_s4 + $0x1] sm:$0xff]  ;;  %v216_v10 = vld [vmem:[%s3489_s4 + $0x9] sm:$0x1]  ;;  %v217_v11 = vld [vmem:[%s3489_s4 + $0x11] sm:$0xff] }
  0x12   : > { %v218_v12 = vld [vmem:[%s3489_s4 + $0x19] sm:$0x1]  ;;  %v233_v13 = vpack.c.bf16 %v216_v10, %v215_v9  ;;  %v219_v15 = vld [vmem:[%s3489_s4 + $0x21] sm:$0xff]  ;;  %v220_v16 = vld [vmem:[%s3489_s4 + $0x29] sm:$0x1] }
  0x13   : > { %2627 = vmatpush3.bf16.msra.mxu0 %v3456_v4  ;;  %2647 = vmatpush3.bf16.msra.mxu1 %v3456_v4  ;;  %v234_v14 = vpack.c.bf16 %v218_v12, %v217_v11  ;;  %v221_v17 = vld [vmem:[%s3489_s4 + $0x31] sm:$0xff]  ;;  %v222_v18 = vld [vmem:[%s3489_s4 + $0x39] sm:$0x1]  ;;  %v235_v19 = vpack.c.bf16 %v220_v16, %v219_v15  ;;  %v223_v21 = vld [vmem:[%s3489_s4 + $0x41] sm:$0xff] }
  0x14   : > { %2628 = vmatprep.subr.bf16.mxu0 %v3392_v1  ;;  %2648 = vmatprep.subr.bf16.mxu1 %v3392_v1  ;;  %v236_v20 = vpack.c.bf16 %v222_v18, %v221_v17  ;;  %v224_v22 = vld [vmem:[%s3489_s4 + $0x49] sm:$0x1]  ;;  %v225_v23 = vld [vmem:[%s3489_s4 + $0x51] sm:$0xff]  ;;  %v226_v24 = vld [vmem:[%s3489_s4 + $0x59] sm:$0x1] }
  0x15   : > { %v237_v25 = vpack.c.bf16 %v224_v22, %v223_v21  ;;  %v238_v26 = vpack.c.bf16 %v226_v24, %v225_v23  ;;  %v227_v27 = vld [vmem:[%s3489_s4 + $0x61] sm:$0xff]  ;;  %v228_v28 = vld [vmem:[%s3489_s4 + $0x69] sm:$0x1]  ;;  %v229_v29 = vld [vmem:[%s3489_s4 + $0x71] sm:$0xff] }
  0x16   : > { %v230_v30 = vld [vmem:[%s3489_s4 + $0x79] sm:$0x1]  ;;  %v239_v31 = vpack.c.bf16 %v228_v28, %v227_v27  ;;  %v231_v41 = vld [vmem:[%s3489_s4 + $0x81] sm:$0xff]  ;;  %v232_v42 = vld [vmem:[%s3489_s4 + $0x89] sm:$0x1] }
  0x17   : > { %2629 = vmatpush3.bf16.msra.mxu0 %v3467_v5  ;;  %2649 = vmatpush3.bf16.msra.mxu1 %v3467_v5  ;;  %v240_v32 = vpack.c.bf16 %v230_v30, %v229_v29  ;;  %v172_v43 = vld [vmem:[%s3489_s4] sm:$0xff]  ;;  %v173_v44 = vld [vmem:[%s3489_s4 + $0x8] sm:$0x1]  ;;  %v241_v45 = vpack.c.bf16 %v232_v42, %v231_v41  ;;  %v3741_v47 = vld [vmem:[%s3489_s4 + $0x10] sm:$0xff] }
  0x18   : > { %2630 = vmatprep.subr.bf16.mxu0 %v3392_v1  ;;  %2650 = vmatprep.subr.bf16.mxu1 %v3392_v1  ;;  %v190_v46 = vpack.c.bf16 %v173_v44, %v172_v43  ;;  %v175_v48 = vld [vmem:[%s3489_s4 + $0x18] sm:$0x1]  ;;  %v3747_v49 = vld [vmem:[%s3489_s4 + $0x20] sm:$0xff]  ;;  %v177_v50 = vld [vmem:[%s3489_s4 + $0x28] sm:$0x1] }
  0x19   : > { %v191_v51 = vpack.c.bf16 %v175_v48, %v3741_v47  ;;  %v192_v52 = vpack.c.bf16 %v177_v50, %v3747_v49  ;;  %v3787_v53 = vld [vmem:[%s3489_s4 + $0x30] sm:$0xff]  ;;  %v179_v54 = vld [vmem:[%s3489_s4 + $0x38] sm:$0x1]  ;;  %v3793_v55 = vld [vmem:[%s3489_s4 + $0x40] sm:$0xff] }
  0x1a   : > { %v181_v56 = vld [vmem:[%s3489_s4 + $0x48] sm:$0x1]  ;;  %v193_v57 = vpack.c.bf16 %v179_v54, %v3787_v53  ;;  %v3895_v18 = vld [vmem:[%s3489_s4 + $0x70] sm:$0xff]  ;;  %v3913_v24 = vld [vmem:[%s4565_s1 + $0x80] sm:$0xff]  }
  0x1b   : > { %2631 = vmatpush3.bf16.msra.mxu0 %v3477_v6  ;;  %2651 = vmatpush3.bf16.msra.mxu1 %v3477_v6  ;;  %v194_v58 = vpack.c.bf16 %v181_v56, %v3793_v55  ;;  %v189_v21 = vld [vmem:[%s3489_s4 + $0x88] sm:$0x1]  ;;  %v3944_v27 = vld [vmem:[%s4565_s1 + $0x98] sm:$0xff]   ;;  %v3953_v28 = vld [vmem:[%s4565_s1 + $0xa0] sm:$0xff]  }
  0x1c   : > { %2632 = vmatprep.subr.bf16.mxu0 %v3392_v1  ;;  %2652 = vmatprep.subr.bf16.mxu1 %v3392_v1  ;;  %v3962_v29 = vld [vmem:[%s4565_s1 + $0xa8] sm:$0xff]  }
  0x1d   : > { %v2212_v41 = vld [vmem:[%s3489_s4 + $0x28] sm:$0x1] }
  0x1e   : > { %v1113_v43 = vpack.c.bf16 %v2212_v41, %v3747_v49  ;;  %v2216_v54 = vld [vmem:[%s3489_s4 + $0x48] sm:$0x1] }
  0x1f   : > { %2633 = vmatpush3.bf16.msra.mxu0 %v3484_v7  ;;  %2653 = vmatpush3.bf16.msra.mxu1 %v3484_v7 }
  0x20   : > { %2634 = vmatprep.subr.bf16.mxu0 %v3392_v1  ;;  %2654 = vmatprep.subr.bf16.mxu1 %v3392_v1 }
  0x23   : > { %2635 = vmatpush3.bf16.msra.mxu0 %v3498_v8  ;;  %2655 = vmatpush3.bf16.msra.mxu1 %v3498_v8 }
  0x24   : > { %2660 = vmatprep.subr.bf16.mxu0 %v3392_v1  ;;  %2680 = vmatprep.subr.bf16.mxu1 %v3392_v1 }
  0x26   : > { %2637 = vmatmul.mubr.bf16.vlgmr.msra.gmra.mrb[0].mxu0 %v233_v13  ;;  %2657 = vmatmul.mubr.bf16.vlgmr.msra.gmra.mrb[0].mxu1 %v234_v14 }
  0x27   : > { %2661 = vmatpush3.bf16.msra.mxu0 %v3425_v0  ;;  %2681 = vmatpush3.bf16.msra.mxu1 %v3425_v0 }
  0x28   : > { %2662 = vmatprep.subr.bf16.mxu0 %v3392_v1  ;;  %2682 = vmatprep.subr.bf16.mxu1 %v3392_v1 }
  0x29   : > { %2676 = vmatprep.mubr.msk.bf16.mxu0 %vm3393_vm0, %v3392_v1  ;;  %2696 = vmatprep.mubr.msk.bf16.mxu1 %vm3393_vm0, %v3392_v1 }
  0x2b   : > { %2663 = vmatpush3.bf16.msra.mxu0 %v3434_v2  ;;  %2683 = vmatpush3.bf16.msra.mxu1 %v3434_v2 }
  0x2c   : > { %2664 = vmatprep.subr.bf16.mxu0 %v3392_v1  ;;  %2684 = vmatprep.subr.bf16.mxu1 %v3392_v1 }
  0x2f   : > { %2665 = vmatpush3.bf16.msra.mxu0 %v3447_v3  ;;  %2685 = vmatpush3.bf16.msra.mxu1 %v3447_v3 }
  0x30   : > { %2666 = vmatprep.subr.bf16.mxu0 %v3392_v1  ;;  %2686 = vmatprep.subr.bf16.mxu1 %v3392_v1 }
  0x33   : > { %2667 = vmatpush3.bf16.msra.mxu0 %v3456_v4  ;;  %2687 = vmatpush3.bf16.msra.mxu1 %v3456_v4 }
  0x34   : > { %2668 = vmatprep.subr.bf16.mxu0 %v3392_v1  ;;  %2688 = vmatprep.subr.bf16.mxu1 %v3392_v1 }
  0x37   : > { %2669 = vmatpush3.bf16.msra.mxu0 %v3467_v5  ;;  %2689 = vmatpush3.bf16.msra.mxu1 %v3467_v5 }
  0x38   : > { %2670 = vmatprep.subr.bf16.mxu0 %v3392_v1  ;;  %2690 = vmatprep.subr.bf16.mxu1 %v3392_v1 }
  0x3b   : > { %2671 = vmatpush3.bf16.msra.mxu0 %v3477_v6  ;;  %2691 = vmatpush3.bf16.msra.mxu1 %v3477_v6 }
  0x3c   : > { %2672 = vmatprep.subr.bf16.mxu0 %v3392_v1  ;;  %2692 = vmatprep.subr.bf16.mxu1 %v3392_v1 }
  0x3f   : > { %2673 = vmatpush3.bf16.msra.mxu0 %v3484_v7  ;;  %2693 = vmatpush3.bf16.msra.mxu1 %v3484_v7 }
  0x40   : > { %2674 = vmatprep.subr.bf16.mxu0 %v3392_v1  ;;  %2694 = vmatprep.subr.bf16.mxu1 %v3392_v1 }
  0x43   : > { %2675 = vmatpush3.bf16.msra.mxu0 %v3498_v8  ;;  %2695 = vmatpush3.bf16.msra.mxu1 %v3498_v8 }
  0x44   : > { %2700 = vmatprep.subr.bf16.mxu0 %v3392_v1  ;;  %2720 = vmatprep.subr.bf16.mxu1 %v3392_v1 }
  0x46   : > { %2677 = vmatmul.mubr.bf16.vlgmr.msra.gmra.mrb[4].mxu0 %v235_v19  ;;  %2697 = vmatmul.mubr.bf16.vlgmr.msra.gmra.mrb[4].mxu1 %v236_v20  ;;  %v187_v19 = vld [vmem:[%s3489_s4 + $0x78] sm:$0x1]  ;;  %v3901_v20 = vld [vmem:[%s3489_s4 + $0x80] sm:$0xff] }
  0x47   : > { %2701 = vmatpush3.bf16.msra.mxu0 %v3425_v0  ;;  %2721 = vmatpush3.bf16.msra.mxu1 %v3425_v0  ;;  %v197_v22 = vpack.c.bf16 %v187_v19, %v3895_v18  ;;  %v198_v23 = vpack.c.bf16 %v189_v21, %v3901_v20 }
  0x48   : > { %2702 = vmatprep.subr.bf16.mxu0 %v3392_v1  ;;  %2722 = vmatprep.subr.bf16.mxu1 %v3392_v1 }
  0x49   : > { %2716 = vmatprep.mubr.msk.bf16.mxu0 %vm3393_vm0, %v3392_v1  ;;  %2736 = vmatprep.mubr.msk.bf16.mxu1 %vm3393_vm0, %v3392_v1 }
  0x4b   : > { %2703 = vmatpush3.bf16.msra.mxu0 %v3434_v2  ;;  %2723 = vmatpush3.bf16.msra.mxu1 %v3434_v2 }
  0x4c   : > { %2704 = vmatprep.subr.bf16.mxu0 %v3392_v1  ;;  %2724 = vmatprep.subr.bf16.mxu1 %v3392_v1 }
  0x4f   : > { %2705 = vmatpush3.bf16.msra.mxu0 %v3447_v3  ;;  %2725 = vmatpush3.bf16.msra.mxu1 %v3447_v3 }
  0x50   : > { %2706 = vmatprep.subr.bf16.mxu0 %v3392_v1  ;;  %2726 = vmatprep.subr.bf16.mxu1 %v3392_v1 }
  0x53   : > { %2707 = vmatpush3.bf16.msra.mxu0 %v3456_v4  ;;  %2727 = vmatpush3.bf16.msra.mxu1 %v3456_v4 }
  0x54   : > { %2708 = vmatprep.subr.bf16.mxu0 %v3392_v1  ;;  %2728 = vmatprep.subr.bf16.mxu1 %v3392_v1 }
  0x57   : > { %2709 = vmatpush3.bf16.msra.mxu0 %v3467_v5  ;;  %2729 = vmatpush3.bf16.msra.mxu1 %v3467_v5 }
  0x58   : > { %2710 = vmatprep.subr.bf16.mxu0 %v3392_v1  ;;  %2730 = vmatprep.subr.bf16.mxu1 %v3392_v1 }
  0x5b   : > { %2711 = vmatpush3.bf16.msra.mxu0 %v3477_v6  ;;  %2731 = vmatpush3.bf16.msra.mxu1 %v3477_v6 }
  0x5c   : > { %2712 = vmatprep.subr.bf16.mxu0 %v3392_v1  ;;  %2732 = vmatprep.subr.bf16.mxu1 %v3392_v1 }
  0x5f   : > { %2713 = vmatpush3.bf16.msra.mxu0 %v3484_v7  ;;  %2733 = vmatpush3.bf16.msra.mxu1 %v3484_v7 }
  0x60   : > { %2714 = vmatprep.subr.bf16.mxu0 %v3392_v1  ;;  %2734 = vmatprep.subr.bf16.mxu1 %v3392_v1 }
  0x63   : > { %2715 = vmatpush3.bf16.msra.mxu0 %v3498_v8  ;;  %2735 = vmatpush3.bf16.msra.mxu1 %v3498_v8 }
  0x64   : > { %2740 = vmatprep.subr.bf16.mxu0 %v3392_v1  ;;  %2760 = vmatprep.subr.bf16.mxu1 %v3392_v1 }
  0x66   : > { %2717 = vmatmul.mubr.bf16.vlgmr.msra.gmra.mrb[8].mxu0 %v237_v25  ;;  %2737 = vmatmul.mubr.bf16.vlgmr.msra.gmra.mrb[8].mxu1 %v238_v26  ;;  %v3922_v25 = vld [vmem:[%s4565_s1 + $0x88] sm:$0xff]   ;;  %v3935_v26 = vld [vmem:[%s4565_s1 + $0x90] sm:$0xff]  }
  0x67   : > { %2741 = vmatpush3.bf16.msra.mxu0 %v3425_v0  ;;  %2761 = vmatpush3.bf16.msra.mxu1 %v3425_v0 }
  0x68   : > { %2742 = vmatprep.subr.bf16.mxu0 %v3392_v1  ;;  %2762 = vmatprep.subr.bf16.mxu1 %v3392_v1 }
  0x69   : > { %2756 = vmatprep.mubr.msk.bf16.mxu0 %vm3393_vm0, %v3392_v1  ;;  %2776 = vmatprep.mubr.msk.bf16.mxu1 %vm3393_vm0, %v3392_v1 }
  0x6b   : > { %2743 = vmatpush3.bf16.msra.mxu0 %v3434_v2  ;;  %2763 = vmatpush3.bf16.msra.mxu1 %v3434_v2 }
  0x6c   : > { %2744 = vmatprep.subr.bf16.mxu0 %v3392_v1  ;;  %2764 = vmatprep.subr.bf16.mxu1 %v3392_v1 }
  0x6f   : > { %2745 = vmatpush3.bf16.msra.mxu0 %v3447_v3  ;;  %2765 = vmatpush3.bf16.msra.mxu1 %v3447_v3 }
  0x70   : > { %2746 = vmatprep.subr.bf16.mxu0 %v3392_v1  ;;  %2766 = vmatprep.subr.bf16.mxu1 %v3392_v1 }
  0x73   : > { %2747 = vmatpush3.bf16.msra.mxu0 %v3456_v4  ;;  %2767 = vmatpush3.bf16.msra.mxu1 %v3456_v4 }
  0x74   : > { %2748 = vmatprep.subr.bf16.mxu0 %v3392_v1  ;;  %2768 = vmatprep.subr.bf16.mxu1 %v3392_v1 }
  0x77   : > { %2749 = vmatpush3.bf16.msra.mxu0 %v3467_v5  ;;  %2769 = vmatpush3.bf16.msra.mxu1 %v3467_v5 }
  0x78   : > { %2750 = vmatprep.subr.bf16.mxu0 %v3392_v1  ;;  %2770 = vmatprep.subr.bf16.mxu1 %v3392_v1 }
  0x7b   : > { %2751 = vmatpush3.bf16.msra.mxu0 %v3477_v6  ;;  %2771 = vmatpush3.bf16.msra.mxu1 %v3477_v6 }
  0x7c   : > { %2752 = vmatprep.subr.bf16.mxu0 %v3392_v1  ;;  %2772 = vmatprep.subr.bf16.mxu1 %v3392_v1 }
  0x7f   : > { %2753 = vmatpush3.bf16.msra.mxu0 %v3484_v7  ;;  %2773 = vmatpush3.bf16.msra.mxu1 %v3484_v7 }
  0x80   : > { %2754 = vmatprep.subr.bf16.mxu0 %v3392_v1  ;;  %2774 = vmatprep.subr.bf16.mxu1 %v3392_v1 }
  0x83   : > { %2755 = vmatpush3.bf16.msra.mxu0 %v3498_v8  ;;  %2775 = vmatpush3.bf16.msra.mxu1 %v3498_v8 }
  0x84   : > { %2780 = vmatprep.subr.bf16.mxu0 %v3392_v1  ;;  %2800 = vmatprep.subr.bf16.mxu1 %v3392_v1 }
  0x86   : > { %2757 = vmatmul.mubr.bf16.vlgmr.msra.gmra.mrb[12].mxu0 %v239_v31  ;;  %2777 = vmatmul.mubr.bf16.vlgmr.msra.gmra.mrb[12].mxu1 %v240_v32 }
  0x87   : > { %2781 = vmatpush3.bf16.msra.mxu0 %v3425_v0  ;;  %2801 = vmatpush3.bf16.msra.mxu1 %v3633_v33 }
  0x88   : > { %2782 = vmatprep.subr.bf16.mxu0 %v3392_v1  ;;  %2802 = vmatprep.subr.bf16.mxu1 %v3392_v1 }
  0x89   : > { %2796 = vmatprep.mubr.msk.bf16.mxu0 %vm3393_vm0, %v3392_v1  ;;  %2816 = vmatprep.mubr.msk.bf16.mxu1 %vm3393_vm0, %v3392_v1 }
  0x8b   : > { %2783 = vmatpush3.bf16.msra.mxu0 %v3434_v2  ;;  %2803 = vmatpush3.bf16.msra.mxu1 %v3642_v34 }
  0x8c   : > { %2784 = vmatprep.subr.bf16.mxu0 %v3392_v1  ;;  %2804 = vmatprep.subr.bf16.mxu1 %v3392_v1 }
  0x8f   : > { %2785 = vmatpush3.bf16.msra.mxu0 %v3447_v3  ;;  %2805 = vmatpush3.bf16.msra.mxu1 %v3655_v35 }
  0x90   : > { %2786 = vmatprep.subr.bf16.mxu0 %v3392_v1  ;;  %2806 = vmatprep.subr.bf16.mxu1 %v3392_v1 }
  0x93   : > { %2787 = vmatpush3.bf16.msra.mxu0 %v3456_v4  ;;  %2807 = vmatpush3.bf16.msra.mxu1 %v3664_v36  ;;  %v3841_v4 = vld [vmem:[%s3489_s4 + $0x50] sm:$0xff] }
  0x94   : > { %2788 = vmatprep.subr.bf16.mxu0 %v3392_v1  ;;  %2808 = vmatprep.subr.bf16.mxu1 %v3392_v1 }
  0x97   : > { %2789 = vmatpush3.bf16.msra.mxu0 %v3467_v5  ;;  %2809 = vmatpush3.bf16.msra.mxu1 %v3673_v37  ;;  %v183_v5 = vld [vmem:[%s3489_s4 + $0x58] sm:$0x1] }
  0x98   : > { %2790 = vmatprep.subr.bf16.mxu0 %v3392_v1  ;;  %2810 = vmatprep.subr.bf16.mxu1 %v3392_v1 }
  0x9b   : > { %2791 = vmatpush3.bf16.msra.mxu0 %v3477_v6  ;;  %2811 = vmatpush3.bf16.msra.mxu1 %v3682_v38  ;;  %v3847_v6 = vld [vmem:[%s3489_s4 + $0x60] sm:$0xff] }
  0x9c   : > { %2792 = vmatprep.subr.bf16.mxu0 %v3392_v1  ;;  %2812 = vmatprep.subr.bf16.mxu1 %v3392_v1 }
  0x9f   : > { %2793 = vmatpush3.bf16.msra.mxu0 %v3484_v7  ;;  %2813 = vmatpush3.bf16.msra.mxu1 %v3691_v39  ;;  %v185_v7 = vld [vmem:[%s3489_s4 + $0x68] sm:$0x1] }
  0xa0   : > { %2794 = vmatprep.subr.bf16.mxu0 %v3392_v1  ;;  %2814 = vmatprep.subr.bf16.mxu1 %v3392_v1  ;;  %v196_v9 = vpack.c.bf16 %v185_v7, %v3847_v6 }
  0xa3   : > { %2795 = vmatpush3.bf16.msra.mxu0 %v3498_v8  ;;  %2815 = vmatpush3.bf16.msra.mxu1 %v3698_v40  ;;  %v195_v8 = vpack.c.bf16 %v183_v5, %v3841_v4 }
  0xa4   : > { %2820 = vmatprep.subr.bf16.mxu0 %v3392_v1  ;;  %2840 = vmatprep.subr.bf16.mxu1 %v3392_v1 }
  0xa6   : > { %2797 = vmatmul.mubr.bf16.vlgmr.msra.gmra.mrb[16].mxu0 %v241_v45  ;;  %2817 = vmatmul.mubr.bf16.vlgmr.msra.gmra.mrb[16].mxu1 %v190_v46 }
  0xa7   : > { %2821 = vmatpush3.bf16.msra.mxu0 %v3633_v33  ;;  %2841 = vmatpush3.bf16.msra.mxu1 %v3633_v33 }
  0xa8   : > { %2822 = vmatprep.subr.bf16.mxu0 %v3392_v1  ;;  %2842 = vmatprep.subr.bf16.mxu1 %v3392_v1 }
  0xa9   : > { %2836 = vmatprep.mubr.msk.bf16.mxu0 %vm3393_vm0, %v3392_v1  ;;  %2856 = vmatprep.mubr.msk.bf16.mxu1 %vm3393_vm0, %v3392_v1 }
  0xab   : > { %2823 = vmatpush3.bf16.msra.mxu0 %v3642_v34  ;;  %2843 = vmatpush3.bf16.msra.mxu1 %v3642_v34 }
  0xac   : > { %2824 = vmatprep.subr.bf16.mxu0 %v3392_v1  ;;  %2844 = vmatprep.subr.bf16.mxu1 %v3392_v1 }
  0xaf   : > { %2825 = vmatpush3.bf16.msra.mxu0 %v3655_v35  ;;  %2845 = vmatpush3.bf16.msra.mxu1 %v3655_v35 }
  0xb0   : > { %2826 = vmatprep.subr.bf16.mxu0 %v3392_v1  ;;  %2846 = vmatprep.subr.bf16.mxu1 %v3392_v1 }
  0xb3   : > { %2827 = vmatpush3.bf16.msra.mxu0 %v3664_v36  ;;  %2847 = vmatpush3.bf16.msra.mxu1 %v3664_v36 }
  0xb4   : > { %2828 = vmatprep.subr.bf16.mxu0 %v3392_v1  ;;  %2848 = vmatprep.subr.bf16.mxu1 %v3392_v1 }
  0xb7   : > { %2829 = vmatpush3.bf16.msra.mxu0 %v3673_v37  ;;  %2849 = vmatpush3.bf16.msra.mxu1 %v3673_v37 }
  0xb8   : > { %2830 = vmatprep.subr.bf16.mxu0 %v3392_v1  ;;  %2850 = vmatprep.subr.bf16.mxu1 %v3392_v1 }
  0xbb   : > { %2831 = vmatpush3.bf16.msra.mxu0 %v3682_v38  ;;  %2851 = vmatpush3.bf16.msra.mxu1 %v3682_v38 }
  0xbc   : > { %2832 = vmatprep.subr.bf16.mxu0 %v3392_v1  ;;  %2852 = vmatprep.subr.bf16.mxu1 %v3392_v1 }
  0xbf   : > { %2833 = vmatpush3.bf16.msra.mxu0 %v3691_v39  ;;  %2853 = vmatpush3.bf16.msra.mxu1 %v3691_v39 }
  0xc0   : > { %2834 = vmatprep.subr.bf16.mxu0 %v3392_v1  ;;  %2854 = vmatprep.subr.bf16.mxu1 %v3392_v1 }
  0xc3   : > { %2835 = vmatpush3.bf16.msra.mxu0 %v3698_v40  ;;  %2855 = vmatpush3.bf16.msra.mxu1 %v3698_v40 }
  0xc4   : > { %2860 = vmatprep.subr.bf16.mxu0 %v3392_v1  ;;  %2880 = vmatprep.subr.bf16.mxu1 %v3392_v1 }
  0xc6   : > { %2837 = vmatmul.mubr.bf16.vlgmr.msra.gmra.mrb[20].mxu0 %v191_v51  ;;  %2857 = vmatmul.mubr.bf16.vlgmr.msra.gmra.mrb[20].mxu1 %v192_v52  ;;  %v2214_v52 = vld [vmem:[%s3489_s4 + $0x38] sm:$0x1] }
  0xc7   : > { %2861 = vmatpush3.bf16.msra.mxu0 %v3633_v33  ;;  %2881 = vmatpush3.bf16.msra.mxu1 %v3633_v33  ;;  %v1114_v56 = vpack.c.bf16 %v2214_v52, %v3787_v53 }
  0xc8   : > { %2862 = vmatprep.subr.bf16.mxu0 %v3392_v1  ;;  %2882 = vmatprep.subr.bf16.mxu1 %v3392_v1 }
  0xc9   : > { %2876 = vmatprep.mubr.msk.bf16.mxu0 %vm3393_vm0, %v3392_v1  ;;  %2896 = vmatprep.mubr.msk.bf16.mxu1 %vm3393_vm0, %v3392_v1 }
  0xcb   : > { %2863 = vmatpush3.bf16.msra.mxu0 %v3642_v34  ;;  %2883 = vmatpush3.bf16.msra.mxu1 %v3642_v34 }
  0xcc   : > { %2864 = vmatprep.subr.bf16.mxu0 %v3392_v1  ;;  %2884 = vmatprep.subr.bf16.mxu1 %v3392_v1 }
  0xcf   : > { %2865 = vmatpush3.bf16.msra.mxu0 %v3655_v35  ;;  %2885 = vmatpush3.bf16.msra.mxu1 %v3655_v35 }
  0xd0   : > { %2866 = vmatprep.subr.bf16.mxu0 %v3392_v1  ;;  %2886 = vmatprep.subr.bf16.mxu1 %v3392_v1 }
  0xd3   : > { %2867 = vmatpush3.bf16.msra.mxu0 %v3664_v36  ;;  %2887 = vmatpush3.bf16.msra.mxu1 %v3664_v36 }
  0xd4   : > { %2868 = vmatprep.subr.bf16.mxu0 %v3392_v1  ;;  %2888 = vmatprep.subr.bf16.mxu1 %v3392_v1 }
  0xd7   : > { %2869 = vmatpush3.bf16.msra.mxu0 %v3673_v37  ;;  %2889 = vmatpush3.bf16.msra.mxu1 %v3673_v37 }
  0xd8   : > { %2870 = vmatprep.subr.bf16.mxu0 %v3392_v1  ;;  %2890 = vmatprep.subr.bf16.mxu1 %v3392_v1 }
  0xdb   : > { %2871 = vmatpush3.bf16.msra.mxu0 %v3682_v38  ;;  %2891 = vmatpush3.bf16.msra.mxu1 %v3682_v38 }
  0xdc   : > { %2872 = vmatprep.subr.bf16.mxu0 %v3392_v1  ;;  %2892 = vmatprep.subr.bf16.mxu1 %v3392_v1 }
  0xdf   : > { %2873 = vmatpush3.bf16.msra.mxu0 %v3691_v39  ;;  %2893 = vmatpush3.bf16.msra.mxu1 %v3691_v39 }
  0xe0   : > { %2874 = vmatprep.subr.bf16.mxu0 %v3392_v1  ;;  %2894 = vmatprep.subr.bf16.mxu1 %v3392_v1 }
  0xe3   : > { %2875 = vmatpush3.bf16.msra.mxu0 %v3698_v40  ;;  %2895 = vmatpush3.bf16.msra.mxu1 %v3698_v40 }
  0xe4   : > { %2900 = vmatprep.subr.bf16.mxu0 %v3392_v1  ;;  %2920 = vmatprep.subr.bf16.mxu1 %v3392_v1 }
  0xe6   : > { %2877 = vmatmul.mubr.bf16.vlgmr.msra.gmra.mrb[24].mxu0 %v193_v57  ;;  %2897 = vmatmul.mubr.bf16.vlgmr.msra.gmra.mrb[24].mxu1 %v194_v58  ;;  %v1115_v57 = vpack.c.bf16 %v2216_v54, %v3793_v55  ;;  %v2225_v54 = vld [vmem:[%s3489_s4 + $0x90] sm:$0xff] }
  0xe7   : > { %2901 = vmatpush3.bf16.msra.mxu0 %v3633_v33  ;;  %2921 = vmatpush3.bf16.msra.mxu1 %v3633_v33 }
  0xe8   : > { %2902 = vmatprep.subr.bf16.mxu0 %v3392_v1  ;;  %2922 = vmatprep.subr.bf16.mxu1 %v3392_v1 }
  0xe9   : > { %2916 = vmatprep.mubr.msk.bf16.mxu0 %vm3393_vm0, %v3392_v1  ;;  %2936 = vmatprep.mubr.msk.bf16.mxu1 %vm3393_vm0, %v3392_v1 }
  0xeb   : > { %2903 = vmatpush3.bf16.msra.mxu0 %v3642_v34  ;;  %2923 = vmatpush3.bf16.msra.mxu1 %v3642_v34 }
  0xec   : > { %2904 = vmatprep.subr.bf16.mxu0 %v3392_v1  ;;  %2924 = vmatprep.subr.bf16.mxu1 %v3392_v1 }
  0xef   : > { %2905 = vmatpush3.bf16.msra.mxu0 %v3655_v35  ;;  %2925 = vmatpush3.bf16.msra.mxu1 %v3655_v35 }
  0xf0   : > { %2906 = vmatprep.subr.bf16.mxu0 %v3392_v1  ;;  %2926 = vmatprep.subr.bf16.mxu1 %v3392_v1 }
  0xf3   : > { %2907 = vmatpush3.bf16.msra.mxu0 %v3664_v36  ;;  %2927 = vmatpush3.bf16.msra.mxu1 %v3664_v36 }
  0xf4   : > { %2908 = vmatprep.subr.bf16.mxu0 %v3392_v1  ;;  %2928 = vmatprep.subr.bf16.mxu1 %v3392_v1 }
  0xf7   : > { %2909 = vmatpush3.bf16.msra.mxu0 %v3673_v37  ;;  %2929 = vmatpush3.bf16.msra.mxu1 %v3673_v37 }
  0xf8   : > { %2910 = vmatprep.subr.bf16.mxu0 %v3392_v1  ;;  %2930 = vmatprep.subr.bf16.mxu1 %v3392_v1 }
  0xf9   : > { %v3828_v59 = vpop.f32.mrb[0].mxu0  ;;  %v3830_v60 = vpop.f32.mrb[0].mxu1 }
  0xfa   : > { %v2638_v61 = vpop.f32.mrb[1].mxu0  ;;  %v2658_v62 = vpop.f32.mrb[1].mxu1 }
  0xfb   : > { %v3832_v63 = vpop.f32.mrb[2].mxu0  ;;  %v3834_v0 = vpop.f32.mrb[2].mxu1  ;;  %2911 = vmatpush3.bf16.msra.mxu0 %v3682_v38  ;;  %2931 = vmatpush3.bf16.msra.mxu1 %v3682_v38 }
  0xfc   : > { %v2639_v2 = vpop.f32.mrb[3].mxu0  ;;  %v2659_v3 = vpop.f32.mrb[3].mxu1  ;;  %2912 = vmatprep.subr.bf16.mxu0 %v3392_v1  ;;  %2932 = vmatprep.subr.bf16.mxu1 %v3392_v1 }
  0xff   : > { %2913 = vmatpush3.bf16.msra.mxu0 %v3691_v39  ;;  %2933 = vmatpush3.bf16.msra.mxu1 %v3691_v39 }
 0x100   : > { %2914 = vmatprep.subr.bf16.mxu0 %v3392_v1  ;;  %2934 = vmatprep.subr.bf16.mxu1 %v3392_v1 }
 0x103   : > { %2915 = vmatpush3.bf16.msra.mxu0 %v3698_v40  ;;  %2935 = vmatpush3.bf16.msra.mxu1 %v3698_v40 }
 0x104   : > { %2940 = vmatprep.subr.bf16.mxu0 %v3392_v1  ;;  %2960 = vmatprep.subr.bf16.mxu1 %v3392_v1 }
 0x106   : > { %2917 = vmatmul.mubr.bf16.vlgmr.msra.gmra.mrb[28].mxu0 %v195_v8  ;;  %2937 = vmatmul.mubr.bf16.vlgmr.msra.gmra.mrb[28].mxu1 %v196_v9  ;;  %v2220_v9 = vld [vmem:[%s3489_s4 + $0x68] sm:$0x1] }
 0x107   : > { %2941 = vmatpush3.bf16.msra.mxu0 %v3633_v33  ;;  %2961 = vmatpush3.bf16.msra.mxu1 %v3633_v33 }
 0x108   : > { %2942 = vmatprep.subr.bf16.mxu0 %v3392_v1  ;;  %2962 = vmatprep.subr.bf16.mxu1 %v3392_v1 }
 0x109   : > { %2956 = vmatprep.mubr.msk.bf16.mxu0 %vm3393_vm0, %v3392_v1  ;;  %2976 = vmatprep.mubr.msk.bf16.mxu1 %vm3393_vm0, %v3392_v1 }
 0x10b   : > { %2943 = vmatpush3.bf16.msra.mxu0 %v3642_v34  ;;  %2963 = vmatpush3.bf16.msra.mxu1 %v3642_v34 }
 0x10c   : > { %2944 = vmatprep.subr.bf16.mxu0 %v3392_v1  ;;  %2964 = vmatprep.subr.bf16.mxu1 %v3392_v1 }
 0x10f   : > { %2945 = vmatpush3.bf16.msra.mxu0 %v3655_v35  ;;  %2965 = vmatpush3.bf16.msra.mxu1 %v3655_v35 }
 0x110   : > { %2946 = vmatprep.subr.bf16.mxu0 %v3392_v1  ;;  %2966 = vmatprep.subr.bf16.mxu1 %v3392_v1 }
 0x113   : > { %2947 = vmatpush3.bf16.msra.mxu0 %v3664_v36  ;;  %2967 = vmatpush3.bf16.msra.mxu1 %v3664_v36  ;;  %v3979_v36 = vld [vmem:[%s4565_s1 + $0xb0] sm:$0xff]  }
 0x114   : > { %2948 = vmatprep.subr.bf16.mxu0 %v3392_v1  ;;  %2968 = vmatprep.subr.bf16.mxu1 %v3392_v1 }
 0x117   : > { %2949 = vmatpush3.bf16.msra.mxu0 %v3673_v37  ;;  %2969 = vmatpush3.bf16.msra.mxu1 %v3673_v37 }
 0x118   : > { %2950 = vmatprep.subr.bf16.mxu0 %v3392_v1  ;;  %2970 = vmatprep.subr.bf16.mxu1 %v3392_v1 }
 0x119   : > { %v3882_v10 = vpop.f32.mrb[4].mxu0  ;;  %v3884_v11 = vpop.f32.mrb[4].mxu1 }
 0x11a   : > { %v2678_v12 = vpop.f32.mrb[5].mxu0  ;;  %v2698_v13 = vpop.f32.mrb[5].mxu1 }
 0x11b   : > { %v3886_v14 = vpop.f32.mrb[6].mxu0  ;;  %v3888_v15 = vpop.f32.mrb[6].mxu1  ;;  %2951 = vmatpush3.bf16.msra.mxu0 %v3682_v38  ;;  %2971 = vmatpush3.bf16.msra.mxu1 %v3682_v38 }
 0x11c   : > { %v2679_v16 = vpop.f32.mrb[7].mxu0  ;;  %v2699_v17 = vpop.f32.mrb[7].mxu1  ;;  %2952 = vmatprep.subr.bf16.mxu0 %v3392_v1  ;;  %2972 = vmatprep.subr.bf16.mxu1 %v3392_v1 }
 0x11f   : > { %2953 = vmatpush3.bf16.msra.mxu0 %v3691_v39  ;;  %2973 = vmatpush3.bf16.msra.mxu1 %v3691_v39  ;;  %v3988_v39 = vld [vmem:[%s4565_s1 + $0xb8] sm:$0xff]  }
 0x120   : > { %2954 = vmatprep.subr.bf16.mxu0 %v3392_v1  ;;  %2974 = vmatprep.subr.bf16.mxu1 %v3392_v1 }
 0x123   : > { %2955 = vmatpush3.bf16.msra.mxu0 %v3698_v40  ;;  %2975 = vmatpush3.bf16.msra.mxu1 %v3698_v40  ;;  %v2210_v40 = vld [vmem:[%s3489_s4 + $0x18] sm:$0x1] }
 0x124   : > { %2980 = vmatprep.subr.bf16.mxu0 %v3392_v1  ;;  %3000 = vmatprep.subr.bf16.mxu1 %v3392_v1  ;;  %v1112_v42 = vpack.c.bf16 %v2210_v40, %v3741_v47 }
 0x126   : > { %2957 = vmatmul.mubr.bf16.vlgmr.msra.gmra.mrb[32].mxu0 %v197_v22  ;;  %2977 = vmatmul.mubr.bf16.vlgmr.msra.gmra.mrb[32].mxu1 %v198_v23 }
 0x127   : > { %2981 = vmatpush3.bf16.msra.mxu0 %v3913_v24  ;;  %3001 = vmatpush3.bf16.msra.mxu1 %v3913_v24 }
 0x128   : > { %2982 = vmatprep.subr.bf16.mxu0 %v3392_v1  ;;  %3002 = vmatprep.subr.bf16.mxu1 %v3392_v1 }
 0x129   : > { %2996 = vmatprep.mubr.msk.bf16.mxu0 %vm3393_vm0, %v3392_v1  ;;  %3016 = vmatprep.mubr.msk.bf16.mxu1 %vm3393_vm0, %v3392_v1 }
 0x12b   : > { %2983 = vmatpush3.bf16.msra.mxu0 %v3922_v25  ;;  %3003 = vmatpush3.bf16.msra.mxu1 %v3922_v25 }
 0x12c   : > { %2984 = vmatprep.subr.bf16.mxu0 %v3392_v1  ;;  %3004 = vmatprep.subr.bf16.mxu1 %v3392_v1 }
 0x12f   : > { %2985 = vmatpush3.bf16.msra.mxu0 %v3935_v26  ;;  %3005 = vmatpush3.bf16.msra.mxu1 %v3935_v26 }
 0x130   : > { %2986 = vmatprep.subr.bf16.mxu0 %v3392_v1  ;;  %3006 = vmatprep.subr.bf16.mxu1 %v3392_v1 }
 0x133   : > { %2987 = vmatpush3.bf16.msra.mxu0 %v3944_v27  ;;  %3007 = vmatpush3.bf16.msra.mxu1 %v3944_v27 }
 0x134   : > { %2988 = vmatprep.subr.bf16.mxu0 %v3392_v1  ;;  %3008 = vmatprep.subr.bf16.mxu1 %v3392_v1 }
 0x137   : > { %2989 = vmatpush3.bf16.msra.mxu0 %v3953_v28  ;;  %3009 = vmatpush3.bf16.msra.mxu1 %v3953_v28 }
 0x138   : > { %2990 = vmatprep.subr.bf16.mxu0 %v3392_v1  ;;  %3010 = vmatprep.subr.bf16.mxu1 %v3392_v1 }
 0x139   : > { %v3966_v30 = vpop.f32.mrb[8].mxu0  ;;  %v3968_v31 = vpop.f32.mrb[8].mxu1 }
 0x13a   : > { %v2718_v32 = vpop.f32.mrb[9].mxu0  ;;  %v2738_v33 = vpop.f32.mrb[9].mxu1 }
 0x13b   : > { %v3970_v34 = vpop.f32.mrb[10].mxu0  ;;  %v3972_v35 = vpop.f32.mrb[10].mxu1  ;;  %2991 = vmatpush3.bf16.msra.mxu0 %v3962_v29  ;;  %3011 = vmatpush3.bf16.msra.mxu1 %v3962_v29 }
 0x13c   : > { %v2719_v37 = vpop.f32.mrb[11].mxu0  ;;  %v2739_v38 = vpop.f32.mrb[11].mxu1  ;;  %2992 = vmatprep.subr.bf16.mxu0 %v3392_v1  ;;  %3012 = vmatprep.subr.bf16.mxu1 %v3392_v1 }
 0x13d   : > { %v2224_v37 = vld [vmem:[%s3489_s4 + $0x88] sm:$0x1]  ;;  %v4151_v38 = vld [vmem:[%s4565_s1 + $0xc0] sm:$0xff]  }
 0x13f   : > { %2993 = vmatpush3.bf16.msra.mxu0 %v3979_v36  ;;  %3013 = vmatpush3.bf16.msra.mxu1 %v3979_v36 }
 0x140   : > { %2994 = vmatprep.subr.bf16.mxu0 %v3392_v1  ;;  %3014 = vmatprep.subr.bf16.mxu1 %v3392_v1 }
 0x143   : > { %2995 = vmatpush3.bf16.msra.mxu0 %v3988_v39  ;;  %3015 = vmatpush3.bf16.msra.mxu1 %v3988_v39 }
 0x144   : > { %3020 = vmatprep.subr.bf16.mxu0 %v3392_v1  ;;  %3040 = vmatprep.subr.bf16.mxu1 %v3392_v1 }
 0x146   : > { %2997 = vmatmul.mubr.bf16.vlgmr.msra.gmra.mrb[36].mxu0 %v1112_v42  ;;  %3017 = vmatmul.mubr.bf16.vlgmr.msra.gmra.mrb[36].mxu1 %v1113_v43 }
 0x147   : > { %3021 = vmatpush3.bf16.msra.mxu0 %v3913_v24  ;;  %3041 = vmatpush3.bf16.msra.mxu1 %v3913_v24 }
 0x148   : > { %3022 = vmatprep.subr.bf16.mxu0 %v3392_v1  ;;  %3042 = vmatprep.subr.bf16.mxu1 %v3392_v1 }
 0x149   : > { %3036 = vmatprep.mubr.msk.bf16.mxu0 %vm3393_vm0, %v3392_v1  ;;  %3056 = vmatprep.mubr.msk.bf16.mxu1 %vm3393_vm0, %v3392_v1 }
 0x14b   : > { %3023 = vmatpush3.bf16.msra.mxu0 %v3922_v25  ;;  %3043 = vmatpush3.bf16.msra.mxu1 %v3922_v25 }
 0x14c   : > { %3024 = vmatprep.subr.bf16.mxu0 %v3392_v1  ;;  %3044 = vmatprep.subr.bf16.mxu1 %v3392_v1 }
 0x14f   : > { %3025 = vmatpush3.bf16.msra.mxu0 %v3935_v26  ;;  %3045 = vmatpush3.bf16.msra.mxu1 %v3935_v26 }
 0x150   : > { %3026 = vmatprep.subr.bf16.mxu0 %v3392_v1  ;;  %3046 = vmatprep.subr.bf16.mxu1 %v3392_v1 }
 0x153   : > { %3027 = vmatpush3.bf16.msra.mxu0 %v3944_v27  ;;  %3047 = vmatpush3.bf16.msra.mxu1 %v3944_v27 }
 0x154   : > { %3028 = vmatprep.subr.bf16.mxu0 %v3392_v1  ;;  %3048 = vmatprep.subr.bf16.mxu1 %v3392_v1 }
 0x157   : > { %3029 = vmatpush3.bf16.msra.mxu0 %v3953_v28  ;;  %3049 = vmatpush3.bf16.msra.mxu1 %v3953_v28 }
 0x158   : > { %3030 = vmatprep.subr.bf16.mxu0 %v3392_v1  ;;  %3050 = vmatprep.subr.bf16.mxu1 %v3392_v1 }
 0x159   : > { %v4024_v44 = vpop.f32.mrb[12].mxu0  ;;  %v4026_v45 = vpop.f32.mrb[12].mxu1 }
 0x15a   : > { %v2758_v46 = vpop.f32.mrb[13].mxu0  ;;  %v2778_v47 = vpop.f32.mrb[13].mxu1 }
 0x15b   : > { %v4028_v48 = vpop.f32.mrb[14].mxu0  ;;  %v4030_v49 = vpop.f32.mrb[14].mxu1  ;;  %3031 = vmatpush3.bf16.msra.mxu0 %v3962_v29  ;;  %3051 = vmatpush3.bf16.msra.mxu1 %v3962_v29 }
 0x15c   : > { %v2759_v50 = vpop.f32.mrb[15].mxu0  ;;  %v2779_v51 = vpop.f32.mrb[15].mxu1  ;;  %3032 = vmatprep.subr.bf16.mxu0 %v3392_v1  ;;  %3052 = vmatprep.subr.bf16.mxu1 %v3392_v1 }
 0x15f   : > { %3033 = vmatpush3.bf16.msra.mxu0 %v3979_v36  ;;  %3053 = vmatpush3.bf16.msra.mxu1 %v3979_v36 }
 0x160   : > { %3034 = vmatprep.subr.bf16.mxu0 %v3392_v1  ;;  %3054 = vmatprep.subr.bf16.mxu1 %v3392_v1 }
 0x163   : > { %3035 = vmatpush3.bf16.msra.mxu0 %v3988_v39  ;;  %3055 = vmatpush3.bf16.msra.mxu1 %v3988_v39 }
 0x164   : > { %3060 = vmatprep.subr.bf16.mxu0 %v3392_v1  ;;  %3080 = vmatprep.subr.bf16.mxu1 %v3392_v1 }
 0x166   : > { %3037 = vmatmul.mubr.bf16.vlgmr.msra.gmra.mrb[40].mxu0 %v1114_v56  ;;  %3057 = vmatmul.mubr.bf16.vlgmr.msra.gmra.mrb[40].mxu1 %v1115_v57  ;;  %v2251_v56 = vld [vmem:[%s3489_s4 + $0x11] sm:$0xff] }
 0x167   : > { %3061 = vmatpush3.bf16.msra.mxu0 %v3913_v24  ;;  %3081 = vmatpush3.bf16.msra.mxu1 %v3913_v24 }
 0x168   : > { %3062 = vmatprep.subr.bf16.mxu0 %v3392_v1  ;;  %3082 = vmatprep.subr.bf16.mxu1 %v3392_v1 }
 0x169   : > { %3076 = vmatprep.mubr.msk.bf16.mxu0 %vm3393_vm0, %v3392_v1  ;;  %3096 = vmatprep.mubr.msk.bf16.mxu1 %vm3393_vm0, %v3392_v1 }
 0x16b   : > { %3063 = vmatpush3.bf16.msra.mxu0 %v3922_v25  ;;  %3083 = vmatpush3.bf16.msra.mxu1 %v3922_v25 }
 0x16c   : > { %3064 = vmatprep.subr.bf16.mxu0 %v3392_v1  ;;  %3084 = vmatprep.subr.bf16.mxu1 %v3392_v1 }
 0x16f   : > { %3065 = vmatpush3.bf16.msra.mxu0 %v3935_v26  ;;  %3085 = vmatpush3.bf16.msra.mxu1 %v3935_v26 }
 0x170   : > { %3066 = vmatprep.subr.bf16.mxu0 %v3392_v1  ;;  %3086 = vmatprep.subr.bf16.mxu1 %v3392_v1 }
 0x173   : > { %3067 = vmatpush3.bf16.msra.mxu0 %v3944_v27  ;;  %3087 = vmatpush3.bf16.msra.mxu1 %v3944_v27 }
 0x174   : > { %3068 = vmatprep.subr.bf16.mxu0 %v3392_v1  ;;  %3088 = vmatprep.subr.bf16.mxu1 %v3392_v1 }
 0x177   : > { %3069 = vmatpush3.bf16.msra.mxu0 %v3953_v28  ;;  %3089 = vmatpush3.bf16.msra.mxu1 %v3953_v28 }
 0x178   : > { %3070 = vmatprep.subr.bf16.mxu0 %v3392_v1  ;;  %3090 = vmatprep.subr.bf16.mxu1 %v3392_v1 }
 0x179   : > { %v4072_v53 = vpop.f32.mrb[16].mxu0  ;;  %v758_v55 = vpop.f32.mrb[16].mxu1 }
 0x17a   : > { %v4075_v58 = vadd.f32 %v758_v55, %v3828_v59  ;;  %v2798_v61 = vpop.f32.mrb[17].mxu0  ;;  %v2818_v62 = vpop.f32.mrb[17].mxu1  ;;  %v2218_v59 = vld [vmem:[%s3489_s4 + $0x58] sm:$0x1] }
 0x17b   : > { %v4077_v2 = vpop.f32.mrb[18].mxu0  ;;  %v761_v3 = vpop.f32.mrb[18].mxu1  ;;  %3071 = vmatpush3.bf16.msra.mxu0 %v3962_v29  ;;  %3091 = vmatpush3.bf16.msra.mxu1 %v3962_v29  ;;  %v1116_v12 = vpack.c.bf16 %v2218_v59, %v3841_v4 }
 0x17c   : > { %v4082_v5 = vadd.f32 %v761_v3, %v3832_v63  ;;  %v2799_v7 = vpop.f32.mrb[19].mxu0  ;;  %v2819_v8 = vpop.f32.mrb[19].mxu1  ;;  %3072 = vmatprep.subr.bf16.mxu0 %v3392_v1  ;;  %3092 = vmatprep.subr.bf16.mxu1 %v3392_v1  ;;  %v1117_v63 = vpack.c.bf16 %v2220_v9, %v3847_v6 }
 0x17f   : > { %3073 = vmatpush3.bf16.msra.mxu0 %v3979_v36  ;;  %3093 = vmatpush3.bf16.msra.mxu1 %v3979_v36 }
 0x180   : > { %3074 = vmatprep.subr.bf16.mxu0 %v3392_v1  ;;  %3094 = vmatprep.subr.bf16.mxu1 %v3392_v1 }
 0x183   : > { %3075 = vmatpush3.bf16.msra.mxu0 %v3988_v39  ;;  %3095 = vmatpush3.bf16.msra.mxu1 %v3988_v39 }
 0x184   : > { %3100 = vmatprep.subr.bf16.mxu0 %v3392_v1  ;;  %3120 = vmatprep.subr.bf16.mxu1 %v3392_v1 }
 0x186   : > { %3077 = vmatmul.mubr.bf16.vlgmr.msra.gmra.mrb[44].mxu0 %v1116_v12  ;;  %3097 = vmatmul.mubr.bf16.vlgmr.msra.gmra.mrb[44].mxu1 %v1117_v63  ;;  %v2253_v63 = vld [vmem:[%s3489_s4 + $0x21] sm:$0xff] }
 0x187   : > { %3101 = vmatpush3.bf16.msra.mxu0 %v3913_v24  ;;  %3121 = vmatpush3.bf16.msra.mxu1 %v3913_v24 }
 0x188   : > { %3102 = vmatprep.subr.bf16.mxu0 %v3392_v1  ;;  %3122 = vmatprep.subr.bf16.mxu1 %v3392_v1 }
 0x189   : > { %3116 = vmatprep.mubr.msk.bf16.mxu0 %vm3393_vm0, %v3392_v1  ;;  %3136 = vmatprep.mubr.msk.bf16.mxu1 %vm3393_vm0, %v3392_v1 }
 0x18b   : > { %3103 = vmatpush3.bf16.msra.mxu0 %v3922_v25  ;;  %3123 = vmatpush3.bf16.msra.mxu1 %v3922_v25 }
 0x18c   : > { %3104 = vmatprep.subr.bf16.mxu0 %v3392_v1  ;;  %3124 = vmatprep.subr.bf16.mxu1 %v3392_v1 }
 0x18f   : > { %3105 = vmatpush3.bf16.msra.mxu0 %v3935_v26  ;;  %3125 = vmatpush3.bf16.msra.mxu1 %v3935_v26 }
 0x190   : > { %3106 = vmatprep.subr.bf16.mxu0 %v3392_v1  ;;  %3126 = vmatprep.subr.bf16.mxu1 %v3392_v1 }
 0x193   : > { %3107 = vmatpush3.bf16.msra.mxu0 %v3944_v27  ;;  %3127 = vmatpush3.bf16.msra.mxu1 %v3944_v27 }
 0x194   : > { %3108 = vmatprep.subr.bf16.mxu0 %v3392_v1  ;;  %3128 = vmatprep.subr.bf16.mxu1 %v3392_v1 }
 0x197   : > { %3109 = vmatpush3.bf16.msra.mxu0 %v3953_v28  ;;  %3129 = vmatpush3.bf16.msra.mxu1 %v3953_v28 }
 0x198   : > { %3110 = vmatprep.subr.bf16.mxu0 %v3392_v1  ;;  %3130 = vmatprep.subr.bf16.mxu1 %v3392_v1 }
 0x199   : > { %v799_v4 = vpop.f32.mrb[20].mxu0  ;;  %v840_v6 = vpop.f32.mrb[20].mxu1 }
 0x19a   : > { %v4123_v13 = vadd.f32 %v799_v4, %v3830_v60  ;;  %v4126_v16 = vadd.f32 %v840_v6, %v3882_v10  ;;  %v2838_v17 = vpop.f32.mrb[21].mxu0  ;;  %v2858_v19 = vpop.f32.mrb[21].mxu1  ;;  %v2222_v10 = vld [vmem:[%s3489_s4 + $0x78] sm:$0x1]  ;;  %v2254_v4 = vld [vmem:[%s3489_s4 + $0x29] sm:$0x1] }
 0x19b   : > { %v802_v21 = vpop.f32.mrb[22].mxu0  ;;  %v843_v22 = vpop.f32.mrb[22].mxu1  ;;  %3111 = vmatpush3.bf16.msra.mxu0 %v3962_v29  ;;  %3131 = vmatpush3.bf16.msra.mxu1 %v3962_v29  ;;  %v2255_v6 = vld [vmem:[%s3489_s4 + $0x31] sm:$0xff]  ;;  %v2256_v17 = vld [vmem:[%s3489_s4 + $0x39] sm:$0x1] }
 0x19c   : > { %v4131_v23 = vadd.f32 %v802_v21, %v3834_v0  ;;  %v4134_v32 = vadd.f32 %v843_v22, %v3886_v14  ;;  %v2839_v60 = vpop.f32.mrb[23].mxu0  ;;  %v2859_v33 = vpop.f32.mrb[23].mxu1  ;;  %3112 = vmatprep.subr.bf16.mxu0 %v3392_v1  ;;  %3132 = vmatprep.subr.bf16.mxu1 %v3392_v1  ;;  %v1118_v0 = vpack.c.bf16 %v2222_v10, %v3895_v18  ;;  %v4160_v18 = vld [vmem:[%s4565_s1 + $0xc8] sm:$0xff]  }
 0x19d   : > { %v1119_v14 = vpack.c.bf16 %v2224_v37, %v3901_v20  ;;  %v4173_v20 = vld [vmem:[%s4565_s1 + $0xd0] sm:$0xff]  }
 0x19f   : > { %3113 = vmatpush3.bf16.msra.mxu0 %v3979_v36  ;;  %3133 = vmatpush3.bf16.msra.mxu1 %v3979_v36 }
 0x1a0   : > { %3114 = vmatprep.subr.bf16.mxu0 %v3392_v1  ;;  %3134 = vmatprep.subr.bf16.mxu1 %v3392_v1 }
 0x1a3   : > { %3115 = vmatpush3.bf16.msra.mxu0 %v3988_v39  ;;  %3135 = vmatpush3.bf16.msra.mxu1 %v3988_v39 }
 0x1a4   : > { %3140 = vmatprep.subr.bf16.mxu0 %v3392_v1  ;;  %3160 = vmatprep.subr.bf16.mxu1 %v3392_v1 }
 0x1a6   : > { %3117 = vmatmul.mubr.bf16.vlgmr.msra.gmra.mrb[48].mxu0 %v1118_v0  ;;  %3137 = vmatmul.mubr.bf16.vlgmr.msra.gmra.mrb[48].mxu1 %v1119_v14 }
 0x1a7   : > { %3141 = vmatpush3.bf16.msra.mxu0 %v3913_v24  ;;  %3161 = vmatpush3.bf16.msra.mxu1 %v4151_v38  ;;  %v4182_v24 = vld [vmem:[%s4565_s1 + $0xd8] sm:$0xff]  }
 0x1a8   : > { %3142 = vmatprep.subr.bf16.mxu0 %v3392_v1  ;;  %3162 = vmatprep.subr.bf16.mxu1 %v3392_v1 }
 0x1a9   : > { %3156 = vmatprep.mubr.msk.bf16.mxu0 %vm3393_vm0, %v3392_v1  ;;  %3176 = vmatprep.mubr.msk.bf16.mxu1 %vm3393_vm0, %v3392_v1 }
 0x1ab   : > { %3143 = vmatpush3.bf16.msra.mxu0 %v3922_v25  ;;  %3163 = vmatpush3.bf16.msra.mxu1 %v4160_v18  ;;  %v4191_v25 = vld [vmem:[%s4565_s1 + $0xe0] sm:$0xff]  }
 0x1ac   : > { %3144 = vmatprep.subr.bf16.mxu0 %v3392_v1  ;;  %3164 = vmatprep.subr.bf16.mxu1 %v3392_v1 }
 0x1af   : > { %3145 = vmatpush3.bf16.msra.mxu0 %v3935_v26  ;;  %3165 = vmatpush3.bf16.msra.mxu1 %v4173_v20  ;;  %v4200_v26 = vld [vmem:[%s4565_s1 + $0xe8] sm:$0xff]  }
 0x1b0   : > { %3146 = vmatprep.subr.bf16.mxu0 %v3392_v1  ;;  %3166 = vmatprep.subr.bf16.mxu1 %v3392_v1 }
 0x1b3   : > { %3147 = vmatpush3.bf16.msra.mxu0 %v3944_v27  ;;  %3167 = vmatpush3.bf16.msra.mxu1 %v4182_v24 }
 0x1b4   : > { %3148 = vmatprep.subr.bf16.mxu0 %v3392_v1  ;;  %3168 = vmatprep.subr.bf16.mxu1 %v3392_v1 }
 0x1b7   : > { %3149 = vmatpush3.bf16.msra.mxu0 %v3953_v28  ;;  %3169 = vmatpush3.bf16.msra.mxu1 %v4191_v25 }
 0x1b8   : > { %3150 = vmatprep.subr.bf16.mxu0 %v3392_v1  ;;  %3170 = vmatprep.subr.bf16.mxu1 %v3392_v1 }
 0x1b9   : > { %v881_v27 = vpop.f32.mrb[24].mxu0  ;;  %v922_v40 = vpop.f32.mrb[24].mxu1 }
 0x1ba   : > { %v4205_v41 = vadd.f32 %v881_v27, %v3884_v11  ;;  %v4208_v42 = vadd.f32 %v922_v40, %v3966_v30  ;;  %v2878_v28 = vpop.f32.mrb[25].mxu0  ;;  %v2898_v43 = vpop.f32.mrb[25].mxu1  ;;  %v4215_v11 = vld [vmem:[%s4565_s1 + $0xf0] sm:$0xff]   ;;  %v2257_v40 = vld [vmem:[%s3489_s4 + $0x41] sm:$0xff] }
 0x1bb   : > { %v884_v46 = vpop.f32.mrb[26].mxu0  ;;  %v925_v47 = vpop.f32.mrb[26].mxu1  ;;  %3151 = vmatpush3.bf16.msra.mxu0 %v3962_v29  ;;  %3171 = vmatpush3.bf16.msra.mxu1 %v4200_v26  ;;  %v4228_v29 = vld [vmem:[%s4565_s1 + $0xf8] sm:$0xff]   ;;  %v2258_v28 = vld [vmem:[%s3489_s4 + $0x49] sm:$0x1] }
 0x1bc   : > { %v4218_v50 = vadd.f32 %v884_v46, %v3888_v15  ;;  %v4221_v30 = vadd.f32 %v925_v47, %v3970_v34  ;;  %v2879_v51 = vpop.f32.mrb[27].mxu0  ;;  %v2899_v52 = vpop.f32.mrb[27].mxu1  ;;  %3152 = vmatprep.subr.bf16.mxu0 %v3392_v1  ;;  %3172 = vmatprep.subr.bf16.mxu1 %v3392_v1  ;;  %v2226_v15 = vld [vmem:[%s3489_s4 + $0x98] sm:$0x1]  ;;  %v2252_v34 = vld [vmem:[%s3489_s4 + $0x19] sm:$0x1] }
 0x1bd   : > { %v1120_v57 = vpack.c.bf16 %v2226_v15, %v2225_v54  ;;  %v1591_v55 = vpack.c.bf16 %v2252_v34, %v2251_v56  ;;  %v2259_v43 = vld [vmem:[%s3489_s4 + $0x51] sm:$0xff]  ;;  %v2260_v46 = vld [vmem:[%s3489_s4 + $0x59] sm:$0x1] }
 0x1bf   : > { %3153 = vmatpush3.bf16.msra.mxu0 %v3979_v36  ;;  %3173 = vmatpush3.bf16.msra.mxu1 %v4215_v11 }
 0x1c0   : > { %3154 = vmatprep.subr.bf16.mxu0 %v3392_v1  ;;  %3174 = vmatprep.subr.bf16.mxu1 %v3392_v1 }
 0x1c3   : > { %3155 = vmatpush3.bf16.msra.mxu0 %v3988_v39  ;;  %3175 = vmatpush3.bf16.msra.mxu1 %v4228_v29 }
 0x1c4   : > { %3180 = vmatprep.subr.bf16.mxu0 %v3392_v1  ;;  %3200 = vmatprep.subr.bf16.mxu1 %v3392_v1 }
 0x1c6   : > { %3157 = vmatmul.mubr.bf16.vlgmr.msra.gmra.mrb[52].mxu0 %v1120_v57  ;;  %3177 = vmatmul.mubr.bf16.vlgmr.msra.gmra.mrb[52].mxu1 %v1591_v55 }
 0x1c7   : > { %3181 = vmatpush3.bf16.msra.mxu0 %v4151_v38  ;;  %3201 = vmatpush3.bf16.msra.mxu1 %v4151_v38 }
 0x1c8   : > { %3182 = vmatprep.subr.bf16.mxu0 %v3392_v1  ;;  %3202 = vmatprep.subr.bf16.mxu1 %v3392_v1 }
 0x1c9   : > { %3196 = vmatprep.mubr.msk.bf16.mxu0 %vm3393_vm0, %v3392_v1  ;;  %3216 = vmatprep.mubr.msk.bf16.mxu1 %vm3393_vm0, %v3392_v1 }
 0x1cb   : > { %3183 = vmatpush3.bf16.msra.mxu0 %v4160_v18  ;;  %3203 = vmatpush3.bf16.msra.mxu1 %v4160_v18 }
 0x1cc   : > { %3184 = vmatprep.subr.bf16.mxu0 %v3392_v1  ;;  %3204 = vmatprep.subr.bf16.mxu1 %v3392_v1 }
 0x1cf   : > { %3185 = vmatpush3.bf16.msra.mxu0 %v4173_v20  ;;  %3205 = vmatpush3.bf16.msra.mxu1 %v4173_v20 }
 0x1d0   : > { %3186 = vmatprep.subr.bf16.mxu0 %v3392_v1  ;;  %3206 = vmatprep.subr.bf16.mxu1 %v3392_v1 }
 0x1d3   : > { %3187 = vmatpush3.bf16.msra.mxu0 %v4182_v24  ;;  %3207 = vmatpush3.bf16.msra.mxu1 %v4182_v24 }
 0x1d4   : > { %3188 = vmatprep.subr.bf16.mxu0 %v3392_v1  ;;  %3208 = vmatprep.subr.bf16.mxu1 %v3392_v1 }
 0x1d7   : > { %3189 = vmatpush3.bf16.msra.mxu0 %v4191_v25  ;;  %3209 = vmatpush3.bf16.msra.mxu1 %v4191_v25 }
 0x1d8   : > { %3190 = vmatprep.subr.bf16.mxu0 %v3392_v1  ;;  %3210 = vmatprep.subr.bf16.mxu1 %v3392_v1 }
 0x1d9   : > { %v963_v36 = vpop.f32.mrb[28].mxu0  ;;  %v1004_v39 = vpop.f32.mrb[28].mxu1 }
 0x1da   : > { %v4267_v61 = vadd.f32 %v963_v36, %v3968_v31  ;;  %v4270_v62 = vadd.f32 %v1004_v39, %v4024_v44  ;;  %v2918_v3 = vpop.f32.mrb[29].mxu0  ;;  %v2938_v7 = vpop.f32.mrb[29].mxu1  ;;  %v2261_v39 = vld [vmem:[%s3489_s4 + $0x61] sm:$0xff] }
 0x1db   : > { %v966_v8 = vpop.f32.mrb[30].mxu0  ;;  %v1007_v59 = vpop.f32.mrb[30].mxu1  ;;  %3191 = vmatpush3.bf16.msra.mxu0 %v4200_v26  ;;  %3211 = vmatpush3.bf16.msra.mxu1 %v4200_v26  ;;  %v2262_v3 = vld [vmem:[%s3489_s4 + $0x69] sm:$0x1]  ;;  %v2263_v7 = vld [vmem:[%s3489_s4 + $0x71] sm:$0xff] }
 0x1dc   : > { %v4275_v9 = vadd.f32 %v966_v8, %v3972_v35  ;;  %v4278_v31 = vadd.f32 %v1007_v59, %v4028_v48  ;;  %v2919_v12 = vpop.f32.mrb[31].mxu0  ;;  %v2939_v44 = vpop.f32.mrb[31].mxu1  ;;  %3192 = vmatprep.subr.bf16.mxu0 %v3392_v1  ;;  %3212 = vmatprep.subr.bf16.mxu1 %v3392_v1  ;;  %v1592_v35 = vpack.c.bf16 %v2254_v4, %v2253_v63  ;;  %v2264_v8 = vld [vmem:[%s3489_s4 + $0x79] sm:$0x1] }
 0x1dd   : > { %v1593_v48 = vpack.c.bf16 %v2256_v17, %v2255_v6  ;;  %v2265_v6 = vld [vmem:[%s3489_s4 + $0x81] sm:$0xff]  ;;  %v2266_v17 = vld [vmem:[%s3489_s4 + $0x89] sm:$0x1] }
 0x1df   : > { %3193 = vmatpush3.bf16.msra.mxu0 %v4215_v11  ;;  %3213 = vmatpush3.bf16.msra.mxu1 %v4215_v11 }
 0x1e0   : > { %3194 = vmatprep.subr.bf16.mxu0 %v3392_v1  ;;  %3214 = vmatprep.subr.bf16.mxu1 %v3392_v1 }
 0x1e3   : > { %3195 = vmatpush3.bf16.msra.mxu0 %v4228_v29  ;;  %3215 = vmatpush3.bf16.msra.mxu1 %v4228_v29 }
 0x1e4   : > { %3220 = vmatprep.subr.bf16.mxu0 %v3392_v1  ;;  %3240 = vmatprep.subr.bf16.mxu1 %v3392_v1 }
 0x1e6   : > { %3197 = vmatmul.mubr.bf16.vlgmr.msra.gmra.mrb[56].mxu0 %v1592_v35  ;;  %3217 = vmatmul.mubr.bf16.vlgmr.msra.gmra.mrb[56].mxu1 %v1593_v48  ;;  %v2267_v35 = vld [vmem:[%s3489_s4 + $0x91] sm:$0xff] }
 0x1e7   : > { %3221 = vmatpush3.bf16.msra.mxu0 %v4151_v38  ;;  %3241 = vmatpush3.bf16.msra.mxu1 %v4151_v38 }
 0x1e8   : > { %3222 = vmatprep.subr.bf16.mxu0 %v3392_v1  ;;  %3242 = vmatprep.subr.bf16.mxu1 %v3392_v1 }
 0x1e9   : > { %3236 = vmatprep.mubr.msk.bf16.mxu0 %vm3393_vm0, %v3392_v1  ;;  %3256 = vmatprep.mubr.msk.bf16.mxu1 %vm3393_vm0, %v3392_v1 }
 0x1eb   : > { %3223 = vmatpush3.bf16.msra.mxu0 %v4160_v18  ;;  %3243 = vmatpush3.bf16.msra.mxu1 %v4160_v18 }
 0x1ec   : > { %3224 = vmatprep.subr.bf16.mxu0 %v3392_v1  ;;  %3244 = vmatprep.subr.bf16.mxu1 %v3392_v1 }
 0x1ef   : > { %3225 = vmatpush3.bf16.msra.mxu0 %v4173_v20  ;;  %3245 = vmatpush3.bf16.msra.mxu1 %v4173_v20 }
 0x1f0   : > { %3226 = vmatprep.subr.bf16.mxu0 %v3392_v1  ;;  %3246 = vmatprep.subr.bf16.mxu1 %v3392_v1 }
 0x1f3   : > { %3227 = vmatpush3.bf16.msra.mxu0 %v4182_v24  ;;  %3247 = vmatpush3.bf16.msra.mxu1 %v4182_v24 }
 0x1f4   : > { %3228 = vmatprep.subr.bf16.mxu0 %v3392_v1  ;;  %3248 = vmatprep.subr.bf16.mxu1 %v3392_v1 }
 0x1f7   : > { %3229 = vmatpush3.bf16.msra.mxu0 %v4191_v25  ;;  %3249 = vmatpush3.bf16.msra.mxu1 %v4191_v25 }
 0x1f8   : > { %3230 = vmatprep.subr.bf16.mxu0 %v3392_v1  ;;  %3250 = vmatprep.subr.bf16.mxu1 %v3392_v1 }
 0x1f9   : > { %v1045_v19 = vpop.f32.mrb[32].mxu0  ;;  %v1086_v21 = vpop.f32.mrb[32].mxu1 }
 0x1fa   : > { %v4319_v22 = vadd.f32 %v1045_v19, %v4026_v45  ;;  %v4322_v60 = vadd.f32 %v1086_v21, %v4072_v53  ;;  %v2958_v33 = vpop.f32.mrb[33].mxu0  ;;  %v2978_v10 = vpop.f32.mrb[33].mxu1 }
 0x1fb   : > { %v1048_v37 = vpop.f32.mrb[34].mxu0  ;;  %v1089_v0 = vpop.f32.mrb[34].mxu1  ;;  %3231 = vmatpush3.bf16.msra.mxu0 %v4200_v26  ;;  %3251 = vmatpush3.bf16.msra.mxu1 %v4200_v26 }
 0x1fc   : > { %v4327_v14 = vadd.f32 %v1048_v37, %v4030_v49  ;;  %v4330_v45 = vadd.f32 %v1089_v0, %v4077_v2  ;;  %v2959_v27 = vpop.f32.mrb[35].mxu0  ;;  %v2979_v53 = vpop.f32.mrb[35].mxu1  ;;  %3232 = vmatprep.subr.bf16.mxu0 %v3392_v1  ;;  %3252 = vmatprep.subr.bf16.mxu1 %v3392_v1  ;;  %v1594_v49 = vpack.c.bf16 %v2258_v28, %v2257_v40 }
 0x1fd   : > { %v1595_v2 = vpack.c.bf16 %v2260_v46, %v2259_v43 }
 0x1ff   : > { %3233 = vmatpush3.bf16.msra.mxu0 %v4215_v11  ;;  %3253 = vmatpush3.bf16.msra.mxu1 %v4215_v11 }
 0x200   : > { %3234 = vmatprep.subr.bf16.mxu0 %v3392_v1  ;;  %3254 = vmatprep.subr.bf16.mxu1 %v3392_v1 }
 0x203   : > { %3235 = vmatpush3.bf16.msra.mxu0 %v4228_v29  ;;  %3255 = vmatpush3.bf16.msra.mxu1 %v4228_v29 }
 0x204   : > { %3260 = vmatprep.subr.bf16.mxu0 %v3392_v1  ;;  %3280 = vmatprep.subr.bf16.mxu1 %v3392_v1 }
 0x206   : > { %3237 = vmatmul.mubr.bf16.vlgmr.msra.gmra.mrb[60].mxu0 %v1594_v49  ;;  %3257 = vmatmul.mubr.bf16.vlgmr.msra.gmra.mrb[60].mxu1 %v1595_v2 }
 0x207   : > { %3261 = vmatpush3.bf16.msra.mxu0 %v4151_v38  ;;  %3281 = vmatpush3.bf16.msra.mxu1 %v4151_v38 }
 0x208   : > { %3262 = vmatprep.subr.bf16.mxu0 %v3392_v1  ;;  %3282 = vmatprep.subr.bf16.mxu1 %v3392_v1 }
 0x209   : > { %3276 = vmatprep.mubr.msk.bf16.mxu0 %vm3393_vm0, %v3392_v1  ;;  %3296 = vmatprep.mubr.msk.bf16.mxu1 %vm3393_vm0, %v3392_v1 }
 0x20b   : > { %3263 = vmatpush3.bf16.msra.mxu0 %v4160_v18  ;;  %3283 = vmatpush3.bf16.msra.mxu1 %v4160_v18 }
 0x20c   : > { %3264 = vmatprep.subr.bf16.mxu0 %v3392_v1  ;;  %3284 = vmatprep.subr.bf16.mxu1 %v3392_v1 }
 0x20f   : > { %3265 = vmatpush3.bf16.msra.mxu0 %v4173_v20  ;;  %3285 = vmatpush3.bf16.msra.mxu1 %v4173_v20 }
 0x210   : > { %3266 = vmatprep.subr.bf16.mxu0 %v3392_v1  ;;  %3286 = vmatprep.subr.bf16.mxu1 %v3392_v1 }
 0x213   : > { %3267 = vmatpush3.bf16.msra.mxu0 %v4182_v24  ;;  %3287 = vmatpush3.bf16.msra.mxu1 %v4182_v24 }
 0x214   : > { %3268 = vmatprep.subr.bf16.mxu0 %v3392_v1  ;;  %3288 = vmatprep.subr.bf16.mxu1 %v3392_v1 }
 0x217   : > { %3269 = vmatpush3.bf16.msra.mxu0 %v4191_v25  ;;  %3289 = vmatpush3.bf16.msra.mxu1 %v4191_v25 }
 0x218   : > { %3270 = vmatprep.subr.bf16.mxu0 %v3392_v1  ;;  %3290 = vmatprep.subr.bf16.mxu1 %v3392_v1 }
 0x219   : > { %v1220_v47 = vpop.f32.mrb[36].mxu0  ;;  %v1261_v51 = vpop.f32.mrb[36].mxu1 }
 0x21a   : > { %v4371_v52 = vadd.f32 %v1220_v47, %v4075_v58  ;;  %v4374_v54 = vadd.f32 %v1261_v51, %v4123_v13  ;;  %v2998_v15 = vpop.f32.mrb[37].mxu0  ;;  %v3018_v56 = vpop.f32.mrb[37].mxu1 }
 0x21b   : > { %v1223_v34 = vpop.f32.mrb[38].mxu0  ;;  %v1264_v57 = vpop.f32.mrb[38].mxu1  ;;  %3271 = vmatpush3.bf16.msra.mxu0 %v4200_v26  ;;  %3291 = vmatpush3.bf16.msra.mxu1 %v4200_v26 }
 0x21c   : > { %v4379_v55 = vadd.f32 %v1223_v34, %v4082_v5  ;;  %v4382_v58 = vadd.f32 %v1264_v57, %v4131_v23  ;;  %v2999_v36 = vpop.f32.mrb[39].mxu0  ;;  %v3019_v13 = vpop.f32.mrb[39].mxu1  ;;  %3272 = vmatprep.subr.bf16.mxu0 %v3392_v1  ;;  %3292 = vmatprep.subr.bf16.mxu1 %v3392_v1  ;;  %v1596_v5 = vpack.c.bf16 %v2262_v3, %v2261_v39 }
 0x21d   : > { %v1597_v23 = vpack.c.bf16 %v2264_v8, %v2263_v7 }
 0x21f   : > { %3273 = vmatpush3.bf16.msra.mxu0 %v4215_v11  ;;  %3293 = vmatpush3.bf16.msra.mxu1 %v4215_v11 }
 0x220   : > { %3274 = vmatprep.subr.bf16.mxu0 %v3392_v1  ;;  %3294 = vmatprep.subr.bf16.mxu1 %v3392_v1 }
 0x223   : > { %3275 = vmatpush3.bf16.msra.mxu0 %v4228_v29  ;;  %3295 = vmatpush3.bf16.msra.mxu1 %v4228_v29 }
 0x224   : > { %3300 = vmatprep.subr.bf16.mxu0 %v3392_v1  ;;  %3320 = vmatprep.subr.bf16.mxu1 %v3392_v1 }
 0x226   : > { %3277 = vmatmul.mubr.bf16.vlgmr.msra.gmra.mrb[64].mxu0 %v1596_v5  ;;  %3297 = vmatmul.mubr.bf16.vlgmr.msra.gmra.mrb[64].mxu1 %v1597_v23 }
 0x227   : > { %3301 = vmatpush3.bf16.msra.mxu0 %v4151_v38  ;;  %3321 = vmatpush3.bf16.msra.mxu1 %v4151_v38 }
 0x228   : > { %3302 = vmatprep.subr.bf16.mxu0 %v3392_v1  ;;  %3322 = vmatprep.subr.bf16.mxu1 %v3392_v1 }
 0x229   : > { %3316 = vmatprep.mubr.msk.bf16.mxu0 %vm3393_vm0, %v3392_v1  ;;  %3336 = vmatprep.mubr.msk.bf16.mxu1 %vm3393_vm0, %v3392_v1 }
 0x22b   : > { %3303 = vmatpush3.bf16.msra.mxu0 %v4160_v18  ;;  %3323 = vmatpush3.bf16.msra.mxu1 %v4160_v18 }
 0x22c   : > { %3304 = vmatprep.subr.bf16.mxu0 %v3392_v1  ;;  %3324 = vmatprep.subr.bf16.mxu1 %v3392_v1 }
 0x22f   : > { %3305 = vmatpush3.bf16.msra.mxu0 %v4173_v20  ;;  %3325 = vmatpush3.bf16.msra.mxu1 %v4173_v20 }
 0x230   : > { %3306 = vmatprep.subr.bf16.mxu0 %v3392_v1  ;;  %3326 = vmatprep.subr.bf16.mxu1 %v3392_v1 }
 0x233   : > { %3307 = vmatpush3.bf16.msra.mxu0 %v4182_v24  ;;  %3327 = vmatpush3.bf16.msra.mxu1 %v4182_v24 }
 0x234   : > { %3308 = vmatprep.subr.bf16.mxu0 %v3392_v1  ;;  %3328 = vmatprep.subr.bf16.mxu1 %v3392_v1 }
 0x237   : > { %3309 = vmatpush3.bf16.msra.mxu0 %v4191_v25  ;;  %3329 = vmatpush3.bf16.msra.mxu1 %v4191_v25 }
 0x238   : > { %3310 = vmatprep.subr.bf16.mxu0 %v3392_v1  ;;  %3330 = vmatprep.subr.bf16.mxu1 %v3392_v1 }
 0x239   : > { %v1302_v38 = vpop.f32.mrb[40].mxu0  ;;  %v1343_v18 = vpop.f32.mrb[40].mxu1 }
 0x23a   : > { %v4423_v20 = vadd.f32 %v1302_v38, %v4126_v16  ;;  %v4426_v24 = vadd.f32 %v1343_v18, %v4205_v41  ;;  %v3038_v59 = vpop.f32.mrb[41].mxu0  ;;  %v3058_v12 = vpop.f32.mrb[41].mxu1 }
 0x23b   : > { %v1305_v44 = vpop.f32.mrb[42].mxu0  ;;  %v1346_v25 = vpop.f32.mrb[42].mxu1  ;;  %3311 = vmatpush3.bf16.msra.mxu0 %v4200_v26  ;;  %3331 = vmatpush3.bf16.msra.mxu1 %v4200_v26  ;;  %v2268_v26 = vld [vmem:[%s3489_s4 + $0x99] sm:$0x1]  ;;  %s3341_s4 = smul.u32 144, %s4569_s13 }
 0x23c   : > { %v4431_v63 = vadd.f32 %v1305_v44, %v4134_v32  ;;  %v4434_v16 = vadd.f32 %v1346_v25, %v4218_v50  ;;  %v3039_v4 = vpop.f32.mrb[43].mxu0  ;;  %v3059_v41 = vpop.f32.mrb[43].mxu1  ;;  %3312 = vmatprep.subr.bf16.mxu0 %v3392_v1  ;;  %3332 = vmatprep.subr.bf16.mxu1 %v3392_v1  ;;  %v1598_v32 = vpack.c.bf16 %v2266_v17, %v2265_v6 }
 0x23d   : > { %v1599_v50 = vpack.c.bf16 %v2268_v26, %v2267_v35  ;;  %s4490_s10 = scalar_lea.vmem %s4567_s3, %s3341_s4 }
 0x23f   : > { %3313 = vmatpush3.bf16.msra.mxu0 %v4215_v11  ;;  %3333 = vmatpush3.bf16.msra.mxu1 %v4215_v11 }
 0x240   : > { %3314 = vmatprep.subr.bf16.mxu0 %v3392_v1  ;;  %3334 = vmatprep.subr.bf16.mxu1 %v3392_v1 }
 0x243   : > { %3315 = vmatpush3.bf16.msra.mxu0 %v4228_v29  ;;  %3335 = vmatpush3.bf16.msra.mxu1 %v4228_v29 }
 0x246   : > { %3317 = vmatmul.mubr.bf16.vlgmr.msra.gmra.mrb[68].mxu0 %v1598_v32  ;;  %3337 = vmatmul.mubr.bf16.vlgmr.msra.gmra.mrb[68].mxu1 %v1599_v50 }
 0x259   : > { %v1384_v48 = vpop.f32.mrb[44].mxu0  ;;  %v1425_v19 = vpop.f32.mrb[44].mxu1 }
 0x25a   : > { %v4449_v21 = vadd.f32 %v1384_v48, %v4208_v42  ;;  %v4452_v11 = vadd.f32 %v1425_v19, %v4267_v61  ;;  %v3078_v33 = vpop.f32.mrb[45].mxu0  ;;  %v3098_v10 = vpop.f32.mrb[45].mxu1 }
 0x25b   : > { %v1387_v37 = vpop.f32.mrb[46].mxu0  ;;  %v1428_v1 = vpop.f32.mrb[46].mxu1 }
 0x25c   : > { %v4455_v0 = vadd.f32 %v1387_v37, %v4221_v30  ;;  %v4458_v27 = vadd.f32 %v1428_v1, %v4275_v9  ;;  %v3079_v29 = vpop.f32.mrb[47].mxu0  ;;  %v3099_v53 = vpop.f32.mrb[47].mxu1 }
 0x279   : > { %v1466_v40 = vpop.f32.mrb[48].mxu0  ;;  %v1507_v28 = vpop.f32.mrb[48].mxu1 }
 0x27a   : > { %v4461_v42 = vadd.f32 %v1466_v40, %v4270_v62  ;;  %v4464_v61 = vadd.f32 %v1507_v28, %v4319_v22  ;;  %v3118_v43 = vpop.f32.mrb[49].mxu0  ;;  %v3138_v46 = vpop.f32.mrb[49].mxu1  ;;  %v4476_v62 = vld [vmem:[%s4566_s2] ss:$0 sm:$0xff] }
 0x27b   : > { %v1469_v49 = vpop.f32.mrb[50].mxu0  ;;  %v1510_v2 = vpop.f32.mrb[50].mxu1 }
 0x27c   : > { %v4467_v30 = vadd.f32 %v1469_v49, %v4278_v31  ;;  %v4470_v9 = vadd.f32 %v1510_v2, %v4327_v14  ;;  %v3119_v47 = vpop.f32.mrb[51].mxu0  ;;  %v3139_v51 = vpop.f32.mrb[51].mxu1 }
 0x299   : > { %v1548_v15 = vpop.f32.mrb[52].mxu0  ;;  %v1699_v56 = vpop.f32.mrb[52].mxu1 }
 0x29a   : > { %v4479_v22 = vadd.f32 %v1548_v15, %v4322_v60  ;;  %v2034_v34 = vadd.f32 %v1699_v56, %v4371_v52  ;;  %v3158_v31 = vpop.f32.mrb[53].mxu0  ;;  %v3178_v57 = vpop.f32.mrb[53].mxu1 }
 0x29b   : > { %v1551_v36 = vpop.f32.mrb[54].mxu0  ;;  %v1702_v14 = vpop.f32.mrb[54].mxu1 }
 0x29c   : > { %v2059_v13 = vadd.f32 %v4476_v62, %v2034_v34  ;;  %v4484_v39 = vadd.f32 %v1551_v36, %v4330_v45  ;;  %v2035_v3 = vadd.f32 %v1702_v14, %v4379_v55  ;;  %v3159_v7 = vpop.f32.mrb[55].mxu0  ;;  %v3179_v8 = vpop.f32.mrb[55].mxu1 }
 0x29e   : > { %v2077_v60 = vmax.f32 %v2059_v13, 0.0  ;;  %v2060_v52 = vadd.f32 %v4476_v62, %v2035_v3 }
 0x2a0   : > { %2096 = vst.msk [vmem:[%s4490_s10] sm:$0xff] %vm2095_vm1, %v2077_v60  ;;  %v2078_v45 = vmax.f32 %v2060_v52, 0.0 }
 0x2a2   : > { %2098 = vst.msk [vmem:[%s4490_s10 + $0x8] sm:$0x1] %vm2097_vm2, %v2078_v45 }
 0x2b9   : > { %v1740_v55 = vpop.f32.mrb[56].mxu0  ;;  %v1781_v5 = vpop.f32.mrb[56].mxu1 }
 0x2ba   : > { %v2036_v23 = vadd.f32 %v1740_v55, %v4374_v54  ;;  %v2038_v38 = vadd.f32 %v1781_v5, %v4423_v20  ;;  %v3198_v18 = vpop.f32.mrb[57].mxu0  ;;  %v3218_v59 = vpop.f32.mrb[57].mxu1 }
 0x2bb   : > { %v1743_v12 = vpop.f32.mrb[58].mxu0  ;;  %v1784_v44 = vpop.f32.mrb[58].mxu1 }
 0x2bc   : > { %v2061_v25 = vadd.f32 %v4476_v62, %v2036_v23  ;;  %v2063_v4 = vadd.f32 %v4476_v62, %v2038_v38  ;;  %v2037_v41 = vadd.f32 %v1743_v12, %v4382_v58  ;;  %v2039_v6 = vadd.f32 %v1784_v44, %v4431_v63  ;;  %v3199_v17 = vpop.f32.mrb[59].mxu0  ;;  %v3219_v54 = vpop.f32.mrb[59].mxu1 }
 0x2be   : > { %v2079_v35 = vmax.f32 %v2061_v25, 0.0  ;;  %v2081_v26 = vmax.f32 %v2063_v4, 0.0  ;;  %v2062_v20 = vadd.f32 %v4476_v62, %v2037_v41  ;;  %v2064_v32 = vadd.f32 %v4476_v62, %v2039_v6 }
 0x2c0   : > { %2099 = vst.msk [vmem:[%s4490_s10 + $0x10] sm:$0xff] %vm2095_vm1, %v2079_v35  ;;  %2101 = vst.msk [vmem:[%s4490_s10 + $0x20] sm:$0xff] %vm2095_vm1, %v2081_v26  ;;  %v2080_v50 = vmax.f32 %v2062_v20, 0.0  ;;  %v2082_v48 = vmax.f32 %v2064_v32, 0.0 }
 0x2c2   : > { %2100 = vst.msk [vmem:[%s4490_s10 + $0x18] sm:$0x1] %vm2097_vm2, %v2080_v50  ;;  %2102 = vst.msk [vmem:[%s4490_s10 + $0x28] sm:$0x1] %vm2097_vm2, %v2082_v48 }
 0x2d9   : > { %v1822_v58 = vpop.f32.mrb[60].mxu0  ;;  %v1863_v63 = vpop.f32.mrb[60].mxu1 }
 0x2da   : > { %v2040_v19 = vadd.f32 %v1822_v58, %v4426_v24  ;;  %v2042_v33 = vadd.f32 %v1863_v63, %v4449_v21  ;;  %v3238_v10 = vpop.f32.mrb[61].mxu0  ;;  %v3258_v37 = vpop.f32.mrb[61].mxu1 }
 0x2db   : > { %v1825_v1 = vpop.f32.mrb[62].mxu0  ;;  %v1866_v29 = vpop.f32.mrb[62].mxu1 }
 0x2dc   : > { %v2065_v53 = vadd.f32 %v4476_v62, %v2040_v19  ;;  %v2067_v40 = vadd.f32 %v4476_v62, %v2042_v33  ;;  %v2041_v28 = vadd.f32 %v1825_v1, %v4434_v16  ;;  %v2043_v43 = vadd.f32 %v1866_v29, %v4455_v0  ;;  %v3239_v46 = vpop.f32.mrb[63].mxu0  ;;  %v3259_v24 = vpop.f32.mrb[63].mxu1 }
 0x2de   : > { %v2083_v49 = vmax.f32 %v2065_v53, 0.0  ;;  %v2085_v2 = vmax.f32 %v2067_v40, 0.0  ;;  %v2066_v21 = vadd.f32 %v4476_v62, %v2041_v28  ;;  %v2068_v47 = vadd.f32 %v4476_v62, %v2043_v43 }
 0x2e0   : > { %2103 = vst.msk [vmem:[%s4490_s10 + $0x30] sm:$0xff] %vm2095_vm1, %v2083_v49  ;;  %2105 = vst.msk [vmem:[%s4490_s10 + $0x40] sm:$0xff] %vm2095_vm1, %v2085_v2  ;;  %v2084_v51 = vmax.f32 %v2066_v21, 0.0  ;;  %v2086_v15 = vmax.f32 %v2068_v47, 0.0 }
 0x2e2   : > { %2104 = vst.msk [vmem:[%s4490_s10 + $0x38] sm:$0x1] %vm2097_vm2, %v2084_v51  ;;  %2106 = vst.msk [vmem:[%s4490_s10 + $0x48] sm:$0x1] %vm2097_vm2, %v2086_v15 }
 0x2f9   : > { %v1904_v16 = vpop.f32.mrb[64].mxu0  ;;  %v1945_v0 = vpop.f32.mrb[64].mxu1 }
 0x2fa   : > { %v2044_v56 = vadd.f32 %v1904_v16, %v4452_v11  ;;  %v2046_v34 = vadd.f32 %v1945_v0, %v4461_v42  ;;  %v3278_v31 = vpop.f32.mrb[65].mxu0  ;;  %v3298_v57 = vpop.f32.mrb[65].mxu1 }
 0x2fb   : > { %v1907_v36 = vpop.f32.mrb[66].mxu0  ;;  %v1948_v14 = vpop.f32.mrb[66].mxu1 }
 0x2fc   : > { %v2069_v13 = vadd.f32 %v4476_v62, %v2044_v56  ;;  %v2071_v3 = vadd.f32 %v4476_v62, %v2046_v34  ;;  %v2045_v7 = vadd.f32 %v1907_v36, %v4458_v27  ;;  %v2047_v8 = vadd.f32 %v1948_v14, %v4467_v30  ;;  %v3279_v60 = vpop.f32.mrb[67].mxu0  ;;  %v3299_v11 = vpop.f32.mrb[67].mxu1 }
 0x2fe   : > { %v2087_v52 = vmax.f32 %v2069_v13, 0.0  ;;  %v2089_v45 = vmax.f32 %v2071_v3, 0.0  ;;  %v2070_v42 = vadd.f32 %v4476_v62, %v2045_v7  ;;  %v2072_v55 = vadd.f32 %v4476_v62, %v2047_v8 }
 0x300   : > { %2107 = vst.msk [vmem:[%s4490_s10 + $0x50] sm:$0xff] %vm2095_vm1, %v2087_v52  ;;  %2109 = vst.msk [vmem:[%s4490_s10 + $0x60] sm:$0xff] %vm2095_vm1, %v2089_v45  ;;  %v2088_v5 = vmax.f32 %v2070_v42, 0.0  ;;  %v2090_v23 = vmax.f32 %v2072_v55, 0.0 }
 0x302   : > { %2108 = vst.msk [vmem:[%s4490_s10 + $0x58] sm:$0x1] %vm2097_vm2, %v2088_v5  ;;  %2110 = vst.msk [vmem:[%s4490_s10 + $0x68] sm:$0x1] %vm2097_vm2, %v2090_v23 }
 0x319   : > { %v1986_v27 = vpop.f32.mrb[68].mxu0  ;;  %v2027_v30 = vpop.f32.mrb[68].mxu1 }
 0x31a   : > { %v2048_v38 = vadd.f32 %v1986_v27, %v4464_v61  ;;  %v2050_v18 = vadd.f32 %v2027_v30, %v4479_v22  ;;  %v3318_v59 = vpop.f32.mrb[69].mxu0  ;;  %v3338_v12 = vpop.f32.mrb[69].mxu1 }
 0x31b   : > { %v1989_v44 = vpop.f32.mrb[70].mxu0  ;;  %v2030_v25 = vpop.f32.mrb[70].mxu1 }
 0x31c   : > { %v2073_v4 = vadd.f32 %v4476_v62, %v2048_v38  ;;  %v2075_v41 = vadd.f32 %v4476_v62, %v2050_v18  ;;  %v2049_v6 = vadd.f32 %v1989_v44, %v4470_v9  ;;  %v2051_v17 = vadd.f32 %v2030_v25, %v4484_v39  ;;  %v3319_v54 = vpop.f32.mrb[71].mxu0  ;;  %v3339_v61 = vpop.f32.mrb[71].mxu1 }
 0x31e   : > { %v2091_v35 = vmax.f32 %v2073_v4, 0.0  ;;  %v2093_v26 = vmax.f32 %v2075_v41, 0.0  ;;  %v2074_v22 = vadd.f32 %v4476_v62, %v2049_v6  ;;  %v2076_v20 = vadd.f32 %v4476_v62, %v2051_v17 }
 0x320   : > { %2111 = vst.msk [vmem:[%s4490_s10 + $0x70] sm:$0xff] %vm2095_vm1, %v2091_v35  ;;  %2113 = vst.msk [vmem:[%s4490_s10 + $0x80] sm:$0xff] %vm2095_vm1, %v2093_v26  ;;  %v2092_v32 = vmax.f32 %v2074_v22, 0.0  ;;  %v2094_v50 = vmax.f32 %v2076_v20, 0.0 }
 0x322   : > { %2112 = vst.msk [vmem:[%s4490_s10 + $0x78] sm:$0x1] %vm2097_vm2, %v2092_v32  ;;  %2114 = vst.msk [vmem:[%s4490_s10 + $0x88] sm:$0x1] %vm2097_vm2, %v2094_v50 }
 0x323 PF: > { %s13_s12 = sadd.s32 1, %s3390_s12  }
 0x324   : > { %p10_p4 = scmp.ge.s32.totalorder %s13_s12, 6  }
 0x326   :  { %12 = sbr.rel (!%p10_p4) target bundleno = 1 (0x1), region = 66 }

// kernel: dqn_cnn_forward.6
= control target key start
LH: loop header
LB: loop body
LE: loop exit
PB: predicated region body
PF: predicated region fallthrough
CT: control target
= control target key end

     0   :  { %s4803_s12 = smov 0   ;;  %s5880_s0 = inlined_call_operand.vmem [shape: f32[4,9,9,64], index: 0, kind: input, shape index: {}]   ;;  %s5881_s1 = inlined_call_operand.vmem [shape: bf16[9,64,64], index: 1, kind: input, shape index: {}]   ;;  %s5882_s2 = inlined_call_operand.vmem [shape: f32[1,1,64], index: 2, kind: input, shape index: {}]   ;;  %s5883_s3 = inlined_call_operand.vmem [shape: f32[4,7,7,64], index: 3, kind: output, shape index: {}]  }
   0x1 LB: > { %s3439_s13 = sadd.s32 4294967295, %s4779_s12   ;;  %p3443_p0 = scmp.ge.s32.totalorder %s4779_s12, 1  ;;  %s4779_s12 = sphi %s4803_s12, %s13_s12  }
   0x2   : > { %p137_p1 = scmp.lt.s32.totalorder %s4779_s12, 5 }
   0x4   : > { %p138_p2 = pnand %p3443_p0, %p137_p1 }
   0x5   : > { %v4814_v0 = vld [vmem:[%s5881_s1 + $0x20] sm:$0xff] (!%p138_p2)   ;;  %v4781_v1 = vmov (!%p138_p2), 0.0   ;;  %v4823_v2 = vld [vmem:[%s5881_s1 + $0x28] sm:$0xff] (!%p138_p2)   ;;  %p161_p3 = scmp.lt.s32.totalorder (!%p138_p2), %s3439_s13, 3  ;;  %vm4782_vm0 = vmmov (!%p138_p2), 0   ;;  %v4838_v3 = vld [vmem:[%s5881_s1 + $0x30] sm:$0xff] (!%p138_p2)  }
   0x6   : > { %141 = sbr.rel (%p138_p2) target bundleno = 737 (0x2e1), region = 32  ;;  %3969 = vmatprep.subr.bf16.mxu0 (!%p138_p2), %v4781_v1  ;;  %3981 = vmatprep.subr.bf16.mxu1 (!%p138_p2), %v4781_v1  ;;  %v4853_v4 = vld [vmem:[%s5881_s1 + $0x38] sm:$0xff] (!%p138_p2)   ;;  %vm241_vm1 = vcmask (!%p138_p2), 523264   ;;  %v4912_v17 = vld [vmem:[%s5881_s1] sm:$0xff] (!%p138_p2)   ;;  %v4923_v18 = vld [vmem:[%s5881_s1 + $0x8] sm:$0xff] (!%p138_p2)   ;;  %vm3376_vm2 = vcmask (!%p138_p2), 522240  }
   0x7   : > { %3970 = vmatpush3.bf16.msra.mxu0 (!%p138_p2), %v4814_v0  ;;  %3982 = vmatpush3.bf16.msra.mxu1 (!%p138_p2), %v4814_v0  ;;  %v4936_v19 = vld [vmem:[%s5881_s1 + $0x10] sm:$0xff] (!%p138_p2)   ;;  %v4945_v20 = vld [vmem:[%s5881_s1 + $0x18] sm:$0xff] (!%p138_p2)   ;;  %v5028_v37 = vld [vmem:[%s5881_s1 + $0x40] sm:$0xff] (!%p138_p2)  }
   0x8   : > { %3971 = vmatprep.subr.bf16.mxu0 (!%p138_p2), %v4781_v1  ;;  %3983 = vmatprep.subr.bf16.mxu1 (!%p138_p2), %v4781_v1  ;;  %v5039_v38 = vld [vmem:[%s5881_s1 + $0x48] sm:$0xff] (!%p138_p2)   ;;  %v5052_v39 = vld [vmem:[%s5881_s1 + $0x50] sm:$0xff] (!%p138_p2)   ;;  %v5061_v40 = vld [vmem:[%s5881_s1 + $0x58] sm:$0xff] (!%p138_p2)  }
   0x9   : > { %3977 = vmatprep.mubr.msk.bf16.mxu0 (!%p138_p2), %vm4782_vm0, %v4781_v1  ;;  %3989 = vmatprep.mubr.msk.bf16.mxu1 (!%p138_p2), %vm4782_vm0, %v4781_v1  ;;  %v5120_v53 = vld [vmem:[%s5881_s1 + $0x60] sm:$0xff] (!%p138_p2)   ;;  %v5131_v54 = vld [vmem:[%s5881_s1 + $0x68] sm:$0xff] (!%p138_p2)   ;;  %v5144_v55 = vld [vmem:[%s5881_s1 + $0x70] sm:$0xff] (!%p138_p2)  }
   0xa   : > { %v5153_v56 = vld [vmem:[%s5881_s1 + $0x78] sm:$0xff] (!%p138_p2)  }
   0xb   : > { %3972 = vmatpush3.bf16.msra.mxu0 (!%p138_p2), %v4823_v2  ;;  %3984 = vmatpush3.bf16.msra.mxu1 (!%p138_p2), %v4823_v2 }
   0xc   : > { %3973 = vmatprep.subr.bf16.mxu0 (!%p138_p2), %v4781_v1  ;;  %3985 = vmatprep.subr.bf16.mxu1 (!%p138_p2), %v4781_v1 }
   0xd   : > { %s5885_s13 = smov (!%p161_p3, %s3439_s13), 3 }
   0xe   : > { %s4725_s20 = smul.u32 144, %s5885_s13 }
   0xf   : > { %3974 = vmatpush3.bf16.msra.mxu0 %v4838_v3  ;;  %3986 = vmatpush3.bf16.msra.mxu1 %v4838_v3 }
  0x10   : > { %s4846_s23 = scalar_lea.vmem %s5880_s0, %s4725_s20  ;;  %3975 = vmatprep.subr.bf16.mxu0 %v4781_v1  ;;  %3987 = vmatprep.subr.bf16.mxu1 %v4781_v1 }
  0x11   : > { %v194_v5 = vld [vmem:[%s4846_s23 + $0x1] sm:$0x7f]  ;;  %v195_v6 = vld [vmem:[%s4846_s23 + $0x11] sm:$0x7f] }
  0x12   : > { %v201_v7 = vpack.c.bf16 %v194_v5, %v194_v5  ;;  %v202_v8 = vpack.c.bf16 %v195_v6, %v195_v6  ;;  %v196_v9 = vld [vmem:[%s4846_s23 + $0x21] sm:$0x7f]  ;;  %v197_v10 = vld [vmem:[%s4846_s23 + $0x31] sm:$0x7f] }
  0x13   : > { %3976 = vmatpush3.bf16.msra.mxu0 %v4853_v4  ;;  %3988 = vmatpush3.bf16.msra.mxu1 %v4853_v4  ;;  %v203_v11 = vpack.c.bf16 %v196_v9, %v196_v9  ;;  %v204_v12 = vpack.c.bf16 %v197_v10, %v197_v10  ;;  %v198_v13 = vld [vmem:[%s4846_s23 + $0x41] sm:$0x7f]  ;;  %v199_v14 = vld [vmem:[%s4846_s23 + $0x51] sm:$0x7f] }
  0x14   : > { %3993 = vmatprep.subr.bf16.mxu0 %v4781_v1  ;;  %4005 = vmatprep.subr.bf16.mxu1 %v4781_v1  ;;  %v205_v15 = vpack.c.bf16 %v198_v13, %v198_v13  ;;  %v206_v16 = vpack.c.bf16 %v199_v14, %v199_v14  ;;  %v200_v21 = vld [vmem:[%s4846_s23 + $0x61] sm:$0x7f]  ;;  %v173_v25 = vld [vmem:[%s4846_s23 + $0x10] sm:$0x7f] }
  0x15   : > { %v172_v22 = vld [vmem:[%s4846_s23] sm:$0x7f]  ;;  %v207_v23 = vpack.c.bf16 %v200_v21, %v200_v21  ;;  %v180_v27 = vpack.c.bf16 %v173_v25, %v173_v25  ;;  %v175_v29 = vld [vmem:[%s4846_s23 + $0x30] sm:$0x7f]  ;;  %v5273_v21 = vld [vmem:[%s5881_s1 + $0x98] sm:$0xff]  }
  0x16   : > { %3978 = vmatmul.mubr.msk.bf16.vlgmr.msra.gmra.mrb[0].mxu0 %vm241_vm1, %v201_v7  ;;  %3990 = vmatmul.mubr.msk.bf16.vlgmr.msra.gmra.mrb[0].mxu1 %vm241_vm1, %v202_v8  ;;  %v179_v24 = vpack.c.bf16 %v172_v22, %v172_v22  ;;  %v174_v26 = vld [vmem:[%s4846_s23 + $0x20] sm:$0x7f]  ;;  %v182_v31 = vpack.c.bf16 %v175_v29, %v175_v29  ;;  %v177_v33 = vld [vmem:[%s4846_s23 + $0x50] sm:$0x7f] }
  0x17   : > { %3994 = vmatpush3.bf16.msra.mxu0 %v4814_v0  ;;  %4006 = vmatpush3.bf16.msra.mxu1 %v4814_v0  ;;  %v181_v28 = vpack.c.bf16 %v174_v26, %v174_v26  ;;  %v176_v30 = vld [vmem:[%s4846_s23 + $0x40] sm:$0x7f]  ;;  %v184_v35 = vpack.c.bf16 %v177_v33, %v177_v33  ;;  %v869_v42 = vld [vmem:[%s4846_s23 + $0x12] sm:$0x7f] }
  0x18   : > { %3995 = vmatprep.subr.bf16.mxu0 %v4781_v1  ;;  %4007 = vmatprep.subr.bf16.mxu1 %v4781_v1  ;;  %v183_v32 = vpack.c.bf16 %v176_v30, %v176_v30  ;;  %v178_v34 = vld [vmem:[%s4846_s23 + $0x60] sm:$0x7f]  ;;  %v876_v44 = vpack.c.bf16 %v869_v42, %v869_v42  ;;  %v871_v46 = vld [vmem:[%s4846_s23 + $0x32] sm:$0x7f] }
  0x19   : > { %4001 = vmatprep.mubr.msk.bf16.mxu0 %vm4782_vm0, %v4781_v1  ;;  %4013 = vmatprep.mubr.msk.bf16.mxu1 %vm4782_vm0, %v4781_v1  ;;  %v185_v36 = vpack.c.bf16 %v178_v34, %v178_v34  ;;  %v868_v41 = vld [vmem:[%s4846_s23 + $0x2] sm:$0x7f]  ;;  %v878_v48 = vpack.c.bf16 %v871_v46, %v871_v46  ;;  %v873_v50 = vld [vmem:[%s4846_s23 + $0x52] sm:$0x7f] }
  0x1a   : > { %v875_v43 = vpack.c.bf16 %v868_v41, %v868_v41  ;;  %v870_v45 = vld [vmem:[%s4846_s23 + $0x22] sm:$0x7f]  ;;  %v880_v52 = vpack.c.bf16 %v873_v50, %v873_v50  ;;  %v3495_v58 = vld [vmem:[%s4846_s23 + $0x10] sm:$0x7f] }
  0x1b   : > { %3996 = vmatpush3.bf16.msra.mxu0 %v4823_v2  ;;  %4008 = vmatpush3.bf16.msra.mxu1 %v4823_v2  ;;  %v877_v47 = vpack.c.bf16 %v870_v45, %v870_v45  ;;  %v872_v49 = vld [vmem:[%s4846_s23 + $0x42] sm:$0x7f]  ;;  %v1231_v60 = vpack.c.bf16 %v3495_v58, %v3495_v58  ;;  %v3497_v62 = vld [vmem:[%s4846_s23 + $0x30] sm:$0x7f] }
  0x1c   : > { %3997 = vmatprep.subr.bf16.mxu0 %v4781_v1  ;;  %4009 = vmatprep.subr.bf16.mxu1 %v4781_v1  ;;  %v879_v51 = vpack.c.bf16 %v872_v49, %v872_v49  ;;  %v874_v57 = vld [vmem:[%s4846_s23 + $0x62] sm:$0x7f]  ;;  %v3501_v7 = vld [vmem:[%s4846_s23 + $0x70] sm:$0x7f] }
  0x1d   : > { %v881_v59 = vpack.c.bf16 %v874_v57, %v874_v57  ;;  %v3496_v61 = vld [vmem:[%s4846_s23 + $0x20] sm:$0x7f]  ;;  %v1237_v9 = vpack.c.bf16 %v3501_v7, %v3501_v7  ;;  %v3521_v22 = vld [vmem:[%s4846_s23 + $0x11] sm:$0x7f] }
  0x1e   : > { %v1232_v63 = vpack.c.bf16 %v3496_v61, %v3496_v61  ;;  %v3500_v6 = vld [vmem:[%s4846_s23 + $0x60] sm:$0x7f]  ;;  %v3523_v34 = vld [vmem:[%s4846_s23 + $0x31] sm:$0x7f] }
  0x1f   : > { %3998 = vmatpush3.bf16.msra.mxu0 %v4838_v3  ;;  %4010 = vmatpush3.bf16.msra.mxu1 %v4838_v3  ;;  %v1236_v8 = vpack.c.bf16 %v3500_v6, %v3500_v6  ;;  %v5236_v10 = vld [vmem:[%s5881_s1 + $0x80] sm:$0xff]   ;;  %v3525_v46 = vld [vmem:[%s4846_s23 + $0x51] sm:$0x7f] }
  0x20   : > { %3999 = vmatprep.subr.bf16.mxu0 %v4781_v1  ;;  %4011 = vmatprep.subr.bf16.mxu1 %v4781_v1  ;;  %v5340_v50 = vld [vmem:[%s5881_s1 + $0xa0] sm:$0xff]   ;;  %v5369_v58 = vld [vmem:[%s5881_s1 + $0xb0] sm:$0xff]  }
  0x23   : > { %4000 = vmatpush3.bf16.msra.mxu0 %v4853_v4  ;;  %4012 = vmatpush3.bf16.msra.mxu1 %v4853_v4 }
  0x24   : > { %4017 = vmatprep.subr.bf16.mxu0 %v4781_v1  ;;  %4029 = vmatprep.subr.bf16.mxu1 %v4781_v1 }
  0x26   : > { %4002 = vmatmul.mubr.msk.bf16.vlgmr.msra.gmra.mrb[4].mxu0 %vm241_vm1, %v203_v11  ;;  %4014 = vmatmul.mubr.msk.bf16.vlgmr.msra.gmra.mrb[4].mxu1 %vm241_vm1, %v204_v12  ;;  %v5247_v11 = vld [vmem:[%s5881_s1 + $0x88] sm:$0xff]  }
  0x27   : > { %4018 = vmatpush3.bf16.msra.mxu0 %v4814_v0  ;;  %4030 = vmatpush3.bf16.msra.mxu1 %v4814_v0 }
  0x28   : > { %4019 = vmatprep.subr.bf16.mxu0 %v4781_v1  ;;  %4031 = vmatprep.subr.bf16.mxu1 %v4781_v1 }
  0x29   : > { %4025 = vmatprep.mubr.msk.bf16.mxu0 %vm4782_vm0, %v4781_v1  ;;  %4037 = vmatprep.mubr.msk.bf16.mxu1 %vm4782_vm0, %v4781_v1 }
  0x2b   : > { %4020 = vmatpush3.bf16.msra.mxu0 %v4823_v2  ;;  %4032 = vmatpush3.bf16.msra.mxu1 %v4823_v2 }
  0x2c   : > { %4021 = vmatprep.subr.bf16.mxu0 %v4781_v1  ;;  %4033 = vmatprep.subr.bf16.mxu1 %v4781_v1 }
  0x2f   : > { %4022 = vmatpush3.bf16.msra.mxu0 %v4838_v3  ;;  %4034 = vmatpush3.bf16.msra.mxu1 %v4838_v3 }
  0x30   : > { %4023 = vmatprep.subr.bf16.mxu0 %v4781_v1  ;;  %4035 = vmatprep.subr.bf16.mxu1 %v4781_v1 }
  0x33   : > { %4024 = vmatpush3.bf16.msra.mxu0 %v4853_v4  ;;  %4036 = vmatpush3.bf16.msra.mxu1 %v4853_v4 }
  0x34   : > { %4041 = vmatprep.subr.bf16.mxu0 %v4781_v1  ;;  %4053 = vmatprep.subr.bf16.mxu1 %v4781_v1 }
  0x36   : > { %4026 = vmatmul.mubr.msk.bf16.vlgmr.msra.gmra.mrb[8].mxu0 %vm241_vm1, %v205_v15  ;;  %4038 = vmatmul.mubr.msk.bf16.vlgmr.msra.gmra.mrb[8].mxu1 %vm241_vm1, %v206_v16 }
  0x37   : > { %4042 = vmatpush3.bf16.msra.mxu0 %v4814_v0  ;;  %4054 = vmatpush3.bf16.msra.mxu1 %v4912_v17  ;;  %v1233_v0 = vpack.c.bf16 %v3497_v62, %v3497_v62  ;;  %v5378_v62 = vld [vmem:[%s5881_s1 + $0xb8] sm:$0xff]  }
  0x38   : > { %4043 = vmatprep.subr.bf16.mxu0 %v4781_v1  ;;  %4055 = vmatprep.subr.bf16.mxu1 %v4781_v1 }
  0x39   : > { %4049 = vmatprep.mubr.msk.bf16.mxu0 %vm4782_vm0, %v4781_v1  ;;  %4061 = vmatprep.mubr.msk.bf16.mxu1 %vm4782_vm0, %v4781_v1 }
  0x3b   : > { %4044 = vmatpush3.bf16.msra.mxu0 %v4823_v2  ;;  %4056 = vmatpush3.bf16.msra.mxu1 %v4923_v18  ;;  %v3498_v2 = vld [vmem:[%s4846_s23 + $0x40] sm:$0x7f] }
  0x3c   : > { %4045 = vmatprep.subr.bf16.mxu0 %v4781_v1  ;;  %4057 = vmatprep.subr.bf16.mxu1 %v4781_v1 }
  0x3f   : > { %4046 = vmatpush3.bf16.msra.mxu0 %v4838_v3  ;;  %4058 = vmatpush3.bf16.msra.mxu1 %v4936_v19  ;;  %v3499_v3 = vld [vmem:[%s4846_s23 + $0x50] sm:$0x7f] }
  0x40   : > { %4047 = vmatprep.subr.bf16.mxu0 %v4781_v1  ;;  %4059 = vmatprep.subr.bf16.mxu1 %v4781_v1  ;;  %v1235_v5 = vpack.c.bf16 %v3499_v3, %v3499_v3 }
  0x43   : > { %4048 = vmatpush3.bf16.msra.mxu0 %v4853_v4  ;;  %4060 = vmatpush3.bf16.msra.mxu1 %v4945_v20  ;;  %v1234_v4 = vpack.c.bf16 %v3498_v2, %v3498_v2 }
  0x44   : > { %4065 = vmatprep.subr.bf16.mxu0 %v4781_v1  ;;  %4077 = vmatprep.subr.bf16.mxu1 %v4781_v1 }
  0x46   : > { %4050 = vmatmul.mubr.msk.bf16.vlgmr.msra.gmra.mrb[12].mxu0 %vm241_vm1, %v207_v23  ;;  %4062 = vmatmul.mubr.msk.bf16.vlgmr.msra.gmra.mrb[12].mxu1 %vm241_vm1, %v179_v24  ;;  %v3522_v23 = vld [vmem:[%s4846_s23 + $0x21] sm:$0x7f]  ;;  %v1586_v24 = vpack.c.bf16 %v3521_v22, %v3521_v22 }
  0x47   : > { %4066 = vmatpush3.bf16.msra.mxu0 %v4912_v17  ;;  %4078 = vmatpush3.bf16.msra.mxu1 %v4912_v17  ;;  %v1587_v25 = vpack.c.bf16 %v3522_v23, %v3522_v23 }
  0x48   : > { %4067 = vmatprep.subr.bf16.mxu0 %v4781_v1  ;;  %4079 = vmatprep.subr.bf16.mxu1 %v4781_v1 }
  0x49   : > { %4073 = vmatprep.mubr.msk.bf16.mxu0 %vm4782_vm0, %v4781_v1  ;;  %4085 = vmatprep.mubr.msk.bf16.mxu1 %vm4782_vm0, %v4781_v1 }
  0x4b   : > { %4068 = vmatpush3.bf16.msra.mxu0 %v4923_v18  ;;  %4080 = vmatpush3.bf16.msra.mxu1 %v4923_v18 }
  0x4c   : > { %4069 = vmatprep.subr.bf16.mxu0 %v4781_v1  ;;  %4081 = vmatprep.subr.bf16.mxu1 %v4781_v1 }
  0x4f   : > { %4070 = vmatpush3.bf16.msra.mxu0 %v4936_v19  ;;  %4082 = vmatpush3.bf16.msra.mxu1 %v4936_v19 }
  0x50   : > { %4071 = vmatprep.subr.bf16.mxu0 %v4781_v1  ;;  %4083 = vmatprep.subr.bf16.mxu1 %v4781_v1 }
  0x53   : > { %4072 = vmatpush3.bf16.msra.mxu0 %v4945_v20  ;;  %4084 = vmatpush3.bf16.msra.mxu1 %v4945_v20 }
  0x54   : > { %4089 = vmatprep.subr.bf16.mxu0 %v4781_v1  ;;  %4101 = vmatprep.subr.bf16.mxu1 %v4781_v1 }
  0x56   : > { %4074 = vmatmul.mubr.msk.bf16.vlgmr.msra.gmra.mrb[16].mxu0 %vm241_vm1, %v180_v27  ;;  %4086 = vmatmul.mubr.msk.bf16.vlgmr.msra.gmra.mrb[16].mxu1 %vm241_vm1, %v181_v28 }
  0x57   : > { %4090 = vmatpush3.bf16.msra.mxu0 %v4912_v17  ;;  %4102 = vmatpush3.bf16.msra.mxu1 %v4912_v17 }
  0x58   : > { %4091 = vmatprep.subr.bf16.mxu0 %v4781_v1  ;;  %4103 = vmatprep.subr.bf16.mxu1 %v4781_v1 }
  0x59   : > { %4097 = vmatprep.mubr.msk.bf16.mxu0 %vm4782_vm0, %v4781_v1  ;;  %4109 = vmatprep.mubr.msk.bf16.mxu1 %vm4782_vm0, %v4781_v1 }
  0x5b   : > { %4092 = vmatpush3.bf16.msra.mxu0 %v4923_v18  ;;  %4104 = vmatpush3.bf16.msra.mxu1 %v4923_v18 }
  0x5c   : > { %4093 = vmatprep.subr.bf16.mxu0 %v4781_v1  ;;  %4105 = vmatprep.subr.bf16.mxu1 %v4781_v1 }
  0x5f   : > { %4094 = vmatpush3.bf16.msra.mxu0 %v4936_v19  ;;  %4106 = vmatpush3.bf16.msra.mxu1 %v4936_v19 }
  0x60   : > { %4095 = vmatprep.subr.bf16.mxu0 %v4781_v1  ;;  %4107 = vmatprep.subr.bf16.mxu1 %v4781_v1 }
  0x63   : > { %4096 = vmatpush3.bf16.msra.mxu0 %v4945_v20  ;;  %4108 = vmatpush3.bf16.msra.mxu1 %v4945_v20 }
  0x64   : > { %4113 = vmatprep.subr.bf16.mxu0 %v4781_v1  ;;  %4125 = vmatprep.subr.bf16.mxu1 %v4781_v1 }
  0x66   : > { %4098 = vmatmul.mubr.msk.bf16.vlgmr.msra.gmra.mrb[20].mxu0 %vm241_vm1, %v182_v31  ;;  %4110 = vmatmul.mubr.msk.bf16.vlgmr.msra.gmra.mrb[20].mxu1 %vm241_vm1, %v183_v32 }
  0x67   : > { %4114 = vmatpush3.bf16.msra.mxu0 %v4912_v17  ;;  %4126 = vmatpush3.bf16.msra.mxu1 %v4912_v17  ;;  %v5264_v17 = vld [vmem:[%s5881_s1 + $0x90] sm:$0xff]  }
  0x68   : > { %4115 = vmatprep.subr.bf16.mxu0 %v4781_v1  ;;  %4127 = vmatprep.subr.bf16.mxu1 %v4781_v1 }
  0x69   : > { %4121 = vmatprep.mubr.msk.bf16.mxu0 %vm4782_vm0, %v4781_v1  ;;  %4133 = vmatprep.mubr.msk.bf16.mxu1 %vm4782_vm0, %v4781_v1 }
  0x6b   : > { %4116 = vmatpush3.bf16.msra.mxu0 %v4923_v18  ;;  %4128 = vmatpush3.bf16.msra.mxu1 %v4923_v18 }
  0x6c   : > { %4117 = vmatprep.subr.bf16.mxu0 %v4781_v1  ;;  %4129 = vmatprep.subr.bf16.mxu1 %v4781_v1 }
  0x6f   : > { %4118 = vmatpush3.bf16.msra.mxu0 %v4936_v19  ;;  %4130 = vmatpush3.bf16.msra.mxu1 %v4936_v19 }
  0x70   : > { %4119 = vmatprep.subr.bf16.mxu0 %v4781_v1  ;;  %4131 = vmatprep.subr.bf16.mxu1 %v4781_v1 }
  0x73   : > { %4120 = vmatpush3.bf16.msra.mxu0 %v4945_v20  ;;  %4132 = vmatpush3.bf16.msra.mxu1 %v4945_v20 }
  0x74   : > { %4137 = vmatprep.subr.bf16.mxu0 %v4781_v1  ;;  %4149 = vmatprep.subr.bf16.mxu1 %v4781_v1 }
  0x76   : > { %4122 = vmatmul.mubr.msk.bf16.vlgmr.msra.gmra.mrb[24].mxu0 %vm241_vm1, %v184_v35  ;;  %4134 = vmatmul.mubr.msk.bf16.vlgmr.msra.gmra.mrb[24].mxu1 %vm241_vm1, %v185_v36  ;;  %v3524_v35 = vld [vmem:[%s4846_s23 + $0x41] sm:$0x7f]  ;;  %v1588_v36 = vpack.c.bf16 %v3523_v34, %v3523_v34 }
  0x77   : > { %4138 = vmatpush3.bf16.msra.mxu0 %v5028_v37  ;;  %4150 = vmatpush3.bf16.msra.mxu1 %v5028_v37 }
  0x78   : > { %4139 = vmatprep.subr.bf16.mxu0 %v4781_v1  ;;  %4151 = vmatprep.subr.bf16.mxu1 %v4781_v1 }
  0x79   : > { %4145 = vmatprep.mubr.msk.bf16.mxu0 %vm4782_vm0, %v4781_v1  ;;  %4157 = vmatprep.mubr.msk.bf16.mxu1 %vm4782_vm0, %v4781_v1 }
  0x7b   : > { %4140 = vmatpush3.bf16.msra.mxu0 %v5039_v38  ;;  %4152 = vmatpush3.bf16.msra.mxu1 %v5039_v38 }
  0x7c   : > { %4141 = vmatprep.subr.bf16.mxu0 %v4781_v1  ;;  %4153 = vmatprep.subr.bf16.mxu1 %v4781_v1 }
  0x7f   : > { %4142 = vmatpush3.bf16.msra.mxu0 %v5052_v39  ;;  %4154 = vmatpush3.bf16.msra.mxu1 %v5052_v39 }
  0x80   : > { %4143 = vmatprep.subr.bf16.mxu0 %v4781_v1  ;;  %4155 = vmatprep.subr.bf16.mxu1 %v4781_v1 }
  0x83   : > { %4144 = vmatpush3.bf16.msra.mxu0 %v5061_v40  ;;  %4156 = vmatpush3.bf16.msra.mxu1 %v5061_v40 }
  0x84   : > { %4161 = vmatprep.subr.bf16.mxu0 %v4781_v1  ;;  %4173 = vmatprep.subr.bf16.mxu1 %v4781_v1 }
  0x86   : > { %4146 = vmatmul.mubr.msk.bf16.vlgmr.msra.gmra.mrb[28].mxu0 %vm241_vm1, %v875_v43  ;;  %4158 = vmatmul.mubr.msk.bf16.vlgmr.msra.gmra.mrb[28].mxu1 %vm241_vm1, %v876_v44 }
  0x87   : > { %4162 = vmatpush3.bf16.msra.mxu0 %v5028_v37  ;;  %4174 = vmatpush3.bf16.msra.mxu1 %v5028_v37 }
  0x88   : > { %4163 = vmatprep.subr.bf16.mxu0 %v4781_v1  ;;  %4175 = vmatprep.subr.bf16.mxu1 %v4781_v1 }
  0x89   : > { %4169 = vmatprep.mubr.msk.bf16.mxu0 %vm4782_vm0, %v4781_v1  ;;  %4181 = vmatprep.mubr.msk.bf16.mxu1 %vm4782_vm0, %v4781_v1 }
  0x8b   : > { %4164 = vmatpush3.bf16.msra.mxu0 %v5039_v38  ;;  %4176 = vmatpush3.bf16.msra.mxu1 %v5039_v38 }
  0x8c   : > { %4165 = vmatprep.subr.bf16.mxu0 %v4781_v1  ;;  %4177 = vmatprep.subr.bf16.mxu1 %v4781_v1 }
  0x8f   : > { %4166 = vmatpush3.bf16.msra.mxu0 %v5052_v39  ;;  %4178 = vmatpush3.bf16.msra.mxu1 %v5052_v39 }
  0x90   : > { %4167 = vmatprep.subr.bf16.mxu0 %v4781_v1  ;;  %4179 = vmatprep.subr.bf16.mxu1 %v4781_v1 }
  0x93   : > { %4168 = vmatpush3.bf16.msra.mxu0 %v5061_v40  ;;  %4180 = vmatpush3.bf16.msra.mxu1 %v5061_v40 }
  0x94   : > { %4185 = vmatprep.subr.bf16.mxu0 %v4781_v1  ;;  %4197 = vmatprep.subr.bf16.mxu1 %v4781_v1 }
  0x96   : > { %4170 = vmatmul.mubr.msk.bf16.vlgmr.msra.gmra.mrb[32].mxu0 %vm241_vm1, %v877_v47  ;;  %4182 = vmatmul.mubr.msk.bf16.vlgmr.msra.gmra.mrb[32].mxu1 %vm241_vm1, %v878_v48  ;;  %v3526_v47 = vld [vmem:[%s4846_s23 + $0x61] sm:$0x7f]  ;;  %v1590_v48 = vpack.c.bf16 %v3525_v46, %v3525_v46 }
  0x97   : > { %4186 = vmatpush3.bf16.msra.mxu0 %v5028_v37  ;;  %4198 = vmatpush3.bf16.msra.mxu1 %v5028_v37  ;;  %v1591_v49 = vpack.c.bf16 %v3526_v47, %v3526_v47  ;;  %v5479_v46 = vld [vmem:[%s5881_s1 + $0xc0] sm:$0xff]   ;;  %v5490_v47 = vld [vmem:[%s5881_s1 + $0xc8] sm:$0xff]  }
  0x98   : > { %4187 = vmatprep.subr.bf16.mxu0 %v4781_v1  ;;  %4199 = vmatprep.subr.bf16.mxu1 %v4781_v1 }
  0x99   : > { %4193 = vmatprep.mubr.msk.bf16.mxu0 %vm4782_vm0, %v4781_v1  ;;  %4205 = vmatprep.mubr.msk.bf16.mxu1 %vm4782_vm0, %v4781_v1 }
  0x9b   : > { %4188 = vmatpush3.bf16.msra.mxu0 %v5039_v38  ;;  %4200 = vmatpush3.bf16.msra.mxu1 %v5039_v38 }
  0x9c   : > { %4189 = vmatprep.subr.bf16.mxu0 %v4781_v1  ;;  %4201 = vmatprep.subr.bf16.mxu1 %v4781_v1 }
  0x9f   : > { %4190 = vmatpush3.bf16.msra.mxu0 %v5052_v39  ;;  %4202 = vmatpush3.bf16.msra.mxu1 %v5052_v39 }
  0xa0   : > { %4191 = vmatprep.subr.bf16.mxu0 %v4781_v1  ;;  %4203 = vmatprep.subr.bf16.mxu1 %v4781_v1 }
  0xa3   : > { %4192 = vmatpush3.bf16.msra.mxu0 %v5061_v40  ;;  %4204 = vmatpush3.bf16.msra.mxu1 %v5061_v40 }
  0xa4   : > { %4209 = vmatprep.subr.bf16.mxu0 %v4781_v1  ;;  %4221 = vmatprep.subr.bf16.mxu1 %v4781_v1 }
  0xa6   : > { %4194 = vmatmul.mubr.msk.bf16.vlgmr.msra.gmra.mrb[36].mxu0 %vm241_vm1, %v879_v51  ;;  %4206 = vmatmul.mubr.msk.bf16.vlgmr.msra.gmra.mrb[36].mxu1 %vm241_vm1, %v880_v52  ;;  %v5351_v51 = vld [vmem:[%s5881_s1 + $0xa8] sm:$0xff]  }
  0xa7   : > { %4210 = vmatpush3.bf16.msra.mxu0 %v5028_v37  ;;  %4222 = vmatpush3.bf16.msra.mxu1 %v5120_v53  ;;  %v1589_v37 = vpack.c.bf16 %v3524_v35, %v3524_v35 }
  0xa8   : > { %4211 = vmatprep.subr.bf16.mxu0 %v4781_v1  ;;  %4223 = vmatprep.subr.bf16.mxu1 %v4781_v1 }
  0xa9   : > { %4217 = vmatprep.mubr.msk.bf16.mxu0 %vm4782_vm0, %v4781_v1  ;;  %4229 = vmatprep.mubr.msk.bf16.mxu1 %vm4782_vm0, %v4781_v1 }
  0xab   : > { %4212 = vmatpush3.bf16.msra.mxu0 %v5039_v38  ;;  %4224 = vmatpush3.bf16.msra.mxu1 %v5131_v54 }
  0xac   : > { %4213 = vmatprep.subr.bf16.mxu0 %v4781_v1  ;;  %4225 = vmatprep.subr.bf16.mxu1 %v4781_v1 }
  0xaf   : > { %4214 = vmatpush3.bf16.msra.mxu0 %v5052_v39  ;;  %4226 = vmatpush3.bf16.msra.mxu1 %v5144_v55 }
  0xb0   : > { %4215 = vmatprep.subr.bf16.mxu0 %v4781_v1  ;;  %4227 = vmatprep.subr.bf16.mxu1 %v4781_v1 }
  0xb3   : > { %4216 = vmatpush3.bf16.msra.mxu0 %v5061_v40  ;;  %4228 = vmatpush3.bf16.msra.mxu1 %v5153_v56 }
  0xb4   : > { %4233 = vmatprep.subr.bf16.mxu0 %v4781_v1  ;;  %4245 = vmatprep.subr.bf16.mxu1 %v4781_v1 }
  0xb6   : > { %4218 = vmatmul.mubr.msk.bf16.vlgmr.msra.gmra.mrb[40].mxu0 %vm241_vm1, %v881_v59  ;;  %4230 = vmatmul.mubr.msk.bf16.vlgmr.msra.gmra.mrb[40].mxu1 %vm241_vm1, %v1231_v60 }
  0xb7   : > { %4234 = vmatpush3.bf16.msra.mxu0 %v5120_v53  ;;  %4246 = vmatpush3.bf16.msra.mxu1 %v5120_v53 }
  0xb8   : > { %4235 = vmatprep.subr.bf16.mxu0 %v4781_v1  ;;  %4247 = vmatprep.subr.bf16.mxu1 %v4781_v1 }
  0xb9   : > { %4241 = vmatprep.mubr.msk.bf16.mxu0 %vm4782_vm0, %v4781_v1  ;;  %4253 = vmatprep.mubr.msk.bf16.mxu1 %vm4782_vm0, %v4781_v1 }
  0xbb   : > { %4236 = vmatpush3.bf16.msra.mxu0 %v5131_v54  ;;  %4248 = vmatpush3.bf16.msra.mxu1 %v5131_v54 }
  0xbc   : > { %4237 = vmatprep.subr.bf16.mxu0 %v4781_v1  ;;  %4249 = vmatprep.subr.bf16.mxu1 %v4781_v1 }
  0xbf   : > { %4238 = vmatpush3.bf16.msra.mxu0 %v5144_v55  ;;  %4250 = vmatpush3.bf16.msra.mxu1 %v5144_v55 }
  0xc0   : > { %4239 = vmatprep.subr.bf16.mxu0 %v4781_v1  ;;  %4251 = vmatprep.subr.bf16.mxu1 %v4781_v1 }
  0xc3   : > { %4240 = vmatpush3.bf16.msra.mxu0 %v5153_v56  ;;  %4252 = vmatpush3.bf16.msra.mxu1 %v5153_v56 }
  0xc4   : > { %4257 = vmatprep.subr.bf16.mxu0 %v4781_v1  ;;  %4269 = vmatprep.subr.bf16.mxu1 %v4781_v1 }
  0xc6   : > { %4242 = vmatmul.mubr.msk.bf16.vlgmr.msra.gmra.mrb[44].mxu0 %vm241_vm1, %v1232_v63  ;;  %4254 = vmatmul.mubr.msk.bf16.vlgmr.msra.gmra.mrb[44].mxu1 %vm241_vm1, %v1233_v0  ;;  %v3527_v63 = vld [vmem:[%s4846_s23 + $0x71] sm:$0x7f] }
  0xc7   : > { %4258 = vmatpush3.bf16.msra.mxu0 %v5120_v53  ;;  %4270 = vmatpush3.bf16.msra.mxu1 %v5120_v53  ;;  %v3547_v0 = vld [vmem:[%s4846_s23 + $0x12] sm:$0x7f]  ;;  %v1592_v2 = vpack.c.bf16 %v3527_v63, %v3527_v63 }
  0xc8   : > { %4259 = vmatprep.subr.bf16.mxu0 %v4781_v1  ;;  %4271 = vmatprep.subr.bf16.mxu1 %v4781_v1  ;;  %v1941_v3 = vpack.c.bf16 %v3547_v0, %v3547_v0 }
  0xc9   : > { %4265 = vmatprep.mubr.msk.bf16.mxu0 %vm4782_vm0, %v4781_v1  ;;  %4277 = vmatprep.mubr.msk.bf16.mxu1 %vm4782_vm0, %v4781_v1 }
  0xcb   : > { %4260 = vmatpush3.bf16.msra.mxu0 %v5131_v54  ;;  %4272 = vmatpush3.bf16.msra.mxu1 %v5131_v54 }
  0xcc   : > { %4261 = vmatprep.subr.bf16.mxu0 %v4781_v1  ;;  %4273 = vmatprep.subr.bf16.mxu1 %v4781_v1 }
  0xcf   : > { %4262 = vmatpush3.bf16.msra.mxu0 %v5144_v55  ;;  %4274 = vmatpush3.bf16.msra.mxu1 %v5144_v55 }
  0xd0   : > { %4263 = vmatprep.subr.bf16.mxu0 %v4781_v1  ;;  %4275 = vmatprep.subr.bf16.mxu1 %v4781_v1 }
  0xd3   : > { %4264 = vmatpush3.bf16.msra.mxu0 %v5153_v56  ;;  %4276 = vmatpush3.bf16.msra.mxu1 %v5153_v56 }
  0xd4   : > { %4281 = vmatprep.subr.bf16.mxu0 %v4781_v1  ;;  %4293 = vmatprep.subr.bf16.mxu1 %v4781_v1 }
  0xd6   : > { %4266 = vmatmul.mubr.msk.bf16.vlgmr.msra.gmra.mrb[48].mxu0 %vm241_vm1, %v1234_v4  ;;  %4278 = vmatmul.mubr.msk.bf16.vlgmr.msra.gmra.mrb[48].mxu1 %vm241_vm1, %v1235_v5 }
  0xd7   : > { %4282 = vmatpush3.bf16.msra.mxu0 %v5120_v53  ;;  %4294 = vmatpush3.bf16.msra.mxu1 %v5120_v53 }
  0xd8   : > { %4283 = vmatprep.subr.bf16.mxu0 %v4781_v1  ;;  %4295 = vmatprep.subr.bf16.mxu1 %v4781_v1 }
  0xd9   : > { %4289 = vmatprep.mubr.msk.bf16.mxu0 %vm4782_vm0, %v4781_v1  ;;  %4301 = vmatprep.mubr.msk.bf16.mxu1 %vm4782_vm0, %v4781_v1 }
  0xdb   : > { %4284 = vmatpush3.bf16.msra.mxu0 %v5131_v54  ;;  %4296 = vmatpush3.bf16.msra.mxu1 %v5131_v54 }
  0xdc   : > { %4285 = vmatprep.subr.bf16.mxu0 %v4781_v1  ;;  %4297 = vmatprep.subr.bf16.mxu1 %v4781_v1 }
  0xdf   : > { %4286 = vmatpush3.bf16.msra.mxu0 %v5144_v55  ;;  %4298 = vmatpush3.bf16.msra.mxu1 %v5144_v55 }
  0xe0   : > { %4287 = vmatprep.subr.bf16.mxu0 %v4781_v1  ;;  %4299 = vmatprep.subr.bf16.mxu1 %v4781_v1 }
  0xe3   : > { %4288 = vmatpush3.bf16.msra.mxu0 %v5153_v56  ;;  %4300 = vmatpush3.bf16.msra.mxu1 %v5153_v56 }
  0xe4   : > { %4305 = vmatprep.subr.bf16.mxu0 %v4781_v1  ;;  %4317 = vmatprep.subr.bf16.mxu1 %v4781_v1 }
  0xe6   : > { %4290 = vmatmul.mubr.msk.bf16.vlgmr.msra.gmra.mrb[52].mxu0 %vm241_vm1, %v1236_v8  ;;  %4302 = vmatmul.mubr.msk.bf16.vlgmr.msra.gmra.mrb[52].mxu1 %vm241_vm1, %v1237_v9 }
  0xe7   : > { %4306 = vmatpush3.bf16.msra.mxu0 %v5236_v10  ;;  %4318 = vmatpush3.bf16.msra.mxu1 %v5236_v10 }
  0xe8   : > { %4307 = vmatprep.subr.bf16.mxu0 %v4781_v1  ;;  %4319 = vmatprep.subr.bf16.mxu1 %v4781_v1 }
  0xe9   : > { %v5251_v12 = vpop.f32.mrb[0].mxu0  ;;  %4313 = vmatprep.mubr.msk.bf16.mxu0 %vm4782_vm0, %v4781_v1  ;;  %4325 = vmatprep.mubr.msk.bf16.mxu1 %vm4782_vm0, %v4781_v1  ;;  %v5257_v13 = vpop.f32.mrb[0].mxu1 }
  0xea   : > { %v3979_v14 = vpop.f32.mrb[1].mxu0  ;;  %v3991_v15 = vpop.f32.mrb[1].mxu1 }
  0xeb   : > { %v282_v16 = vpop.f32.mrb[2].mxu0  ;;  %4308 = vmatpush3.bf16.msra.mxu0 %v5247_v11  ;;  %4320 = vmatpush3.bf16.msra.mxu1 %v5247_v11  ;;  %v325_v18 = vpop.f32.mrb[2].mxu1  ;;  %v3549_v15 = vld [vmem:[%s4846_s23 + $0x32] sm:$0x7f] }
  0xec   : > { %v3980_v19 = vpop.f32.mrb[3].mxu0  ;;  %4309 = vmatprep.subr.bf16.mxu0 %v4781_v1  ;;  %4321 = vmatprep.subr.bf16.mxu1 %v4781_v1  ;;  %v3992_v20 = vpop.f32.mrb[3].mxu1 }
  0xef   : > { %4310 = vmatpush3.bf16.msra.mxu0 %v5264_v17  ;;  %4322 = vmatpush3.bf16.msra.mxu1 %v5264_v17 }
  0xf0   : > { %4311 = vmatprep.subr.bf16.mxu0 %v4781_v1  ;;  %4323 = vmatprep.subr.bf16.mxu1 %v4781_v1 }
  0xf3   : > { %4312 = vmatpush3.bf16.msra.mxu0 %v5273_v21  ;;  %4324 = vmatpush3.bf16.msra.mxu1 %v5273_v21 }
  0xf4   : > { %4329 = vmatprep.subr.bf16.mxu0 %v4781_v1  ;;  %4341 = vmatprep.subr.bf16.mxu1 %v4781_v1 }
  0xf6   : > { %4314 = vmatmul.mubr.msk.bf16.vlgmr.msra.gmra.mrb[56].mxu0 %vm241_vm1, %v1586_v24  ;;  %4326 = vmatmul.mubr.msk.bf16.vlgmr.msra.gmra.mrb[56].mxu1 %vm241_vm1, %v1587_v25 }
  0xf7   : > { %4330 = vmatpush3.bf16.msra.mxu0 %v5236_v10  ;;  %4342 = vmatpush3.bf16.msra.mxu1 %v5236_v10 }
  0xf8   : > { %4331 = vmatprep.subr.bf16.mxu0 %v4781_v1  ;;  %4343 = vmatprep.subr.bf16.mxu1 %v4781_v1 }
  0xf9   : > { %v5289_v26 = vpop.f32.mrb[4].mxu0  ;;  %4337 = vmatprep.mubr.msk.bf16.mxu0 %vm4782_vm0, %v4781_v1  ;;  %4349 = vmatprep.mubr.msk.bf16.mxu1 %vm4782_vm0, %v4781_v1  ;;  %v5295_v27 = vpop.f32.mrb[4].mxu1 }
  0xfa   : > { %v4003_v28 = vpop.f32.mrb[5].mxu0  ;;  %v4015_v29 = vpop.f32.mrb[5].mxu1 }
  0xfb   : > { %v368_v30 = vpop.f32.mrb[6].mxu0  ;;  %4332 = vmatpush3.bf16.msra.mxu0 %v5247_v11  ;;  %4344 = vmatpush3.bf16.msra.mxu1 %v5247_v11  ;;  %v411_v31 = vpop.f32.mrb[6].mxu1  ;;  %v3551_v29 = vld [vmem:[%s4846_s23 + $0x52] sm:$0x7f] }
  0xfc   : > { %v4004_v32 = vpop.f32.mrb[7].mxu0  ;;  %4333 = vmatprep.subr.bf16.mxu0 %v4781_v1  ;;  %4345 = vmatprep.subr.bf16.mxu1 %v4781_v1  ;;  %v4016_v33 = vpop.f32.mrb[7].mxu1  ;;  %v1945_v31 = vpack.c.bf16 %v3551_v29, %v3551_v29  ;;  %v5589_v29 = vld [vmem:[%s5881_s1 + $0xe0] sm:$0xff]  }
  0xff   : > { %4334 = vmatpush3.bf16.msra.mxu0 %v5264_v17  ;;  %4346 = vmatpush3.bf16.msra.mxu1 %v5264_v17 }
 0x100   : > { %4335 = vmatprep.subr.bf16.mxu0 %v4781_v1  ;;  %4347 = vmatprep.subr.bf16.mxu1 %v4781_v1 }
 0x103   : > { %4336 = vmatpush3.bf16.msra.mxu0 %v5273_v21  ;;  %4348 = vmatpush3.bf16.msra.mxu1 %v5273_v21 }
 0x104   : > { %4353 = vmatprep.subr.bf16.mxu0 %v4781_v1  ;;  %4365 = vmatprep.subr.bf16.mxu1 %v4781_v1 }
 0x106   : > { %4338 = vmatmul.mubr.msk.bf16.vlgmr.msra.gmra.mrb[60].mxu0 %vm241_vm1, %v1588_v36  ;;  %4350 = vmatmul.mubr.msk.bf16.vlgmr.msra.gmra.mrb[60].mxu1 %vm241_vm1, %v1589_v37 }
 0x107   : > { %4354 = vmatpush3.bf16.msra.mxu0 %v5236_v10  ;;  %4366 = vmatpush3.bf16.msra.mxu1 %v5236_v10 }
 0x108   : > { %4355 = vmatprep.subr.bf16.mxu0 %v4781_v1  ;;  %4367 = vmatprep.subr.bf16.mxu1 %v4781_v1 }
 0x109   : > { %v5317_v38 = vpop.f32.mrb[8].mxu0  ;;  %v5319_v39 = vpop.f32.mrb[8].mxu1  ;;  %4361 = vmatprep.mubr.msk.bf16.mxu0 %vm4782_vm0, %v4781_v1  ;;  %4373 = vmatprep.mubr.msk.bf16.mxu1 %vm4782_vm0, %v4781_v1 }
 0x10a   : > { %v4027_v40 = vpop.f32.mrb[9].mxu0  ;;  %v4039_v41 = vpop.f32.mrb[9].mxu1 }
 0x10b   : > { %v454_v42 = vpop.f32.mrb[10].mxu0  ;;  %4356 = vmatpush3.bf16.msra.mxu0 %v5247_v11  ;;  %4368 = vmatpush3.bf16.msra.mxu1 %v5247_v11  ;;  %v497_v43 = vpop.f32.mrb[10].mxu1 }
 0x10c   : > { %v4028_v44 = vpop.f32.mrb[11].mxu0  ;;  %4357 = vmatprep.subr.bf16.mxu0 %v4781_v1  ;;  %4369 = vmatprep.subr.bf16.mxu1 %v4781_v1  ;;  %v4040_v45 = vpop.f32.mrb[11].mxu1  ;;  %v3553_v43 = vld [vmem:[%s4846_s23 + $0x72] sm:$0x7f] }
 0x10d   : > { %v1947_v45 = vpack.c.bf16 %v3553_v43, %v3553_v43  ;;  %v3579_v43 = vld [vmem:[%s4846_s23 + $0x80] sm:$0x7f] }
 0x10f   : > { %4358 = vmatpush3.bf16.msra.mxu0 %v5264_v17  ;;  %4370 = vmatpush3.bf16.msra.mxu1 %v5264_v17 }
 0x110   : > { %4359 = vmatprep.subr.bf16.mxu0 %v4781_v1  ;;  %4371 = vmatprep.subr.bf16.mxu1 %v4781_v1 }
 0x113   : > { %4360 = vmatpush3.bf16.msra.mxu0 %v5273_v21  ;;  %4372 = vmatpush3.bf16.msra.mxu1 %v5273_v21 }
 0x114   : > { %4377 = vmatprep.subr.bf16.mxu0 %v4781_v1  ;;  %4389 = vmatprep.subr.bf16.mxu1 %v4781_v1 }
 0x116   : > { %4362 = vmatmul.mubr.msk.bf16.vlgmr.msra.gmra.mrb[64].mxu0 %vm241_vm1, %v1590_v48  ;;  %4374 = vmatmul.mubr.msk.bf16.vlgmr.msra.gmra.mrb[64].mxu1 %vm241_vm1, %v1591_v49 }
 0x117   : > { %4378 = vmatpush3.bf16.msra.mxu0 %v5236_v10  ;;  %4390 = vmatpush3.bf16.msra.mxu1 %v5340_v50 }
 0x118   : > { %4379 = vmatprep.subr.bf16.mxu0 %v4781_v1  ;;  %4391 = vmatprep.subr.bf16.mxu1 %v4781_v1 }
 0x119   : > { %v5355_v52 = vpop.f32.mrb[12].mxu0  ;;  %v604_v53 = vpop.f32.mrb[12].mxu1  ;;  %4385 = vmatprep.mubr.msk.bf16.mxu0 %vm4782_vm0, %v4781_v1  ;;  %4397 = vmatprep.mubr.msk.bf16.mxu1 %vm4782_vm0, %v4781_v1 }
 0x11a   : > { %v5362_v54 = vadd.f32 %v604_v53, %v5251_v12  ;;  %v4051_v55 = vpop.f32.mrb[13].mxu0  ;;  %v4063_v56 = vpop.f32.mrb[13].mxu1 }
 0x11b   : > { %v540_v57 = vpop.f32.mrb[14].mxu0  ;;  %4380 = vmatpush3.bf16.msra.mxu0 %v5247_v11  ;;  %4392 = vmatpush3.bf16.msra.mxu1 %v5351_v51  ;;  %v607_v59 = vpop.f32.mrb[14].mxu1  ;;  %v5509_v56 = vld [vmem:[%s5881_s1 + $0xd0] sm:$0xff]  }
 0x11c   : > { %v4052_v60 = vpop.f32.mrb[15].mxu0  ;;  %4381 = vmatprep.subr.bf16.mxu0 %v4781_v1  ;;  %4393 = vmatprep.subr.bf16.mxu1 %v4781_v1  ;;  %v4064_v61 = vpop.f32.mrb[15].mxu1  ;;  %v5518_v59 = vld [vmem:[%s5881_s1 + $0xd8] sm:$0xff]  }
 0x11d   : > { %v3573_v60 = vld [vmem:[%s4846_s23 + $0x20] sm:$0x7f]  ;;  %v3574_v61 = vld [vmem:[%s4846_s23 + $0x30] sm:$0x7f] }
 0x11e   : > { %v2298_v63 = vpack.c.bf16 %v3574_v61, %v3574_v61 }
 0x11f   : > { %4382 = vmatpush3.bf16.msra.mxu0 %v5264_v17  ;;  %4394 = vmatpush3.bf16.msra.mxu1 %v5369_v58  ;;  %v1943_v17 = vpack.c.bf16 %v3549_v15, %v3549_v15 }
 0x120   : > { %4383 = vmatprep.subr.bf16.mxu0 %v4781_v1  ;;  %4395 = vmatprep.subr.bf16.mxu1 %v4781_v1 }
 0x123   : > { %4384 = vmatpush3.bf16.msra.mxu0 %v5273_v21  ;;  %4396 = vmatpush3.bf16.msra.mxu1 %v5378_v62 }
 0x124   : > { %4401 = vmatprep.subr.bf16.mxu0 %v4781_v1  ;;  %4413 = vmatprep.subr.bf16.mxu1 %v4781_v1 }
 0x126   : > { %4386 = vmatmul.mubr.msk.bf16.vlgmr.msra.gmra.mrb[68].mxu0 %vm241_vm1, %v1592_v2  ;;  %4398 = vmatmul.mubr.msk.bf16.vlgmr.msra.gmra.mrb[68].mxu1 %vm241_vm1, %v1941_v3 }
 0x127   : > { %4402 = vmatpush3.bf16.msra.mxu0 %v5340_v50  ;;  %4414 = vmatpush3.bf16.msra.mxu1 %v5340_v50 }
 0x128   : > { %4403 = vmatprep.subr.bf16.mxu0 %v4781_v1  ;;  %4415 = vmatprep.subr.bf16.mxu1 %v4781_v1 }
 0x129   : > { %v647_v4 = vpop.f32.mrb[16].mxu0  ;;  %v690_v5 = vpop.f32.mrb[16].mxu1  ;;  %4409 = vmatprep.mubr.msk.bf16.mxu0 %vm4782_vm0, %v4781_v1  ;;  %4421 = vmatprep.mubr.msk.bf16.mxu1 %vm4782_vm0, %v4781_v1 }
 0x12a   : > { %v5399_v6 = vadd.f32 %v647_v4, %v5257_v13  ;;  %v5402_v7 = vadd.f32 %v690_v5, %v5289_v26  ;;  %v4075_v8 = vpop.f32.mrb[17].mxu0  ;;  %v4087_v9 = vpop.f32.mrb[17].mxu1  ;;  %v3548_v13 = vld [vmem:[%s4846_s23 + $0x22] sm:$0x7f] }
 0x12b   : > { %v650_v10 = vpop.f32.mrb[18].mxu0  ;;  %4404 = vmatpush3.bf16.msra.mxu0 %v5351_v51  ;;  %4416 = vmatpush3.bf16.msra.mxu1 %v5351_v51  ;;  %v693_v11 = vpop.f32.mrb[18].mxu1  ;;  %v1942_v16 = vpack.c.bf16 %v3548_v13, %v3548_v13 }
 0x12c   : > { %v4076_v12 = vpop.f32.mrb[19].mxu0  ;;  %4405 = vmatprep.subr.bf16.mxu0 %v4781_v1  ;;  %4417 = vmatprep.subr.bf16.mxu1 %v4781_v1  ;;  %v4088_v14 = vpop.f32.mrb[19].mxu1 }
 0x12d   : > { %v3576_v12 = vld [vmem:[%s4846_s23 + $0x50] sm:$0x7f] }
 0x12e   : > { %v2300_v13 = vpack.c.bf16 %v3576_v12, %v3576_v12 }
 0x12f   : > { %4406 = vmatpush3.bf16.msra.mxu0 %v5369_v58  ;;  %4418 = vmatpush3.bf16.msra.mxu1 %v5369_v58 }
 0x130   : > { %4407 = vmatprep.subr.bf16.mxu0 %v4781_v1  ;;  %4419 = vmatprep.subr.bf16.mxu1 %v4781_v1 }
 0x133   : > { %4408 = vmatpush3.bf16.msra.mxu0 %v5378_v62  ;;  %4420 = vmatpush3.bf16.msra.mxu1 %v5378_v62 }
 0x134   : > { %4425 = vmatprep.subr.bf16.mxu0 %v4781_v1  ;;  %4437 = vmatprep.subr.bf16.mxu1 %v4781_v1 }
 0x136   : > { %4410 = vmatmul.mubr.msk.bf16.vlgmr.msra.gmra.mrb[72].mxu0 %vm241_vm1, %v1942_v16  ;;  %4422 = vmatmul.mubr.msk.bf16.vlgmr.msra.gmra.mrb[72].mxu1 %vm241_vm1, %v1943_v17 }
 0x137   : > { %4426 = vmatpush3.bf16.msra.mxu0 %v5340_v50  ;;  %4438 = vmatpush3.bf16.msra.mxu1 %v5340_v50 }
 0x138   : > { %4427 = vmatprep.subr.bf16.mxu0 %v4781_v1  ;;  %4439 = vmatprep.subr.bf16.mxu1 %v4781_v1 }
 0x139   : > { %v733_v18 = vpop.f32.mrb[20].mxu0  ;;  %v776_v19 = vpop.f32.mrb[20].mxu1  ;;  %4433 = vmatprep.mubr.msk.bf16.mxu0 %vm4782_vm0, %v4781_v1  ;;  %4445 = vmatprep.mubr.msk.bf16.mxu1 %vm4782_vm0, %v4781_v1 }
 0x13a   : > { %v5429_v20 = vadd.f32 %v733_v18, %v5295_v27  ;;  %v5432_v21 = vadd.f32 %v776_v19, %v5317_v38  ;;  %v4099_v22 = vpop.f32.mrb[21].mxu0  ;;  %v4111_v23 = vpop.f32.mrb[21].mxu1  ;;  %v3550_v27 = vld [vmem:[%s4846_s23 + $0x42] sm:$0x7f] }
 0x13b   : > { %v736_v24 = vpop.f32.mrb[22].mxu0  ;;  %4428 = vmatpush3.bf16.msra.mxu0 %v5351_v51  ;;  %4440 = vmatpush3.bf16.msra.mxu1 %v5351_v51  ;;  %v779_v25 = vpop.f32.mrb[22].mxu1  ;;  %v1944_v30 = vpack.c.bf16 %v3550_v27, %v3550_v27 }
 0x13c   : > { %v4100_v26 = vpop.f32.mrb[23].mxu0  ;;  %4429 = vmatprep.subr.bf16.mxu0 %v4781_v1  ;;  %4441 = vmatprep.subr.bf16.mxu1 %v4781_v1  ;;  %v4112_v28 = vpop.f32.mrb[23].mxu1 }
 0x13d   : > { %v3578_v26 = vld [vmem:[%s4846_s23 + $0x70] sm:$0x7f] }
 0x13e   : > { %v2302_v27 = vpack.c.bf16 %v3578_v26, %v3578_v26  ;;  %v5729_v26 = vld [vmem:[%s5881_s1 + $0x100] sm:$0xff]  }
 0x13f   : > { %4430 = vmatpush3.bf16.msra.mxu0 %v5369_v58  ;;  %4442 = vmatpush3.bf16.msra.mxu1 %v5369_v58 }
 0x140   : > { %4431 = vmatprep.subr.bf16.mxu0 %v4781_v1  ;;  %4443 = vmatprep.subr.bf16.mxu1 %v4781_v1 }
 0x143   : > { %4432 = vmatpush3.bf16.msra.mxu0 %v5378_v62  ;;  %4444 = vmatpush3.bf16.msra.mxu1 %v5378_v62 }
 0x144   : > { %4449 = vmatprep.subr.bf16.mxu0 %v4781_v1  ;;  %4461 = vmatprep.subr.bf16.mxu1 %v4781_v1 }
 0x146   : > { %4434 = vmatmul.mubr.msk.bf16.vlgmr.msra.gmra.mrb[76].mxu0 %vm241_vm1, %v1944_v30  ;;  %4446 = vmatmul.mubr.msk.bf16.vlgmr.msra.gmra.mrb[76].mxu1 %vm241_vm1, %v1945_v31  ;;  %v5600_v30 = vld [vmem:[%s5881_s1 + $0xe8] sm:$0xff]  }
 0x147   : > { %4450 = vmatpush3.bf16.msra.mxu0 %v5340_v50  ;;  %4462 = vmatpush3.bf16.msra.mxu1 %v5340_v50 }
 0x148   : > { %4451 = vmatprep.subr.bf16.mxu0 %v4781_v1  ;;  %4463 = vmatprep.subr.bf16.mxu1 %v4781_v1 }
 0x149   : > { %v819_v32 = vpop.f32.mrb[24].mxu0  ;;  %v862_v33 = vpop.f32.mrb[24].mxu1  ;;  %4457 = vmatprep.mubr.msk.bf16.mxu0 %vm4782_vm0, %v4781_v1  ;;  %4469 = vmatprep.mubr.msk.bf16.mxu1 %vm4782_vm0, %v4781_v1 }
 0x14a   : > { %v5459_v34 = vadd.f32 %v819_v32, %v5319_v39  ;;  %v5462_v35 = vadd.f32 %v862_v33, %v5355_v52  ;;  %v4123_v36 = vpop.f32.mrb[25].mxu0  ;;  %v4135_v37 = vpop.f32.mrb[25].mxu1  ;;  %v3552_v39 = vld [vmem:[%s4846_s23 + $0x62] sm:$0x7f] }
 0x14b   : > { %v822_v38 = vpop.f32.mrb[26].mxu0  ;;  %4452 = vmatpush3.bf16.msra.mxu0 %v5351_v51  ;;  %4464 = vmatpush3.bf16.msra.mxu1 %v5351_v51  ;;  %v865_v40 = vpop.f32.mrb[26].mxu1  ;;  %v1946_v44 = vpack.c.bf16 %v3552_v39, %v3552_v39  ;;  %v5628_v39 = vld [vmem:[%s5881_s1 + $0xf8] sm:$0xff]  }
 0x14c   : > { %v4124_v41 = vpop.f32.mrb[27].mxu0  ;;  %4453 = vmatprep.subr.bf16.mxu0 %v4781_v1  ;;  %4465 = vmatprep.subr.bf16.mxu1 %v4781_v1  ;;  %v4136_v42 = vpop.f32.mrb[27].mxu1  ;;  %v5619_v40 = vld [vmem:[%s5881_s1 + $0xf0] sm:$0xff]  }
 0x14f   : > { %4454 = vmatpush3.bf16.msra.mxu0 %v5369_v58  ;;  %4466 = vmatpush3.bf16.msra.mxu1 %v5369_v58 }
 0x150   : > { %4455 = vmatprep.subr.bf16.mxu0 %v4781_v1  ;;  %4467 = vmatprep.subr.bf16.mxu1 %v4781_v1 }
 0x153   : > { %4456 = vmatpush3.bf16.msra.mxu0 %v5378_v62  ;;  %4468 = vmatpush3.bf16.msra.mxu1 %v5378_v62  ;;  %v2297_v62 = vpack.c.bf16 %v3573_v60, %v3573_v60 }
 0x154   : > { %4473 = vmatprep.subr.bf16.mxu0 %v4781_v1  ;;  %4485 = vmatprep.subr.bf16.mxu1 %v4781_v1 }
 0x156   : > { %4458 = vmatmul.mubr.msk.bf16.vlgmr.msra.gmra.mrb[80].mxu0 %vm241_vm1, %v1946_v44  ;;  %4470 = vmatmul.mubr.msk.bf16.vlgmr.msra.gmra.mrb[80].mxu1 %vm241_vm1, %v1947_v45  ;;  %v3599_v44 = vld [vmem:[%s4846_s23 + $0x21] sm:$0x7f]  ;;  %v2303_v45 = vpack.c.bf16 %v3579_v43, %v3579_v43 }
 0x157   : > { %4474 = vmatpush3.bf16.msra.mxu0 %v5479_v46  ;;  %4486 = vmatpush3.bf16.msra.mxu1 %v5479_v46 }
 0x158   : > { %4475 = vmatprep.subr.bf16.mxu0 %v4781_v1  ;;  %4487 = vmatprep.subr.bf16.mxu1 %v4781_v1 }
 0x159   : > { %v952_v48 = vpop.f32.mrb[28].mxu0  ;;  %v995_v49 = vpop.f32.mrb[28].mxu1  ;;  %4481 = vmatprep.mubr.msk.bf16.mxu0 %vm4782_vm0, %v4781_v1  ;;  %4493 = vmatprep.mubr.msk.bf16.mxu1 %vm4782_vm0, %v4781_v1 }
 0x15a   : > { %v5499_v50 = vadd.f32 %v952_v48, %v5362_v54  ;;  %v5502_v51 = vadd.f32 %v995_v49, %v5399_v6  ;;  %v4147_v52 = vpop.f32.mrb[29].mxu0  ;;  %v4159_v53 = vpop.f32.mrb[29].mxu1 }
 0x15b   : > { %v955_v55 = vpop.f32.mrb[30].mxu0  ;;  %4476 = vmatpush3.bf16.msra.mxu0 %v5490_v47  ;;  %4488 = vmatpush3.bf16.msra.mxu1 %v5490_v47  ;;  %v998_v57 = vpop.f32.mrb[30].mxu1 }
 0x15c   : > { %v4148_v54 = vpop.f32.mrb[31].mxu0  ;;  %4477 = vmatprep.subr.bf16.mxu0 %v4781_v1  ;;  %4489 = vmatprep.subr.bf16.mxu1 %v4781_v1  ;;  %v4160_v58 = vpop.f32.mrb[31].mxu1 }
 0x15d   : > { %v3601_v58 = vld [vmem:[%s4846_s23 + $0x41] sm:$0x7f] }
 0x15e   : > { %v2654_v60 = vpack.c.bf16 %v3601_v58, %v3601_v58 }
 0x15f   : > { %4478 = vmatpush3.bf16.msra.mxu0 %v5509_v56  ;;  %4490 = vmatpush3.bf16.msra.mxu1 %v5509_v56 }
 0x160   : > { %4479 = vmatprep.subr.bf16.mxu0 %v4781_v1  ;;  %4491 = vmatprep.subr.bf16.mxu1 %v4781_v1 }
 0x163   : > { %4480 = vmatpush3.bf16.msra.mxu0 %v5518_v59  ;;  %4492 = vmatpush3.bf16.msra.mxu1 %v5518_v59 }
 0x164   : > { %4497 = vmatprep.subr.bf16.mxu0 %v4781_v1  ;;  %4509 = vmatprep.subr.bf16.mxu1 %v4781_v1 }
 0x166   : > { %4482 = vmatmul.mubr.msk.bf16.vlgmr.msra.gmra.mrb[84].mxu0 %vm241_vm1, %v2297_v62  ;;  %4494 = vmatmul.mubr.msk.bf16.vlgmr.msra.gmra.mrb[84].mxu1 %vm241_vm1, %v2298_v63 }
 0x167   : > { %4498 = vmatpush3.bf16.msra.mxu0 %v5479_v46  ;;  %4510 = vmatpush3.bf16.msra.mxu1 %v5479_v46 }
 0x168   : > { %4499 = vmatprep.subr.bf16.mxu0 %v4781_v1  ;;  %4511 = vmatprep.subr.bf16.mxu1 %v4781_v1 }
 0x169   : > { %v1038_v0 = vpop.f32.mrb[32].mxu0  ;;  %v1081_v2 = vpop.f32.mrb[32].mxu1  ;;  %4505 = vmatprep.mubr.msk.bf16.mxu0 %vm4782_vm0, %v4781_v1  ;;  %4517 = vmatprep.mubr.msk.bf16.mxu1 %vm4782_vm0, %v4781_v1 }
 0x16a   : > { %v5539_v3 = vadd.f32 %v1038_v0, %v5402_v7  ;;  %v5542_v4 = vadd.f32 %v1081_v2, %v5429_v20  ;;  %v4171_v5 = vpop.f32.mrb[33].mxu0  ;;  %v4183_v6 = vpop.f32.mrb[33].mxu1  ;;  %v3575_v7 = vld [vmem:[%s4846_s23 + $0x40] sm:$0x7f] }
 0x16b   : > { %v1041_v8 = vpop.f32.mrb[34].mxu0  ;;  %4500 = vmatpush3.bf16.msra.mxu0 %v5490_v47  ;;  %4512 = vmatpush3.bf16.msra.mxu1 %v5490_v47  ;;  %v1084_v9 = vpop.f32.mrb[34].mxu1  ;;  %v2299_v14 = vpack.c.bf16 %v3575_v7, %v3575_v7 }
 0x16c   : > { %v4172_v10 = vpop.f32.mrb[35].mxu0  ;;  %4501 = vmatprep.subr.bf16.mxu0 %v4781_v1  ;;  %4513 = vmatprep.subr.bf16.mxu1 %v4781_v1  ;;  %v4184_v11 = vpop.f32.mrb[35].mxu1 }
 0x16d   : > { %v3603_v10 = vld [vmem:[%s4846_s23 + $0x61] sm:$0x7f] }
 0x16e   : > { %v2656_v7 = vpack.c.bf16 %v3603_v10, %v3603_v10 }
 0x16f   : > { %4502 = vmatpush3.bf16.msra.mxu0 %v5509_v56  ;;  %4514 = vmatpush3.bf16.msra.mxu1 %v5509_v56 }
 0x170   : > { %4503 = vmatprep.subr.bf16.mxu0 %v4781_v1  ;;  %4515 = vmatprep.subr.bf16.mxu1 %v4781_v1 }
 0x173   : > { %4504 = vmatpush3.bf16.msra.mxu0 %v5518_v59  ;;  %4516 = vmatpush3.bf16.msra.mxu1 %v5518_v59 }
 0x174   : > { %4521 = vmatprep.subr.bf16.mxu0 %v4781_v1  ;;  %4533 = vmatprep.subr.bf16.mxu1 %v4781_v1 }
 0x176   : > { %4506 = vmatmul.mubr.msk.bf16.vlgmr.msra.gmra.mrb[88].mxu0 %vm241_vm1, %v2299_v14  ;;  %4518 = vmatmul.mubr.msk.bf16.vlgmr.msra.gmra.mrb[88].mxu1 %vm241_vm1, %v2300_v13 }
 0x177   : > { %4522 = vmatpush3.bf16.msra.mxu0 %v5479_v46  ;;  %4534 = vmatpush3.bf16.msra.mxu1 %v5479_v46 }
 0x178   : > { %4523 = vmatprep.subr.bf16.mxu0 %v4781_v1  ;;  %4535 = vmatprep.subr.bf16.mxu1 %v4781_v1 }
 0x179   : > { %v1124_v15 = vpop.f32.mrb[36].mxu0  ;;  %v1167_v16 = vpop.f32.mrb[36].mxu1  ;;  %4529 = vmatprep.mubr.msk.bf16.mxu0 %vm4782_vm0, %v4781_v1  ;;  %4541 = vmatprep.mubr.msk.bf16.mxu1 %vm4782_vm0, %v4781_v1 }
 0x17a   : > { %v5569_v17 = vadd.f32 %v1124_v15, %v5432_v21  ;;  %v5572_v18 = vadd.f32 %v1167_v16, %v5459_v34  ;;  %v4195_v19 = vpop.f32.mrb[37].mxu0  ;;  %v4207_v20 = vpop.f32.mrb[37].mxu1  ;;  %v3577_v21 = vld [vmem:[%s4846_s23 + $0x60] sm:$0x7f] }
 0x17b   : > { %v1127_v22 = vpop.f32.mrb[38].mxu0  ;;  %4524 = vmatpush3.bf16.msra.mxu0 %v5490_v47  ;;  %4536 = vmatpush3.bf16.msra.mxu1 %v5490_v47  ;;  %v1170_v23 = vpop.f32.mrb[38].mxu1  ;;  %v2301_v28 = vpack.c.bf16 %v3577_v21, %v3577_v21 }
 0x17c   : > { %v4196_v24 = vpop.f32.mrb[39].mxu0  ;;  %4525 = vmatprep.subr.bf16.mxu0 %v4781_v1  ;;  %4537 = vmatprep.subr.bf16.mxu1 %v4781_v1  ;;  %v4208_v25 = vpop.f32.mrb[39].mxu1 }
 0x17d   : > { %v3605_v24 = vld [vmem:[%s4846_s23 + $0x81] sm:$0x7f] }
 0x17e   : > { %v2658_v21 = vpack.c.bf16 %v3605_v24, %v3605_v24 }
 0x17f   : > { %4526 = vmatpush3.bf16.msra.mxu0 %v5509_v56  ;;  %4538 = vmatpush3.bf16.msra.mxu1 %v5509_v56 }
 0x180   : > { %4527 = vmatprep.subr.bf16.mxu0 %v4781_v1  ;;  %4539 = vmatprep.subr.bf16.mxu1 %v4781_v1 }
 0x183   : > { %4528 = vmatpush3.bf16.msra.mxu0 %v5518_v59  ;;  %4540 = vmatpush3.bf16.msra.mxu1 %v5518_v59 }
 0x184   : > { %4545 = vmatprep.subr.bf16.mxu0 %v4781_v1  ;;  %4557 = vmatprep.subr.bf16.mxu1 %v4781_v1 }
 0x186   : > { %4530 = vmatmul.mubr.msk.bf16.vlgmr.msra.gmra.mrb[92].mxu0 %vm241_vm1, %v2301_v28  ;;  %4542 = vmatmul.mubr.msk.bf16.vlgmr.msra.gmra.mrb[92].mxu1 %vm241_vm1, %v2302_v27  ;;  %v5740_v28 = vld [vmem:[%s5881_s1 + $0x108] sm:$0xff]  }
 0x187   : > { %4546 = vmatpush3.bf16.msra.mxu0 %v5479_v46  ;;  %4558 = vmatpush3.bf16.msra.mxu1 %v5589_v29  ;;  %v2652_v46 = vpack.c.bf16 %v3599_v44, %v3599_v44 }
 0x188   : > { %4547 = vmatprep.subr.bf16.mxu0 %v4781_v1  ;;  %4559 = vmatprep.subr.bf16.mxu1 %v4781_v1 }
 0x189   : > { %v1210_v31 = vpop.f32.mrb[40].mxu0  ;;  %v1308_v32 = vpop.f32.mrb[40].mxu1  ;;  %4553 = vmatprep.mubr.msk.bf16.mxu0 %vm4782_vm0, %v4781_v1  ;;  %4565 = vmatprep.mubr.msk.bf16.mxu1 %vm4782_vm0, %v4781_v1 }
 0x18a   : > { %v5609_v33 = vadd.f32 %v1210_v31, %v5462_v35  ;;  %v5612_v34 = vadd.f32 %v1308_v32, %v5499_v50  ;;  %v4219_v36 = vpop.f32.mrb[41].mxu0  ;;  %v4231_v37 = vpop.f32.mrb[41].mxu1 }
 0x18b   : > { %v1213_v38 = vpop.f32.mrb[42].mxu0  ;;  %4548 = vmatpush3.bf16.msra.mxu0 %v5490_v47  ;;  %4560 = vmatpush3.bf16.msra.mxu1 %v5600_v30  ;;  %v1311_v41 = vpop.f32.mrb[42].mxu1  ;;  %v5759_v37 = vld [vmem:[%s5881_s1 + $0x110] sm:$0xff]  }
 0x18c   : > { %v4220_v35 = vpop.f32.mrb[43].mxu0  ;;  %4549 = vmatprep.subr.bf16.mxu0 %v4781_v1  ;;  %4561 = vmatprep.subr.bf16.mxu1 %v4781_v1  ;;  %v4232_v42 = vpop.f32.mrb[43].mxu1  ;;  %v5768_v41 = vld [vmem:[%s5881_s1 + $0x118] sm:$0xff]  }
 0x18d   : > { %v3625_v35 = vld [vmem:[%s4846_s23 + $0x22] sm:$0x7f]  ;;  %v3626_v42 = vld [vmem:[%s4846_s23 + $0x32] sm:$0x7f] }
 0x18e   : > { %v3008_v43 = vpack.c.bf16 %v3626_v42, %v3626_v42 }
 0x18f   : > { %4550 = vmatpush3.bf16.msra.mxu0 %v5509_v56  ;;  %4562 = vmatpush3.bf16.msra.mxu1 %v5619_v40 }
 0x190   : > { %4551 = vmatprep.subr.bf16.mxu0 %v4781_v1  ;;  %4563 = vmatprep.subr.bf16.mxu1 %v4781_v1 }
 0x193   : > { %4552 = vmatpush3.bf16.msra.mxu0 %v5518_v59  ;;  %4564 = vmatpush3.bf16.msra.mxu1 %v5628_v39 }
 0x194   : > { %4569 = vmatprep.subr.bf16.mxu0 %v4781_v1  ;;  %4581 = vmatprep.subr.bf16.mxu1 %v4781_v1 }
 0x196   : > { %4554 = vmatmul.mubr.msk.bf16.vlgmr.msra.gmra.mrb[96].mxu0 %vm241_vm1, %v2303_v45  ;;  %4566 = vmatmul.mubr.msk.bf16.vlgmr.msra.gmra.mrb[96].mxu1 %vm241_vm1, %v2652_v46 }
 0x197   : > { %4570 = vmatpush3.bf16.msra.mxu0 %v5589_v29  ;;  %4582 = vmatpush3.bf16.msra.mxu1 %v5589_v29 }
 0x198   : > { %4571 = vmatprep.subr.bf16.mxu0 %v4781_v1  ;;  %4583 = vmatprep.subr.bf16.mxu1 %v4781_v1 }
 0x199   : > { %v1351_v47 = vpop.f32.mrb[44].mxu0  ;;  %v1394_v48 = vpop.f32.mrb[44].mxu1  ;;  %4577 = vmatprep.mubr.msk.bf16.mxu0 %vm4782_vm0, %v4781_v1  ;;  %4589 = vmatprep.mubr.msk.bf16.mxu1 %vm4782_vm0, %v4781_v1 }
 0x19a   : > { %v5649_v49 = vadd.f32 %v1351_v47, %v5502_v51  ;;  %v5652_v50 = vadd.f32 %v1394_v48, %v5539_v3  ;;  %v4243_v52 = vpop.f32.mrb[45].mxu0  ;;  %v4255_v53 = vpop.f32.mrb[45].mxu1  ;;  %v3600_v51 = vld [vmem:[%s4846_s23 + $0x31] sm:$0x7f] }
 0x19b   : > { %v1354_v55 = vpop.f32.mrb[46].mxu0  ;;  %4572 = vmatpush3.bf16.msra.mxu0 %v5600_v30  ;;  %4584 = vmatpush3.bf16.msra.mxu1 %v5600_v30  ;;  %v1397_v56 = vpop.f32.mrb[46].mxu1  ;;  %v2653_v59 = vpack.c.bf16 %v3600_v51, %v3600_v51 }
 0x19c   : > { %v4244_v57 = vpop.f32.mrb[47].mxu0  ;;  %4573 = vmatprep.subr.bf16.mxu0 %v4781_v1  ;;  %4585 = vmatprep.subr.bf16.mxu1 %v4781_v1  ;;  %v4256_v54 = vpop.f32.mrb[47].mxu1 }
 0x19d   : > { %v3628_v57 = vld [vmem:[%s4846_s23 + $0x52] sm:$0x7f] }
 0x19e   : > { %v3010_v51 = vpack.c.bf16 %v3628_v57, %v3628_v57 }
 0x19f   : > { %4574 = vmatpush3.bf16.msra.mxu0 %v5619_v40  ;;  %4586 = vmatpush3.bf16.msra.mxu1 %v5619_v40 }
 0x1a0   : > { %4575 = vmatprep.subr.bf16.mxu0 %v4781_v1  ;;  %4587 = vmatprep.subr.bf16.mxu1 %v4781_v1 }
 0x1a3   : > { %4576 = vmatpush3.bf16.msra.mxu0 %v5628_v39  ;;  %4588 = vmatpush3.bf16.msra.mxu1 %v5628_v39 }
 0x1a4   : > { %4593 = vmatprep.subr.bf16.mxu0 %v4781_v1  ;;  %4605 = vmatprep.subr.bf16.mxu1 %v4781_v1 }
 0x1a6   : > { %4578 = vmatmul.mubr.msk.bf16.vlgmr.msra.gmra.mrb[100].mxu0 %vm241_vm1, %v2653_v59  ;;  %4590 = vmatmul.mubr.msk.bf16.vlgmr.msra.gmra.mrb[100].mxu1 %vm241_vm1, %v2654_v60 }
 0x1a7   : > { %4594 = vmatpush3.bf16.msra.mxu0 %v5589_v29  ;;  %4606 = vmatpush3.bf16.msra.mxu1 %v5589_v29 }
 0x1a8   : > { %4595 = vmatprep.subr.bf16.mxu0 %v4781_v1  ;;  %4607 = vmatprep.subr.bf16.mxu1 %v4781_v1 }
 0x1a9   : > { %v1437_v61 = vpop.f32.mrb[48].mxu0  ;;  %v1480_v62 = vpop.f32.mrb[48].mxu1  ;;  %4601 = vmatprep.mubr.msk.bf16.mxu0 %vm4782_vm0, %v4781_v1  ;;  %4613 = vmatprep.mubr.msk.bf16.mxu1 %vm4782_vm0, %v4781_v1 }
 0x1aa   : > { %v5679_v63 = vadd.f32 %v1437_v61, %v5542_v4  ;;  %v5682_v0 = vadd.f32 %v1480_v62, %v5569_v17  ;;  %v4267_v2 = vpop.f32.mrb[49].mxu0  ;;  %v4279_v3 = vpop.f32.mrb[49].mxu1  ;;  %v3602_v4 = vld [vmem:[%s4846_s23 + $0x51] sm:$0x7f] }
 0x1ab   : > { %v1440_v5 = vpop.f32.mrb[50].mxu0  ;;  %4596 = vmatpush3.bf16.msra.mxu0 %v5600_v30  ;;  %4608 = vmatpush3.bf16.msra.mxu1 %v5600_v30  ;;  %v1483_v6 = vpop.f32.mrb[50].mxu1  ;;  %v2655_v11 = vpack.c.bf16 %v3602_v4, %v3602_v4 }
 0x1ac   : > { %v4268_v8 = vpop.f32.mrb[51].mxu0  ;;  %4597 = vmatprep.subr.bf16.mxu0 %v4781_v1  ;;  %4609 = vmatprep.subr.bf16.mxu1 %v4781_v1  ;;  %v4280_v9 = vpop.f32.mrb[51].mxu1 }
 0x1ad   : > { %v3630_v8 = vld [vmem:[%s4846_s23 + $0x72] sm:$0x7f] }
 0x1ae   : > { %v3012_v4 = vpack.c.bf16 %v3630_v8, %v3630_v8 }
 0x1af   : > { %4598 = vmatpush3.bf16.msra.mxu0 %v5619_v40  ;;  %4610 = vmatpush3.bf16.msra.mxu1 %v5619_v40 }
 0x1b0   : > { %4599 = vmatprep.subr.bf16.mxu0 %v4781_v1  ;;  %4611 = vmatprep.subr.bf16.mxu1 %v4781_v1 }
 0x1b3   : > { %4600 = vmatpush3.bf16.msra.mxu0 %v5628_v39  ;;  %4612 = vmatpush3.bf16.msra.mxu1 %v5628_v39 }
 0x1b4   : > { %4617 = vmatprep.subr.bf16.mxu0 %v4781_v1  ;;  %4629 = vmatprep.subr.bf16.mxu1 %v4781_v1 }
 0x1b6   : > { %4602 = vmatmul.mubr.msk.bf16.vlgmr.msra.gmra.mrb[104].mxu0 %vm241_vm1, %v2655_v11  ;;  %4614 = vmatmul.mubr.msk.bf16.vlgmr.msra.gmra.mrb[104].mxu1 %vm241_vm1, %v2656_v7 }
 0x1b7   : > { %4618 = vmatpush3.bf16.msra.mxu0 %v5589_v29  ;;  %4630 = vmatpush3.bf16.msra.mxu1 %v5589_v29 }
 0x1b8   : > { %4619 = vmatprep.subr.bf16.mxu0 %v4781_v1  ;;  %4631 = vmatprep.subr.bf16.mxu1 %v4781_v1 }
 0x1b9   : > { %v1523_v12 = vpop.f32.mrb[52].mxu0  ;;  %v1566_v14 = vpop.f32.mrb[52].mxu1  ;;  %4625 = vmatprep.mubr.msk.bf16.mxu0 %vm4782_vm0, %v4781_v1  ;;  %4637 = vmatprep.mubr.msk.bf16.mxu1 %vm4782_vm0, %v4781_v1 }
 0x1ba   : > { %v5709_v13 = vadd.f32 %v1523_v12, %v5572_v18  ;;  %v5712_v15 = vadd.f32 %v1566_v14, %v5609_v33  ;;  %v4291_v16 = vpop.f32.mrb[53].mxu0  ;;  %v4303_v17 = vpop.f32.mrb[53].mxu1  ;;  %v3604_v18 = vld [vmem:[%s4846_s23 + $0x71] sm:$0x7f] }
 0x1bb   : > { %v1526_v19 = vpop.f32.mrb[54].mxu0  ;;  %4620 = vmatpush3.bf16.msra.mxu0 %v5600_v30  ;;  %4632 = vmatpush3.bf16.msra.mxu1 %v5600_v30  ;;  %v1569_v20 = vpop.f32.mrb[54].mxu1  ;;  %v2657_v25 = vpack.c.bf16 %v3604_v18, %v3604_v18 }
 0x1bc   : > { %v4292_v22 = vpop.f32.mrb[55].mxu0  ;;  %4621 = vmatprep.subr.bf16.mxu0 %v4781_v1  ;;  %4633 = vmatprep.subr.bf16.mxu1 %v4781_v1  ;;  %v4304_v23 = vpop.f32.mrb[55].mxu1 }
 0x1bd   : > { %v3631_v22 = vld [vmem:[%s4846_s23 + $0x82] sm:$0x7f] }
 0x1be   : > { %v3013_v23 = vpack.c.bf16 %v3631_v22, %v3631_v22 }
 0x1bf   : > { %4622 = vmatpush3.bf16.msra.mxu0 %v5619_v40  ;;  %4634 = vmatpush3.bf16.msra.mxu1 %v5619_v40 }
 0x1c0   : > { %4623 = vmatprep.subr.bf16.mxu0 %v4781_v1  ;;  %4635 = vmatprep.subr.bf16.mxu1 %v4781_v1 }
 0x1c3   : > { %4624 = vmatpush3.bf16.msra.mxu0 %v5628_v39  ;;  %4636 = vmatpush3.bf16.msra.mxu1 %v5628_v39  ;;  %v3007_v39 = vpack.c.bf16 %v3625_v35, %v3625_v35 }
 0x1c4   : > { %4641 = vmatprep.subr.bf16.mxu0 %v4781_v1  ;;  %4653 = vmatprep.subr.bf16.mxu1 %v4781_v1 }
 0x1c6   : > { %4626 = vmatmul.mubr.msk.bf16.vlgmr.msra.gmra.mrb[108].mxu0 %vm241_vm1, %v2657_v25  ;;  %4638 = vmatmul.mubr.msk.bf16.vlgmr.msra.gmra.mrb[108].mxu1 %vm241_vm1, %v2658_v21 }
 0x1c7   : > { %4642 = vmatpush3.bf16.msra.mxu0 %v5729_v26  ;;  %4654 = vmatpush3.bf16.msra.mxu1 %v5729_v26 }
 0x1c8   : > { %4643 = vmatprep.subr.bf16.mxu0 %v4781_v1  ;;  %4655 = vmatprep.subr.bf16.mxu1 %v4781_v1 }
 0x1c9   : > { %v1663_v27 = vpop.f32.mrb[56].mxu0  ;;  %v1706_v29 = vpop.f32.mrb[56].mxu1  ;;  %4649 = vmatprep.mubr.msk.bf16.mxu0 %vm4782_vm0, %v4781_v1  ;;  %4661 = vmatprep.mubr.msk.bf16.mxu1 %vm4782_vm0, %v4781_v1 }
 0x1ca   : > { %v5749_v30 = vadd.f32 %v1663_v27, %v5612_v34  ;;  %v5752_v31 = vadd.f32 %v1706_v29, %v5649_v49  ;;  %v4315_v32 = vpop.f32.mrb[57].mxu0  ;;  %v4327_v33 = vpop.f32.mrb[57].mxu1 }
 0x1cb   : > { %v1666_v36 = vpop.f32.mrb[58].mxu0  ;;  %4644 = vmatpush3.bf16.msra.mxu0 %v5740_v28  ;;  %4656 = vmatpush3.bf16.msra.mxu1 %v5740_v28  ;;  %v1709_v38 = vpop.f32.mrb[58].mxu1 }
 0x1cc   : > { %v4316_v34 = vpop.f32.mrb[59].mxu0  ;;  %4645 = vmatprep.subr.bf16.mxu0 %v4781_v1  ;;  %4657 = vmatprep.subr.bf16.mxu1 %v4781_v1  ;;  %v4328_v40 = vpop.f32.mrb[59].mxu1 }
 0x1cf   : > { %4646 = vmatpush3.bf16.msra.mxu0 %v5759_v37  ;;  %4658 = vmatpush3.bf16.msra.mxu1 %v5759_v37 }
 0x1d0   : > { %4647 = vmatprep.subr.bf16.mxu0 %v4781_v1  ;;  %4659 = vmatprep.subr.bf16.mxu1 %v4781_v1 }
 0x1d3   : > { %4648 = vmatpush3.bf16.msra.mxu0 %v5768_v41  ;;  %4660 = vmatpush3.bf16.msra.mxu1 %v5768_v41 }
 0x1d4   : > { %4665 = vmatprep.subr.bf16.mxu0 %v4781_v1  ;;  %4677 = vmatprep.subr.bf16.mxu1 %v4781_v1 }
 0x1d6   : > { %4650 = vmatmul.mubr.msk.bf16.vlgmr.msra.gmra.mrb[112].mxu0 %vm241_vm1, %v3007_v39  ;;  %4662 = vmatmul.mubr.msk.bf16.vlgmr.msra.gmra.mrb[112].mxu1 %vm241_vm1, %v3008_v43 }
 0x1d7   : > { %4666 = vmatpush3.bf16.msra.mxu0 %v5729_v26  ;;  %4678 = vmatpush3.bf16.msra.mxu1 %v5729_v26 }
 0x1d8   : > { %4667 = vmatprep.subr.bf16.mxu0 %v4781_v1  ;;  %4679 = vmatprep.subr.bf16.mxu1 %v4781_v1 }
 0x1d9   : > { %v1749_v44 = vpop.f32.mrb[60].mxu0  ;;  %v1792_v45 = vpop.f32.mrb[60].mxu1  ;;  %4673 = vmatprep.mubr.msk.bf16.mxu0 %vm4782_vm0, %v4781_v1  ;;  %4685 = vmatprep.mubr.msk.bf16.mxu1 %vm4782_vm0, %v4781_v1 }
 0x1da   : > { %v5789_v46 = vadd.f32 %v1749_v44, %v5652_v50  ;;  %v5792_v47 = vadd.f32 %v1792_v45, %v5679_v63  ;;  %v4339_v48 = vpop.f32.mrb[61].mxu0  ;;  %v4351_v49 = vpop.f32.mrb[61].mxu1  ;;  %v3627_v50 = vld [vmem:[%s4846_s23 + $0x42] sm:$0x7f] }
 0x1db   : > { %v1752_v52 = vpop.f32.mrb[62].mxu0  ;;  %4668 = vmatpush3.bf16.msra.mxu0 %v5740_v28  ;;  %4680 = vmatpush3.bf16.msra.mxu1 %v5740_v28  ;;  %v1795_v53 = vpop.f32.mrb[62].mxu1  ;;  %v3009_v54 = vpack.c.bf16 %v3627_v50, %v3627_v50 }
 0x1dc   : > { %v4340_v55 = vpop.f32.mrb[63].mxu0  ;;  %4669 = vmatprep.subr.bf16.mxu0 %v4781_v1  ;;  %4681 = vmatprep.subr.bf16.mxu1 %v4781_v1  ;;  %v4352_v56 = vpop.f32.mrb[63].mxu1 }
 0x1df   : > { %4670 = vmatpush3.bf16.msra.mxu0 %v5759_v37  ;;  %4682 = vmatpush3.bf16.msra.mxu1 %v5759_v37 }
 0x1e0   : > { %4671 = vmatprep.subr.bf16.mxu0 %v4781_v1  ;;  %4683 = vmatprep.subr.bf16.mxu1 %v4781_v1 }
 0x1e3   : > { %4672 = vmatpush3.bf16.msra.mxu0 %v5768_v41  ;;  %4684 = vmatpush3.bf16.msra.mxu1 %v5768_v41 }
 0x1e4   : > { %4689 = vmatprep.subr.bf16.mxu0 %v4781_v1  ;;  %4701 = vmatprep.subr.bf16.mxu1 %v4781_v1 }
 0x1e6   : > { %4674 = vmatmul.mubr.msk.bf16.vlgmr.msra.gmra.mrb[116].mxu0 %vm241_vm1, %v3009_v54  ;;  %4686 = vmatmul.mubr.msk.bf16.vlgmr.msra.gmra.mrb[116].mxu1 %vm241_vm1, %v3010_v51 }
 0x1e7   : > { %4690 = vmatpush3.bf16.msra.mxu0 %v5729_v26  ;;  %4702 = vmatpush3.bf16.msra.mxu1 %v5729_v26 }
 0x1e8   : > { %4691 = vmatprep.subr.bf16.mxu0 %v4781_v1  ;;  %4703 = vmatprep.subr.bf16.mxu1 %v4781_v1 }
 0x1e9   : > { %v1835_v58 = vpop.f32.mrb[64].mxu0  ;;  %v1878_v59 = vpop.f32.mrb[64].mxu1  ;;  %4697 = vmatprep.mubr.msk.bf16.mxu0 %vm4782_vm0, %v4781_v1  ;;  %4709 = vmatprep.mubr.msk.bf16.mxu1 %vm4782_vm0, %v4781_v1 }
 0x1ea   : > { %v1931_v60 = vadd.f32 %v1835_v58, %v5682_v0  ;;  %v5820_v61 = vadd.f32 %v1878_v59, %v5709_v13  ;;  %v4363_v62 = vpop.f32.mrb[65].mxu0  ;;  %v4375_v63 = vpop.f32.mrb[65].mxu1  ;;  %v3629_v0 = vld [vmem:[%s4846_s23 + $0x62] sm:$0x7f]  ;;  %s4726_s23 = smul.u32 56, %s5885_s13 }
 0x1eb   : > { %v1838_v2 = vpop.f32.mrb[66].mxu0  ;;  %4692 = vmatpush3.bf16.msra.mxu0 %v5740_v28  ;;  %4704 = vmatpush3.bf16.msra.mxu1 %v5740_v28  ;;  %v1881_v3 = vpop.f32.mrb[66].mxu1  ;;  %v3011_v9 = vpack.c.bf16 %v3629_v0, %v3629_v0 }
 0x1ec   : > { %v4364_v5 = vpop.f32.mrb[67].mxu0  ;;  %4693 = vmatprep.subr.bf16.mxu0 %v4781_v1  ;;  %4705 = vmatprep.subr.bf16.mxu1 %v4781_v1  ;;  %v4376_v6 = vpop.f32.mrb[67].mxu1  ;;  %s5861_s13 = scalar_lea.vmem %s5883_s3, %s4726_s23 }
 0x1ef   : > { %4694 = vmatpush3.bf16.msra.mxu0 %v5759_v37  ;;  %4706 = vmatpush3.bf16.msra.mxu1 %v5759_v37 }
 0x1f0   : > { %4695 = vmatprep.subr.bf16.mxu0 %v4781_v1  ;;  %4707 = vmatprep.subr.bf16.mxu1 %v4781_v1 }
 0x1f3   : > { %4696 = vmatpush3.bf16.msra.mxu0 %v5768_v41  ;;  %4708 = vmatpush3.bf16.msra.mxu1 %v5768_v41 }
 0x1f4   : > { %4713 = vmatprep.subr.bf16.mxu0 %v4781_v1 }
 0x1f6   : > { %4698 = vmatmul.mubr.msk.bf16.vlgmr.msra.gmra.mrb[120].mxu0 %vm241_vm1, %v3011_v9  ;;  %4710 = vmatmul.mubr.msk.bf16.vlgmr.msra.gmra.mrb[120].mxu1 %vm241_vm1, %v3012_v4 }
 0x1f7   : > { %4714 = vmatpush3.bf16.msra.mxu0 %v5729_v26  ;;  %4721 = vmatprep.mubr.msk.bf16.mxu0 %vm4782_vm0, %v4781_v1 }
 0x1f8   : > { %4715 = vmatprep.subr.bf16.mxu0 %v4781_v1 }
 0x1f9   : > { %v1921_v10 = vpop.f32.mrb[68].mxu0  ;;  %v2018_v11 = vpop.f32.mrb[68].mxu1 }
 0x1fa   : > { %v1933_v7 = vadd.f32 %v1921_v10, %v5712_v15  ;;  %v2282_v12 = vadd.f32 %v2018_v11, %v5749_v30  ;;  %v4387_v14 = vpop.f32.mrb[69].mxu0  ;;  %v4399_v13 = vpop.f32.mrb[69].mxu1 }
 0x1fb   : > { %v1924_v16 = vpop.f32.mrb[70].mxu0  ;;  %4716 = vmatpush3.bf16.msra.mxu0 %v5740_v28  ;;  %v2021_v17 = vpop.f32.mrb[70].mxu1 }
 0x1fc   : > { %v4388_v19 = vpop.f32.mrb[71].mxu0  ;;  %4717 = vmatprep.subr.bf16.mxu0 %v4781_v1  ;;  %v4400_v20 = vpop.f32.mrb[71].mxu1 }
 0x1ff   : > { %4718 = vmatpush3.bf16.msra.mxu0 %v5759_v37 }
 0x200   : > { %4719 = vmatprep.subr.bf16.mxu0 %v4781_v1 }
 0x203   : > { %4720 = vmatpush3.bf16.msra.mxu0 %v5768_v41 }
 0x206   : > { %4722 = vmatmul.mubr.msk.bf16.vlgmr.msra.gmra.mrb[124].mxu0 %vm241_vm1, %v3013_v23 }
 0x209   : > { %v2061_v15 = vpop.f32.mrb[72].mxu0  ;;  %v2104_v18 = vpop.f32.mrb[72].mxu1 }
 0x20a   : > { %v2283_v24 = vadd.f32 %v2061_v15, %v5752_v31  ;;  %v2284_v25 = vadd.f32 %v2104_v18, %v5789_v46  ;;  %v4411_v21 = vpop.f32.mrb[73].mxu0  ;;  %v4423_v26 = vpop.f32.mrb[73].mxu1 }
 0x20b   : > { %v2064_v28 = vpop.f32.mrb[74].mxu0  ;;  %v2107_v27 = vpop.f32.mrb[74].mxu1 }
 0x20c   : > { %v4412_v29 = vpop.f32.mrb[75].mxu0  ;;  %v4424_v30 = vpop.f32.mrb[75].mxu1 }
 0x219   : > { %v2147_v32 = vpop.f32.mrb[76].mxu0  ;;  %v2190_v33 = vpop.f32.mrb[76].mxu1 }
 0x21a   : > { %v2285_v1 = vadd.f32 %v2147_v32, %v5792_v47  ;;  %v2286_v36 = vadd.f32 %v2190_v33, %v1931_v60  ;;  %v4435_v37 = vpop.f32.mrb[77].mxu0  ;;  %v4447_v38 = vpop.f32.mrb[77].mxu1 }
 0x21b   : > { %v2150_v34 = vpop.f32.mrb[78].mxu0  ;;  %v2193_v40 = vpop.f32.mrb[78].mxu1 }
 0x21c   : > { %v4436_v41 = vpop.f32.mrb[79].mxu0  ;;  %v4448_v35 = vpop.f32.mrb[79].mxu1 }
 0x229   : > { %v2233_v31 = vpop.f32.mrb[80].mxu0  ;;  %v2276_v42 = vpop.f32.mrb[80].mxu1 }
 0x22a   : > { %v2287_v39 = vadd.f32 %v2233_v31, %v5820_v61  ;;  %v2288_v43 = vadd.f32 %v2276_v42, %v1933_v7  ;;  %v4459_v44 = vpop.f32.mrb[81].mxu0  ;;  %v4471_v45 = vpop.f32.mrb[81].mxu1 }
 0x22b   : > { %v2236_v46 = vpop.f32.mrb[82].mxu0  ;;  %v2279_v48 = vpop.f32.mrb[82].mxu1 }
 0x22c   : > { %v4460_v49 = vpop.f32.mrb[83].mxu0  ;;  %v4472_v52 = vpop.f32.mrb[83].mxu1 }
 0x239   : > { %v2374_v53 = vpop.f32.mrb[84].mxu0  ;;  %v2417_v47 = vpop.f32.mrb[84].mxu1 }
 0x23a   : > { %v2638_v55 = vadd.f32 %v2374_v53, %v2282_v12  ;;  %v2639_v56 = vadd.f32 %v2417_v47, %v2283_v24  ;;  %v4483_v50 = vpop.f32.mrb[85].mxu0  ;;  %v4495_v57 = vpop.f32.mrb[85].mxu1 }
 0x23b   : > { %v2377_v54 = vpop.f32.mrb[86].mxu0  ;;  %v2420_v51 = vpop.f32.mrb[86].mxu1 }
 0x23c   : > { %v4484_v58 = vpop.f32.mrb[87].mxu0  ;;  %v4496_v59 = vpop.f32.mrb[87].mxu1  ;;  %v3651_v51 = vld [vmem:[%s5882_s2] ss:$0 sm:$0xff] }
 0x249   : > { %v2460_v60 = vpop.f32.mrb[88].mxu0  ;;  %v2503_v62 = vpop.f32.mrb[88].mxu1 }
 0x24a   : > { %v2640_v61 = vadd.f32 %v2460_v60, %v2284_v25  ;;  %v2641_v63 = vadd.f32 %v2503_v62, %v2285_v1  ;;  %v4507_v2 = vpop.f32.mrb[89].mxu0  ;;  %v4519_v3 = vpop.f32.mrb[89].mxu1 }
 0x24b   : > { %v2463_v5 = vpop.f32.mrb[90].mxu0  ;;  %v2506_v6 = vpop.f32.mrb[90].mxu1 }
 0x24c   : > { %v4508_v0 = vpop.f32.mrb[91].mxu0  ;;  %v4520_v8 = vpop.f32.mrb[91].mxu1 }
 0x259   : > { %v2546_v9 = vpop.f32.mrb[92].mxu0  ;;  %v2589_v4 = vpop.f32.mrb[92].mxu1 }
 0x25a   : > { %v2642_v10 = vadd.f32 %v2546_v9, %v2286_v36  ;;  %v2643_v11 = vadd.f32 %v2589_v4, %v2287_v39  ;;  %v4531_v7 = vpop.f32.mrb[93].mxu0  ;;  %v4543_v12 = vpop.f32.mrb[93].mxu1 }
 0x25b   : > { %v2549_v14 = vpop.f32.mrb[94].mxu0  ;;  %v2592_v13 = vpop.f32.mrb[94].mxu1 }
 0x25c   : > { %v4532_v16 = vpop.f32.mrb[95].mxu0  ;;  %v4544_v17 = vpop.f32.mrb[95].mxu1 }
 0x269   : > { %v2632_v19 = vpop.f32.mrb[96].mxu0  ;;  %v2729_v20 = vpop.f32.mrb[96].mxu1 }
 0x26a   : > { %v2644_v22 = vadd.f32 %v2632_v19, %v2288_v43  ;;  %v2993_v23 = vadd.f32 %v2729_v20, %v2638_v55  ;;  %v4555_v15 = vpop.f32.mrb[97].mxu0  ;;  %v4567_v18 = vpop.f32.mrb[97].mxu1 }
 0x26b   : > { %v2635_v24 = vpop.f32.mrb[98].mxu0  ;;  %v2732_v25 = vpop.f32.mrb[98].mxu1 }
 0x26c   : > { %v4556_v21 = vpop.f32.mrb[99].mxu0  ;;  %v4568_v26 = vpop.f32.mrb[99].mxu1 }
 0x279   : > { %v2772_v28 = vpop.f32.mrb[100].mxu0  ;;  %v2815_v27 = vpop.f32.mrb[100].mxu1 }
 0x27a   : > { %v2994_v29 = vadd.f32 %v2772_v28, %v2639_v56  ;;  %v2995_v30 = vadd.f32 %v2815_v27, %v2640_v61  ;;  %v4579_v32 = vpop.f32.mrb[101].mxu0  ;;  %v4591_v33 = vpop.f32.mrb[101].mxu1 }
 0x27b   : > { %v2775_v1 = vpop.f32.mrb[102].mxu0  ;;  %v2818_v36 = vpop.f32.mrb[102].mxu1 }
 0x27c   : > { %v4580_v37 = vpop.f32.mrb[103].mxu0  ;;  %v4592_v38 = vpop.f32.mrb[103].mxu1 }
 0x289   : > { %v2858_v34 = vpop.f32.mrb[104].mxu0  ;;  %v2901_v40 = vpop.f32.mrb[104].mxu1 }
 0x28a   : > { %v2996_v41 = vadd.f32 %v2858_v34, %v2641_v63  ;;  %v2997_v35 = vadd.f32 %v2901_v40, %v2642_v10  ;;  %v4603_v31 = vpop.f32.mrb[105].mxu0  ;;  %v4615_v42 = vpop.f32.mrb[105].mxu1 }
 0x28b   : > { %v2861_v39 = vpop.f32.mrb[106].mxu0  ;;  %v2904_v43 = vpop.f32.mrb[106].mxu1 }
 0x28c   : > { %v4604_v44 = vpop.f32.mrb[107].mxu0  ;;  %v4616_v45 = vpop.f32.mrb[107].mxu1 }
 0x299   : > { %v2944_v46 = vpop.f32.mrb[108].mxu0  ;;  %v2987_v48 = vpop.f32.mrb[108].mxu1 }
 0x29a   : > { %v2998_v49 = vadd.f32 %v2944_v46, %v2643_v11  ;;  %v2999_v52 = vadd.f32 %v2987_v48, %v2644_v22  ;;  %v4627_v53 = vpop.f32.mrb[109].mxu0  ;;  %v4639_v47 = vpop.f32.mrb[109].mxu1 }
 0x29b   : > { %v2947_v55 = vpop.f32.mrb[110].mxu0  ;;  %v2990_v56 = vpop.f32.mrb[110].mxu1 }
 0x29c   : > { %v4628_v50 = vpop.f32.mrb[111].mxu0  ;;  %v4640_v57 = vpop.f32.mrb[111].mxu1 }
 0x2a9   : > { %v3084_v54 = vpop.f32.mrb[112].mxu0  ;;  %v3127_v58 = vpop.f32.mrb[112].mxu1 }
 0x2aa   : > { %v3348_v59 = vadd.f32 %v3084_v54, %v2993_v23  ;;  %v3349_v60 = vadd.f32 %v3127_v58, %v2994_v29  ;;  %v4651_v62 = vpop.f32.mrb[113].mxu0  ;;  %v4663_v61 = vpop.f32.mrb[113].mxu1 }
 0x2ab   : > { %v3087_v63 = vpop.f32.mrb[114].mxu0  ;;  %v3130_v2 = vpop.f32.mrb[114].mxu1 }
 0x2ac   : > { %v3362_v3 = vadd.f32 %v3651_v51, %v3348_v59  ;;  %v3363_v5 = vadd.f32 %v3651_v51, %v3349_v60  ;;  %v4652_v6 = vpop.f32.mrb[115].mxu0  ;;  %v4664_v0 = vpop.f32.mrb[115].mxu1 }
 0x2ae   : > { %v3369_v8 = vmax.f32 %v3362_v3, 0.0  ;;  %v3370_v9 = vmax.f32 %v3363_v5, 0.0 }
 0x2b0   : > { %3377 = vst.msk [vmem:[%s5861_s13] sm:$0x7f] %vm3376_vm2, %v3369_v8  ;;  %3378 = vst.msk [vmem:[%s5861_s13 + $0x8] sm:$0x7f] %vm3376_vm2, %v3370_v9 }
 0x2b9   : > { %v3170_v4 = vpop.f32.mrb[116].mxu0  ;;  %v3213_v10 = vpop.f32.mrb[116].mxu1 }
 0x2ba   : > { %v3350_v11 = vadd.f32 %v3170_v4, %v2995_v30  ;;  %v3351_v7 = vadd.f32 %v3213_v10, %v2996_v41  ;;  %v4675_v12 = vpop.f32.mrb[117].mxu0  ;;  %v4687_v14 = vpop.f32.mrb[117].mxu1 }
 0x2bb   : > { %v3173_v13 = vpop.f32.mrb[118].mxu0  ;;  %v3216_v16 = vpop.f32.mrb[118].mxu1 }
 0x2bc   : > { %v3364_v17 = vadd.f32 %v3651_v51, %v3350_v11  ;;  %v3365_v19 = vadd.f32 %v3651_v51, %v3351_v7  ;;  %v4676_v20 = vpop.f32.mrb[119].mxu0  ;;  %v4688_v22 = vpop.f32.mrb[119].mxu1 }
 0x2be   : > { %v3371_v23 = vmax.f32 %v3364_v17, 0.0  ;;  %v3372_v15 = vmax.f32 %v3365_v19, 0.0 }
 0x2c0   : > { %3379 = vst.msk [vmem:[%s5861_s13 + $0x10] sm:$0x7f] %vm3376_vm2, %v3371_v23  ;;  %3380 = vst.msk [vmem:[%s5861_s13 + $0x18] sm:$0x7f] %vm3376_vm2, %v3372_v15 }
 0x2c9   : > { %v3256_v18 = vpop.f32.mrb[120].mxu0  ;;  %v3299_v24 = vpop.f32.mrb[120].mxu1 }
 0x2ca   : > { %v3352_v25 = vadd.f32 %v3256_v18, %v2997_v35  ;;  %v3353_v21 = vadd.f32 %v3299_v24, %v2998_v49  ;;  %v4699_v26 = vpop.f32.mrb[121].mxu0  ;;  %v4711_v28 = vpop.f32.mrb[121].mxu1 }
 0x2cb   : > { %v3259_v27 = vpop.f32.mrb[122].mxu0  ;;  %v3302_v29 = vpop.f32.mrb[122].mxu1 }
 0x2cc   : > { %v3366_v30 = vadd.f32 %v3651_v51, %v3352_v25  ;;  %v3367_v32 = vadd.f32 %v3651_v51, %v3353_v21  ;;  %v4700_v33 = vpop.f32.mrb[123].mxu0  ;;  %v4712_v1 = vpop.f32.mrb[123].mxu1 }
 0x2ce   : > { %v3373_v36 = vmax.f32 %v3366_v30, 0.0  ;;  %v3374_v37 = vmax.f32 %v3367_v32, 0.0 }
 0x2d0   : > { %3381 = vst.msk [vmem:[%s5861_s13 + $0x20] sm:$0x7f] %vm3376_vm2, %v3373_v36  ;;  %3382 = vst.msk [vmem:[%s5861_s13 + $0x28] sm:$0x7f] %vm3376_vm2, %v3374_v37 }
 0x2d9   : > { %v3342_v38 = vpop.f32.mrb[124].mxu0 }
 0x2da   : > { %v3354_v34 = vadd.f32 %v3342_v38, %v2999_v52  ;;  %v4723_v40 = vpop.f32.mrb[125].mxu0 }
 0x2db   : > { %v3345_v41 = vpop.f32.mrb[126].mxu0 }
 0x2dc   : > { %v3368_v35 = vadd.f32 %v3651_v51, %v3354_v34  ;;  %v4724_v31 = vpop.f32.mrb[127].mxu0 }
 0x2de   : > { %v3375_v42 = vmax.f32 %v3368_v35, 0.0 }
 0x2e0   : > { %3383 = vst.msk [vmem:[%s5861_s13 + $0x30] sm:$0x7f] %vm3376_vm2, %v3375_v42 }
 0x2e1 PF: > { %s13_s12 = sadd.s32 1, %s4779_s12  }
 0x2e2   : > { %p10_p4 = scmp.ge.s32.totalorder %s13_s12, 6  }
 0x2e4   :  { %12 = sbr.rel (!%p10_p4) target bundleno = 1 (0x1), region = 72 }

// kernel: dqn_cnn_forward.7
= control target key start
LH: loop header
LB: loop body
LE: loop exit
PB: predicated region body
PF: predicated region fallthrough
CT: control target
= control target key end

     0   :  { %vm3085_vm0 = vmmov 0   ;;  %s3800_s0 = inlined_call_operand.vmem [shape: f32[4,3136], index: 0, kind: input, shape index: {}]   ;;  %s3801_s1 = inlined_call_operand.vmem [shape: bf16[3136,128], index: 1, kind: input, shape index: {}]   ;;  %s3802_s2 = inlined_call_operand.vmem [shape: f32[1,128], index: 2, kind: input, shape index: {}]   ;;  %s3803_s3 = inlined_call_operand.vmem [shape: bf16[128,6], index: 3, kind: input, shape index: {}]   ;;  %s3804_s4 = inlined_call_operand.vmem [shape: f32[1,6], index: 4, kind: input, shape index: {}]   ;;  %s3805_s5 = inlined_call_operand.hbm [shape: f32[4,6], index: 5, kind: output, shape index: {}]  }
   0x1   :  { %v2844_v0 = vld [vmem:[%s3801_s1 + $0x40] sm:$0xff]   ;;  %v2848_v4 = vld [vmem:[%s3801_s1 + $0x48] sm:$0xff]   ;;  %v2852_v8 = vld [vmem:[%s3801_s1 + $0x50] sm:$0xff]  }
   0x2   :  { %v2845_v1 = vld [vmem:[%s3801_s1] sm:$0xff]   ;;  %2531 = vmatprep.subr.bf16.mxu0 %v2844_v0  ;;  %v2849_v5 = vld [vmem:[%s3801_s1 + $0x8] sm:$0xff]   ;;  %v2853_v9 = vld [vmem:[%s3801_s1 + $0x10] sm:$0xff]  }
   0x3   :  { %v2846_v2 = vld [vmem:[%s3801_s1 + $0xc0] sm:$0xff]   ;;  %2532 = vmatpush3.bf16.msra.mxu0 %v2845_v1  ;;  %v2850_v6 = vld [vmem:[%s3801_s1 + $0xc8] sm:$0xff]   ;;  %v2854_v10 = vld [vmem:[%s3801_s1 + $0xd0] sm:$0xff]  }
   0x4   :  { %v2847_v3 = vld [vmem:[%s3801_s1 + $0x80] sm:$0xff]   ;;  %2553 = vmatprep.subr.bf16.mxu1 %v2846_v2  ;;  %2533 = vmatprep.subr.bf16.mxu0 %v2848_v4  ;;  %v2851_v7 = vld [vmem:[%s3801_s1 + $0x88] sm:$0xff]   ;;  %v2855_v11 = vld [vmem:[%s3801_s1 + $0x90] sm:$0xff]  }
   0x5   :  { %2554 = vmatpush3.bf16.msra.mxu1 %v2847_v3  ;;  %v2856_v12 = vld [vmem:[%s3801_s1 + $0x58] sm:$0xff]   ;;  %v2860_v16 = vld [vmem:[%s3801_s1 + $0x60] sm:$0xff]   ;;  %v2864_v20 = vld [vmem:[%s3801_s1 + $0x68] sm:$0xff]  }
   0x6   :  { %2555 = vmatprep.subr.bf16.mxu1 %v2850_v6  ;;  %v2857_v13 = vld [vmem:[%s3801_s1 + $0x18] sm:$0xff]   ;;  %v2861_v17 = vld [vmem:[%s3801_s1 + $0x20] sm:$0xff]   ;;  %v2865_v21 = vld [vmem:[%s3801_s1 + $0x28] sm:$0xff]  }
   0x7   :  { %2534 = vmatpush3.bf16.msra.mxu0 %v2849_v5  ;;  %v2858_v14 = vld [vmem:[%s3801_s1 + $0xd8] sm:$0xff]   ;;  %v2862_v18 = vld [vmem:[%s3801_s1 + $0xe0] sm:$0xff]   ;;  %v2866_v22 = vld [vmem:[%s3801_s1 + $0xe8] sm:$0xff]  }
   0x8   :  { %2535 = vmatprep.subr.bf16.mxu0 %v2852_v8  ;;  %v2859_v15 = vld [vmem:[%s3801_s1 + $0x98] sm:$0xff]   ;;  %v2863_v19 = vld [vmem:[%s3801_s1 + $0xa0] sm:$0xff]   ;;  %v2867_v23 = vld [vmem:[%s3801_s1 + $0xa8] sm:$0xff]  }
   0x9   :  { %2556 = vmatpush3.bf16.msra.mxu1 %v2851_v7  ;;  %v2868_v24 = vld [vmem:[%s3801_s1 + $0x70] sm:$0xff]   ;;  %v2872_v28 = vld [vmem:[%s3801_s1 + $0x78] sm:$0xff]   ;;  %v22_v31 = vld [vmem:[%s3800_s0] sm:$0xff] }
   0xa   :  { %2557 = vmatprep.subr.bf16.mxu1 %v2854_v10  ;;  %v2869_v25 = vld [vmem:[%s3801_s1 + $0x30] sm:$0xff]   ;;  %v2873_v29 = vld [vmem:[%s3801_s1 + $0x38] sm:$0xff]   ;;  %v47_v32 = vcombine.high %v22_v31, %v22_v31  ;;  %v71_v34 = vpack.c.bf16 %v22_v31, %v22_v31  ;;  %v2877_v35 = vld [vmem:[%s3801_s1 + $0x140] sm:$0xff]  }
   0xb   :  { %2536 = vmatpush3.bf16.msra.mxu0 %v2853_v9  ;;  %v2870_v26 = vld [vmem:[%s3801_s1 + $0xf0] sm:$0xff]   ;;  %v2874_v30 = vld [vmem:[%s3801_s1 + $0xf8] sm:$0xff]   ;;  %v23_v36 = vld [vmem:[%s3800_s0 + $0x8] sm:$0xff] }
   0xc   :  { %2537 = vmatprep.subr.bf16.mxu0 %v2856_v12  ;;  %v2871_v27 = vld [vmem:[%s3801_s1 + $0xb0] sm:$0xff]   ;;  %v2876_v33 = vld [vmem:[%s3801_s1 + $0xb8] sm:$0xff]   ;;  %v72_v37 = vpack.c.bf16 %v47_v32, %v47_v32  ;;  %v48_v38 = vcombine.high %v23_v36, %v23_v36  ;;  %v2879_v39 = vld [vmem:[%s3801_s1 + $0x100] sm:$0xff]   ;;  %v73_v40 = vpack.c.bf16 %v23_v36, %v23_v36 }
   0xd   :  { %2558 = vmatpush3.bf16.msra.mxu1 %v2855_v11  ;;  %v2880_v41 = vld [vmem:[%s3801_s1 + $0x1c0] sm:$0xff]   ;;  %v2882_v44 = vld [vmem:[%s3801_s1 + $0x148] sm:$0xff]   ;;  %v2886_v48 = vld [vmem:[%s3801_s1 + $0x150] sm:$0xff]  }
   0xe   :  { %2559 = vmatprep.subr.bf16.mxu1 %v2858_v14  ;;  %1707 = vmatprep.mubr.bf16.mxu0 %v72_v37  ;;  %v74_v42 = vpack.c.bf16 %v48_v38, %v48_v38  ;;  %v2881_v43 = vld [vmem:[%s3801_s1 + $0x180] sm:$0xff]   ;;  %v2883_v45 = vld [vmem:[%s3801_s1 + $0x108] sm:$0xff]   ;;  %v2887_v49 = vld [vmem:[%s3801_s1 + $0x110] sm:$0xff]  }
   0xf   :  { %2538 = vmatpush3.bf16.msra.mxu0 %v2857_v13  ;;  %v2884_v46 = vld [vmem:[%s3801_s1 + $0x1c8] sm:$0xff]   ;;  %v2888_v50 = vld [vmem:[%s3801_s1 + $0x1d0] sm:$0xff]   ;;  %v2890_v52 = vld [vmem:[%s3801_s1 + $0x158] sm:$0xff]  }
  0x10   :  { %2539 = vmatprep.subr.bf16.mxu0 %v2860_v16  ;;  %1747 = vmatprep.mubr.bf16.mxu1 %v74_v42  ;;  %v2885_v47 = vld [vmem:[%s3801_s1 + $0x188] sm:$0xff]   ;;  %v2889_v51 = vld [vmem:[%s3801_s1 + $0x190] sm:$0xff]   ;;  %v2891_v53 = vld [vmem:[%s3801_s1 + $0x118] sm:$0xff]  }
  0x11   :  { %2560 = vmatpush3.bf16.msra.mxu1 %v2859_v15  ;;  %v2892_v54 = vld [vmem:[%s3801_s1 + $0x1d8] sm:$0xff]   ;;  %v2894_v56 = vld [vmem:[%s3801_s1 + $0x160] sm:$0xff]   ;;  %v2898_v60 = vld [vmem:[%s3801_s1 + $0x168] sm:$0xff]  }
  0x12   :  { %2561 = vmatprep.subr.bf16.mxu1 %v2862_v18  ;;  %v2893_v55 = vld [vmem:[%s3801_s1 + $0x198] sm:$0xff]   ;;  %v2895_v57 = vld [vmem:[%s3801_s1 + $0x120] sm:$0xff]   ;;  %v2899_v61 = vld [vmem:[%s3801_s1 + $0x128] sm:$0xff]  }
  0x13   :  { %2540 = vmatpush3.bf16.msra.mxu0 %v2861_v17  ;;  %v2896_v58 = vld [vmem:[%s3801_s1 + $0x1e0] sm:$0xff]   ;;  %v2900_v62 = vld [vmem:[%s3801_s1 + $0x1e8] sm:$0xff]   ;;  %v2902_v0 = vld [vmem:[%s3801_s1 + $0x170] sm:$0xff]  }
  0x14   :  { %2541 = vmatprep.subr.bf16.mxu0 %v2864_v20  ;;  %v2897_v59 = vld [vmem:[%s3801_s1 + $0x1a0] sm:$0xff]   ;;  %v2901_v63 = vld [vmem:[%s3801_s1 + $0x1a8] sm:$0xff]   ;;  %v2903_v1 = vld [vmem:[%s3801_s1 + $0x130] sm:$0xff]  }
  0x15   :  { %2562 = vmatpush3.bf16.msra.mxu1 %v2863_v19  ;;  %v2904_v2 = vld [vmem:[%s3801_s1 + $0x1f0] sm:$0xff]   ;;  %v2906_v4 = vld [vmem:[%s3801_s1 + $0x178] sm:$0xff]   ;;  %v2911_v11 = vld [vmem:[%s3801_s1 + $0x240] sm:$0xff]  }
  0x16   :  { %2563 = vmatprep.subr.bf16.mxu1 %v2866_v22  ;;  %v2905_v3 = vld [vmem:[%s3801_s1 + $0x1b0] sm:$0xff]   ;;  %v2907_v5 = vld [vmem:[%s3801_s1 + $0x138] sm:$0xff]   ;;  %v2913_v15 = vld [vmem:[%s3801_s1 + $0x200] sm:$0xff]  }
  0x17   :  { %2542 = vmatpush3.bf16.msra.mxu0 %v2865_v21  ;;  %v2908_v6 = vld [vmem:[%s3801_s1 + $0x1f8] sm:$0xff]   ;;  %v24_v7 = vld [vmem:[%s3800_s0 + $0x10] sm:$0xff]  ;;  %v2914_v17 = vld [vmem:[%s3801_s1 + $0x2c0] sm:$0xff]  }
  0x18   :  { %2543 = vmatprep.subr.bf16.mxu0 %v2868_v24  ;;  %v49_v8 = vcombine.high %v24_v7, %v24_v7  ;;  %v2910_v9 = vld [vmem:[%s3801_s1 + $0x1b8] sm:$0xff]   ;;  %v75_v10 = vpack.c.bf16 %v24_v7, %v24_v7  ;;  %v2915_v19 = vld [vmem:[%s3801_s1 + $0x280] sm:$0xff]   ;;  %v2916_v20 = vld [vmem:[%s3801_s1 + $0x248] sm:$0xff]  }
  0x19   :  { %2564 = vmatpush3.bf16.msra.mxu1 %v2867_v23  ;;  %v25_v13 = vld [vmem:[%s3800_s0 + $0x18] sm:$0xff]  ;;  %v2917_v21 = vld [vmem:[%s3801_s1 + $0x208] sm:$0xff]   ;;  %v2920_v24 = vld [vmem:[%s3801_s1 + $0x250] sm:$0xff]  }
  0x1a   :  { %2565 = vmatprep.subr.bf16.mxu1 %v2870_v26  ;;  %v76_v12 = vpack.c.bf16 %v49_v8, %v49_v8  ;;  %v50_v14 = vcombine.high %v25_v13, %v25_v13  ;;  %v77_v16 = vpack.c.bf16 %v25_v13, %v25_v13  ;;  %v2918_v22 = vld [vmem:[%s3801_s1 + $0x2c8] sm:$0xff]   ;;  %v2922_v26 = vld [vmem:[%s3801_s1 + $0x2d0] sm:$0xff]   ;;  %v2927_v31 = vld [vmem:[%s3801_s1 + $0x298] sm:$0xff]  }
  0x1b   :  { %2544 = vmatpush3.bf16.msra.mxu0 %v2869_v25  ;;  %v2919_v23 = vld [vmem:[%s3801_s1 + $0x288] sm:$0xff]   ;;  %v2921_v25 = vld [vmem:[%s3801_s1 + $0x210] sm:$0xff]   ;;  %v2928_v32 = vld [vmem:[%s3801_s1 + $0x260] sm:$0xff]  }
  0x1c   :  { %2545 = vmatprep.subr.bf16.mxu0 %v2872_v28  ;;  %v78_v18 = vpack.c.bf16 %v50_v14, %v50_v14  ;;  %v2924_v28 = vld [vmem:[%s3801_s1 + $0x258] sm:$0xff]   ;;  %v2932_v36 = vld [vmem:[%s3801_s1 + $0x268] sm:$0xff]   ;;  %v2938_v42 = vld [vmem:[%s3801_s1 + $0x2f0] sm:$0xff]  }
  0x1d   :  { %2566 = vmatpush3.bf16.msra.mxu1 %v2871_v27  ;;  %v2923_v27 = vld [vmem:[%s3801_s1 + $0x290] sm:$0xff]   ;;  %v2933_v37 = vld [vmem:[%s3801_s1 + $0x228] sm:$0xff]   ;;  %v2961_v7 = vld [vmem:[%s3801_s1 + $0x398] sm:$0xff]  }
  0x1e   :  { %2567 = vmatprep.subr.bf16.mxu1 %v2874_v30  ;;  %v2926_v30 = vld [vmem:[%s3801_s1 + $0x2d8] sm:$0xff]   ;;  %v2934_v38 = vld [vmem:[%s3801_s1 + $0x2e8] sm:$0xff]   ;;  %v2962_v8 = vld [vmem:[%s3801_s1 + $0x360] sm:$0xff]  }
  0x1f   :  { %2546 = vmatpush3.bf16.msra.mxu0 %v2873_v29  ;;  %v2925_v29 = vld [vmem:[%s3801_s1 + $0x218] sm:$0xff]   ;;  %v2967_v13 = vld [vmem:[%s3801_s1 + $0x328] sm:$0xff]  }
  0x20   :  { %2575 = vmatprep.subr.bf16.mxu0 %v2877_v35  ;;  %v2931_v35 = vld [vmem:[%s3801_s1 + $0x2a0] sm:$0xff]   ;;  %v2968_v14 = vld [vmem:[%s3801_s1 + $0x3e8] sm:$0xff]  }
  0x21   :  { %2568 = vmatpush3.bf16.msra.mxu1 %v2876_v33  ;;  %v2929_v33 = vld [vmem:[%s3801_s1 + $0x220] sm:$0xff]  }
  0x22   :  { %1708 = vmatmul.mubr.bf16.vlgmr.msra.gmra.mrb[0].mxu0 %v71_v34  ;;  %2597 = vmatprep.subr.bf16.mxu1 %v2880_v41  ;;  %v2930_v34 = vld [vmem:[%s3801_s1 + $0x2e0] sm:$0xff]   ;;  %v2937_v41 = vld [vmem:[%s3801_s1 + $0x230] sm:$0xff]  }
  0x23   :  { %2576 = vmatpush3.bf16.msra.mxu0 %v2879_v39  ;;  %1787 = vmatprep.mubr.bf16.mxu0 %v76_v12  ;;  %v2935_v39 = vld [vmem:[%s3801_s1 + $0x2a8] sm:$0xff]  }
  0x24   :  { %1748 = vmatmul.mubr.bf16.vlgmr.msra.gmra.mrb[0].mxu1 %v73_v40  ;;  %2577 = vmatprep.subr.bf16.mxu0 %v2882_v44  ;;  %v2936_v40 = vld [vmem:[%s3801_s1 + $0x270] sm:$0xff]   ;;  %v2940_v44 = vld [vmem:[%s3801_s1 + $0x278] sm:$0xff]   ;;  %v2966_v12 = vld [vmem:[%s3801_s1 + $0x368] sm:$0xff]  }
  0x25   :  { %2598 = vmatpush3.bf16.msra.mxu1 %v2881_v43  ;;  %1827 = vmatprep.mubr.bf16.mxu1 %v78_v18  ;;  %v2939_v43 = vld [vmem:[%s3801_s1 + $0x2b0] sm:$0xff]  }
  0x26   :  { %2599 = vmatprep.subr.bf16.mxu1 %v2884_v46  ;;  %v2942_v46 = vld [vmem:[%s3801_s1 + $0x2f8] sm:$0xff]   ;;  %v2972_v18 = vld [vmem:[%s3801_s1 + $0x3f0] sm:$0xff]  }
  0x27   :  { %2578 = vmatpush3.bf16.msra.mxu0 %v2883_v45  ;;  %v2941_v45 = vld [vmem:[%s3801_s1 + $0x238] sm:$0xff]  }
  0x28   :  { %2579 = vmatprep.subr.bf16.mxu0 %v2886_v48 }
  0x29   :  { %2600 = vmatpush3.bf16.msra.mxu1 %v2885_v47  ;;  %v26_v47 = vld [vmem:[%s3800_s0 + $0x20] sm:$0xff] }
  0x2a   :  { %2601 = vmatprep.subr.bf16.mxu1 %v2888_v50  ;;  %v51_v48 = vcombine.high %v26_v47, %v26_v47  ;;  %v79_v50 = vpack.c.bf16 %v26_v47, %v26_v47  ;;  %v2995_v47 = vld [vmem:[%s3801_s1 + $0x498] sm:$0xff]  }
  0x2b   :  { %2580 = vmatpush3.bf16.msra.mxu0 %v2887_v49  ;;  %v2944_v49 = vld [vmem:[%s3801_s1 + $0x2b8] sm:$0xff]  }
  0x2c   :  { %2581 = vmatprep.subr.bf16.mxu0 %v2890_v52  ;;  %v27_v52 = vld [vmem:[%s3800_s0 + $0x28] sm:$0xff] }
  0x2d   :  { %2602 = vmatpush3.bf16.msra.mxu1 %v2889_v51  ;;  %v2945_v51 = vld [vmem:[%s3801_s1 + $0x340] sm:$0xff]  }
  0x2e   :  { %2603 = vmatprep.subr.bf16.mxu1 %v2892_v54  ;;  %v52_v54 = vcombine.high %v27_v52, %v27_v52 }
  0x2f   :  { %2582 = vmatpush3.bf16.msra.mxu0 %v2891_v53  ;;  %v80_v53 = vpack.c.bf16 %v51_v48, %v51_v48  ;;  %v2996_v48 = vld [vmem:[%s3801_s1 + $0x460] sm:$0xff]  }
  0x30   :  { %2583 = vmatprep.subr.bf16.mxu0 %v2894_v56  ;;  %v81_v56 = vpack.c.bf16 %v27_v52, %v27_v52  ;;  %v3000_v52 = vld [vmem:[%s3801_s1 + $0x468] sm:$0xff]  }
  0x31   :  { %2604 = vmatpush3.bf16.msra.mxu1 %v2893_v55  ;;  %v2947_v55 = vld [vmem:[%s3801_s1 + $0x300] sm:$0xff]  }
  0x32   :  { %2605 = vmatprep.subr.bf16.mxu1 %v2896_v58  ;;  %v82_v58 = vpack.c.bf16 %v52_v54, %v52_v54  ;;  %v3002_v54 = vld [vmem:[%s3801_s1 + $0x4e8] sm:$0xff]  }
  0x33   :  { %2584 = vmatpush3.bf16.msra.mxu0 %v2895_v57  ;;  %v2948_v57 = vld [vmem:[%s3801_s1 + $0x3c0] sm:$0xff]  }
  0x34   :  { %2585 = vmatprep.subr.bf16.mxu0 %v2898_v60  ;;  %v2950_v60 = vld [vmem:[%s3801_s1 + $0x348] sm:$0xff]  }
  0x35   :  { %2606 = vmatpush3.bf16.msra.mxu1 %v2897_v59  ;;  %v2949_v59 = vld [vmem:[%s3801_s1 + $0x380] sm:$0xff]  }
  0x36   :  { %2607 = vmatprep.subr.bf16.mxu1 %v2900_v62  ;;  %v2952_v62 = vld [vmem:[%s3801_s1 + $0x3c8] sm:$0xff]  }
  0x37   :  { %2586 = vmatpush3.bf16.msra.mxu0 %v2899_v61  ;;  %v2951_v61 = vld [vmem:[%s3801_s1 + $0x308] sm:$0xff]  }
  0x38   :  { %2587 = vmatprep.subr.bf16.mxu0 %v2902_v0  ;;  %v2954_v0 = vld [vmem:[%s3801_s1 + $0x350] sm:$0xff]  }
  0x39   :  { %2608 = vmatpush3.bf16.msra.mxu1 %v2901_v63  ;;  %v2953_v63 = vld [vmem:[%s3801_s1 + $0x388] sm:$0xff]  }
  0x3a   :  { %2609 = vmatprep.subr.bf16.mxu1 %v2904_v2  ;;  %v2956_v2 = vld [vmem:[%s3801_s1 + $0x3d0] sm:$0xff]  }
  0x3b   :  { %2588 = vmatpush3.bf16.msra.mxu0 %v2903_v1  ;;  %v2955_v1 = vld [vmem:[%s3801_s1 + $0x310] sm:$0xff]  }
  0x3c   :  { %2589 = vmatprep.subr.bf16.mxu0 %v2906_v4  ;;  %v2958_v4 = vld [vmem:[%s3801_s1 + $0x358] sm:$0xff]  }
  0x3d   :  { %2610 = vmatpush3.bf16.msra.mxu1 %v2905_v3  ;;  %v2957_v3 = vld [vmem:[%s3801_s1 + $0x390] sm:$0xff]  }
  0x3e   :  { %2611 = vmatprep.subr.bf16.mxu1 %v2908_v6  ;;  %v2960_v6 = vld [vmem:[%s3801_s1 + $0x3d8] sm:$0xff]  }
  0x3f   :  { %2590 = vmatpush3.bf16.msra.mxu0 %v2907_v5  ;;  %v2959_v5 = vld [vmem:[%s3801_s1 + $0x318] sm:$0xff]  }
  0x40   :  { %2619 = vmatprep.subr.bf16.mxu0 %v2911_v11  ;;  %v2965_v11 = vld [vmem:[%s3801_s1 + $0x3a0] sm:$0xff]  }
  0x41   :  { %2612 = vmatpush3.bf16.msra.mxu1 %v2910_v9  ;;  %v2963_v9 = vld [vmem:[%s3801_s1 + $0x320] sm:$0xff]  }
  0x42   :  { %1788 = vmatmul.mubr.bf16.vlgmr.msra.gmra.mrb[4].mxu0 %v75_v10  ;;  %2641 = vmatprep.subr.bf16.mxu1 %v2914_v17  ;;  %v2964_v10 = vld [vmem:[%s3801_s1 + $0x3e0] sm:$0xff]   ;;  %v2971_v17 = vld [vmem:[%s3801_s1 + $0x330] sm:$0xff]  }
  0x43   :  { %2620 = vmatpush3.bf16.msra.mxu0 %v2913_v15  ;;  %1867 = vmatprep.mubr.bf16.mxu0 %v80_v53  ;;  %v2969_v15 = vld [vmem:[%s3801_s1 + $0x3a8] sm:$0xff]  }
  0x44   :  { %1828 = vmatmul.mubr.bf16.vlgmr.msra.gmra.mrb[4].mxu1 %v77_v16  ;;  %2621 = vmatprep.subr.bf16.mxu0 %v2916_v20  ;;  %v2970_v16 = vld [vmem:[%s3801_s1 + $0x370] sm:$0xff]   ;;  %v2974_v20 = vld [vmem:[%s3801_s1 + $0x378] sm:$0xff]   ;;  %v3001_v53 = vld [vmem:[%s3801_s1 + $0x428] sm:$0xff]  }
  0x45   :  { %2642 = vmatpush3.bf16.msra.mxu1 %v2915_v19  ;;  %1907 = vmatprep.mubr.bf16.mxu1 %v82_v58  ;;  %v2973_v19 = vld [vmem:[%s3801_s1 + $0x3b0] sm:$0xff]  }
  0x46   :  { %2643 = vmatprep.subr.bf16.mxu1 %v2918_v22  ;;  %v2976_v22 = vld [vmem:[%s3801_s1 + $0x3f8] sm:$0xff]   ;;  %v3006_v58 = vld [vmem:[%s3801_s1 + $0x4f0] sm:$0xff]  }
  0x47   :  { %2622 = vmatpush3.bf16.msra.mxu0 %v2917_v21  ;;  %v2975_v21 = vld [vmem:[%s3801_s1 + $0x338] sm:$0xff]  }
  0x48   :  { %2623 = vmatprep.subr.bf16.mxu0 %v2920_v24 }
  0x49   :  { %2644 = vmatpush3.bf16.msra.mxu1 %v2919_v23  ;;  %v28_v23 = vld [vmem:[%s3800_s0 + $0x30] sm:$0xff] }
  0x4a   :  { %2645 = vmatprep.subr.bf16.mxu1 %v2922_v26  ;;  %v53_v24 = vcombine.high %v28_v23, %v28_v23  ;;  %v83_v26 = vpack.c.bf16 %v28_v23, %v28_v23  ;;  %v3029_v23 = vld [vmem:[%s3801_s1 + $0x598] sm:$0xff]  }
  0x4b   :  { %2624 = vmatpush3.bf16.msra.mxu0 %v2921_v25  ;;  %v2978_v25 = vld [vmem:[%s3801_s1 + $0x3b8] sm:$0xff]  }
  0x4c   :  { %2625 = vmatprep.subr.bf16.mxu0 %v2924_v28  ;;  %v29_v28 = vld [vmem:[%s3800_s0 + $0x38] sm:$0xff] }
  0x4d   :  { %2646 = vmatpush3.bf16.msra.mxu1 %v2923_v27  ;;  %v2979_v27 = vld [vmem:[%s3801_s1 + $0x440] sm:$0xff]  }
  0x4e   :  { %2647 = vmatprep.subr.bf16.mxu1 %v2926_v30  ;;  %v54_v30 = vcombine.high %v29_v28, %v29_v28 }
  0x4f   :  { %2626 = vmatpush3.bf16.msra.mxu0 %v2925_v29  ;;  %v84_v29 = vpack.c.bf16 %v53_v24, %v53_v24  ;;  %v3030_v24 = vld [vmem:[%s3801_s1 + $0x560] sm:$0xff]  }
  0x50   :  { %2627 = vmatprep.subr.bf16.mxu0 %v2928_v32  ;;  %v85_v32 = vpack.c.bf16 %v29_v28, %v29_v28  ;;  %v3034_v28 = vld [vmem:[%s3801_s1 + $0x568] sm:$0xff]  }
  0x51   :  { %2648 = vmatpush3.bf16.msra.mxu1 %v2927_v31  ;;  %v2981_v31 = vld [vmem:[%s3801_s1 + $0x400] sm:$0xff]  }
  0x52   :  { %2649 = vmatprep.subr.bf16.mxu1 %v2930_v34  ;;  %v86_v34 = vpack.c.bf16 %v54_v30, %v54_v30  ;;  %v3036_v30 = vld [vmem:[%s3801_s1 + $0x5e8] sm:$0xff]  }
  0x53   :  { %2628 = vmatpush3.bf16.msra.mxu0 %v2929_v33  ;;  %v2982_v33 = vld [vmem:[%s3801_s1 + $0x4c0] sm:$0xff]  }
  0x54   :  { %2629 = vmatprep.subr.bf16.mxu0 %v2932_v36  ;;  %v2984_v36 = vld [vmem:[%s3801_s1 + $0x448] sm:$0xff]  }
  0x55   :  { %2650 = vmatpush3.bf16.msra.mxu1 %v2931_v35  ;;  %v2983_v35 = vld [vmem:[%s3801_s1 + $0x480] sm:$0xff]  }
  0x56   :  { %2651 = vmatprep.subr.bf16.mxu1 %v2934_v38  ;;  %v2986_v38 = vld [vmem:[%s3801_s1 + $0x4c8] sm:$0xff]  }
  0x57   :  { %2630 = vmatpush3.bf16.msra.mxu0 %v2933_v37  ;;  %v2985_v37 = vld [vmem:[%s3801_s1 + $0x408] sm:$0xff]  }
  0x58   :  { %2631 = vmatprep.subr.bf16.mxu0 %v2936_v40  ;;  %v2988_v40 = vld [vmem:[%s3801_s1 + $0x450] sm:$0xff]  }
  0x59   :  { %2652 = vmatpush3.bf16.msra.mxu1 %v2935_v39  ;;  %v2987_v39 = vld [vmem:[%s3801_s1 + $0x488] sm:$0xff]  }
  0x5a   :  { %2653 = vmatprep.subr.bf16.mxu1 %v2938_v42  ;;  %v2990_v42 = vld [vmem:[%s3801_s1 + $0x4d0] sm:$0xff]  }
  0x5b   :  { %2632 = vmatpush3.bf16.msra.mxu0 %v2937_v41  ;;  %v2989_v41 = vld [vmem:[%s3801_s1 + $0x410] sm:$0xff]  }
  0x5c   :  { %2633 = vmatprep.subr.bf16.mxu0 %v2940_v44  ;;  %v2992_v44 = vld [vmem:[%s3801_s1 + $0x458] sm:$0xff]  }
  0x5d   :  { %2654 = vmatpush3.bf16.msra.mxu1 %v2939_v43  ;;  %v2991_v43 = vld [vmem:[%s3801_s1 + $0x490] sm:$0xff]  }
  0x5e   :  { %2655 = vmatprep.subr.bf16.mxu1 %v2942_v46  ;;  %v2994_v46 = vld [vmem:[%s3801_s1 + $0x4d8] sm:$0xff]  }
  0x5f   :  { %2634 = vmatpush3.bf16.msra.mxu0 %v2941_v45  ;;  %v2993_v45 = vld [vmem:[%s3801_s1 + $0x418] sm:$0xff]  }
  0x60   :  { %2663 = vmatprep.subr.bf16.mxu0 %v2945_v51  ;;  %v2999_v51 = vld [vmem:[%s3801_s1 + $0x4a0] sm:$0xff]  }
  0x61   :  { %2656 = vmatpush3.bf16.msra.mxu1 %v2944_v49  ;;  %v2997_v49 = vld [vmem:[%s3801_s1 + $0x420] sm:$0xff]  }
  0x62   :  { %1868 = vmatmul.mubr.bf16.vlgmr.msra.gmra.mrb[8].mxu0 %v79_v50  ;;  %2685 = vmatprep.subr.bf16.mxu1 %v2948_v57  ;;  %v2998_v50 = vld [vmem:[%s3801_s1 + $0x4e0] sm:$0xff]   ;;  %v3005_v57 = vld [vmem:[%s3801_s1 + $0x430] sm:$0xff]  }
  0x63   :  { %2664 = vmatpush3.bf16.msra.mxu0 %v2947_v55  ;;  %1947 = vmatprep.mubr.bf16.mxu0 %v84_v29  ;;  %v3003_v55 = vld [vmem:[%s3801_s1 + $0x4a8] sm:$0xff]  }
  0x64   :  { %1908 = vmatmul.mubr.bf16.vlgmr.msra.gmra.mrb[8].mxu1 %v81_v56  ;;  %2665 = vmatprep.subr.bf16.mxu0 %v2950_v60  ;;  %v3004_v56 = vld [vmem:[%s3801_s1 + $0x470] sm:$0xff]   ;;  %v3008_v60 = vld [vmem:[%s3801_s1 + $0x478] sm:$0xff]   ;;  %v3035_v29 = vld [vmem:[%s3801_s1 + $0x528] sm:$0xff]  }
  0x65   :  { %2686 = vmatpush3.bf16.msra.mxu1 %v2949_v59  ;;  %1987 = vmatprep.mubr.bf16.mxu1 %v86_v34  ;;  %v3007_v59 = vld [vmem:[%s3801_s1 + $0x4b0] sm:$0xff]  }
  0x66   :  { %2687 = vmatprep.subr.bf16.mxu1 %v2952_v62  ;;  %v3010_v62 = vld [vmem:[%s3801_s1 + $0x4f8] sm:$0xff]   ;;  %v3040_v34 = vld [vmem:[%s3801_s1 + $0x5f0] sm:$0xff]  }
  0x67   :  { %2666 = vmatpush3.bf16.msra.mxu0 %v2951_v61  ;;  %v3009_v61 = vld [vmem:[%s3801_s1 + $0x438] sm:$0xff]  }
  0x68   :  { %2667 = vmatprep.subr.bf16.mxu0 %v2954_v0 }
  0x69   :  { %2688 = vmatpush3.bf16.msra.mxu1 %v2953_v63  ;;  %v30_v63 = vld [vmem:[%s3800_s0 + $0x40] sm:$0xff] }
  0x6a   :  { %2689 = vmatprep.subr.bf16.mxu1 %v2956_v2  ;;  %v55_v0 = vcombine.high %v30_v63, %v30_v63  ;;  %v87_v2 = vpack.c.bf16 %v30_v63, %v30_v63 }
  0x6b   :  { %2668 = vmatpush3.bf16.msra.mxu0 %v2955_v1  ;;  %v3012_v1 = vld [vmem:[%s3801_s1 + $0x4b8] sm:$0xff]  }
  0x6c   :  { %2669 = vmatprep.subr.bf16.mxu0 %v2958_v4  ;;  %v88_v4 = vpack.c.bf16 %v55_v0, %v55_v0 }
  0x6d   :  { %2690 = vmatpush3.bf16.msra.mxu1 %v2957_v3  ;;  %v3013_v3 = vld [vmem:[%s3801_s1 + $0x540] sm:$0xff]  }
  0x6e   :  { %2691 = vmatprep.subr.bf16.mxu1 %v2960_v6 }
  0x6f   :  { %2670 = vmatpush3.bf16.msra.mxu0 %v2959_v5  ;;  %v31_v5 = vld [vmem:[%s3800_s0 + $0x48] sm:$0xff] }
  0x70   :  { %2671 = vmatprep.subr.bf16.mxu0 %v2962_v8  ;;  %v56_v6 = vcombine.high %v31_v5, %v31_v5  ;;  %v89_v8 = vpack.c.bf16 %v31_v5, %v31_v5 }
  0x71   :  { %2692 = vmatpush3.bf16.msra.mxu1 %v2961_v7  ;;  %v3015_v7 = vld [vmem:[%s3801_s1 + $0x500] sm:$0xff]  }
  0x72   :  { %2693 = vmatprep.subr.bf16.mxu1 %v2964_v10  ;;  %v90_v10 = vpack.c.bf16 %v56_v6, %v56_v6 }
  0x73   :  { %2672 = vmatpush3.bf16.msra.mxu0 %v2963_v9  ;;  %v3016_v9 = vld [vmem:[%s3801_s1 + $0x5c0] sm:$0xff]  }
  0x74   :  { %2673 = vmatprep.subr.bf16.mxu0 %v2966_v12  ;;  %v3018_v12 = vld [vmem:[%s3801_s1 + $0x548] sm:$0xff]  }
  0x75   :  { %2694 = vmatpush3.bf16.msra.mxu1 %v2965_v11  ;;  %v3017_v11 = vld [vmem:[%s3801_s1 + $0x580] sm:$0xff]  }
  0x76   :  { %2695 = vmatprep.subr.bf16.mxu1 %v2968_v14  ;;  %v3020_v14 = vld [vmem:[%s3801_s1 + $0x5c8] sm:$0xff]  }
  0x77   :  { %2674 = vmatpush3.bf16.msra.mxu0 %v2967_v13  ;;  %v3019_v13 = vld [vmem:[%s3801_s1 + $0x508] sm:$0xff]  }
  0x78   :  { %2675 = vmatprep.subr.bf16.mxu0 %v2970_v16  ;;  %v3022_v16 = vld [vmem:[%s3801_s1 + $0x550] sm:$0xff]  }
  0x79   :  { %2696 = vmatpush3.bf16.msra.mxu1 %v2969_v15  ;;  %v3021_v15 = vld [vmem:[%s3801_s1 + $0x588] sm:$0xff]  }
  0x7a   :  { %2697 = vmatprep.subr.bf16.mxu1 %v2972_v18  ;;  %v3024_v18 = vld [vmem:[%s3801_s1 + $0x5d0] sm:$0xff]  }
  0x7b   :  { %2676 = vmatpush3.bf16.msra.mxu0 %v2971_v17  ;;  %v3023_v17 = vld [vmem:[%s3801_s1 + $0x510] sm:$0xff]  }
  0x7c   :  { %2677 = vmatprep.subr.bf16.mxu0 %v2974_v20  ;;  %v3026_v20 = vld [vmem:[%s3801_s1 + $0x558] sm:$0xff]  }
  0x7d   :  { %2698 = vmatpush3.bf16.msra.mxu1 %v2973_v19  ;;  %v3025_v19 = vld [vmem:[%s3801_s1 + $0x590] sm:$0xff]  }
  0x7e   :  { %2699 = vmatprep.subr.bf16.mxu1 %v2976_v22  ;;  %v3028_v22 = vld [vmem:[%s3801_s1 + $0x5d8] sm:$0xff]  }
  0x7f   :  { %2678 = vmatpush3.bf16.msra.mxu0 %v2975_v21  ;;  %v3027_v21 = vld [vmem:[%s3801_s1 + $0x518] sm:$0xff]  }
  0x80   :  { %2707 = vmatprep.subr.bf16.mxu0 %v2979_v27  ;;  %v3033_v27 = vld [vmem:[%s3801_s1 + $0x5a0] sm:$0xff]  }
  0x81   :  { %2700 = vmatpush3.bf16.msra.mxu1 %v2978_v25  ;;  %v3031_v25 = vld [vmem:[%s3801_s1 + $0x520] sm:$0xff]  }
  0x82   :  { %1948 = vmatmul.mubr.bf16.vlgmr.msra.gmra.mrb[12].mxu0 %v83_v26  ;;  %2729 = vmatprep.subr.bf16.mxu1 %v2982_v33  ;;  %v3032_v26 = vld [vmem:[%s3801_s1 + $0x5e0] sm:$0xff]   ;;  %v3039_v33 = vld [vmem:[%s3801_s1 + $0x530] sm:$0xff]  }
  0x83   :  { %2708 = vmatpush3.bf16.msra.mxu0 %v2981_v31  ;;  %2027 = vmatprep.mubr.bf16.mxu0 %v88_v4  ;;  %v3037_v31 = vld [vmem:[%s3801_s1 + $0x5a8] sm:$0xff]  }
  0x84   :  { %1988 = vmatmul.mubr.bf16.vlgmr.msra.gmra.mrb[12].mxu1 %v85_v32  ;;  %2709 = vmatprep.subr.bf16.mxu0 %v2984_v36  ;;  %v3038_v32 = vld [vmem:[%s3801_s1 + $0x570] sm:$0xff]   ;;  %v3042_v36 = vld [vmem:[%s3801_s1 + $0x578] sm:$0xff]  }
  0x85   :  { %2730 = vmatpush3.bf16.msra.mxu1 %v2983_v35  ;;  %2067 = vmatprep.mubr.bf16.mxu1 %v90_v10  ;;  %v3041_v35 = vld [vmem:[%s3801_s1 + $0x5b0] sm:$0xff]  }
  0x86   :  { %2731 = vmatprep.subr.bf16.mxu1 %v2986_v38  ;;  %v3044_v38 = vld [vmem:[%s3801_s1 + $0x5f8] sm:$0xff]  }
  0x87   :  { %2710 = vmatpush3.bf16.msra.mxu0 %v2985_v37  ;;  %v3043_v37 = vld [vmem:[%s3801_s1 + $0x538] sm:$0xff]  }
  0x88   :  { %2711 = vmatprep.subr.bf16.mxu0 %v2988_v40 }
  0x89   :  { %2732 = vmatpush3.bf16.msra.mxu1 %v2987_v39  ;;  %v32_v39 = vld [vmem:[%s3800_s0 + $0x50] sm:$0xff] }
  0x8a   :  { %2733 = vmatprep.subr.bf16.mxu1 %v2990_v42  ;;  %v57_v40 = vcombine.high %v32_v39, %v32_v39  ;;  %v33_v42 = vld [vmem:[%s3800_s0 + $0x58] sm:$0xff] }
  0x8b   :  { %2712 = vmatpush3.bf16.msra.mxu0 %v2989_v41  ;;  %v3046_v41 = vld [vmem:[%s3801_s1 + $0x5b8] sm:$0xff]  }
  0x8c   :  { %2713 = vmatprep.subr.bf16.mxu0 %v2992_v44  ;;  %v58_v44 = vcombine.high %v33_v42, %v33_v42 }
  0x8d   :  { %2734 = vmatpush3.bf16.msra.mxu1 %v2991_v43  ;;  %v91_v43 = vpack.c.bf16 %v32_v39, %v32_v39 }
  0x8e   :  { %2735 = vmatprep.subr.bf16.mxu1 %v2994_v46  ;;  %v3084_v46 = vmov 0.0  }
  0x8f   :  { %2714 = vmatpush3.bf16.msra.mxu0 %v2993_v45  ;;  %v92_v45 = vpack.c.bf16 %v57_v40, %v57_v40 }
  0x90   :  { %2715 = vmatprep.subr.bf16.mxu0 %v2996_v48  ;;  %v93_v48 = vpack.c.bf16 %v33_v42, %v33_v42 }
  0x91   :  { %2736 = vmatpush3.bf16.msra.mxu1 %v2995_v47  ;;  %v3048_v47 = vld [vmem:[%s3801_s1 + $0x600] sm:$0xff]  }
  0x92   :  { %2737 = vmatprep.subr.bf16.mxu1 %v2998_v50  ;;  %v3049_v50 = vld [vmem:[%s3801_s1 + $0x608] sm:$0xff]  }
  0x93   :  { %2716 = vmatpush3.bf16.msra.mxu0 %v2997_v49  ;;  %v94_v49 = vpack.c.bf16 %v58_v44, %v58_v44 }
  0x94   :  { %2717 = vmatprep.subr.bf16.mxu0 %v3000_v52 }
  0x95   :  { %2738 = vmatpush3.bf16.msra.mxu1 %v2999_v51  ;;  %v3050_v51 = vld [vmem:[%s3801_s1 + $0x610] sm:$0xff]  }
  0x96   :  { %2739 = vmatprep.subr.bf16.mxu1 %v3002_v54 }
  0x97   :  { %2718 = vmatpush3.bf16.msra.mxu0 %v3001_v53 }
  0x98   :  { %2719 = vmatprep.subr.bf16.mxu0 %v3004_v56 }
  0x99   :  { %2740 = vmatpush3.bf16.msra.mxu1 %v3003_v55 }
  0x9a   :  { %2741 = vmatprep.subr.bf16.mxu1 %v3006_v58 }
  0x9b   :  { %2720 = vmatpush3.bf16.msra.mxu0 %v3005_v57 }
  0x9c   :  { %2721 = vmatprep.subr.bf16.mxu0 %v3008_v60 }
  0x9d   :  { %2742 = vmatpush3.bf16.msra.mxu1 %v3007_v59 }
  0x9e   :  { %2743 = vmatprep.subr.bf16.mxu1 %v3010_v62 }
  0x9f   :  { %2722 = vmatpush3.bf16.msra.mxu0 %v3009_v61 }
  0xa0   :  { %2751 = vmatprep.subr.bf16.mxu0 %v3013_v3 }
  0xa1   :  { %2744 = vmatpush3.bf16.msra.mxu1 %v3012_v1 }
  0xa2   :  { %2028 = vmatmul.mubr.bf16.vlgmr.msra.gmra.mrb[16].mxu0 %v87_v2  ;;  %2773 = vmatprep.subr.bf16.mxu1 %v3016_v9 }
  0xa3   :  { %2752 = vmatpush3.bf16.msra.mxu0 %v3015_v7  ;;  %2107 = vmatprep.mubr.bf16.mxu0 %v92_v45 }
  0xa4   :  { %2068 = vmatmul.mubr.bf16.vlgmr.msra.gmra.mrb[16].mxu1 %v89_v8  ;;  %2753 = vmatprep.subr.bf16.mxu0 %v3018_v12 }
  0xa5   :  { %2774 = vmatpush3.bf16.msra.mxu1 %v3017_v11  ;;  %2147 = vmatprep.mubr.bf16.mxu1 %v94_v49 }
  0xa6   :  { %2775 = vmatprep.subr.bf16.mxu1 %v3020_v14 }
  0xa7   :  { %2754 = vmatpush3.bf16.msra.mxu0 %v3019_v13 }
  0xa8   :  { %2755 = vmatprep.subr.bf16.mxu0 %v3022_v16 }
  0xa9   :  { %2776 = vmatpush3.bf16.msra.mxu1 %v3021_v15 }
  0xaa   :  { %2777 = vmatprep.subr.bf16.mxu1 %v3024_v18 }
  0xab   :  { %2756 = vmatpush3.bf16.msra.mxu0 %v3023_v17 }
  0xac   :  { %2757 = vmatprep.subr.bf16.mxu0 %v3026_v20 }
  0xad   :  { %2778 = vmatpush3.bf16.msra.mxu1 %v3025_v19 }
  0xae   :  { %2779 = vmatprep.subr.bf16.mxu1 %v3028_v22 }
  0xaf   :  { %2758 = vmatpush3.bf16.msra.mxu0 %v3027_v21 }
  0xb0   :  { %2759 = vmatprep.subr.bf16.mxu0 %v3030_v24 }
  0xb1   :  { %2780 = vmatpush3.bf16.msra.mxu1 %v3029_v23 }
  0xb2   :  { %2781 = vmatprep.subr.bf16.mxu1 %v3032_v26 }
  0xb3   :  { %2760 = vmatpush3.bf16.msra.mxu0 %v3031_v25 }
  0xb4   :  { %2761 = vmatprep.subr.bf16.mxu0 %v3034_v28 }
  0xb5   :  { %2782 = vmatpush3.bf16.msra.mxu1 %v3033_v27 }
  0xb6   :  { %2783 = vmatprep.subr.bf16.mxu1 %v3036_v30 }
  0xb7   :  { %2762 = vmatpush3.bf16.msra.mxu0 %v3035_v29 }
  0xb8   :  { %2763 = vmatprep.subr.bf16.mxu0 %v3038_v32 }
  0xb9   :  { %2784 = vmatpush3.bf16.msra.mxu1 %v3037_v31 }
  0xba   :  { %2785 = vmatprep.subr.bf16.mxu1 %v3040_v34 }
  0xbb   :  { %2764 = vmatpush3.bf16.msra.mxu0 %v3039_v33 }
  0xbc   :  { %2765 = vmatprep.subr.bf16.mxu0 %v3042_v36 }
  0xbd   :  { %2786 = vmatpush3.bf16.msra.mxu1 %v3041_v35 }
  0xbe   :  { %2787 = vmatprep.subr.bf16.mxu1 %v3044_v38 }
  0xbf   :  { %2766 = vmatpush3.bf16.msra.mxu0 %v3043_v37 }
  0xc0   :  { %2809 = vmatprep.subr.bf16.mxu0 %v3084_v46 }
  0xc1   :  { %2788 = vmatpush3.bf16.msra.mxu1 %v3046_v41 }
  0xc2   :  { %2108 = vmatmul.mubr.bf16.vlgmr.msra.gmra.mrb[20].mxu0 %v91_v43  ;;  %2821 = vmatprep.subr.bf16.mxu1 %v3084_v46 }
  0xc3   :  { %2810 = vmatpush3.bf16.msra.mxu0 %v3048_v47  ;;  %2817 = vmatprep.mubr.msk.bf16.mxu0 %vm3085_vm0, %v3084_v46 }
  0xc4   :  { %2148 = vmatmul.mubr.bf16.vlgmr.msra.gmra.mrb[20].mxu1 %v93_v48  ;;  %2811 = vmatprep.subr.bf16.mxu0 %v3084_v46 }
  0xc5   :  { %2837 = vmatprep.mubr.msk.bf16.mxu1 %vm3085_vm0, %v3084_v46 }
  0xc7   :  { %2812 = vmatpush3.bf16.msra.mxu0 %v3049_v50 }
  0xc8   :  { %2813 = vmatprep.subr.bf16.mxu0 %v3084_v46 }
  0xc9   :  { %10 = vsyncpa [#allocation3], 0  ;;  %v3051_v52 = vld [vmem:[%s3801_s1 + $0x618] sm:$0xff]   ;;  %v34_v53 = vld [vmem:[%s3800_s0 + $0x60] sm:$0xf]  ;;  %vm1671_vm1 = vcmask 523264  }
  0xca   :  { %v95_v54 = vpack.c.bf16 %v34_v53, %v34_v53  ;;  %v2324_v56 = vld [vmem:[%s3802_s2] ss:$0 sm:$0xff]  ;;  %v3053_v5 = vld [vmem:[%s3803_s3 + $0x8] sm:$0xff]   ;;  %v3054_v8 = vld [vmem:[%s3803_s3 + $0x10] sm:$0xff]   ;;  %s3086_s27 = smov [#allocation2]   ;;  %vm2308_vm2 = vcmask 44032  }
  0xcb   :  { %2814 = vmatpush3.bf16.msra.mxu0 %v3050_v51  ;;  %v3052_v4 = vld [vmem:[%s3803_s3] sm:$0xff]   ;;  %v3055_v17 = vld [vmem:[%s3803_s3 + $0x18] sm:$0xff]   ;;  %v3057_v21 = vld [vmem:[%s3803_s3 + $0x28] sm:$0xff]   ;;  %s2316_s28 = sshll.u32 %s3086_s27, 4  ;;  %s2317_s28 = int_to_ptr.vmem [resolvable:$true] %s2316_s28 }
  0xcc   :  { %2815 = vmatprep.subr.bf16.mxu0 %v3084_v46  ;;  %2822 = vmatpush3.bf16.msra.mxu1 %v3052_v4  ;;  %v3056_v20 = vld [vmem:[%s3803_s3 + $0x20] sm:$0xff]   ;;  %v3058_v22 = vld [vmem:[%s3803_s3 + $0x30] sm:$0xff]   ;;  %v3059_v23 = vld [vmem:[%s3803_s3 + $0x38] sm:$0xff]   ;;  %s3060_s29 = scalar_lea.vmem %s2317_s28, 64  ;;  %p3065_p1 = scmp.lt.s32.totalorder %s2317_s28, %s2317_s28 }
  0xcd   :  { %2823 = vmatprep.subr.bf16.mxu1 %v3084_v46  ;;  %p3061_p0 = scmp.ne.s32.totalorder %s2317_s28, %s3060_s29  ;;  %p3066_p2 = scmp.lt.s32.totalorder %s3060_s29, %s3060_s29 }
  0xcf   :  { %2816 = vmatpush3.bf16.msra.mxu0 %v3051_v52  ;;  %p3067_p3 = por %p3066_p2, %p3065_p1 }
  0xd0   :  { %2824 = vmatpush3.bf16.msra.mxu1 %v3053_v5 }
  0xd1   :  { %2825 = vmatprep.subr.bf16.mxu1 %v3084_v46  ;;  %p3068_p4 = pnand %p3067_p3, %p3061_p0 }
  0xd2   :  { %2818 = vmatmul.mubr.msk.bf16.vlgmr.msra.gmra.mrb[24].mxu0 %vm1671_vm1, %v95_v54 }
  0xd4   :  { %2826 = vmatpush3.bf16.msra.mxu1 %v3054_v8 }
  0xd5   :  { %2827 = vmatprep.subr.bf16.mxu1 %v3084_v46 }
  0xd8   :  { %2828 = vmatpush3.bf16.msra.mxu1 %v3055_v17 }
  0xd9   :  { %2829 = vmatprep.subr.bf16.mxu1 %v3084_v46 }
  0xdc   :  { %2830 = vmatpush3.bf16.msra.mxu1 %v3056_v20 }
  0xdd   :  { %2831 = vmatprep.subr.bf16.mxu1 %v3084_v46 }
  0xe0   :  { %2832 = vmatpush3.bf16.msra.mxu1 %v3057_v21 }
  0xe1   :  { %2833 = vmatprep.subr.bf16.mxu1 %v3084_v46 }
  0xe4   :  { %2834 = vmatpush3.bf16.msra.mxu1 %v3058_v22 }
  0xe5   :  { %2835 = vmatprep.subr.bf16.mxu1 %v3084_v46 }
  0xe8   :  { %2836 = vmatpush3.bf16.msra.mxu1 %v3059_v23 }
  0xf5   :  { %v2547_v55 = vpop.f32.mrb[0].mxu0 }
  0xf6   :  { %v2548_v57 = vpop.f32.mrb[1].mxu0 }
  0xf7   :  { %v2549_v58 = vadd.f32 %v2548_v57, %v2547_v55  ;;  %v2550_v59 = vpop.f32.mrb[2].mxu0  ;;  %v2569_v60 = vpop.f32.mrb[0].mxu1 }
  0xf8   :  { %v2551_v61 = vpop.f32.mrb[3].mxu0  ;;  %v2570_v62 = vpop.f32.mrb[1].mxu1 }
  0xf9   :  { %v1710_v63 = vadd.f32 %v2549_v58, %v2324_v56  ;;  %v2571_v0 = vadd.f32 %v2570_v62, %v2569_v60  ;;  %v2572_v1 = vpop.f32.mrb[2].mxu1 }
  0xfa   :  { %v2573_v2 = vpop.f32.mrb[3].mxu1 }
  0xfb   :  { %v1750_v3 = vadd.f32 %v2571_v0, %v1710_v63 }
 0x115   :  { %v2591_v6 = vpop.f32.mrb[4].mxu0 }
 0x116   :  { %v2592_v7 = vpop.f32.mrb[5].mxu0 }
 0x117   :  { %v2593_v9 = vadd.f32 %v2592_v7, %v2591_v6  ;;  %v2594_v10 = vpop.f32.mrb[6].mxu0  ;;  %v2613_v11 = vpop.f32.mrb[4].mxu1 }
 0x118   :  { %v2595_v12 = vpop.f32.mrb[7].mxu0  ;;  %v2614_v14 = vpop.f32.mrb[5].mxu1 }
 0x119   :  { %v1790_v13 = vadd.f32 %v2593_v9, %v1750_v3  ;;  %v2615_v15 = vadd.f32 %v2614_v14, %v2613_v11  ;;  %v2616_v16 = vpop.f32.mrb[6].mxu1 }
 0x11a   :  { %v2617_v18 = vpop.f32.mrb[7].mxu1 }
 0x11b   :  { %v1830_v19 = vadd.f32 %v2615_v15, %v1790_v13  ;;  %v2522_v15 = vld [vmem:[%s3804_s4] ss:$0 sm:$0xff] }
 0x135   :  { %v2635_v24 = vpop.f32.mrb[8].mxu0 }
 0x136   :  { %v2636_v25 = vpop.f32.mrb[9].mxu0 }
 0x137   :  { %v2637_v26 = vadd.f32 %v2636_v25, %v2635_v24  ;;  %v2638_v27 = vpop.f32.mrb[10].mxu0  ;;  %v2657_v28 = vpop.f32.mrb[8].mxu1 }
 0x138   :  { %v2639_v29 = vpop.f32.mrb[11].mxu0  ;;  %v2658_v30 = vpop.f32.mrb[9].mxu1 }
 0x139   :  { %v1870_v31 = vadd.f32 %v2637_v26, %v1830_v19  ;;  %v2659_v32 = vadd.f32 %v2658_v30, %v2657_v28  ;;  %v2660_v33 = vpop.f32.mrb[10].mxu1 }
 0x13a   :  { %v2661_v34 = vpop.f32.mrb[11].mxu1 }
 0x13b   :  { %v1910_v35 = vadd.f32 %v2659_v32, %v1870_v31 }
 0x155   :  { %v2679_v36 = vpop.f32.mrb[12].mxu0 }
 0x156   :  { %v2680_v37 = vpop.f32.mrb[13].mxu0 }
 0x157   :  { %v2681_v38 = vadd.f32 %v2680_v37, %v2679_v36  ;;  %v2682_v39 = vpop.f32.mrb[14].mxu0  ;;  %v2701_v40 = vpop.f32.mrb[12].mxu1 }
 0x158   :  { %v2683_v41 = vpop.f32.mrb[15].mxu0  ;;  %v2702_v42 = vpop.f32.mrb[13].mxu1 }
 0x159   :  { %v1950_v43 = vadd.f32 %v2681_v38, %v1910_v35  ;;  %v2703_v44 = vadd.f32 %v2702_v42, %v2701_v40  ;;  %v2704_v45 = vpop.f32.mrb[14].mxu1 }
 0x15a   :  { %v2705_v46 = vpop.f32.mrb[15].mxu1 }
 0x15b   :  { %v1990_v47 = vadd.f32 %v2703_v44, %v1950_v43 }
 0x175   :  { %v2723_v48 = vpop.f32.mrb[16].mxu0 }
 0x176   :  { %v2724_v49 = vpop.f32.mrb[17].mxu0 }
 0x177   :  { %v2725_v50 = vadd.f32 %v2724_v49, %v2723_v48  ;;  %v2726_v51 = vpop.f32.mrb[18].mxu0  ;;  %v2745_v52 = vpop.f32.mrb[16].mxu1 }
 0x178   :  { %v2727_v53 = vpop.f32.mrb[19].mxu0  ;;  %v2746_v55 = vpop.f32.mrb[17].mxu1 }
 0x179   :  { %v2030_v54 = vadd.f32 %v2725_v50, %v1990_v47  ;;  %v2747_v56 = vadd.f32 %v2746_v55, %v2745_v52  ;;  %v2748_v57 = vpop.f32.mrb[18].mxu1 }
 0x17a   :  { %v2749_v58 = vpop.f32.mrb[19].mxu1 }
 0x17b   :  { %v2070_v59 = vadd.f32 %v2747_v56, %v2030_v54 }
 0x195   :  { %v2767_v60 = vpop.f32.mrb[20].mxu0 }
 0x196   :  { %v2768_v61 = vpop.f32.mrb[21].mxu0 }
 0x197   :  { %v2769_v62 = vadd.f32 %v2768_v61, %v2767_v60  ;;  %v2770_v63 = vpop.f32.mrb[22].mxu0  ;;  %v2789_v0 = vpop.f32.mrb[20].mxu1 }
 0x198   :  { %v2771_v1 = vpop.f32.mrb[23].mxu0  ;;  %v2790_v2 = vpop.f32.mrb[21].mxu1 }
 0x199   :  { %v2110_v3 = vadd.f32 %v2769_v62, %v2070_v59  ;;  %v2791_v4 = vadd.f32 %v2790_v2, %v2789_v0  ;;  %v2792_v5 = vpop.f32.mrb[22].mxu1 }
 0x19a   :  { %v2793_v6 = vpop.f32.mrb[23].mxu1 }
 0x19b   :  { %v2150_v7 = vadd.f32 %v2791_v4, %v2110_v3 }
 0x1a5   :  { %v2189_v8 = vpop.f32.mrb[24].mxu0 }
 0x1a6   :  { %v2190_v9 = vadd.f32 %v2189_v8, %v2150_v7  ;;  %v2819_v10 = vpop.f32.mrb[25].mxu0 }
 0x1a7   :  { %v2192_v11 = vpop.f32.mrb[26].mxu0 }
 0x1a8   :  { %v2195_v12 = vmax.f32 %v2190_v9, 0.0  ;;  %v2820_v13 = vpop.f32.mrb[27].mxu0 }
 0x1aa   :  { %v2196_v14 = vpack.c.bf16 %v2195_v12, %v2195_v12 }
 0x1ac   :  { %2838 = vmatmul.mubr.bf16.vlgmr.msra.gmra.mrb[24].mxu1 %v2196_v14 }
 0x27f   :  { %v2302_v16 = vpop.f32.mrb[24].mxu1 }
 0x280   :  { %v2303_v17 = vadd.f32 %v2522_v15, %v2302_v16  ;;  %v2839_v18 = vpop.f32.mrb[25].mxu1 }
 0x281   :  { %v2305_v19 = vpop.f32.mrb[26].mxu1 }
 0x282   :  { %v2840_v20 = vpop.f32.mrb[27].mxu1  ;;  %2309 = vst.msk [vmem:[#allocation2] sm:$0xf] %vm2308_vm2, %v2303_v17 }
 0x283   :  { %3071 = shalt.err (!%p3068_p4)
}
 0x284   :  { %s3072_s4 = scalar_lea.hbm %s3805_s5, 64 }
 0x285   :  { %p3073_p5 = scmp.ne.s32.totalorder %s3805_s5, %s3072_s4  ;;  %p3076_p6 = scmp.lt.u32.totalorder %s3072_s4, %s3805_s5 }
 0x287   :  { %p3078_p7 = pnand %p3076_p6, %p3073_p5 }
 0x289   :  { %3081 = shalt.err (!%p3078_p7)
}
 0x28a   :  { %2319 = dma.vmem_to_hbm [thread:$0]  %s2317_s28, 64, %s3805_s5, [#allocation3]  }
 0x28b   :  { %3082 = dma.done.wait [#allocation3], 64  }
 0x28c   :  { %3083 = vsyncadd [#allocation3], 4294967232 }
 0x28d   :  { %2323 = vsyncpa [#allocation3], 1 }

</bundles_post_ra>
